<compile_context>
chip_gen: v6e
topology: v6e:2x2x1
jax: 0.10.0
libtpu: 0.0.40
codegen_flags: <defaults>
</compile_context>

<pallas_src>
import functools

import jax
import jax.numpy as jnp
from jax.experimental import pallas as pl
from jax.experimental.pallas import tpu as pltpu


def _round_up(a, b):
    return (a + b - 1) // b * b


def _vmem_limit_bytes():
    """Per-generation VMEM cap: ~3/4 of physical, never above 100 MiB."""
    try:
        info = pltpu.get_tpu_info()
        cap = getattr(info, "vmem_capacity_bytes", None)
        if cap:
            return int(min(cap * 3 // 4, 100 * 1024 * 1024))
    except Exception:
        pass
    return 48 * 1024 * 1024   # safe default (fits under v7x's 64 MiB)


_VMEM_LIMIT = _vmem_limit_bytes()

# Weight blocks at least this big get a 2nd parallel grid step (v7x 2-TC sharding).
_MEGACORE_SPLIT_WEIGHT_BYTES = 1 << 20


# ------------------------------------------------------------------
# Pallas kernels: single-K-pass matmul with fused BN-bias / residual / ReLU
# ------------------------------------------------------------------

def _mm_kernel(x_ref, w_ref, b_ref, o_ref, *, relu):
    y = jnp.dot(x_ref[...], w_ref[...], preferred_element_type=jnp.float32)
    y = y + b_ref[...]                                   # folded-BN bias (f32)
    if relu:
        y = jnp.maximum(y, 0.0)
    o_ref[...] = y.astype(o_ref.dtype)


def _mm_res_kernel(x_ref, w_ref, b_ref, r_ref, o_ref, *, relu):
    y = jnp.dot(x_ref[...], w_ref[...], preferred_element_type=jnp.float32)
    y = y + b_ref[...] + r_ref[...].astype(jnp.float32)  # fused residual add
    if relu:
        y = jnp.maximum(y, 0.0)
    o_ref[...] = y.astype(o_ref.dtype)


def _pick_tile(total, cap, mult):
    """Largest multiple of `mult` that divides `total` and is <= cap."""
    assert total % mult == 0
    t = max(min(cap, total) // mult * mult, mult)
    while total % t:
        t -= mult
    return t


def matmul_bn_act(x, w, b, n_out, residual=None, relu=False,
                  tm_max=256, tn_max=640):
    """(M, K) @ (Kp, Np) with folded-BN bias (+ residual) (+ ReLU) fused.

    Weights `w` (bf16) / bias `b` (f32, shape (1, Np)) are pre-padded at init.
    Activations are bf16; accumulation and epilogue math are f32; output bf16.
    K is never split -> one MXU pass per output tile, no accumulator scratch.
    """
    M, K = x.shape
    Kp, Np = w.shape
    assert K <= Kp

    Mp = _round_up(M, 8)
    if K != Kp or M != Mp:                     # pad activations only when needed
        x = jnp.pad(x, ((0, Mp - M), (0, Kp - K)))

    tm = _pick_tile(Mp, tm_max, 8)
    tn = _pick_tile(Np, tn_max, 128)

    # Give the v7x megacore a second parallel step only for heavy weight blocks.
    if (Mp // tm) * (Np // tn) == 1 and Kp * Np * 2 >= _MEGACORE_SPLIT_WEIGHT_BYTES:
        if tn % 256 == 0:
            tn //= 2
        elif tm % 16 == 0:
            tm //= 2

    grid = (Mp // tm, Np // tn)

    in_specs = [
        pl.BlockSpec((tm, Kp), lambda i, j: (i, 0)),
        pl.BlockSpec((Kp, tn), lambda i, j: (0, j)),
        pl.BlockSpec((1, tn), lambda i, j: (0, j)),
    ]
    operands = [x, w, b]

    if residual is not None:
        r = residual
        if r.shape != (Mp, Np):
            r = jnp.pad(r, ((0, Mp - r.shape[0]), (0, Np - r.shape[1])))
        in_specs.append(pl.BlockSpec((tm, tn), lambda i, j: (i, j)))
        operands.append(r)
        kernel = functools.partial(_mm_res_kernel, relu=relu)
    else:
        kernel = functools.partial(_mm_kernel, relu=relu)

    out = pl.pallas_call(
        kernel,
        out_shape=jax.ShapeDtypeStruct((Mp, Np), jnp.bfloat16),
        grid=grid,
        in_specs=in_specs,
        out_specs=pl.BlockSpec((tm, tn), lambda i, j: (i, j)),
        compiler_params=pltpu.CompilerParams(
            dimension_semantics=("parallel", "parallel"),
            vmem_limit_bytes=_VMEM_LIMIT),
    )(*operands)

    if Mp != M or Np != n_out:
        out = out[:M, :n_out]
    return out


# ------------------------------------------------------------------
# im2col / pooling glue (plain jnp, per perf review: avoid extra pallas launches)
# ------------------------------------------------------------------

def _window_slices(x, k, stride, pad, pad_value):
    B, H, W, C = x.shape
    if pad:
        x = jnp.pad(x, ((0, 0), (pad, pad), (pad, pad), (0, 0)),
                    constant_values=pad_value)
    OH = (H + 2 * pad - k) // stride + 1
    OW = (W + 2 * pad - k) // stride + 1
    slices = []
    for i in range(k):
        for j in range(k):
            slices.append(x[:, i:i + stride * OH:stride,
                            j:j + stride * OW:stride, :])
    return slices, OH, OW


def im2col(x, k, stride, pad):
    """NHWC -> (B*OH*OW, k*k*C) with (kh, kw, c) flattening order."""
    # TODO(synk): at realistic (224x224) inputs, replace this HBM-materialized
    # 9x patch tensor with a shifted-accumulation / conv_general_dilated_patches
    # formulation to cut activation traffic ~9x.
    B, _, _, C = x.shape
    slices, OH, OW = _window_slices(x, k, stride, pad, 0.0)
    patches = jnp.stack(slices, axis=3)            # (B, OH, OW, k*k, C)
    return patches.reshape(B * OH * OW, k * k * C), OH, OW


def maxpool_3x3_s2_p1(x):
    slices, OH, OW = _window_slices(x, 3, 2, 1, -jnp.inf)
    out = slices[0]
    for s in slices[1:]:
        out = jnp.maximum(out, s)
    return out


def global_avg_pool(x):
    """AdaptiveAvgPool2d(1).squeeze(-1).squeeze(-1) on NHWC input -> f32."""
    B, H, W, C = x.shape
    return jnp.mean(x.astype(jnp.float32).reshape(B, H * W, C), axis=1)


# ------------------------------------------------------------------
# Parameters: BN folded into conv weights (inference-exact), padded once at init
# ------------------------------------------------------------------

RESNET50_STAGES = (   # (num_blocks, planes, first_block_stride) for layer1..layer3
    (3, 64, 1),
    (4, 128, 2),
    (6, 256, 2),
)


def _conv_bn_folded(key, k, cin, cout, eps=1e-5):
    kw, kg, kb, km, kv = jax.random.split(key, 5)
    w = jax.random.normal(kw, (k * k * cin, cout), jnp.float32)
    w = w * (1.0 / (k * k * cin) ** 0.5)
    gamma = 1.0 + 0.1 * jax.random.normal(kg, (cout,), jnp.float32)
    beta = 0.1 * jax.random.normal(kb, (cout,), jnp.float32)
    mean = 0.1 * jax.random.normal(km, (cout,), jnp.float32)
    var = jnp.abs(jax.random.normal(kv, (cout,), jnp.float32)) + 0.5
    scale = gamma / jnp.sqrt(var + eps)
    return w * scale[None, :], beta - mean * scale


def _pad_wb(w, b):
    """Pad folded conv weight/bias to lane/sublane-friendly shapes (done at init)."""
    K, N = w.shape
    Kp, Np = _round_up(K, 128), _round_up(N, 128)
    wp = jnp.pad(w, ((0, Kp - K), (0, Np - N))).astype(jnp.bfloat16)
    bp = jnp.pad(b, (0, Np - N)).astype(jnp.float32).reshape(1, Np)
    return dict(w=wp, b=bp)


def _bottleneck_params(key, cin, planes, has_down):
    cout = planes * 4
    keys = jax.random.split(key, 4)
    w1, b1 = _conv_bn_folded(keys[0], 1, cin, planes)
    w2, b2 = _conv_bn_folded(keys[1], 3, planes, planes)
    w3, b3 = _conv_bn_folded(keys[2], 1, planes, cout)
    p = {"c2": _pad_wb(w2, b2), "c3": _pad_wb(w3, b3)}
    if has_down:
        # Fuse the 1x1 c1 conv and the 1x1 downsample conv into one matmul
        # (same input rows; weights concatenated along N).
        wd, bd = _conv_bn_folded(keys[3], 1, cin, cout)
        p["c1d"] = _pad_wb(jnp.concatenate([w1, wd], axis=1),
                           jnp.concatenate([b1, bd], axis=0))
    else:
        p["c1"] = _pad_wb(w1, b1)
    return p


def init_params(key):
    # TODO(synk): pretrained resnet50.tv_in1k weights cannot be fetched in-script;
    # random folded-BN weights are used (same as the class's pretrained=False path).
    keys = jax.random.split(key, 1 + len(RESNET50_STAGES))
    w0, b0 = _conv_bn_folded(keys[0], 7, 3, 64)
    params = dict(stem=_pad_wb(w0, b0), stages=[])
    cin = 64
    for si, (nblocks, planes, _) in enumerate(RESNET50_STAGES):
        skeys = jax.random.split(keys[1 + si], nblocks)
        blocks = []
        for bi in range(nblocks):
            blocks.append(_bottleneck_params(skeys[bi], cin, planes, bi == 0))
            cin = planes * 4
        params["stages"].append(blocks)
    return params


# ------------------------------------------------------------------
# Forward (TimmCNNEncoder.forward semantics)
# ------------------------------------------------------------------

def bottleneck_forward(x, p, stride, planes):
    B, H, W, C = x.shape
    cout = 4 * planes
    x2 = x.reshape(B * H * W, C)

    if "c1d" in p:
        # One matmul for [c1 | downsample]. ReLU only applies to the c1 half,
        # so it is applied on the slice (tiny elementwise op, fused by XLA).
        fused = matmul_bn_act(x2, p["c1d"]["w"], p["c1d"]["b"],
                              planes + cout, relu=False)
        h = jnp.maximum(fused[:, :planes], 0).reshape(B, H, W, planes)
        iden = fused[:, planes:].reshape(B, H, W, cout)
        if stride > 1:
            iden = iden[:, ::stride, ::stride, :]   # exact: 1x1 conv stride == subsample
        identity = iden.reshape(-1, cout)
    else:
        h = matmul_bn_act(x2, p["c1"]["w"], p["c1"]["b"], planes, relu=True)
        h = h.reshape(B, H, W, planes)
        identity = x2                               # stride == 1, C == cout here

    # 3x3 conv (stride) + BN + ReLU
    patches, OH, OW = im2col(h, 3, stride, 1)
    h2 = matmul_bn_act(patches, p["c2"]["w"], p["c2"]["b"], planes, relu=True)

    # 1x1 conv + BN, residual add + final ReLU fused into the matmul epilogue
    out = matmul_bn_act(h2, p["c3"]["w"], p["c3"]["b"], cout,
                        residual=identity, relu=True)
    return out.reshape(B, OH, OW, cout)


def timm_cnn_encoder_forward(x_nchw, params):
    """ResNet50 features_only out_indices=(3,) + AdaptiveAvgPool2d(1) -> (B, 1024)."""
    x = jnp.transpose(x_nchw, (0, 2, 3, 1)).astype(jnp.bfloat16)   # NCHW -> NHWC, bf16 once
    B = x.shape[0]

    # stem: conv7x7/2 + BN + ReLU, then maxpool 3x3/2
    patches, OH, OW = im2col(x, 7, 2, 3)
    h = matmul_bn_act(patches, params["stem"]["w"], params["stem"]["b"], 64, relu=True)
    h = h.reshape(B, OH, OW, 64)
    h = maxpool_3x3_s2_p1(h)

    # layer1..layer3
    for (nblocks, planes, stride), blocks in zip(RESNET50_STAGES, params["stages"]):
        for bi, bp in enumerate(blocks):
            h = bottleneck_forward(h, bp, stride if bi == 0 else 1, planes)

    # pool=True: AdaptiveAvgPool2d(1).squeeze(-1).squeeze(-1) -> f32 features
    return global_avg_pool(h)


# ------------------------------------------------------------------
# main
# ------------------------------------------------------------------

if __name__ == "__main__":
    key = jax.random.PRNGKey(0)
    k_param, k_x = jax.random.split(key)

    params = init_params(k_param)
    # NCHW pixel input (PyTorch convention), small spatial size (divisible by 16).
    x = jax.random.normal(k_x, (2, 3, 32, 32), jnp.float32)

    fwd = jax.jit(timm_cnn_encoder_forward)
    out = fwd(x, params)                      # (B, 1024) pooled layer3 features
    jax.block_until_ready(out)
    assert out.shape == (2, 1024) and out.dtype == jnp.float32
    print("KERNEL_OK")
</pallas_src>

<mosaic_0001>
module attributes {stable_mosaic.version = 11 : i64} {
  func.func @_mm_kernel(%arg0: i32, %arg1: i32, %arg2: memref<256x256xbf16, #tpu.memory_space<vmem>>, %arg3: memref<256x128xbf16, #tpu.memory_space<vmem>>, %arg4: memref<1x128xf32, #tpu.memory_space<vmem>>, %arg5: memref<256x128xbf16, #tpu.memory_space<vmem>>) attributes {dimension_semantics = [#tpu.dimension_semantics<parallel>, #tpu.dimension_semantics<parallel>], iteration_bounds = array<i64: 2, 1>, scalar_prefetch = 0 : i64, scratch_operands = 0 : i64, tpu.core_type = #tpu.core_type<tc>, window_params = [{transform_indices = @transform_0, window_bounds = array<i64: 256, 256>}, {transform_indices = @transform_1, window_bounds = array<i64: 256, 128>}, {transform_indices = @transform_2, window_bounds = array<i64: 1, 128>}, {transform_indices = @transform_3, window_bounds = array<i64: 256, 128>}]} {
    %c0 = arith.constant 0 : index
    %c0_0 = arith.constant 0 : index
    %0 = vector.load %arg2[%c0, %c0_0] : memref<256x256xbf16, #tpu.memory_space<vmem>>, vector<256x256xbf16>
    %c0_1 = arith.constant 0 : index
    %c0_2 = arith.constant 0 : index
    %1 = vector.load %arg3[%c0_1, %c0_2] : memref<256x128xbf16, #tpu.memory_space<vmem>>, vector<256x128xbf16>
    %cst = arith.constant dense<0.000000e+00> : vector<256x128xf32>
    %2 = tpu.matmul %0, %1, %cst {dimension_numbers = #tpu.dot_dimension_numbers<[1], [0], [0], [1], [0, 0, 1, 1], [], []>} : vector<256x256xbf16>, vector<256x128xbf16>, vector<256x128xf32> -> vector<256x128xf32>
    %c0_3 = arith.constant 0 : index
    %c0_4 = arith.constant 0 : index
    %3 = vector.load %arg4[%c0_3, %c0_4] : memref<1x128xf32, #tpu.memory_space<vmem>>, vector<1x128xf32>
    %4 = vector.broadcast %3 : vector<1x128xf32> to vector<256x128xf32>
    %5 = arith.addf %2, %4 : vector<256x128xf32>
    %cst_5 = arith.constant 0.000000e+00 : f32
    %6 = vector.broadcast %cst_5 : f32 to vector<256x128xf32>
    %7 = arith.maximumf %5, %6 : vector<256x128xf32>
    %8 = arith.truncf %7 : vector<256x128xf32> to vector<256x128xbf16>
    %c0_6 = arith.constant 0 : index
    %c0_7 = arith.constant 0 : index
    %9 = vector.load %arg5[%c0_6, %c0_7] : memref<256x128xbf16, #tpu.memory_space<vmem>>, vector<256x128xbf16>
    tpu.vector_store %arg5[%c0_6, %c0_7], %8 {strides = array<i32>} : memref<256x128xbf16, #tpu.memory_space<vmem>>, vector<256x128xbf16>,
    return
  }
  func.func @transform_0(%arg0: i32, %arg1: i32) -> (i32, i32) {
    %c0_i32 = arith.constant 0 : i32
    %c0_i32_0 = arith.constant 0 : i32
    return %arg0, %c0_i32 : i32, i32
  }
  func.func @transform_1(%arg0: i32, %arg1: i32) -> (i32, i32) {
    %c0_i32 = arith.constant 0 : i32
    %c0_i32_0 = arith.constant 0 : i32
    return %c0_i32, %arg1 : i32, i32
  }
  func.func @transform_2(%arg0: i32, %arg1: i32) -> (i32, i32) {
    %c0_i32 = arith.constant 0 : i32
    %c0_i32_0 = arith.constant 0 : i32
    return %c0_i32, %arg1 : i32, i32
  }
  func.func @transform_3(%arg0: i32, %arg1: i32) -> (i32, i32) {
    %c0_i32 = arith.constant 0 : i32
    return %arg0, %arg1 : i32, i32
  }
}

module attributes {stable_mosaic.version = 11 : i64} {
  func.func @_mm_kernel(%arg0: i32, %arg1: i32, %arg2: memref<128x128xbf16, #tpu.memory_space<vmem>>, %arg3: memref<128x384xbf16, #tpu.memory_space<vmem>>, %arg4: memref<1x384xf32, #tpu.memory_space<vmem>>, %arg5: memref<128x384xbf16, #tpu.memory_space<vmem>>) attributes {dimension_semantics = [#tpu.dimension_semantics<parallel>, #tpu.dimension_semantics<parallel>], iteration_bounds = array<i64: 1, 1>, scalar_prefetch = 0 : i64, scratch_operands = 0 : i64, tpu.core_type = #tpu.core_type<tc>, window_params = [{transform_indices = @transform_0, window_bounds = array<i64: 128, 128>}, {transform_indices = @transform_1, window_bounds = array<i64: 128, 384>}, {transform_indices = @transform_2, window_bounds = array<i64: 1, 384>}, {transform_indices = @transform_3, window_bounds = array<i64: 128, 384>}]} {
    %c0 = arith.constant 0 : index
    %c0_0 = arith.constant 0 : index
    %0 = vector.load %arg2[%c0, %c0_0] : memref<128x128xbf16, #tpu.memory_space<vmem>>, vector<128x128xbf16>
    %c0_1 = arith.constant 0 : index
    %c0_2 = arith.constant 0 : index
    %1 = vector.load %arg3[%c0_1, %c0_2] : memref<128x384xbf16, #tpu.memory_space<vmem>>, vector<128x384xbf16>
    %cst = arith.constant dense<0.000000e+00> : vector<128x384xf32>
    %2 = tpu.matmul %0, %1, %cst {dimension_numbers = #tpu.dot_dimension_numbers<[1], [0], [0], [1], [0, 0, 1, 1], [], []>} : vector<128x128xbf16>, vector<128x384xbf16>, vector<128x384xf32> -> vector<128x384xf32>
    %c0_3 = arith.constant 0 : index
    %c0_4 = arith.constant 0 : index
    %3 = vector.load %arg4[%c0_3, %c0_4] : memref<1x384xf32, #tpu.memory_space<vmem>>, vector<1x384xf32>
    %4 = vector.broadcast %3 : vector<1x384xf32> to vector<128x384xf32>
    %5 = arith.addf %2, %4 : vector<128x384xf32>
    %6 = arith.truncf %5 : vector<128x384xf32> to vector<128x384xbf16>
    %c0_5 = arith.constant 0 : index
    %c0_6 = arith.constant 0 : index
    %7 = vector.load %arg5[%c0_5, %c0_6] : memref<128x384xbf16, #tpu.memory_space<vmem>>, vector<128x384xbf16>
    tpu.vector_store %arg5[%c0_5, %c0_6], %6 {strides = array<i32>} : memref<128x384xbf16, #tpu.memory_space<vmem>>, vector<128x384xbf16>,
    return
  }
  func.func @transform_0(%arg0: i32, %arg1: i32) -> (i32, i32) {
    %c0_i32 = arith.constant 0 : i32
    %c0_i32_0 = arith.constant 0 : i32
    return %arg0, %c0_i32 : i32, i32
  }
  func.func @transform_1(%arg0: i32, %arg1: i32) -> (i32, i32) {
    %c0_i32 = arith.constant 0 : i32
    %c0_i32_0 = arith.constant 0 : i32
    return %c0_i32, %arg1 : i32, i32
  }
  func.func @transform_2(%arg0: i32, %arg1: i32) -> (i32, i32) {
    %c0_i32 = arith.constant 0 : i32
    %c0_i32_0 = arith.constant 0 : i32
    return %c0_i32, %arg1 : i32, i32
  }
  func.func @transform_3(%arg0: i32, %arg1: i32) -> (i32, i32) {
    %c0_i32 = arith.constant 0 : i32
    return %arg0, %arg1 : i32, i32
  }
}

module attributes {stable_mosaic.version = 11 : i64} {
  func.func @_mm_kernel(%arg0: i32, %arg1: i32, %arg2: memref<128x640xbf16, #tpu.memory_space<vmem>>, %arg3: memref<640x128xbf16, #tpu.memory_space<vmem>>, %arg4: memref<1x128xf32, #tpu.memory_space<vmem>>, %arg5: memref<128x128xbf16, #tpu.memory_space<vmem>>) attributes {dimension_semantics = [#tpu.dimension_semantics<parallel>, #tpu.dimension_semantics<parallel>], iteration_bounds = array<i64: 1, 1>, scalar_prefetch = 0 : i64, scratch_operands = 0 : i64, tpu.core_type = #tpu.core_type<tc>, window_params = [{transform_indices = @transform_0, window_bounds = array<i64: 128, 640>}, {transform_indices = @transform_1, window_bounds = array<i64: 640, 128>}, {transform_indices = @transform_2, window_bounds = array<i64: 1, 128>}, {transform_indices = @transform_3, window_bounds = array<i64: 128, 128>}]} {
    %c0 = arith.constant 0 : index
    %c0_0 = arith.constant 0 : index
    %0 = vector.load %arg2[%c0, %c0_0] : memref<128x640xbf16, #tpu.memory_space<vmem>>, vector<128x640xbf16>
    %c0_1 = arith.constant 0 : index
    %c0_2 = arith.constant 0 : index
    %1 = vector.load %arg3[%c0_1, %c0_2] : memref<640x128xbf16, #tpu.memory_space<vmem>>, vector<640x128xbf16>
    %cst = arith.constant dense<0.000000e+00> : vector<128x128xf32>
    %2 = tpu.matmul %0, %1, %cst {dimension_numbers = #tpu.dot_dimension_numbers<[1], [0], [0], [1], [0, 0, 1, 1], [], []>} : vector<128x640xbf16>, vector<640x128xbf16>, vector<128x128xf32> -> vector<128x128xf32>
    %c0_3 = arith.constant 0 : index
    %c0_4 = arith.constant 0 : index
    %3 = vector.load %arg4[%c0_3, %c0_4] : memref<1x128xf32, #tpu.memory_space<vmem>>, vector<1x128xf32>
    %4 = vector.broadcast %3 : vector<1x128xf32> to vector<128x128xf32>
    %5 = arith.addf %2, %4 : vector<128x128xf32>
    %cst_5 = arith.constant 0.000000e+00 : f32
    %6 = vector.broadcast %cst_5 : f32 to vector<128x128xf32>
    %7 = arith.maximumf %5, %6 : vector<128x128xf32>
    %8 = arith.truncf %7 : vector<128x128xf32> to vector<128x128xbf16>
    %c0_6 = arith.constant 0 : index
    %c0_7 = arith.constant 0 : index
    %9 = vector.load %arg5[%c0_6, %c0_7] : memref<128x128xbf16, #tpu.memory_space<vmem>>, vector<128x128xbf16>
    tpu.vector_store %arg5[%c0_6, %c0_7], %8 {strides = array<i32>} : memref<128x128xbf16, #tpu.memory_space<vmem>>, vector<128x128xbf16>,
    return
  }
  func.func @transform_0(%arg0: i32, %arg1: i32) -> (i32, i32) {
    %c0_i32 = arith.constant 0 : i32
    %c0_i32_0 = arith.constant 0 : i32
    return %arg0, %c0_i32 : i32, i32
  }
  func.func @transform_1(%arg0: i32, %arg1: i32) -> (i32, i32) {
    %c0_i32 = arith.constant 0 : i32
    %c0_i32_0 = arith.constant 0 : i32
    return %c0_i32, %arg1 : i32, i32
  }
  func.func @transform_2(%arg0: i32, %arg1: i32) -> (i32, i32) {
    %c0_i32 = arith.constant 0 : i32
    %c0_i32_0 = arith.constant 0 : i32
    return %c0_i32, %arg1 : i32, i32
  }
  func.func @transform_3(%arg0: i32, %arg1: i32) -> (i32, i32) {
    %c0_i32 = arith.constant 0 : i32
    return %arg0, %arg1 : i32, i32
  }
}

module attributes {stable_mosaic.version = 11 : i64} {
  func.func @_mm_kernel(%arg0: i32, %arg1: i32, %arg2: memref<128x256xbf16, #tpu.memory_space<vmem>>, %arg3: memref<256x128xbf16, #tpu.memory_space<vmem>>, %arg4: memref<1x128xf32, #tpu.memory_space<vmem>>, %arg5: memref<128x128xbf16, #tpu.memory_space<vmem>>) attributes {dimension_semantics = [#tpu.dimension_semantics<parallel>, #tpu.dimension_semantics<parallel>], iteration_bounds = array<i64: 1, 1>, scalar_prefetch = 0 : i64, scratch_operands = 0 : i64, tpu.core_type = #tpu.core_type<tc>, window_params = [{transform_indices = @transform_0, window_bounds = array<i64: 128, 256>}, {transform_indices = @transform_1, window_bounds = array<i64: 256, 128>}, {transform_indices = @transform_2, window_bounds = array<i64: 1, 128>}, {transform_indices = @transform_3, window_bounds = array<i64: 128, 128>}]} {
    %c0 = arith.constant 0 : index
    %c0_0 = arith.constant 0 : index
    %0 = vector.load %arg2[%c0, %c0_0] : memref<128x256xbf16, #tpu.memory_space<vmem>>, vector<128x256xbf16>
    %c0_1 = arith.constant 0 : index
    %c0_2 = arith.constant 0 : index
    %1 = vector.load %arg3[%c0_1, %c0_2] : memref<256x128xbf16, #tpu.memory_space<vmem>>, vector<256x128xbf16>
    %cst = arith.constant dense<0.000000e+00> : vector<128x128xf32>
    %2 = tpu.matmul %0, %1, %cst {dimension_numbers = #tpu.dot_dimension_numbers<[1], [0], [0], [1], [0, 0, 1, 1], [], []>} : vector<128x256xbf16>, vector<256x128xbf16>, vector<128x128xf32> -> vector<128x128xf32>
    %c0_3 = arith.constant 0 : index
    %c0_4 = arith.constant 0 : index
    %3 = vector.load %arg4[%c0_3, %c0_4] : memref<1x128xf32, #tpu.memory_space<vmem>>, vector<1x128xf32>
    %4 = vector.broadcast %3 : vector<1x128xf32> to vector<128x128xf32>
    %5 = arith.addf %2, %4 : vector<128x128xf32>
    %cst_5 = arith.constant 0.000000e+00 : f32
    %6 = vector.broadcast %cst_5 : f32 to vector<128x128xf32>
    %7 = arith.maximumf %5, %6 : vector<128x128xf32>
    %8 = arith.truncf %7 : vector<128x128xf32> to vector<128x128xbf16>
    %c0_6 = arith.constant 0 : index
    %c0_7 = arith.constant 0 : index
    %9 = vector.load %arg5[%c0_6, %c0_7] : memref<128x128xbf16, #tpu.memory_space<vmem>>, vector<128x128xbf16>
    tpu.vector_store %arg5[%c0_6, %c0_7], %8 {strides = array<i32>} : memref<128x128xbf16, #tpu.memory_space<vmem>>, vector<128x128xbf16>,
    return
  }
  func.func @transform_0(%arg0: i32, %arg1: i32) -> (i32, i32) {
    %c0_i32 = arith.constant 0 : i32
    %c0_i32_0 = arith.constant 0 : i32
    return %arg0, %c0_i32 : i32, i32
  }
  func.func @transform_1(%arg0: i32, %arg1: i32) -> (i32, i32) {
    %c0_i32 = arith.constant 0 : i32
    %c0_i32_0 = arith.constant 0 : i32
    return %c0_i32, %arg1 : i32, i32
  }
  func.func @transform_2(%arg0: i32, %arg1: i32) -> (i32, i32) {
    %c0_i32 = arith.constant 0 : i32
    %c0_i32_0 = arith.constant 0 : i32
    return %c0_i32, %arg1 : i32, i32
  }
  func.func @transform_3(%arg0: i32, %arg1: i32) -> (i32, i32) {
    %c0_i32 = arith.constant 0 : i32
    return %arg0, %arg1 : i32, i32
  }
}

module attributes {stable_mosaic.version = 11 : i64} {
  func.func @_mm_res_kernel(%arg0: i32, %arg1: i32, %arg2: memref<128x128xbf16, #tpu.memory_space<vmem>>, %arg3: memref<128x256xbf16, #tpu.memory_space<vmem>>, %arg4: memref<1x256xf32, #tpu.memory_space<vmem>>, %arg5: memref<128x256xbf16, #tpu.memory_space<vmem>>, %arg6: memref<128x256xbf16, #tpu.memory_space<vmem>>) attributes {dimension_semantics = [#tpu.dimension_semantics<parallel>, #tpu.dimension_semantics<parallel>], iteration_bounds = array<i64: 1, 1>, scalar_prefetch = 0 : i64, scratch_operands = 0 : i64, tpu.core_type = #tpu.core_type<tc>, window_params = [{transform_indices = @transform_0, window_bounds = array<i64: 128, 128>}, {transform_indices = @transform_1, window_bounds = array<i64: 128, 256>}, {transform_indices = @transform_2, window_bounds = array<i64: 1, 256>}, {transform_indices = @transform_3, window_bounds = array<i64: 128, 256>}, {transform_indices = @transform_4, window_bounds = array<i64: 128, 256>}]} {
    %c0 = arith.constant 0 : index
    %c0_0 = arith.constant 0 : index
    %0 = vector.load %arg2[%c0, %c0_0] : memref<128x128xbf16, #tpu.memory_space<vmem>>, vector<128x128xbf16>
    %c0_1 = arith.constant 0 : index
    %c0_2 = arith.constant 0 : index
    %1 = vector.load %arg3[%c0_1, %c0_2] : memref<128x256xbf16, #tpu.memory_space<vmem>>, vector<128x256xbf16>
    %cst = arith.constant dense<0.000000e+00> : vector<128x256xf32>
    %2 = tpu.matmul %0, %1, %cst {dimension_numbers = #tpu.dot_dimension_numbers<[1], [0], [0], [1], [0, 0, 1, 1], [], []>} : vector<128x128xbf16>, vector<128x256xbf16>, vector<128x256xf32> -> vector<128x256xf32>
    %c0_3 = arith.constant 0 : index
    %c0_4 = arith.constant 0 : index
    %3 = vector.load %arg4[%c0_3, %c0_4] : memref<1x256xf32, #tpu.memory_space<vmem>>, vector<1x256xf32>
    %4 = vector.broadcast %3 : vector<1x256xf32> to vector<128x256xf32>
    %5 = arith.addf %2, %4 : vector<128x256xf32>
    %c0_5 = arith.constant 0 : index
    %c0_6 = arith.constant 0 : index
    %6 = vector.load %arg5[%c0_5, %c0_6] : memref<128x256xbf16, #tpu.memory_space<vmem>>, vector<128x256xbf16>
    %7 = arith.extf %6 : vector<128x256xbf16> to vector<128x256xf32>
    %8 = arith.addf %5, %7 : vector<128x256xf32>
    %cst_7 = arith.constant 0.000000e+00 : f32
    %9 = vector.broadcast %cst_7 : f32 to vector<128x256xf32>
    %10 = arith.maximumf %8, %9 : vector<128x256xf32>
    %11 = arith.truncf %10 : vector<128x256xf32> to vector<128x256xbf16>
    %c0_8 = arith.constant 0 : index
    %c0_9 = arith.constant 0 : index
    %12 = vector.load %arg6[%c0_8, %c0_9] : memref<128x256xbf16, #tpu.memory_space<vmem>>, vector<128x256xbf16>
    tpu.vector_store %arg6[%c0_8, %c0_9], %11 {strides = array<i32>} : memref<128x256xbf16, #tpu.memory_space<vmem>>, vector<128x256xbf16>,
    return
  }
  func.func @transform_0(%arg0: i32, %arg1: i32) -> (i32, i32) {
    %c0_i32 = arith.constant 0 : i32
    %c0_i32_0 = arith.constant 0 : i32
    return %arg0, %c0_i32 : i32, i32
  }
  func.func @transform_1(%arg0: i32, %arg1: i32) -> (i32, i32) {
    %c0_i32 = arith.constant 0 : i32
    %c0_i32_0 = arith.constant 0 : i32
    return %c0_i32, %arg1 : i32, i32
  }
  func.func @transform_2(%arg0: i32, %arg1: i32) -> (i32, i32) {
    %c0_i32 = arith.constant 0 : i32
    %c0_i32_0 = arith.constant 0 : i32
    return %c0_i32, %arg1 : i32, i32
  }
  func.func @transform_3(%arg0: i32, %arg1: i32) -> (i32, i32) {
    %c0_i32 = arith.constant 0 : i32
    return %arg0, %arg1 : i32, i32
  }
  func.func @transform_4(%arg0: i32, %arg1: i32) -> (i32, i32) {
    %c0_i32 = arith.constant 0 : i32
    return %arg0, %arg1 : i32, i32
  }
}

module attributes {stable_mosaic.version = 11 : i64} {
  func.func @_mm_kernel(%arg0: i32, %arg1: i32, %arg2: memref<128x256xbf16, #tpu.memory_space<vmem>>, %arg3: memref<256x640xbf16, #tpu.memory_space<vmem>>, %arg4: memref<1x640xf32, #tpu.memory_space<vmem>>, %arg5: memref<128x640xbf16, #tpu.memory_space<vmem>>) attributes {dimension_semantics = [#tpu.dimension_semantics<parallel>, #tpu.dimension_semantics<parallel>], iteration_bounds = array<i64: 1, 1>, scalar_prefetch = 0 : i64, scratch_operands = 0 : i64, tpu.core_type = #tpu.core_type<tc>, window_params = [{transform_indices = @transform_0, window_bounds = array<i64: 128, 256>}, {transform_indices = @transform_1, window_bounds = array<i64: 256, 640>}, {transform_indices = @transform_2, window_bounds = array<i64: 1, 640>}, {transform_indices = @transform_3, window_bounds = array<i64: 128, 640>}]} {
    %c0 = arith.constant 0 : index
    %c0_0 = arith.constant 0 : index
    %0 = vector.load %arg2[%c0, %c0_0] : memref<128x256xbf16, #tpu.memory_space<vmem>>, vector<128x256xbf16>
    %c0_1 = arith.constant 0 : index
    %c0_2 = arith.constant 0 : index
    %1 = vector.load %arg3[%c0_1, %c0_2] : memref<256x640xbf16, #tpu.memory_space<vmem>>, vector<256x640xbf16>
    %cst = arith.constant dense<0.000000e+00> : vector<128x640xf32>
    %2 = tpu.matmul %0, %1, %cst {dimension_numbers = #tpu.dot_dimension_numbers<[1], [0], [0], [1], [0, 0, 1, 1], [], []>} : vector<128x256xbf16>, vector<256x640xbf16>, vector<128x640xf32> -> vector<128x640xf32>
    %c0_3 = arith.constant 0 : index
    %c0_4 = arith.constant 0 : index
    %3 = vector.load %arg4[%c0_3, %c0_4] : memref<1x640xf32, #tpu.memory_space<vmem>>, vector<1x640xf32>
    %4 = vector.broadcast %3 : vector<1x640xf32> to vector<128x640xf32>
    %5 = arith.addf %2, %4 : vector<128x640xf32>
    %6 = arith.truncf %5 : vector<128x640xf32> to vector<128x640xbf16>
    %c0_5 = arith.constant 0 : index
    %c0_6 = arith.constant 0 : index
    %7 = vector.load %arg5[%c0_5, %c0_6] : memref<128x640xbf16, #tpu.memory_space<vmem>>, vector<128x640xbf16>
    tpu.vector_store %arg5[%c0_5, %c0_6], %6 {strides = array<i32>} : memref<128x640xbf16, #tpu.memory_space<vmem>>, vector<128x640xbf16>,
    return
  }
  func.func @transform_0(%arg0: i32, %arg1: i32) -> (i32, i32) {
    %c0_i32 = arith.constant 0 : i32
    %c0_i32_0 = arith.constant 0 : i32
    return %arg0, %c0_i32 : i32, i32
  }
  func.func @transform_1(%arg0: i32, %arg1: i32) -> (i32, i32) {
    %c0_i32 = arith.constant 0 : i32
    %c0_i32_0 = arith.constant 0 : i32
    return %c0_i32, %arg1 : i32, i32
  }
  func.func @transform_2(%arg0: i32, %arg1: i32) -> (i32, i32) {
    %c0_i32 = arith.constant 0 : i32
    %c0_i32_0 = arith.constant 0 : i32
    return %c0_i32, %arg1 : i32, i32
  }
  func.func @transform_3(%arg0: i32, %arg1: i32) -> (i32, i32) {
    %c0_i32 = arith.constant 0 : i32
    return %arg0, %arg1 : i32, i32
  }
}

module attributes {stable_mosaic.version = 11 : i64} {
  func.func @_mm_kernel(%arg0: i32, %arg1: i32, %arg2: memref<32x1152xbf16, #tpu.memory_space<vmem>>, %arg3: memref<1152x128xbf16, #tpu.memory_space<vmem>>, %arg4: memref<1x128xf32, #tpu.memory_space<vmem>>, %arg5: memref<32x128xbf16, #tpu.memory_space<vmem>>) attributes {dimension_semantics = [#tpu.dimension_semantics<parallel>, #tpu.dimension_semantics<parallel>], iteration_bounds = array<i64: 1, 1>, scalar_prefetch = 0 : i64, scratch_operands = 0 : i64, tpu.core_type = #tpu.core_type<tc>, window_params = [{transform_indices = @transform_0, window_bounds = array<i64: 32, 1152>}, {transform_indices = @transform_1, window_bounds = array<i64: 1152, 128>}, {transform_indices = @transform_2, window_bounds = array<i64: 1, 128>}, {transform_indices = @transform_3, window_bounds = array<i64: 32, 128>}]} {
    %c0 = arith.constant 0 : index
    %c0_0 = arith.constant 0 : index
    %0 = vector.load %arg2[%c0, %c0_0] : memref<32x1152xbf16, #tpu.memory_space<vmem>>, vector<32x1152xbf16>
    %c0_1 = arith.constant 0 : index
    %c0_2 = arith.constant 0 : index
    %1 = vector.load %arg3[%c0_1, %c0_2] : memref<1152x128xbf16, #tpu.memory_space<vmem>>, vector<1152x128xbf16>
    %cst = arith.constant dense<0.000000e+00> : vector<32x128xf32>
    %2 = tpu.matmul %0, %1, %cst {dimension_numbers = #tpu.dot_dimension_numbers<[1], [0], [0], [1], [0, 0, 1, 1], [], []>} : vector<32x1152xbf16>, vector<1152x128xbf16>, vector<32x128xf32> -> vector<32x128xf32>
    %c0_3 = arith.constant 0 : index
    %c0_4 = arith.constant 0 : index
    %3 = vector.load %arg4[%c0_3, %c0_4] : memref<1x128xf32, #tpu.memory_space<vmem>>, vector<1x128xf32>
    %4 = vector.broadcast %3 : vector<1x128xf32> to vector<32x128xf32>
    %5 = arith.addf %2, %4 : vector<32x128xf32>
    %cst_5 = arith.constant 0.000000e+00 : f32
    %6 = vector.broadcast %cst_5 : f32 to vector<32x128xf32>
    %7 = arith.maximumf %5, %6 : vector<32x128xf32>
    %8 = arith.truncf %7 : vector<32x128xf32> to vector<32x128xbf16>
    %c0_6 = arith.constant 0 : index
    %c0_7 = arith.constant 0 : index
    %9 = vector.load %arg5[%c0_6, %c0_7] : memref<32x128xbf16, #tpu.memory_space<vmem>>, vector<32x128xbf16>
    tpu.vector_store %arg5[%c0_6, %c0_7], %8 {strides = array<i32>} : memref<32x128xbf16, #tpu.memory_space<vmem>>, vector<32x128xbf16>,
    return
  }
  func.func @transform_0(%arg0: i32, %arg1: i32) -> (i32, i32) {
    %c0_i32 = arith.constant 0 : i32
    %c0_i32_0 = arith.constant 0 : i32
    return %arg0, %c0_i32 : i32, i32
  }
  func.func @transform_1(%arg0: i32, %arg1: i32) -> (i32, i32) {
    %c0_i32 = arith.constant 0 : i32
    %c0_i32_0 = arith.constant 0 : i32
    return %c0_i32, %arg1 : i32, i32
  }
  func.func @transform_2(%arg0: i32, %arg1: i32) -> (i32, i32) {
    %c0_i32 = arith.constant 0 : i32
    %c0_i32_0 = arith.constant 0 : i32
    return %c0_i32, %arg1 : i32, i32
  }
  func.func @transform_3(%arg0: i32, %arg1: i32) -> (i32, i32) {
    %c0_i32 = arith.constant 0 : i32
    return %arg0, %arg1 : i32, i32
  }
}

module attributes {stable_mosaic.version = 11 : i64} {
  func.func @_mm_kernel(%arg0: i32, %arg1: i32, %arg2: memref<32x512xbf16, #tpu.memory_space<vmem>>, %arg3: memref<512x128xbf16, #tpu.memory_space<vmem>>, %arg4: memref<1x128xf32, #tpu.memory_space<vmem>>, %arg5: memref<32x128xbf16, #tpu.memory_space<vmem>>) attributes {dimension_semantics = [#tpu.dimension_semantics<parallel>, #tpu.dimension_semantics<parallel>], iteration_bounds = array<i64: 1, 1>, scalar_prefetch = 0 : i64, scratch_operands = 0 : i64, tpu.core_type = #tpu.core_type<tc>, window_params = [{transform_indices = @transform_0, window_bounds = array<i64: 32, 512>}, {transform_indices = @transform_1, window_bounds = array<i64: 512, 128>}, {transform_indices = @transform_2, window_bounds = array<i64: 1, 128>}, {transform_indices = @transform_3, window_bounds = array<i64: 32, 128>}]} {
    %c0 = arith.constant 0 : index
    %c0_0 = arith.constant 0 : index
    %0 = vector.load %arg2[%c0, %c0_0] : memref<32x512xbf16, #tpu.memory_space<vmem>>, vector<32x512xbf16>
    %c0_1 = arith.constant 0 : index
    %c0_2 = arith.constant 0 : index
    %1 = vector.load %arg3[%c0_1, %c0_2] : memref<512x128xbf16, #tpu.memory_space<vmem>>, vector<512x128xbf16>
    %cst = arith.constant dense<0.000000e+00> : vector<32x128xf32>
    %2 = tpu.matmul %0, %1, %cst {dimension_numbers = #tpu.dot_dimension_numbers<[1], [0], [0], [1], [0, 0, 1, 1], [], []>} : vector<32x512xbf16>, vector<512x128xbf16>, vector<32x128xf32> -> vector<32x128xf32>
    %c0_3 = arith.constant 0 : index
    %c0_4 = arith.constant 0 : index
    %3 = vector.load %arg4[%c0_3, %c0_4] : memref<1x128xf32, #tpu.memory_space<vmem>>, vector<1x128xf32>
    %4 = vector.broadcast %3 : vector<1x128xf32> to vector<32x128xf32>
    %5 = arith.addf %2, %4 : vector<32x128xf32>
    %cst_5 = arith.constant 0.000000e+00 : f32
    %6 = vector.broadcast %cst_5 : f32 to vector<32x128xf32>
    %7 = arith.maximumf %5, %6 : vector<32x128xf32>
    %8 = arith.truncf %7 : vector<32x128xf32> to vector<32x128xbf16>
    %c0_6 = arith.constant 0 : index
    %c0_7 = arith.constant 0 : index
    %9 = vector.load %arg5[%c0_6, %c0_7] : memref<32x128xbf16, #tpu.memory_space<vmem>>, vector<32x128xbf16>
    tpu.vector_store %arg5[%c0_6, %c0_7], %8 {strides = array<i32>} : memref<32x128xbf16, #tpu.memory_space<vmem>>, vector<32x128xbf16>,
    return
  }
  func.func @transform_0(%arg0: i32, %arg1: i32) -> (i32, i32) {
    %c0_i32 = arith.constant 0 : i32
    %c0_i32_0 = arith.constant 0 : i32
    return %arg0, %c0_i32 : i32, i32
  }
  func.func @transform_1(%arg0: i32, %arg1: i32) -> (i32, i32) {
    %c0_i32 = arith.constant 0 : i32
    %c0_i32_0 = arith.constant 0 : i32
    return %c0_i32, %arg1 : i32, i32
  }
  func.func @transform_2(%arg0: i32, %arg1: i32) -> (i32, i32) {
    %c0_i32 = arith.constant 0 : i32
    %c0_i32_0 = arith.constant 0 : i32
    return %c0_i32, %arg1 : i32, i32
  }
  func.func @transform_3(%arg0: i32, %arg1: i32) -> (i32, i32) {
    %c0_i32 = arith.constant 0 : i32
    return %arg0, %arg1 : i32, i32
  }
}

module attributes {stable_mosaic.version = 11 : i64} {
  func.func @_mm_res_kernel(%arg0: i32, %arg1: i32, %arg2: memref<32x128xbf16, #tpu.memory_space<vmem>>, %arg3: memref<128x512xbf16, #tpu.memory_space<vmem>>, %arg4: memref<1x512xf32, #tpu.memory_space<vmem>>, %arg5: memref<32x512xbf16, #tpu.memory_space<vmem>>, %arg6: memref<32x512xbf16, #tpu.memory_space<vmem>>) attributes {dimension_semantics = [#tpu.dimension_semantics<parallel>, #tpu.dimension_semantics<parallel>], iteration_bounds = array<i64: 1, 1>, scalar_prefetch = 0 : i64, scratch_operands = 0 : i64, tpu.core_type = #tpu.core_type<tc>, window_params = [{transform_indices = @transform_0, window_bounds = array<i64: 32, 128>}, {transform_indices = @transform_1, window_bounds = array<i64: 128, 512>}, {transform_indices = @transform_2, window_bounds = array<i64: 1, 512>}, {transform_indices = @transform_3, window_bounds = array<i64: 32, 512>}, {transform_indices = @transform_4, window_bounds = array<i64: 32, 512>}]} {
    %c0 = arith.constant 0 : index
    %c0_0 = arith.constant 0 : index
    %0 = vector.load %arg2[%c0, %c0_0] : memref<32x128xbf16, #tpu.memory_space<vmem>>, vector<32x128xbf16>
    %c0_1 = arith.constant 0 : index
    %c0_2 = arith.constant 0 : index
    %1 = vector.load %arg3[%c0_1, %c0_2] : memref<128x512xbf16, #tpu.memory_space<vmem>>, vector<128x512xbf16>
    %cst = arith.constant dense<0.000000e+00> : vector<32x512xf32>
    %2 = tpu.matmul %0, %1, %cst {dimension_numbers = #tpu.dot_dimension_numbers<[1], [0], [0], [1], [0, 0, 1, 1], [], []>} : vector<32x128xbf16>, vector<128x512xbf16>, vector<32x512xf32> -> vector<32x512xf32>
    %c0_3 = arith.constant 0 : index
    %c0_4 = arith.constant 0 : index
    %3 = vector.load %arg4[%c0_3, %c0_4] : memref<1x512xf32, #tpu.memory_space<vmem>>, vector<1x512xf32>
    %4 = vector.broadcast %3 : vector<1x512xf32> to vector<32x512xf32>
    %5 = arith.addf %2, %4 : vector<32x512xf32>
    %c0_5 = arith.constant 0 : index
    %c0_6 = arith.constant 0 : index
    %6 = vector.load %arg5[%c0_5, %c0_6] : memref<32x512xbf16, #tpu.memory_space<vmem>>, vector<32x512xbf16>
    %7 = arith.extf %6 : vector<32x512xbf16> to vector<32x512xf32>
    %8 = arith.addf %5, %7 : vector<32x512xf32>
    %cst_7 = arith.constant 0.000000e+00 : f32
    %9 = vector.broadcast %cst_7 : f32 to vector<32x512xf32>
    %10 = arith.maximumf %8, %9 : vector<32x512xf32>
    %11 = arith.truncf %10 : vector<32x512xf32> to vector<32x512xbf16>
    %c0_8 = arith.constant 0 : index
    %c0_9 = arith.constant 0 : index
    %12 = vector.load %arg6[%c0_8, %c0_9] : memref<32x512xbf16, #tpu.memory_space<vmem>>, vector<32x512xbf16>
    tpu.vector_store %arg6[%c0_8, %c0_9], %11 {strides = array<i32>} : memref<32x512xbf16, #tpu.memory_space<vmem>>, vector<32x512xbf16>,
    return
  }
  func.func @transform_0(%arg0: i32, %arg1: i32) -> (i32, i32) {
    %c0_i32 = arith.constant 0 : i32
    %c0_i32_0 = arith.constant 0 : i32
    return %arg0, %c0_i32 : i32, i32
  }
  func.func @transform_1(%arg0: i32, %arg1: i32) -> (i32, i32) {
    %c0_i32 = arith.constant 0 : i32
    %c0_i32_0 = arith.constant 0 : i32
    return %c0_i32, %arg1 : i32, i32
  }
  func.func @transform_2(%arg0: i32, %arg1: i32) -> (i32, i32) {
    %c0_i32 = arith.constant 0 : i32
    %c0_i32_0 = arith.constant 0 : i32
    return %c0_i32, %arg1 : i32, i32
  }
  func.func @transform_3(%arg0: i32, %arg1: i32) -> (i32, i32) {
    %c0_i32 = arith.constant 0 : i32
    return %arg0, %arg1 : i32, i32
  }
  func.func @transform_4(%arg0: i32, %arg1: i32) -> (i32, i32) {
    %c0_i32 = arith.constant 0 : i32
    return %arg0, %arg1 : i32, i32
  }
}

module attributes {stable_mosaic.version = 11 : i64} {
  func.func @_mm_kernel(%arg0: i32, %arg1: i32, %arg2: memref<32x512xbf16, #tpu.memory_space<vmem>>, %arg3: memref<512x640xbf16, #tpu.memory_space<vmem>>, %arg4: memref<1x640xf32, #tpu.memory_space<vmem>>, %arg5: memref<32x640xbf16, #tpu.memory_space<vmem>>) attributes {dimension_semantics = [#tpu.dimension_semantics<parallel>, #tpu.dimension_semantics<parallel>], iteration_bounds = array<i64: 1, 2>, scalar_prefetch = 0 : i64, scratch_operands = 0 : i64, tpu.core_type = #tpu.core_type<tc>, window_params = [{transform_indices = @transform_0, window_bounds = array<i64: 32, 512>}, {transform_indices = @transform_1, window_bounds = array<i64: 512, 640>}, {transform_indices = @transform_2, window_bounds = array<i64: 1, 640>}, {transform_indices = @transform_3, window_bounds = array<i64: 32, 640>}]} {
    %c0 = arith.constant 0 : index
    %c0_0 = arith.constant 0 : index
    %0 = vector.load %arg2[%c0, %c0_0] : memref<32x512xbf16, #tpu.memory_space<vmem>>, vector<32x512xbf16>
    %c0_1 = arith.constant 0 : index
    %c0_2 = arith.constant 0 : index
    %1 = vector.load %arg3[%c0_1, %c0_2] : memref<512x640xbf16, #tpu.memory_space<vmem>>, vector<512x640xbf16>
    %cst = arith.constant dense<0.000000e+00> : vector<32x640xf32>
    %2 = tpu.matmul %0, %1, %cst {dimension_numbers = #tpu.dot_dimension_numbers<[1], [0], [0], [1], [0, 0, 1, 1], [], []>} : vector<32x512xbf16>, vector<512x640xbf16>, vector<32x640xf32> -> vector<32x640xf32>
    %c0_3 = arith.constant 0 : index
    %c0_4 = arith.constant 0 : index
    %3 = vector.load %arg4[%c0_3, %c0_4] : memref<1x640xf32, #tpu.memory_space<vmem>>, vector<1x640xf32>
    %4 = vector.broadcast %3 : vector<1x640xf32> to vector<32x640xf32>
    %5 = arith.addf %2, %4 : vector<32x640xf32>
    %6 = arith.truncf %5 : vector<32x640xf32> to vector<32x640xbf16>
    %c0_5 = arith.constant 0 : index
    %c0_6 = arith.constant 0 : index
    %7 = vector.load %arg5[%c0_5, %c0_6] : memref<32x640xbf16, #tpu.memory_space<vmem>>, vector<32x640xbf16>
    tpu.vector_store %arg5[%c0_5, %c0_6], %6 {strides = array<i32>} : memref<32x640xbf16, #tpu.memory_space<vmem>>, vector<32x640xbf16>,
    return
  }
  func.func @transform_0(%arg0: i32, %arg1: i32) -> (i32, i32) {
    %c0_i32 = arith.constant 0 : i32
    %c0_i32_0 = arith.constant 0 : i32
    return %arg0, %c0_i32 : i32, i32
  }
  func.func @transform_1(%arg0: i32, %arg1: i32) -> (i32, i32) {
    %c0_i32 = arith.constant 0 : i32
    %c0_i32_0 = arith.constant 0 : i32
    return %c0_i32, %arg1 : i32, i32
  }
  func.func @transform_2(%arg0: i32, %arg1: i32) -> (i32, i32) {
    %c0_i32 = arith.constant 0 : i32
    %c0_i32_0 = arith.constant 0 : i32
    return %c0_i32, %arg1 : i32, i32
  }
  func.func @transform_3(%arg0: i32, %arg1: i32) -> (i32, i32) {
    %c0_i32 = arith.constant 0 : i32
    return %arg0, %arg1 : i32, i32
  }
}

module attributes {stable_mosaic.version = 11 : i64} {
  func.func @_mm_kernel(%arg0: i32, %arg1: i32, %arg2: memref<8x2304xbf16, #tpu.memory_space<vmem>>, %arg3: memref<2304x128xbf16, #tpu.memory_space<vmem>>, %arg4: memref<1x128xf32, #tpu.memory_space<vmem>>, %arg5: memref<8x128xbf16, #tpu.memory_space<vmem>>) attributes {dimension_semantics = [#tpu.dimension_semantics<parallel>, #tpu.dimension_semantics<parallel>], iteration_bounds = array<i64: 1, 2>, scalar_prefetch = 0 : i64, scratch_operands = 0 : i64, tpu.core_type = #tpu.core_type<tc>, window_params = [{transform_indices = @transform_0, window_bounds = array<i64: 8, 2304>}, {transform_indices = @transform_1, window_bounds = array<i64: 2304, 128>}, {transform_indices = @transform_2, window_bounds = array<i64: 1, 128>}, {transform_indices = @transform_3, window_bounds = array<i64: 8, 128>}]} {
    %c0 = arith.constant 0 : index
    %c0_0 = arith.constant 0 : index
    %0 = vector.load %arg2[%c0, %c0_0] : memref<8x2304xbf16, #tpu.memory_space<vmem>>, vector<8x2304xbf16>
    %c0_1 = arith.constant 0 : index
    %c0_2 = arith.constant 0 : index
    %1 = vector.load %arg3[%c0_1, %c0_2] : memref<2304x128xbf16, #tpu.memory_space<vmem>>, vector<2304x128xbf16>
    %cst = arith.constant dense<0.000000e+00> : vector<8x128xf32>
    %2 = tpu.matmul %0, %1, %cst {dimension_numbers = #tpu.dot_dimension_numbers<[1], [0], [0], [1], [0, 0, 1, 1], [], []>} : vector<8x2304xbf16>, vector<2304x128xbf16>, vector<8x128xf32> -> vector<8x128xf32>
    %c0_3 = arith.constant 0 : index
    %c0_4 = arith.constant 0 : index
    %3 = vector.load %arg4[%c0_3, %c0_4] : memref<1x128xf32, #tpu.memory_space<vmem>>, vector<1x128xf32>
    %4 = vector.broadcast %3 : vector<1x128xf32> to vector<8x128xf32>
    %5 = arith.addf %2, %4 : vector<8x128xf32>
    %cst_5 = arith.constant 0.000000e+00 : f32
    %6 = vector.broadcast %cst_5 : f32 to vector<8x128xf32>
    %7 = arith.maximumf %5, %6 : vector<8x128xf32>
    %8 = arith.truncf %7 : vector<8x128xf32> to vector<8x128xbf16>
    %c0_6 = arith.constant 0 : index
    %c0_7 = arith.constant 0 : index
    %9 = vector.load %arg5[%c0_6, %c0_7] : memref<8x128xbf16, #tpu.memory_space<vmem>>, vector<8x128xbf16>
    tpu.vector_store %arg5[%c0_6, %c0_7], %8 {strides = array<i32>} : memref<8x128xbf16, #tpu.memory_space<vmem>>, vector<8x128xbf16>,
    return
  }
  func.func @transform_0(%arg0: i32, %arg1: i32) -> (i32, i32) {
    %c0_i32 = arith.constant 0 : i32
    %c0_i32_0 = arith.constant 0 : i32
    return %arg0, %c0_i32 : i32, i32
  }
  func.func @transform_1(%arg0: i32, %arg1: i32) -> (i32, i32) {
    %c0_i32 = arith.constant 0 : i32
    %c0_i32_0 = arith.constant 0 : i32
    return %c0_i32, %arg1 : i32, i32
  }
  func.func @transform_2(%arg0: i32, %arg1: i32) -> (i32, i32) {
    %c0_i32 = arith.constant 0 : i32
    %c0_i32_0 = arith.constant 0 : i32
    return %c0_i32, %arg1 : i32, i32
  }
  func.func @transform_3(%arg0: i32, %arg1: i32) -> (i32, i32) {
    %c0_i32 = arith.constant 0 : i32
    return %arg0, %arg1 : i32, i32
  }
}

module attributes {stable_mosaic.version = 11 : i64} {
  func.func @_mm_kernel(%arg0: i32, %arg1: i32, %arg2: memref<8x1024xbf16, #tpu.memory_space<vmem>>, %arg3: memref<1024x256xbf16, #tpu.memory_space<vmem>>, %arg4: memref<1x256xf32, #tpu.memory_space<vmem>>, %arg5: memref<8x256xbf16, #tpu.memory_space<vmem>>) attributes {dimension_semantics = [#tpu.dimension_semantics<parallel>, #tpu.dimension_semantics<parallel>], iteration_bounds = array<i64: 1, 1>, scalar_prefetch = 0 : i64, scratch_operands = 0 : i64, tpu.core_type = #tpu.core_type<tc>, window_params = [{transform_indices = @transform_0, window_bounds = array<i64: 8, 1024>}, {transform_indices = @transform_1, window_bounds = array<i64: 1024, 256>}, {transform_indices = @transform_2, window_bounds = array<i64: 1, 256>}, {transform_indices = @transform_3, window_bounds = array<i64: 8, 256>}]} {
    %c0 = arith.constant 0 : index
    %c0_0 = arith.constant 0 : index
    %0 = vector.load %arg2[%c0, %c0_0] : memref<8x1024xbf16, #tpu.memory_space<vmem>>, vector<8x1024xbf16>
    %c0_1 = arith.constant 0 : index
    %c0_2 = arith.constant 0 : index
    %1 = vector.load %arg3[%c0_1, %c0_2] : memref<1024x256xbf16, #tpu.memory_space<vmem>>, vector<1024x256xbf16>
    %cst = arith.constant dense<0.000000e+00> : vector<8x256xf32>
    %2 = tpu.matmul %0, %1, %cst {dimension_numbers = #tpu.dot_dimension_numbers<[1], [0], [0], [1], [0, 0, 1, 1], [], []>} : vector<8x1024xbf16>, vector<1024x256xbf16>, vector<8x256xf32> -> vector<8x256xf32>
    %c0_3 = arith.constant 0 : index
    %c0_4 = arith.constant 0 : index
    %3 = vector.load %arg4[%c0_3, %c0_4] : memref<1x256xf32, #tpu.memory_space<vmem>>, vector<1x256xf32>
    %4 = vector.broadcast %3 : vector<1x256xf32> to vector<8x256xf32>
    %5 = arith.addf %2, %4 : vector<8x256xf32>
    %cst_5 = arith.constant 0.000000e+00 : f32
    %6 = vector.broadcast %cst_5 : f32 to vector<8x256xf32>
    %7 = arith.maximumf %5, %6 : vector<8x256xf32>
    %8 = arith.truncf %7 : vector<8x256xf32> to vector<8x256xbf16>
    %c0_6 = arith.constant 0 : index
    %c0_7 = arith.constant 0 : index
    %9 = vector.load %arg5[%c0_6, %c0_7] : memref<8x256xbf16, #tpu.memory_space<vmem>>, vector<8x256xbf16>
    tpu.vector_store %arg5[%c0_6, %c0_7], %8 {strides = array<i32>} : memref<8x256xbf16, #tpu.memory_space<vmem>>, vector<8x256xbf16>,
    return
  }
  func.func @transform_0(%arg0: i32, %arg1: i32) -> (i32, i32) {
    %c0_i32 = arith.constant 0 : i32
    %c0_i32_0 = arith.constant 0 : i32
    return %arg0, %c0_i32 : i32, i32
  }
  func.func @transform_1(%arg0: i32, %arg1: i32) -> (i32, i32) {
    %c0_i32 = arith.constant 0 : i32
    %c0_i32_0 = arith.constant 0 : i32
    return %c0_i32, %arg1 : i32, i32
  }
  func.func @transform_2(%arg0: i32, %arg1: i32) -> (i32, i32) {
    %c0_i32 = arith.constant 0 : i32
    %c0_i32_0 = arith.constant 0 : i32
    return %c0_i32, %arg1 : i32, i32
  }
  func.func @transform_3(%arg0: i32, %arg1: i32) -> (i32, i32) {
    %c0_i32 = arith.constant 0 : i32
    return %arg0, %arg1 : i32, i32
  }
}

module attributes {stable_mosaic.version = 11 : i64} {
  func.func @_mm_res_kernel(%arg0: i32, %arg1: i32, %arg2: memref<8x256xbf16, #tpu.memory_space<vmem>>, %arg3: memref<256x512xbf16, #tpu.memory_space<vmem>>, %arg4: memref<1x512xf32, #tpu.memory_space<vmem>>, %arg5: memref<8x512xbf16, #tpu.memory_space<vmem>>, %arg6: memref<8x512xbf16, #tpu.memory_space<vmem>>) attributes {dimension_semantics = [#tpu.dimension_semantics<parallel>, #tpu.dimension_semantics<parallel>], iteration_bounds = array<i64: 1, 2>, scalar_prefetch = 0 : i64, scratch_operands = 0 : i64, tpu.core_type = #tpu.core_type<tc>, window_params = [{transform_indices = @transform_0, window_bounds = array<i64: 8, 256>}, {transform_indices = @transform_1, window_bounds = array<i64: 256, 512>}, {transform_indices = @transform_2, window_bounds = array<i64: 1, 512>}, {transform_indices = @transform_3, window_bounds = array<i64: 8, 512>}, {transform_indices = @transform_4, window_bounds = array<i64: 8, 512>}]} {
    %c0 = arith.constant 0 : index
    %c0_0 = arith.constant 0 : index
    %0 = vector.load %arg2[%c0, %c0_0] : memref<8x256xbf16, #tpu.memory_space<vmem>>, vector<8x256xbf16>
    %c0_1 = arith.constant 0 : index
    %c0_2 = arith.constant 0 : index
    %1 = vector.load %arg3[%c0_1, %c0_2] : memref<256x512xbf16, #tpu.memory_space<vmem>>, vector<256x512xbf16>
    %cst = arith.constant dense<0.000000e+00> : vector<8x512xf32>
    %2 = tpu.matmul %0, %1, %cst {dimension_numbers = #tpu.dot_dimension_numbers<[1], [0], [0], [1], [0, 0, 1, 1], [], []>} : vector<8x256xbf16>, vector<256x512xbf16>, vector<8x512xf32> -> vector<8x512xf32>
    %c0_3 = arith.constant 0 : index
    %c0_4 = arith.constant 0 : index
    %3 = vector.load %arg4[%c0_3, %c0_4] : memref<1x512xf32, #tpu.memory_space<vmem>>, vector<1x512xf32>
    %4 = vector.broadcast %3 : vector<1x512xf32> to vector<8x512xf32>
    %5 = arith.addf %2, %4 : vector<8x512xf32>
    %c0_5 = arith.constant 0 : index
    %c0_6 = arith.constant 0 : index
    %6 = vector.load %arg5[%c0_5, %c0_6] : memref<8x512xbf16, #tpu.memory_space<vmem>>, vector<8x512xbf16>
    %7 = arith.extf %6 : vector<8x512xbf16> to vector<8x512xf32>
    %8 = arith.addf %5, %7 : vector<8x512xf32>
    %cst_7 = arith.constant 0.000000e+00 : f32
    %9 = vector.broadcast %cst_7 : f32 to vector<8x512xf32>
    %10 = arith.maximumf %8, %9 : vector<8x512xf32>
    %11 = arith.truncf %10 : vector<8x512xf32> to vector<8x512xbf16>
    %c0_8 = arith.constant 0 : index
    %c0_9 = arith.constant 0 : index
    %12 = vector.load %arg6[%c0_8, %c0_9] : memref<8x512xbf16, #tpu.memory_space<vmem>>, vector<8x512xbf16>
    tpu.vector_store %arg6[%c0_8, %c0_9], %11 {strides = array<i32>} : memref<8x512xbf16, #tpu.memory_space<vmem>>, vector<8x512xbf16>,
    return
  }
  func.func @transform_0(%arg0: i32, %arg1: i32) -> (i32, i32) {
    %c0_i32 = arith.constant 0 : i32
    %c0_i32_0 = arith.constant 0 : i32
    return %arg0, %c0_i32 : i32, i32
  }
  func.func @transform_1(%arg0: i32, %arg1: i32) -> (i32, i32) {
    %c0_i32 = arith.constant 0 : i32
    %c0_i32_0 = arith.constant 0 : i32
    return %c0_i32, %arg1 : i32, i32
  }
  func.func @transform_2(%arg0: i32, %arg1: i32) -> (i32, i32) {
    %c0_i32 = arith.constant 0 : i32
    %c0_i32_0 = arith.constant 0 : i32
    return %c0_i32, %arg1 : i32, i32
  }
  func.func @transform_3(%arg0: i32, %arg1: i32) -> (i32, i32) {
    %c0_i32 = arith.constant 0 : i32
    return %arg0, %arg1 : i32, i32
  }
  func.func @transform_4(%arg0: i32, %arg1: i32) -> (i32, i32) {
    %c0_i32 = arith.constant 0 : i32
    return %arg0, %arg1 : i32, i32
  }
}

</mosaic_0001>

<bundles_post_ra>
// kernel: timm_cnn_encoder_forward.40
= control target key start
LH: loop header
LB: loop body
LE: loop exit
PB: predicated region body
PF: predicated region fallthrough
CT: control target
= control target key end

     0   :  { %s1494_s12 = smov 0   ;;  %s1496_s13 = smov 0   ;;  %s1668_s0 = inlined_call_operand.vmem [shape: bf16[512,256], index: 0, kind: input, shape index: {}]   ;;  %s1669_s1 = inlined_call_operand.vmem [shape: bf16[256,128], index: 1, kind: input, shape index: {}]   ;;  %s1670_s2 = inlined_call_operand.vmem [shape: f32[1,128], index: 2, kind: input, shape index: {}]   ;;  %s1671_s3 = inlined_call_operand.vmem [shape: bf16[512,128], index: 3, kind: output, shape index: {}]  }
   0x1   :  { %s1498_s14 = smov 0  }
   0x2 LB: > { %s25_s15 = sadd.s32 1, %s1468_s13  ;;  %p1017_p0 = scmp.ge.s32.totalorder %s1472_s14, 1  ;;  %s1472_s14 = sphi %s1498_s14, %s13_s14   ;;  %s1468_s13 = sphi %s1496_s13, %s1673_s13   ;;  %s1464_s12 = sphi %s1494_s12, %s1672_s12  }
   0x3   : > { %p27_p1 = scmp.ge.s32.totalorder %s25_s15, 2  ;;  %p170_p2 = scmp.lt.s32.totalorder %s1472_s14, 3 }
   0x5   : > { %s1675_s15 = smov (%p27_p1, %s25_s15), 0  ;;  %p171_p3 = pnand %p1017_p0, %p170_p2 }
   0x6   : > { %s1018_s18 = sshll.u32 (!%p171_p3), %s1464_s12, 5 }
   0x7   : > { %174 = sbr.rel (%p171_p3) target bundleno = 309 (0x135), region = 32  ;;  %p206_p4 = scmp.lt.s32.totalorder (!%p171_p3), %s1018_s18, 63 }
   0xc   : > { %v1386_v0 = vld [vmem:[%s1669_s1 + $0x78] sm:$0xff]   ;;  %v1388_v2 = vld [vmem:[%s1669_s1 + $0x70] sm:$0xff]   ;;  %v1390_v4 = vld [vmem:[%s1669_s1 + $0x68] sm:$0xff]   ;;  %s1677_s18 = smov (!%p206_p4, %s1018_s18), 63 }
   0xd   : > { %v1387_v1 = vld [vmem:[%s1669_s1 + $0x38] sm:$0xff]   ;;  %1234 = vmatprep.subr.bf16.mxu0 %v1386_v0  ;;  %1346 = vmatprep.subr.bf16.mxu1 %v1386_v0  ;;  %v1389_v3 = vld [vmem:[%s1669_s1 + $0x30] sm:$0xff]   ;;  %v1391_v5 = vld [vmem:[%s1669_s1 + $0x28] sm:$0xff]   ;;  %s1106_s6 = sshll.u32 %s1677_s18, 3  ;;  %s1022_s5 = sshll.u32 %s1677_s18, 2 }
   0xe   : > { %1235 = vmatpush3.bf16.msra.mxu0 %v1387_v1  ;;  %1354 = vmatpush3.bf16.msra.mxu1 %v1387_v1  ;;  %v1392_v6 = vld [vmem:[%s1669_s1 + $0x60] sm:$0xff]   ;;  %v1394_v8 = vld [vmem:[%s1669_s1 + $0x58] sm:$0xff]   ;;  %s1545_s11 = scalar_lea.vmem %s1668_s0, %s1106_s6  ;;  %v1396_v10 = vld [vmem:[%s1669_s1 + $0x50] sm:$0xff]   ;;  %s1613_s8 = scalar_lea.vmem %s1671_s3, %s1022_s5 }
   0xf   : > { %1236 = vmatprep.subr.bf16.mxu0 %v1388_v2  ;;  %1347 = vmatprep.subr.bf16.mxu1 %v1388_v2  ;;  %v1393_v7 = vld [vmem:[%s1669_s1 + $0x20] sm:$0xff]   ;;  %v1395_v9 = vld [vmem:[%s1669_s1 + $0x18] sm:$0xff]   ;;  %v1397_v13 = vld [vmem:[%s1669_s1 + $0x10] sm:$0xff]  }
  0x10   : > { %v1404_v11 = vld [vmem:[%s1545_s11 + $0x4] ss:$8 sps:$4 sm:$0xff]   ;;  %v1402_v18 = vld [vmem:[%s1545_s11] ss:$8 sps:$4 sm:$0xff]   ;;  %v1408_v20 = vld [vmem:[%s1545_s11 + $0x14] ss:$8 sps:$4 sm:$0xff]  }
  0x11   : > { %v1407_v12 = vld [vmem:[%s1545_s11 + $0x84] ss:$8 sps:$4 sm:$0xff]   ;;  %588 = vmatprep.mubr.bf16.mxu0 %v1404_v11  ;;  %v1405_v19 = vld [vmem:[%s1545_s11 + $0x80] ss:$8 sps:$4 sm:$0xff]   ;;  %v1410_v21 = vld [vmem:[%s1545_s11 + $0x94] ss:$8 sps:$4 sm:$0xff]  }
  0x12   : > { %1237 = vmatpush3.bf16.msra.mxu0 %v1389_v3  ;;  %1355 = vmatpush3.bf16.msra.mxu1 %v1389_v3  ;;  %v1398_v14 = vld [vmem:[%s1669_s1 + $0x48] sm:$0xff]   ;;  %v1400_v16 = vld [vmem:[%s1669_s1 + $0x40] sm:$0xff]   ;;  %v1412_v22 = vld [vmem:[%s1545_s11 + $0x10] ss:$8 sps:$4 sm:$0xff]  }
  0x13   : > { %1238 = vmatprep.subr.bf16.mxu0 %v1390_v4  ;;  %1348 = vmatprep.subr.bf16.mxu1 %v1390_v4  ;;  %v1399_v15 = vld [vmem:[%s1669_s1 + $0x8] sm:$0xff]   ;;  %v1401_v17 = vld [vmem:[%s1669_s1] sm:$0xff]   ;;  %v1413_v23 = vld [vmem:[%s1545_s11 + $0x90] ss:$8 sps:$4 sm:$0xff]  }
  0x14   : > { %652 = vmatprep.mubr.bf16.mxu1 %v1407_v12  ;;  %v1414_v24 = vld [vmem:[%s1545_s11 + $0x24] ss:$8 sps:$4 sm:$0xff]   ;;  %v1418_v26 = vld [vmem:[%s1545_s11 + $0x20] ss:$8 sps:$4 sm:$0xff]   ;;  %v1420_v28 = vld [vmem:[%s1545_s11 + $0x34] ss:$8 sps:$4 sm:$0xff]  }
  0x15   : > { %v1416_v25 = vld [vmem:[%s1545_s11 + $0xa4] ss:$8 sps:$4 sm:$0xff]   ;;  %v1419_v27 = vld [vmem:[%s1545_s11 + $0xa0] ss:$8 sps:$4 sm:$0xff]   ;;  %v1422_v29 = vld [vmem:[%s1545_s11 + $0xb4] ss:$8 sps:$4 sm:$0xff]  }
  0x16   : > { %1239 = vmatpush3.bf16.msra.mxu0 %v1391_v5  ;;  %1356 = vmatpush3.bf16.msra.mxu1 %v1391_v5  ;;  %v1424_v30 = vld [vmem:[%s1545_s11 + $0x30] ss:$8 sps:$4 sm:$0xff]   ;;  %v1426_v32 = vld [vmem:[%s1545_s11 + $0x44] ss:$8 sps:$4 sm:$0xff]   ;;  %v1430_v34 = vld [vmem:[%s1545_s11 + $0x40] ss:$8 sps:$4 sm:$0xff]  }
  0x17   : > { %1240 = vmatprep.subr.bf16.mxu0 %v1392_v6  ;;  %1349 = vmatprep.subr.bf16.mxu1 %v1392_v6  ;;  %v1425_v31 = vld [vmem:[%s1545_s11 + $0xb0] ss:$8 sps:$4 sm:$0xff]   ;;  %v1428_v33 = vld [vmem:[%s1545_s11 + $0xc4] ss:$8 sps:$4 sm:$0xff]   ;;  %v1431_v35 = vld [vmem:[%s1545_s11 + $0xc0] ss:$8 sps:$4 sm:$0xff]  }
  0x18   : > { %v1432_v36 = vld [vmem:[%s1545_s11 + $0x54] ss:$8 sps:$4 sm:$0xff]   ;;  %v1436_v38 = vld [vmem:[%s1545_s11 + $0x50] ss:$8 sps:$4 sm:$0xff]   ;;  %v1438_v40 = vld [vmem:[%s1545_s11 + $0x64] ss:$8 sps:$4 sm:$0xff]  }
  0x19   : > { %v1434_v37 = vld [vmem:[%s1545_s11 + $0xd4] ss:$8 sps:$4 sm:$0xff]   ;;  %v1437_v39 = vld [vmem:[%s1545_s11 + $0xd0] ss:$8 sps:$4 sm:$0xff]   ;;  %v1440_v41 = vld [vmem:[%s1545_s11 + $0xe4] ss:$8 sps:$4 sm:$0xff]  }
  0x1a   : > { %1241 = vmatpush3.bf16.msra.mxu0 %v1393_v7  ;;  %1357 = vmatpush3.bf16.msra.mxu1 %v1393_v7  ;;  %v1442_v42 = vld [vmem:[%s1545_s11 + $0x60] ss:$8 sps:$4 sm:$0xff]   ;;  %v1444_v44 = vld [vmem:[%s1545_s11 + $0x74] ss:$8 sps:$4 sm:$0xff]   ;;  %v1448_v46 = vld [vmem:[%s1545_s11 + $0x70] ss:$8 sps:$4 sm:$0xff]  }
  0x1b   : > { %1242 = vmatprep.subr.bf16.mxu0 %v1394_v8  ;;  %1350 = vmatprep.subr.bf16.mxu1 %v1394_v8  ;;  %v1443_v43 = vld [vmem:[%s1545_s11 + $0xe0] ss:$8 sps:$4 sm:$0xff]   ;;  %v1446_v45 = vld [vmem:[%s1545_s11 + $0xf4] ss:$8 sps:$4 sm:$0xff]   ;;  %v1449_v47 = vld [vmem:[%s1545_s11 + $0xf0] ss:$8 sps:$4 sm:$0xff]  }
  0x1c   : > { %v1603_v52 = vld [vmem:[%s1670_s2] ss:$0 sm:$0xff] }
  0x1e   : > { %1243 = vmatpush3.bf16.msra.mxu0 %v1395_v9  ;;  %1358 = vmatpush3.bf16.msra.mxu1 %v1395_v9 }
  0x1f   : > { %1244 = vmatprep.subr.bf16.mxu0 %v1396_v10  ;;  %1351 = vmatprep.subr.bf16.mxu1 %v1396_v10 }
  0x22   : > { %1245 = vmatpush3.bf16.msra.mxu0 %v1397_v13  ;;  %1359 = vmatpush3.bf16.msra.mxu1 %v1397_v13 }
  0x23   : > { %1246 = vmatprep.subr.bf16.mxu0 %v1398_v14  ;;  %1352 = vmatprep.subr.bf16.mxu1 %v1398_v14 }
  0x26   : > { %1247 = vmatpush3.bf16.msra.mxu0 %v1399_v15  ;;  %1360 = vmatpush3.bf16.msra.mxu1 %v1399_v15 }
  0x27   : > { %1248 = vmatprep.subr.bf16.mxu0 %v1400_v16  ;;  %1353 = vmatprep.subr.bf16.mxu1 %v1400_v16 }
  0x2a   : > { %1249 = vmatpush3.bf16.msra.mxu0 %v1401_v17  ;;  %1361 = vmatpush3.bf16.msra.mxu1 %v1401_v17 }
  0x2d   : > { %589 = vmatmul.mubr.bf16.vlgmr.msra.gmra.mxu0 %v1402_v18  ;;  %653 = vmatmul.mubr.bf16.vlgmr.msra.gmra.mxu1 %v1405_v19 }
  0x2e   : > { %596 = vmatprep.mubr.bf16.mxu0 %v1408_v20  ;;  %660 = vmatprep.mubr.bf16.mxu1 %v1410_v21 }
  0x35   : > { %597 = vmatmul.mubr.bf16.gmra.mxu0 %v1412_v22  ;;  %661 = vmatmul.mubr.bf16.gmra.mxu1 %v1413_v23 }
  0x36   : > { %604 = vmatprep.mubr.bf16.mxu0 %v1414_v24  ;;  %668 = vmatprep.mubr.bf16.mxu1 %v1416_v25 }
  0x3d   : > { %605 = vmatmul.mubr.bf16.gmra.mxu0 %v1418_v26  ;;  %669 = vmatmul.mubr.bf16.gmra.mxu1 %v1419_v27 }
  0x3e   : > { %612 = vmatprep.mubr.bf16.mxu0 %v1420_v28  ;;  %676 = vmatprep.mubr.bf16.mxu1 %v1422_v29 }
  0x45   : > { %613 = vmatmul.mubr.bf16.gmra.mxu0 %v1424_v30  ;;  %677 = vmatmul.mubr.bf16.gmra.mxu1 %v1425_v31 }
  0x46   : > { %620 = vmatprep.mubr.bf16.mxu0 %v1426_v32  ;;  %684 = vmatprep.mubr.bf16.mxu1 %v1428_v33 }
  0x4d   : > { %621 = vmatmul.mubr.bf16.gmra.mxu0 %v1430_v34  ;;  %685 = vmatmul.mubr.bf16.gmra.mxu1 %v1431_v35 }
  0x4e   : > { %628 = vmatprep.mubr.bf16.mxu0 %v1432_v36  ;;  %692 = vmatprep.mubr.bf16.mxu1 %v1434_v37 }
  0x55   : > { %629 = vmatmul.mubr.bf16.gmra.mxu0 %v1436_v38  ;;  %693 = vmatmul.mubr.bf16.gmra.mxu1 %v1437_v39 }
  0x56   : > { %636 = vmatprep.mubr.bf16.mxu0 %v1438_v40  ;;  %700 = vmatprep.mubr.bf16.mxu1 %v1440_v41 }
  0x5d   : > { %637 = vmatmul.mubr.bf16.gmra.mxu0 %v1442_v42  ;;  %701 = vmatmul.mubr.bf16.gmra.mxu1 %v1443_v43 }
  0x5e   : > { %644 = vmatprep.mubr.bf16.mxu0 %v1444_v44  ;;  %708 = vmatprep.mubr.bf16.mxu1 %v1446_v45 }
  0x65   : > { %645 = vmatmul.mubr.bf16.gmra.mxu0 %v1448_v46  ;;  %709 = vmatmul.mubr.bf16.gmra.mxu1 %v1449_v47 }
  0xed   : > { %v1250_v48 = vpop.f32.mrf.mxu0  ;;  %v1298_v49 = vpop.f32.mrf.mxu1 }
  0xef   : > { %v1251_v50 = vpop.f32.mrf.mxu0  ;;  %v1299_v51 = vpop.f32.mrf.mxu1 }
  0xf0   : > { %v1252_v53 = vadd.f32 %v1251_v50, %v1250_v48  ;;  %v1300_v54 = vadd.f32 %v1299_v51, %v1298_v49 }
  0xf1   : > { %v1253_v55 = vpop.f32.mrf.mxu0  ;;  %v1301_v56 = vpop.f32.mrf.mxu1 }
  0xf2   : > { %v591_v57 = vadd.f32 %v1252_v53, %v1603_v52  ;;  %v655_v58 = vadd.f32 %v1300_v54, %v1603_v52 }
  0xf3   : > { %v1254_v59 = vpop.f32.mrf.mxu0  ;;  %v1302_v60 = vpop.f32.mrf.mxu1 }
  0xf4   : > { %v1255_v61 = vadd.f32 %v1254_v59, %v1253_v55  ;;  %v1303_v62 = vadd.f32 %v1302_v60, %v1301_v56  ;;  %v717_v3 = vmax.f32 %v591_v57, 0.0  ;;  %v733_v4 = vmax.f32 %v655_v58, 0.0 }
  0xf5   : > { %v1256_v63 = vpop.f32.mrf.mxu0  ;;  %v1304_v0 = vpop.f32.mrf.mxu1 }
  0xf6   : > { %v594_v1 = vadd.f32 %v1255_v61, %v1603_v52  ;;  %v658_v2 = vadd.f32 %v1303_v62, %v1603_v52 }
  0xf7   : > { %v1257_v5 = vpop.f32.mrf.mxu0  ;;  %v1305_v6 = vpop.f32.mrf.mxu1 }
  0xf8   : > { %v718_v7 = vmax.f32 %v594_v1, 0.0  ;;  %v734_v8 = vmax.f32 %v658_v2, 0.0  ;;  %v1258_v9 = vadd.f32 %v1257_v5, %v1256_v63  ;;  %v1306_v10 = vadd.f32 %v1305_v6, %v1304_v0 }
  0xf9   : > { %v1259_v11 = vpop.f32.mrf.mxu0  ;;  %v1307_v12 = vpop.f32.mrf.mxu1 }
  0xfa   : > { %v1142_v13 = vpack.c.bf16 %v718_v7, %v717_v3  ;;  %v1182_v14 = vpack.c.bf16 %v734_v8, %v733_v4  ;;  %v599_v15 = vadd.f32 %v1258_v9, %v1603_v52  ;;  %v663_v16 = vadd.f32 %v1306_v10, %v1603_v52 }
  0xfb   : > { %v1260_v17 = vpop.f32.mrf.mxu0  ;;  %v1308_v18 = vpop.f32.mrf.mxu1 }
  0xfc   : > { %1143 = vst [vmem:[%s1613_s8] sm:$0xff] %v1142_v13   ;;  %1226 = vst [vmem:[%s1613_s8 + $0x40] sm:$0xff] %v1182_v14   ;;  %v1261_v19 = vadd.f32 %v1260_v17, %v1259_v11  ;;  %v1309_v20 = vadd.f32 %v1308_v18, %v1307_v12  ;;  %v719_v25 = vmax.f32 %v599_v15, 0.0  ;;  %v735_v26 = vmax.f32 %v663_v16, 0.0 }
  0xfd   : > { %v1262_v21 = vpop.f32.mrf.mxu0  ;;  %v1310_v22 = vpop.f32.mrf.mxu1 }
  0xfe   : > { %v602_v23 = vadd.f32 %v1261_v19, %v1603_v52  ;;  %v666_v24 = vadd.f32 %v1309_v20, %v1603_v52 }
  0xff   : > { %v1263_v27 = vpop.f32.mrf.mxu0  ;;  %v1311_v28 = vpop.f32.mrf.mxu1 }
 0x100   : > { %v720_v29 = vmax.f32 %v602_v23, 0.0  ;;  %v736_v30 = vmax.f32 %v666_v24, 0.0  ;;  %v1264_v31 = vadd.f32 %v1263_v27, %v1262_v21  ;;  %v1312_v32 = vadd.f32 %v1311_v28, %v1310_v22 }
 0x101   : > { %v1265_v33 = vpop.f32.mrf.mxu0  ;;  %v1313_v34 = vpop.f32.mrf.mxu1 }
 0x102   : > { %v1147_v35 = vpack.c.bf16 %v720_v29, %v719_v25  ;;  %v1187_v36 = vpack.c.bf16 %v736_v30, %v735_v26  ;;  %v607_v37 = vadd.f32 %v1264_v31, %v1603_v52  ;;  %v671_v38 = vadd.f32 %v1312_v32, %v1603_v52 }
 0x103   : > { %v1266_v39 = vpop.f32.mrf.mxu0  ;;  %v1314_v40 = vpop.f32.mrf.mxu1 }
 0x104   : > { %1219 = vst [vmem:[%s1613_s8 + $0x8] sm:$0xff] %v1147_v35   ;;  %1227 = vst [vmem:[%s1613_s8 + $0x48] sm:$0xff] %v1187_v36   ;;  %v1267_v41 = vadd.f32 %v1266_v39, %v1265_v33  ;;  %v1315_v42 = vadd.f32 %v1314_v40, %v1313_v34  ;;  %v721_v47 = vmax.f32 %v607_v37, 0.0  ;;  %v737_v48 = vmax.f32 %v671_v38, 0.0 }
 0x105   : > { %v1268_v43 = vpop.f32.mrf.mxu0  ;;  %v1316_v44 = vpop.f32.mrf.mxu1 }
 0x106   : > { %v610_v45 = vadd.f32 %v1267_v41, %v1603_v52  ;;  %v674_v46 = vadd.f32 %v1315_v42, %v1603_v52 }
 0x107   : > { %v1269_v49 = vpop.f32.mrf.mxu0  ;;  %v1317_v50 = vpop.f32.mrf.mxu1 }
 0x108   : > { %v722_v51 = vmax.f32 %v610_v45, 0.0  ;;  %v738_v53 = vmax.f32 %v674_v46, 0.0  ;;  %v1270_v54 = vadd.f32 %v1269_v49, %v1268_v43  ;;  %v1318_v55 = vadd.f32 %v1317_v50, %v1316_v44 }
 0x109   : > { %v1271_v56 = vpop.f32.mrf.mxu0  ;;  %v1319_v57 = vpop.f32.mrf.mxu1 }
 0x10a   : > { %v1152_v58 = vpack.c.bf16 %v722_v51, %v721_v47  ;;  %v1192_v59 = vpack.c.bf16 %v738_v53, %v737_v48  ;;  %v615_v60 = vadd.f32 %v1270_v54, %v1603_v52  ;;  %v679_v61 = vadd.f32 %v1318_v55, %v1603_v52 }
 0x10b   : > { %v1272_v62 = vpop.f32.mrf.mxu0  ;;  %v1320_v63 = vpop.f32.mrf.mxu1 }
 0x10c   : > { %1220 = vst [vmem:[%s1613_s8 + $0x10] sm:$0xff] %v1152_v58   ;;  %1228 = vst [vmem:[%s1613_s8 + $0x50] sm:$0xff] %v1192_v59   ;;  %v1273_v0 = vadd.f32 %v1272_v62, %v1271_v56  ;;  %v1321_v1 = vadd.f32 %v1320_v63, %v1319_v57  ;;  %v723_v6 = vmax.f32 %v615_v60, 0.0  ;;  %v739_v7 = vmax.f32 %v679_v61, 0.0 }
 0x10d   : > { %v1274_v2 = vpop.f32.mrf.mxu0  ;;  %v1322_v3 = vpop.f32.mrf.mxu1 }
 0x10e   : > { %v618_v4 = vadd.f32 %v1273_v0, %v1603_v52  ;;  %v682_v5 = vadd.f32 %v1321_v1, %v1603_v52 }
 0x10f   : > { %v1275_v8 = vpop.f32.mrf.mxu0  ;;  %v1323_v9 = vpop.f32.mrf.mxu1 }
 0x110   : > { %v724_v10 = vmax.f32 %v618_v4, 0.0  ;;  %v740_v11 = vmax.f32 %v682_v5, 0.0  ;;  %v1276_v12 = vadd.f32 %v1275_v8, %v1274_v2  ;;  %v1324_v13 = vadd.f32 %v1323_v9, %v1322_v3 }
 0x111   : > { %v1277_v14 = vpop.f32.mrf.mxu0  ;;  %v1325_v15 = vpop.f32.mrf.mxu1 }
 0x112   : > { %v1157_v16 = vpack.c.bf16 %v724_v10, %v723_v6  ;;  %v1197_v17 = vpack.c.bf16 %v740_v11, %v739_v7  ;;  %v623_v18 = vadd.f32 %v1276_v12, %v1603_v52  ;;  %v687_v19 = vadd.f32 %v1324_v13, %v1603_v52 }
 0x113   : > { %v1278_v20 = vpop.f32.mrf.mxu0  ;;  %v1326_v21 = vpop.f32.mrf.mxu1 }
 0x114   : > { %1221 = vst [vmem:[%s1613_s8 + $0x18] sm:$0xff] %v1157_v16   ;;  %1229 = vst [vmem:[%s1613_s8 + $0x58] sm:$0xff] %v1197_v17   ;;  %v1279_v22 = vadd.f32 %v1278_v20, %v1277_v14  ;;  %v1327_v23 = vadd.f32 %v1326_v21, %v1325_v15  ;;  %v725_v28 = vmax.f32 %v623_v18, 0.0  ;;  %v741_v29 = vmax.f32 %v687_v19, 0.0 }
 0x115   : > { %v1280_v24 = vpop.f32.mrf.mxu0  ;;  %v1328_v25 = vpop.f32.mrf.mxu1 }
 0x116   : > { %v626_v26 = vadd.f32 %v1279_v22, %v1603_v52  ;;  %v690_v27 = vadd.f32 %v1327_v23, %v1603_v52 }
 0x117   : > { %v1281_v30 = vpop.f32.mrf.mxu0  ;;  %v1329_v31 = vpop.f32.mrf.mxu1 }
 0x118   : > { %v726_v32 = vmax.f32 %v626_v26, 0.0  ;;  %v742_v33 = vmax.f32 %v690_v27, 0.0  ;;  %v1282_v34 = vadd.f32 %v1281_v30, %v1280_v24  ;;  %v1330_v35 = vadd.f32 %v1329_v31, %v1328_v25 }
 0x119   : > { %v1283_v36 = vpop.f32.mrf.mxu0  ;;  %v1331_v37 = vpop.f32.mrf.mxu1 }
 0x11a   : > { %v1162_v38 = vpack.c.bf16 %v726_v32, %v725_v28  ;;  %v1202_v39 = vpack.c.bf16 %v742_v33, %v741_v29  ;;  %v631_v40 = vadd.f32 %v1282_v34, %v1603_v52  ;;  %v695_v41 = vadd.f32 %v1330_v35, %v1603_v52 }
 0x11b   : > { %v1284_v42 = vpop.f32.mrf.mxu0  ;;  %v1332_v43 = vpop.f32.mrf.mxu1 }
 0x11c   : > { %1222 = vst [vmem:[%s1613_s8 + $0x20] sm:$0xff] %v1162_v38   ;;  %1230 = vst [vmem:[%s1613_s8 + $0x60] sm:$0xff] %v1202_v39   ;;  %v1285_v44 = vadd.f32 %v1284_v42, %v1283_v36  ;;  %v1333_v45 = vadd.f32 %v1332_v43, %v1331_v37  ;;  %v727_v50 = vmax.f32 %v631_v40, 0.0  ;;  %v743_v51 = vmax.f32 %v695_v41, 0.0 }
 0x11d   : > { %v1286_v46 = vpop.f32.mrf.mxu0  ;;  %v1334_v47 = vpop.f32.mrf.mxu1 }
 0x11e   : > { %v634_v48 = vadd.f32 %v1285_v44, %v1603_v52  ;;  %v698_v49 = vadd.f32 %v1333_v45, %v1603_v52 }
 0x11f   : > { %v1287_v53 = vpop.f32.mrf.mxu0  ;;  %v1335_v54 = vpop.f32.mrf.mxu1 }
 0x120   : > { %v728_v55 = vmax.f32 %v634_v48, 0.0  ;;  %v744_v56 = vmax.f32 %v698_v49, 0.0  ;;  %v1288_v57 = vadd.f32 %v1287_v53, %v1286_v46  ;;  %v1336_v58 = vadd.f32 %v1335_v54, %v1334_v47 }
 0x121   : > { %v1289_v59 = vpop.f32.mrf.mxu0  ;;  %v1337_v60 = vpop.f32.mrf.mxu1 }
 0x122   : > { %v1167_v61 = vpack.c.bf16 %v728_v55, %v727_v50  ;;  %v1207_v62 = vpack.c.bf16 %v744_v56, %v743_v51  ;;  %v639_v63 = vadd.f32 %v1288_v57, %v1603_v52  ;;  %v703_v0 = vadd.f32 %v1336_v58, %v1603_v52 }
 0x123   : > { %v1290_v1 = vpop.f32.mrf.mxu0  ;;  %v1338_v2 = vpop.f32.mrf.mxu1 }
 0x124   : > { %1223 = vst [vmem:[%s1613_s8 + $0x28] sm:$0xff] %v1167_v61   ;;  %1231 = vst [vmem:[%s1613_s8 + $0x68] sm:$0xff] %v1207_v62   ;;  %v1291_v3 = vadd.f32 %v1290_v1, %v1289_v59  ;;  %v1339_v4 = vadd.f32 %v1338_v2, %v1337_v60  ;;  %v729_v9 = vmax.f32 %v639_v63, 0.0  ;;  %v745_v10 = vmax.f32 %v703_v0, 0.0 }
 0x125   : > { %v1292_v5 = vpop.f32.mrf.mxu0  ;;  %v1340_v6 = vpop.f32.mrf.mxu1 }
 0x126   : > { %v642_v7 = vadd.f32 %v1291_v3, %v1603_v52  ;;  %v706_v8 = vadd.f32 %v1339_v4, %v1603_v52 }
 0x127   : > { %v1293_v11 = vpop.f32.mrf.mxu0  ;;  %v1341_v12 = vpop.f32.mrf.mxu1 }
 0x128   : > { %v730_v13 = vmax.f32 %v642_v7, 0.0  ;;  %v746_v14 = vmax.f32 %v706_v8, 0.0  ;;  %v1294_v15 = vadd.f32 %v1293_v11, %v1292_v5  ;;  %v1342_v16 = vadd.f32 %v1341_v12, %v1340_v6 }
 0x129   : > { %v1295_v17 = vpop.f32.mrf.mxu0  ;;  %v1343_v18 = vpop.f32.mrf.mxu1 }
 0x12a   : > { %v1172_v19 = vpack.c.bf16 %v730_v13, %v729_v9  ;;  %v1212_v20 = vpack.c.bf16 %v746_v14, %v745_v10  ;;  %v647_v23 = vadd.f32 %v1294_v15, %v1603_v52  ;;  %v711_v24 = vadd.f32 %v1342_v16, %v1603_v52 }
 0x12b   : > { %v1296_v21 = vpop.f32.mrf.mxu0  ;;  %v1344_v22 = vpop.f32.mrf.mxu1 }
 0x12c   : > { %1224 = vst [vmem:[%s1613_s8 + $0x30] sm:$0xff] %v1172_v19   ;;  %1232 = vst [vmem:[%s1613_s8 + $0x70] sm:$0xff] %v1212_v20   ;;  %v1297_v25 = vadd.f32 %v1296_v21, %v1295_v17  ;;  %v1345_v26 = vadd.f32 %v1344_v22, %v1343_v18  ;;  %v731_v29 = vmax.f32 %v647_v23, 0.0  ;;  %v747_v30 = vmax.f32 %v711_v24, 0.0 }
 0x12e   : > { %v650_v27 = vadd.f32 %v1297_v25, %v1603_v52  ;;  %v714_v28 = vadd.f32 %v1345_v26, %v1603_v52 }
 0x130   : > { %v732_v31 = vmax.f32 %v650_v27, 0.0  ;;  %v748_v32 = vmax.f32 %v714_v28, 0.0 }
 0x132   : > { %v1177_v33 = vpack.c.bf16 %v732_v31, %v731_v29  ;;  %v1217_v34 = vpack.c.bf16 %v748_v32, %v747_v30 }
 0x134   : > { %1225 = vst [vmem:[%s1613_s8 + $0x38] sm:$0xff] %v1177_v33   ;;  %1233 = vst [vmem:[%s1613_s8 + $0x78] sm:$0xff] %v1217_v34  }
 0x135 PF: > { %s13_s14 = sadd.s32 1, %s1472_s14   ;;  %s1672_s12 = smov %s1468_s13 }
 0x136   : > { %p10_p5 = scmp.ge.s32.totalorder %s13_s14, 4   ;;  %s1673_s13 = smov %s1675_s15 }
 0x138   :  { %12 = sbr.rel (!%p10_p5) target bundleno = 2 (0x2), region = 68 }

// kernel: timm_cnn_encoder_forward.41
= control target key start
LH: loop header
LB: loop body
LE: loop exit
PB: predicated region body
PF: predicated region fallthrough
CT: control target
= control target key end

     0   :  { %v847_v1 = vmov 0   ;;  %v65_v33 = vlaneseq  ;;  %s1125_s1 = inlined_call_operand.vmem [shape: bf16[128,384], index: 1, kind: input, shape index: {}]   ;;  %s1126_s0 = inlined_call_operand.vmem [shape: bf16[128,128], index: 0, kind: input, shape index: {}]   ;;  %s1127_s2 = inlined_call_operand.vmem [shape: f32[1,384], index: 2, kind: input, shape index: {}]   ;;  %s1128_s3 = inlined_call_operand.vmem [shape: bf16[128,384], index: 3, kind: output, shape index: {}]  }
   0x1   :  { %v807_v0 = vld [vmem:[%s1125_s1 + $0xac] ss:$12 sps:$4 sm:$0xff]   ;;  %288 = vmatprep.mubr.bf16.mxu0 %v847_v1  ;;  %v809_v2 = vld [vmem:[%s1125_s1 + $0xa8] ss:$12 sps:$4 sm:$0xff]   ;;  %v812_v4 = vld [vmem:[%s1125_s1 + $0x90] ss:$12 sps:$4 sm:$0xff]  }
   0x2   :  { %256 = vmatprep.subr.bf16.mxu0 %v807_v0  ;;  %v810_v3 = vld [vmem:[%s1125_s1 + $0x94] ss:$12 sps:$4 sm:$0xff]   ;;  %v813_v5 = vld [vmem:[%s1125_s1 + $0x7c] ss:$12 sps:$4 sm:$0xff]   ;;  %v815_v6 = vld [vmem:[%s1125_s1 + $0x78] ss:$12 sps:$4 sm:$0xff]  }
   0x3   :  { %257 = vmatpush1.bf16.msra.mxu0 %v809_v2  ;;  %v816_v7 = vld [vmem:[%s1125_s1 + $0x64] ss:$12 sps:$4 sm:$0xff]   ;;  %v818_v9 = vld [vmem:[%s1125_s1 + $0x60] ss:$12 sps:$4 sm:$0xff]   ;;  %v821_v14 = vld [vmem:[%s1125_s1 + $0x48] ss:$12 sps:$4 sm:$0xff]  }
   0x4   :  { %258 = vmatprep.subr.bf16.mxu0 %v810_v3  ;;  %v828_v8 = vld [vmem:[%s1125_s1 + $0xb0] ss:$12 sps:$4 sm:$0xff]   ;;  %v819_v10 = vld [vmem:[%s1125_s1 + $0x4c] ss:$12 sps:$4 sm:$0xff]   ;;  %v833_v12 = vld [vmem:[%s1126_s0] sm:$0xff]   ;;  %v66_v34 = vshrl.u32 %v65_v33, 7 }
   0x5   :  { %774 = vmatprep.subr.bf16.mxu1 %v828_v8  ;;  %v832_v11 = vld [vmem:[%s1125_s1 + $0x98] ss:$12 sps:$4 sm:$0xff]   ;;  %v834_v13 = vld [vmem:[%s1125_s1 + $0x80] ss:$12 sps:$4 sm:$0xff]   ;;  %790 = vmatprep.mubr.bf16.mxu1 %v833_v12  ;;  %v835_v16 = vld [vmem:[%s1125_s1 + $0x68] ss:$12 sps:$4 sm:$0xff]  }
   0x6   :  { %775 = vmatpush3.bf16.msra.mxu1 %v828_v8  ;;  %v822_v15 = vld [vmem:[%s1125_s1 + $0x34] ss:$12 sps:$4 sm:$0xff]   ;;  %v824_v17 = vld [vmem:[%s1125_s1 + $0x30] ss:$12 sps:$4 sm:$0xff]   ;;  %v827_v20 = vld [vmem:[%s1125_s1 + $0x18] ss:$12 sps:$4 sm:$0xff]  }
   0x7   :  { %259 = vmatpush1.bf16.msra.mxu0 %v812_v4  ;;  %776 = vmatprep.subr.bf16.mxu1 %v832_v11  ;;  %v825_v18 = vld [vmem:[%s1125_s1 + $0x1c] ss:$12 sps:$4 sm:$0xff]   ;;  %v829_v21 = vld [vmem:[%s1125_s1 + $0x4] ss:$12 sps:$4 sm:$0xff]   ;;  %v831_v23 = vld [vmem:[%s1125_s1] ss:$12 sps:$4 sm:$0xff]  }
   0x8   :  { %260 = vmatprep.subr.bf16.mxu0 %v813_v5  ;;  %v837_v19 = vld [vmem:[%s1125_s1 + $0x50] ss:$12 sps:$4 sm:$0xff]   ;;  %v838_v22 = vld [vmem:[%s1125_s1 + $0x38] ss:$12 sps:$4 sm:$0xff]   ;;  %v840_v24 = vld [vmem:[%s1125_s1 + $0x20] ss:$12 sps:$4 sm:$0xff]  }
   0x9   :  { %v841_v25 = vld [vmem:[%s1125_s1 + $0x8] ss:$12 sps:$4 sm:$0xff]   ;;  %v842_v28 = vld [vmem:[%s1126_s0 + $0x18] sm:$0xff]   ;;  %v843_v29 = vld [vmem:[%s1126_s0 + $0x20] sm:$0xff]   ;;  %v67_v35 = vsub.s32 0, %v66_v34  ;;  %v71_v36 = vsub.s32 1, %v66_v34 }
   0xa   :  { %777 = vmatpush3.bf16.msra.mxu1 %v832_v11  ;;  %v836_v26 = vld [vmem:[%s1126_s0 + $0x8] sm:$0xff]   ;;  %v839_v27 = vld [vmem:[%s1126_s0 + $0x10] sm:$0xff]   ;;  %v846_v32 = vld [vmem:[%s1126_s0 + $0x38] sm:$0xff]   ;;  %v75_v44 = vsub.s32 2, %v66_v34 }
   0xb   :  { %261 = vmatpush1.bf16.msra.mxu0 %v815_v6  ;;  %778 = vmatprep.subr.bf16.mxu1 %v834_v13  ;;  %v845_v30 = vld [vmem:[%s1126_s0 + $0x30] sm:$0xff]   ;;  %v844_v31 = vld [vmem:[%s1126_s0 + $0x28] sm:$0xff]   ;;  %v63_v37 = vld [vmem:[%s1127_s2] sm:$0x7] }
   0xc   :  { %262 = vmatprep.subr.bf16.mxu0 %v816_v7  ;;  %v975_v38 = vrot.slane %v63_v37, %v67_v35  ;;  %v977_v39 = vrot.slane %v63_v37, %v71_v36  ;;  %v986_v50 = vrot.slane %v63_v37, %v75_v44 }
   0xe   :  { %779 = vmatpush3.bf16.msra.mxu1 %v834_v13 }
   0xf   :  { %263 = vmatpush1.bf16.msra.mxu0 %v818_v9  ;;  %780 = vmatprep.subr.bf16.mxu1 %v835_v16 }
  0x10   :  { %264 = vmatprep.subr.bf16.mxu0 %v819_v10 }
  0x12   :  { %781 = vmatpush3.bf16.msra.mxu1 %v835_v16 }
  0x13   :  { %265 = vmatpush1.bf16.msra.mxu0 %v821_v14  ;;  %782 = vmatprep.subr.bf16.mxu1 %v837_v19 }
  0x14   :  { %266 = vmatprep.subr.bf16.mxu0 %v822_v15 }
  0x16   :  { %783 = vmatpush3.bf16.msra.mxu1 %v837_v19 }
  0x17   :  { %267 = vmatpush1.bf16.msra.mxu0 %v824_v17  ;;  %784 = vmatprep.subr.bf16.mxu1 %v838_v22 }
  0x18   :  { %268 = vmatprep.subr.bf16.mxu0 %v825_v18 }
  0x1a   :  { %785 = vmatpush3.bf16.msra.mxu1 %v838_v22 }
  0x1b   :  { %269 = vmatpush1.bf16.msra.mxu0 %v827_v20  ;;  %786 = vmatprep.subr.bf16.mxu1 %v840_v24 }
  0x1c   :  { %270 = vmatprep.subr.bf16.mxu0 %v829_v21 }
  0x1e   :  { %787 = vmatpush3.bf16.msra.mxu1 %v840_v24 }
  0x1f   :  { %271 = vmatpush1.bf16.msra.mxu0 %v831_v23  ;;  %788 = vmatprep.subr.bf16.mxu1 %v841_v25 }
  0x22   :  { %289 = vmatmul.mubr.bf16.vlgmr.msra.gmra.mxu0 %v833_v12  ;;  %789 = vmatpush3.bf16.msra.mxu1 %v841_v25 }
  0x23   :  { %298 = vmatprep.mubr.bf16.mxu0 %v847_v1 }
  0x25   :  { %791 = vmatmul.mubr.bf16.vlgmr.msra.gmra.mxu1 %v836_v26 }
  0x26   :  { %794 = vmatprep.mubr.bf16.mxu1 %v839_v27 }
  0x2a   :  { %299 = vmatmul.mubr.bf16.gmra.mxu0 %v836_v26 }
  0x2b   :  { %308 = vmatprep.mubr.bf16.mxu0 %v847_v1 }
  0x2d   :  { %795 = vmatmul.mubr.bf16.gmra.mxu1 %v842_v28 }
  0x2e   :  { %798 = vmatprep.mubr.bf16.mxu1 %v843_v29 }
  0x32   :  { %309 = vmatmul.mubr.bf16.gmra.mxu0 %v839_v27 }
  0x33   :  { %318 = vmatprep.mubr.bf16.mxu0 %v847_v1 }
  0x35   :  { %799 = vmatmul.mubr.bf16.gmra.mxu1 %v844_v31 }
  0x36   :  { %802 = vmatprep.mubr.bf16.mxu1 %v845_v30 }
  0x3a   :  { %319 = vmatmul.mubr.bf16.gmra.mxu0 %v842_v28 }
  0x3b   :  { %328 = vmatprep.mubr.bf16.mxu0 %v847_v1 }
  0x3d   :  { %803 = vmatmul.mubr.bf16.gmra.mxu1 %v846_v32 }
  0x42   :  { %329 = vmatmul.mubr.bf16.gmra.mxu0 %v843_v29 }
  0x43   :  { %338 = vmatprep.mubr.bf16.mxu0 %v847_v1 }
  0x4a   :  { %339 = vmatmul.mubr.bf16.gmra.mxu0 %v844_v31 }
  0x4b   :  { %348 = vmatprep.mubr.bf16.mxu0 %v847_v1 }
  0x52   :  { %349 = vmatmul.mubr.bf16.gmra.mxu0 %v845_v30 }
  0x53   :  { %358 = vmatprep.mubr.bf16.mxu0 %v847_v1 }
  0x5a   :  { %359 = vmatmul.mubr.bf16.gmra.mxu0 %v846_v32 }
  0xe2   :  { %v290_v40 = vpop.f32.mrf.mxu0 }
  0xe3   :  { %v291_v42 = vadd.f32 %v290_v40, %v975_v38 }
  0xe4   :  { %v292_v41 = vpop.f32.mrf.mxu0 }
  0xe5   :  { %v293_v43 = vadd.f32 %v292_v41, %v977_v39  ;;  %v792_v54 = vpop.f32.mrf.mxu1 }
  0xe6   :  { %v294_v45 = vpop.f32.mrf.mxu0  ;;  %v412_v57 = vadd.f32 %v792_v54, %v986_v50 }
  0xe7   :  { %v726_v46 = vpack.c.bf16 %v293_v43, %v291_v42  ;;  %v295_v48 = vadd.f32 %v294_v45, %v975_v38  ;;  %v403_v59 = vpop.f32.mrf.mxu1 }
  0xe8   :  { %v296_v47 = vpop.f32.mrf.mxu0  ;;  %v731_v61 = vpack.c.bf16 %v412_v57, %v412_v57  ;;  %v404_v62 = vadd.f32 %v403_v59, %v986_v50 }
  0xe9   :  { %626 = vst [vmem:[%s1128_s3] sm:$0xff] %v726_v46  ;;  %v297_v49 = vadd.f32 %v296_v47, %v977_v39  ;;  %v793_v0 = vpop.f32.mrf.mxu1 }
  0xea   :  { %v300_v51 = vpop.f32.mrf.mxu0  ;;  %631 = vst [vmem:[%s1128_s3 + $0x20] sm:$0xf] %v731_v61  ;;  %v727_v3 = vpack.c.bf16 %v404_v62, %v404_v62  ;;  %v415_v4 = vadd.f32 %v793_v0, %v986_v50 }
  0xeb   :  { %v728_v52 = vpack.c.bf16 %v297_v49, %v295_v48  ;;  %v301_v55 = vadd.f32 %v300_v51, %v975_v38  ;;  %v406_v6 = vpop.f32.mrf.mxu1 }
  0xec   :  { %v302_v53 = vpop.f32.mrf.mxu0  ;;  %627 = vst [vmem:[%s1128_s3 + $0x8] sm:$0xf] %v727_v3  ;;  %v733_v8 = vpack.c.bf16 %v415_v4, %v415_v4  ;;  %v407_v9 = vadd.f32 %v406_v6, %v986_v50 }
  0xed   :  { %628 = vst [vmem:[%s1128_s3 + $0xc] sm:$0xff] %v728_v52  ;;  %v303_v56 = vadd.f32 %v302_v53, %v977_v39  ;;  %v796_v11 = vpop.f32.mrf.mxu1 }
  0xee   :  { %v304_v58 = vpop.f32.mrf.mxu0  ;;  %633 = vst [vmem:[%s1128_s3 + $0x2c] sm:$0xf] %v733_v8  ;;  %v729_v14 = vpack.c.bf16 %v407_v9, %v407_v9  ;;  %v428_v15 = vadd.f32 %v796_v11, %v986_v50 }
  0xef   :  { %v730_v60 = vpack.c.bf16 %v303_v56, %v301_v55  ;;  %v305_v1 = vadd.f32 %v304_v58, %v975_v38  ;;  %v419_v17 = vpop.f32.mrf.mxu1 }
  0xf0   :  { %v306_v63 = vpop.f32.mrf.mxu0  ;;  %629 = vst [vmem:[%s1128_s3 + $0x14] sm:$0xf] %v729_v14  ;;  %v739_v19 = vpack.c.bf16 %v428_v15, %v428_v15  ;;  %v420_v20 = vadd.f32 %v419_v17, %v986_v50 }
  0xf1   :  { %630 = vst [vmem:[%s1128_s3 + $0x18] sm:$0xff] %v730_v60  ;;  %v307_v2 = vadd.f32 %v306_v63, %v977_v39  ;;  %v797_v22 = vpop.f32.mrf.mxu1 }
  0xf2   :  { %v310_v5 = vpop.f32.mrf.mxu0  ;;  %639 = vst [vmem:[%s1128_s3 + $0x50] sm:$0xf] %v739_v19  ;;  %v735_v25 = vpack.c.bf16 %v420_v20, %v420_v20  ;;  %v431_v26 = vadd.f32 %v797_v22, %v986_v50 }
  0xf3   :  { %v732_v7 = vpack.c.bf16 %v307_v2, %v305_v1  ;;  %v311_v12 = vadd.f32 %v310_v5, %v975_v38  ;;  %v422_v28 = vpop.f32.mrf.mxu1 }
  0xf4   :  { %v312_v10 = vpop.f32.mrf.mxu0  ;;  %635 = vst [vmem:[%s1128_s3 + $0x38] sm:$0xf] %v735_v25  ;;  %v741_v30 = vpack.c.bf16 %v431_v26, %v431_v26  ;;  %v423_v31 = vadd.f32 %v422_v28, %v986_v50 }
  0xf5   :  { %632 = vst [vmem:[%s1128_s3 + $0x24] sm:$0xff] %v732_v7  ;;  %v313_v13 = vadd.f32 %v312_v10, %v977_v39  ;;  %v800_v33 = vpop.f32.mrf.mxu1 }
  0xf6   :  { %v314_v16 = vpop.f32.mrf.mxu0  ;;  %641 = vst [vmem:[%s1128_s3 + $0x5c] sm:$0xf] %v741_v30  ;;  %v737_v36 = vpack.c.bf16 %v423_v31, %v423_v31  ;;  %v444_v37 = vadd.f32 %v800_v33, %v986_v50 }
  0xf7   :  { %v734_v18 = vpack.c.bf16 %v313_v13, %v311_v12  ;;  %v315_v23 = vadd.f32 %v314_v16, %v975_v38  ;;  %v435_v41 = vpop.f32.mrf.mxu1 }
  0xf8   :  { %v316_v21 = vpop.f32.mrf.mxu0  ;;  %637 = vst [vmem:[%s1128_s3 + $0x44] sm:$0xf] %v737_v36  ;;  %v747_v43 = vpack.c.bf16 %v444_v37, %v444_v37  ;;  %v436_v44 = vadd.f32 %v435_v41, %v986_v50 }
  0xf9   :  { %634 = vst [vmem:[%s1128_s3 + $0x30] sm:$0xff] %v734_v18  ;;  %v317_v24 = vadd.f32 %v316_v21, %v977_v39  ;;  %v801_v46 = vpop.f32.mrf.mxu1 }
  0xfa   :  { %v320_v27 = vpop.f32.mrf.mxu0  ;;  %647 = vst [vmem:[%s1128_s3 + $0x80] sm:$0xf] %v747_v43  ;;  %v743_v49 = vpack.c.bf16 %v436_v44, %v436_v44  ;;  %v447_v51 = vadd.f32 %v801_v46, %v986_v50 }
  0xfb   :  { %v736_v29 = vpack.c.bf16 %v317_v24, %v315_v23  ;;  %v321_v34 = vadd.f32 %v320_v27, %v975_v38  ;;  %v438_v53 = vpop.f32.mrf.mxu1 }
  0xfc   :  { %v322_v32 = vpop.f32.mrf.mxu0  ;;  %643 = vst [vmem:[%s1128_s3 + $0x68] sm:$0xf] %v743_v49  ;;  %v749_v55 = vpack.c.bf16 %v447_v51, %v447_v51  ;;  %v439_v56 = vadd.f32 %v438_v53, %v986_v50 }
  0xfd   :  { %636 = vst [vmem:[%s1128_s3 + $0x3c] sm:$0xff] %v736_v29  ;;  %v323_v35 = vadd.f32 %v322_v32, %v977_v39  ;;  %v804_v58 = vpop.f32.mrf.mxu1 }
  0xfe   :  { %v324_v40 = vpop.f32.mrf.mxu0  ;;  %649 = vst [vmem:[%s1128_s3 + $0x8c] sm:$0xf] %v749_v55  ;;  %v745_v61 = vpack.c.bf16 %v439_v56, %v439_v56  ;;  %v460_v62 = vadd.f32 %v804_v58, %v986_v50 }
  0xff   :  { %v738_v42 = vpack.c.bf16 %v323_v35, %v321_v34  ;;  %v325_v47 = vadd.f32 %v324_v40, %v975_v38  ;;  %v451_v0 = vpop.f32.mrf.mxu1 }
 0x100   :  { %v326_v45 = vpop.f32.mrf.mxu0  ;;  %645 = vst [vmem:[%s1128_s3 + $0x74] sm:$0xf] %v745_v61  ;;  %v755_v2 = vpack.c.bf16 %v460_v62, %v460_v62  ;;  %v452_v3 = vadd.f32 %v451_v0, %v986_v50 }
 0x101   :  { %638 = vst [vmem:[%s1128_s3 + $0x48] sm:$0xff] %v738_v42  ;;  %v327_v48 = vadd.f32 %v326_v45, %v977_v39  ;;  %v805_v5 = vpop.f32.mrf.mxu1 }
 0x102   :  { %v330_v52 = vpop.f32.mrf.mxu0  ;;  %655 = vst [vmem:[%s1128_s3 + $0xb0] sm:$0xf] %v755_v2  ;;  %v751_v8 = vpack.c.bf16 %v452_v3, %v452_v3  ;;  %v463_v9 = vadd.f32 %v805_v5, %v986_v50 }
 0x103   :  { %v740_v54 = vpack.c.bf16 %v327_v48, %v325_v47  ;;  %v331_v59 = vadd.f32 %v330_v52, %v975_v38  ;;  %v454_v11 = vpop.f32.mrf.mxu1 }
 0x104   :  { %v332_v57 = vpop.f32.mrf.mxu0  ;;  %651 = vst [vmem:[%s1128_s3 + $0x98] sm:$0xf] %v751_v8  ;;  %v757_v13 = vpack.c.bf16 %v463_v9, %v463_v9  ;;  %v455_v14 = vadd.f32 %v454_v11, %v986_v50 }
 0x105   :  { %640 = vst [vmem:[%s1128_s3 + $0x54] sm:$0xff] %v740_v54  ;;  %v333_v60 = vadd.f32 %v332_v57, %v977_v39 }
 0x106   :  { %v334_v63 = vpop.f32.mrf.mxu0  ;;  %657 = vst [vmem:[%s1128_s3 + $0xbc] sm:$0xf] %v757_v13  ;;  %v753_v18 = vpack.c.bf16 %v455_v14, %v455_v14 }
 0x107   :  { %v742_v1 = vpack.c.bf16 %v333_v60, %v331_v59  ;;  %v335_v6 = vadd.f32 %v334_v63, %v975_v38 }
 0x108   :  { %v336_v4 = vpop.f32.mrf.mxu0  ;;  %653 = vst [vmem:[%s1128_s3 + $0xa4] sm:$0xf] %v753_v18 }
 0x109   :  { %642 = vst [vmem:[%s1128_s3 + $0x60] sm:$0xff] %v742_v1  ;;  %v337_v7 = vadd.f32 %v336_v4, %v977_v39 }
 0x10a   :  { %v340_v10 = vpop.f32.mrf.mxu0 }
 0x10b   :  { %v744_v12 = vpack.c.bf16 %v337_v7, %v335_v6  ;;  %v341_v16 = vadd.f32 %v340_v10, %v975_v38 }
 0x10c   :  { %v342_v15 = vpop.f32.mrf.mxu0 }
 0x10d   :  { %644 = vst [vmem:[%s1128_s3 + $0x6c] sm:$0xff] %v744_v12  ;;  %v343_v17 = vadd.f32 %v342_v15, %v977_v39 }
 0x10e   :  { %v344_v19 = vpop.f32.mrf.mxu0 }
 0x10f   :  { %v746_v20 = vpack.c.bf16 %v343_v17, %v341_v16  ;;  %v345_v21 = vadd.f32 %v344_v19, %v975_v38 }
 0x110   :  { %v346_v50 = vpop.f32.mrf.mxu0 }
 0x111   :  { %646 = vst [vmem:[%s1128_s3 + $0x78] sm:$0xff] %v746_v20  ;;  %v347_v22 = vadd.f32 %v346_v50, %v977_v39 }
 0x112   :  { %v350_v23 = vpop.f32.mrf.mxu0 }
 0x113   :  { %v748_v24 = vpack.c.bf16 %v347_v22, %v345_v21  ;;  %v351_v26 = vadd.f32 %v350_v23, %v975_v38 }
 0x114   :  { %v352_v25 = vpop.f32.mrf.mxu0 }
 0x115   :  { %648 = vst [vmem:[%s1128_s3 + $0x84] sm:$0xff] %v748_v24  ;;  %v353_v27 = vadd.f32 %v352_v25, %v977_v39 }
 0x116   :  { %v354_v28 = vpop.f32.mrf.mxu0 }
 0x117   :  { %v750_v29 = vpack.c.bf16 %v353_v27, %v351_v26  ;;  %v355_v31 = vadd.f32 %v354_v28, %v975_v38 }
 0x118   :  { %v356_v30 = vpop.f32.mrf.mxu0 }
 0x119   :  { %650 = vst [vmem:[%s1128_s3 + $0x90] sm:$0xff] %v750_v29  ;;  %v357_v32 = vadd.f32 %v356_v30, %v977_v39 }
 0x11a   :  { %v360_v33 = vpop.f32.mrf.mxu0 }
 0x11b   :  { %v752_v34 = vpack.c.bf16 %v357_v32, %v355_v31  ;;  %v361_v36 = vadd.f32 %v360_v33, %v975_v38 }
 0x11c   :  { %v362_v35 = vpop.f32.mrf.mxu0 }
 0x11d   :  { %652 = vst [vmem:[%s1128_s3 + $0x9c] sm:$0xff] %v752_v34  ;;  %v363_v37 = vadd.f32 %v362_v35, %v977_v39 }
 0x11e   :  { %v364_v40 = vpop.f32.mrf.mxu0 }
 0x11f   :  { %v754_v41 = vpack.c.bf16 %v363_v37, %v361_v36  ;;  %v365_v43 = vadd.f32 %v364_v40, %v975_v38 }
 0x120   :  { %v366_v42 = vpop.f32.mrf.mxu0 }
 0x121   :  { %654 = vst [vmem:[%s1128_s3 + $0xa8] sm:$0xff] %v754_v41  ;;  %v367_v44 = vadd.f32 %v366_v42, %v977_v39 }
 0x123   :  { %v756_v45 = vpack.c.bf16 %v367_v44, %v365_v43 }
 0x125   :  { %656 = vst [vmem:[%s1128_s3 + $0xb4] sm:$0xff] %v756_v45 }

// kernel: timm_cnn_encoder_forward.42
= control target key start
LH: loop header
LB: loop body
LE: loop exit
PB: predicated region body
PF: predicated region fallthrough
CT: control target
= control target key end

     0   :  { %s1796_s1 = inlined_call_operand.vmem [shape: bf16[640,128], index: 1, kind: input, shape index: {}]   ;;  %s1797_s0 = inlined_call_operand.vmem [shape: bf16[128,640], index: 0, kind: input, shape index: {}]   ;;  %s1798_s2 = inlined_call_operand.vmem [shape: f32[1,128], index: 2, kind: input, shape index: {}]   ;;  %s1799_s3 = inlined_call_operand.vmem [shape: bf16[128,128], index: 3, kind: output, shape index: {}]  }
   0x1   :  { %v1341_v0 = vld [vmem:[%s1796_s1 + $0x78] sm:$0xff]   ;;  %v1345_v4 = vld [vmem:[%s1796_s1 + $0x70] sm:$0xff]   ;;  %v1349_v8 = vld [vmem:[%s1796_s1 + $0x68] sm:$0xff]  }
   0x2   :  { %v1342_v1 = vld [vmem:[%s1796_s1 + $0xf8] sm:$0xff]   ;;  %1149 = vmatprep.subr.bf16.mxu0 %v1341_v0  ;;  %v1346_v5 = vld [vmem:[%s1796_s1 + $0xf0] sm:$0xff]   ;;  %v1350_v9 = vld [vmem:[%s1796_s1 + $0xe8] sm:$0xff]  }
   0x3   :  { %v1343_v2 = vld [vmem:[%s1796_s1 + $0x38] sm:$0xff]   ;;  %1213 = vmatprep.subr.bf16.mxu1 %v1342_v1  ;;  %v1347_v6 = vld [vmem:[%s1796_s1 + $0x30] sm:$0xff]   ;;  %v1351_v10 = vld [vmem:[%s1796_s1 + $0x28] sm:$0xff]  }
   0x4   :  { %v1344_v3 = vld [vmem:[%s1796_s1 + $0xb8] sm:$0xff]   ;;  %1150 = vmatpush3.bf16.msra.mxu0 %v1343_v2  ;;  %v1348_v7 = vld [vmem:[%s1796_s1 + $0xb0] sm:$0xff]   ;;  %v1352_v11 = vld [vmem:[%s1796_s1 + $0xa8] sm:$0xff]  }
   0x5   :  { %1214 = vmatpush3.bf16.msra.mxu1 %v1344_v3  ;;  %1151 = vmatprep.subr.bf16.mxu0 %v1345_v4  ;;  %v1353_v12 = vld [vmem:[%s1796_s1 + $0x60] sm:$0xff]   ;;  %v1357_v16 = vld [vmem:[%s1796_s1 + $0x58] sm:$0xff]   ;;  %v1361_v20 = vld [vmem:[%s1796_s1 + $0x50] sm:$0xff]  }
   0x6   :  { %1215 = vmatprep.subr.bf16.mxu1 %v1346_v5  ;;  %v1354_v13 = vld [vmem:[%s1796_s1 + $0xe0] sm:$0xff]   ;;  %v1358_v17 = vld [vmem:[%s1796_s1 + $0xd8] sm:$0xff]   ;;  %v1362_v21 = vld [vmem:[%s1796_s1 + $0xd0] sm:$0xff]  }
   0x7   :  { %v1355_v14 = vld [vmem:[%s1796_s1 + $0x20] sm:$0xff]   ;;  %v1359_v18 = vld [vmem:[%s1796_s1 + $0x18] sm:$0xff]   ;;  %v1363_v22 = vld [vmem:[%s1796_s1 + $0x10] sm:$0xff]  }
   0x8   :  { %1152 = vmatpush3.bf16.msra.mxu0 %v1347_v6  ;;  %v1356_v15 = vld [vmem:[%s1796_s1 + $0xa0] sm:$0xff]   ;;  %v1360_v19 = vld [vmem:[%s1796_s1 + $0x98] sm:$0xff]   ;;  %v1364_v23 = vld [vmem:[%s1796_s1 + $0x90] sm:$0xff]  }
   0x9   :  { %1216 = vmatpush3.bf16.msra.mxu1 %v1348_v7  ;;  %1153 = vmatprep.subr.bf16.mxu0 %v1349_v8  ;;  %v1365_v24 = vld [vmem:[%s1796_s1 + $0x48] sm:$0xff]   ;;  %v1369_v28 = vld [vmem:[%s1796_s1 + $0x40] sm:$0xff]   ;;  %v1379_v36 = vld [vmem:[%s1796_s1 + $0x138] sm:$0xff]  }
   0xa   :  { %1217 = vmatprep.subr.bf16.mxu1 %v1350_v9  ;;  %v1366_v25 = vld [vmem:[%s1796_s1 + $0xc8] sm:$0xff]   ;;  %v1370_v29 = vld [vmem:[%s1796_s1 + $0xc0] sm:$0xff]   ;;  %v1386_v39 = vld [vmem:[%s1796_s1 + $0x130] sm:$0xff]  }
   0xb   :  { %v1367_v26 = vld [vmem:[%s1796_s1 + $0x8] sm:$0xff]   ;;  %v1371_v30 = vld [vmem:[%s1796_s1] sm:$0xff]   ;;  %v1389_v43 = vld [vmem:[%s1797_s0 + $0x5c] ss:$20 sps:$4 sm:$0xff]  }
   0xc   :  { %1154 = vmatpush3.bf16.msra.mxu0 %v1351_v10  ;;  %v1368_v27 = vld [vmem:[%s1796_s1 + $0x88] sm:$0xff]   ;;  %v1372_v31 = vld [vmem:[%s1796_s1 + $0x80] sm:$0xff]   ;;  %v1394_v48 = vld [vmem:[%s1797_s0 + $0x7c] ss:$20 sps:$4 sm:$0xff]  }
   0xd   :  { %1218 = vmatpush3.bf16.msra.mxu1 %v1352_v11  ;;  %1155 = vmatprep.subr.bf16.mxu0 %v1353_v12  ;;  %v1373_v32 = vld [vmem:[%s1797_s0] ss:$20 sps:$4 sm:$0xff]   ;;  %v1375_v33 = vld [vmem:[%s1797_s0 + $0x4] ss:$20 sps:$4 sm:$0xff]   ;;  %v1376_v34 = vld [vmem:[%s1797_s0 + $0x8] ss:$20 sps:$4 sm:$0xff]  }
   0xe   :  { %1219 = vmatprep.subr.bf16.mxu1 %v1354_v13  ;;  %v1378_v35 = vld [vmem:[%s1797_s0 + $0xc] ss:$20 sps:$4 sm:$0xff]   ;;  %630 = vmatprep.mubr.bf16.mxu0 %v1375_v33  ;;  %v1382_v38 = vld [vmem:[%s1797_s0 + $0x34] ss:$20 sps:$4 sm:$0xff]   ;;  %v1385_v41 = vld [vmem:[%s1797_s0 + $0x30] ss:$20 sps:$4 sm:$0xff]  }
   0xf   :  { %727 = vmatprep.mubr.bf16.mxu1 %v1378_v35  ;;  %v1380_v37 = vld [vmem:[%s1797_s0 + $0x2c] ss:$20 sps:$4 sm:$0xff]   ;;  %v1384_v40 = vld [vmem:[%s1797_s0 + $0x28] ss:$20 sps:$4 sm:$0xff]   ;;  %v1391_v46 = vld [vmem:[%s1797_s0 + $0x50] ss:$20 sps:$4 sm:$0xff]  }
  0x10   :  { %1156 = vmatpush3.bf16.msra.mxu0 %v1355_v14  ;;  %v1387_v42 = vld [vmem:[%s1797_s0 + $0x54] ss:$20 sps:$4 sm:$0xff]   ;;  %v1400_v45 = vld [vmem:[%s1796_s1 + $0x120] sm:$0xff]   ;;  %v1392_v47 = vld [vmem:[%s1797_s0 + $0x58] ss:$20 sps:$4 sm:$0xff]  }
  0x11   :  { %1220 = vmatpush3.bf16.msra.mxu1 %v1356_v15  ;;  %1157 = vmatprep.subr.bf16.mxu0 %v1357_v16  ;;  %v1393_v44 = vld [vmem:[%s1796_s1 + $0x128] sm:$0xff]   ;;  %v1396_v49 = vld [vmem:[%s1797_s0 + $0x84] ss:$20 sps:$4 sm:$0xff]   ;;  %v1414_v51 = vld [vmem:[%s1796_s1 + $0x110] sm:$0xff]  }
  0x12   :  { %1221 = vmatprep.subr.bf16.mxu1 %v1358_v17  ;;  %v1407_v50 = vld [vmem:[%s1796_s1 + $0x118] sm:$0xff]   ;;  %v1399_v53 = vld [vmem:[%s1797_s0 + $0x80] ss:$20 sps:$4 sm:$0xff]   ;;  %v1421_v55 = vld [vmem:[%s1796_s1 + $0x108] sm:$0xff]  }
  0x13   :  { %v1398_v52 = vld [vmem:[%s1797_s0 + $0x78] ss:$20 sps:$4 sm:$0xff]   ;;  %v1428_v57 = vld [vmem:[%s1796_s1 + $0x100] sm:$0xff]   ;;  %v1406_v59 = vld [vmem:[%s1797_s0 + $0xa8] ss:$20 sps:$4 sm:$0xff]  }
  0x14   :  { %1158 = vmatpush3.bf16.msra.mxu0 %v1359_v18  ;;  %v1401_v54 = vld [vmem:[%s1797_s0 + $0xa4] ss:$20 sps:$4 sm:$0xff]   ;;  %v1403_v56 = vld [vmem:[%s1797_s0 + $0xac] ss:$20 sps:$4 sm:$0xff]   ;;  %v1410_v61 = vld [vmem:[%s1797_s0 + $0xd4] ss:$20 sps:$4 sm:$0xff]  }
  0x15   :  { %1222 = vmatpush3.bf16.msra.mxu1 %v1360_v19  ;;  %1159 = vmatprep.subr.bf16.mxu0 %v1361_v20  ;;  %v1405_v58 = vld [vmem:[%s1797_s0 + $0xa0] ss:$20 sps:$4 sm:$0xff]   ;;  %v1412_v62 = vld [vmem:[%s1797_s0 + $0xc8] ss:$20 sps:$4 sm:$0xff]   ;;  %v1413_v63 = vld [vmem:[%s1797_s0 + $0xd0] ss:$20 sps:$4 sm:$0xff]  }
  0x16   :  { %1223 = vmatprep.subr.bf16.mxu1 %v1362_v21  ;;  %v1408_v60 = vld [vmem:[%s1797_s0 + $0xcc] ss:$20 sps:$4 sm:$0xff]   ;;  %v1415_v0 = vld [vmem:[%s1797_s0 + $0xf4] ss:$20 sps:$4 sm:$0xff]   ;;  %v1417_v1 = vld [vmem:[%s1797_s0 + $0xfc] ss:$20 sps:$4 sm:$0xff]  }
  0x17   :  { %v1419_v2 = vld [vmem:[%s1797_s0 + $0xf0] ss:$20 sps:$4 sm:$0xff]   ;;  %v1420_v3 = vld [vmem:[%s1797_s0 + $0xf8] ss:$20 sps:$4 sm:$0xff]   ;;  %v1427_v7 = vld [vmem:[%s1797_s0 + $0x120] ss:$20 sps:$4 sm:$0xff]  }
  0x18   :  { %1160 = vmatpush3.bf16.msra.mxu0 %v1363_v22  ;;  %v1422_v4 = vld [vmem:[%s1797_s0 + $0x11c] ss:$20 sps:$4 sm:$0xff]   ;;  %v1424_v5 = vld [vmem:[%s1797_s0 + $0x124] ss:$20 sps:$4 sm:$0xff]   ;;  %v1433_v12 = vld [vmem:[%s1797_s0 + $0x60] ss:$20 sps:$4 sm:$0xff]  }
  0x19   :  { %1224 = vmatpush3.bf16.msra.mxu1 %v1364_v23  ;;  %1161 = vmatprep.subr.bf16.mxu0 %v1365_v24  ;;  %v1426_v6 = vld [vmem:[%s1797_s0 + $0x118] ss:$20 sps:$4 sm:$0xff]   ;;  %v1429_v8 = vld [vmem:[%s1797_s0 + $0x10] ss:$20 sps:$4 sm:$0xff]   ;;  %v1434_v13 = vld [vmem:[%s1797_s0 + $0x100] ss:$20 sps:$4 sm:$0xff]  }
  0x1a   :  { %1225 = vmatprep.subr.bf16.mxu1 %v1366_v25  ;;  %v1430_v9 = vld [vmem:[%s1797_s0 + $0xb0] ss:$20 sps:$4 sm:$0xff]   ;;  %v1431_v10 = vld [vmem:[%s1797_s0 + $0x38] ss:$20 sps:$4 sm:$0xff]   ;;  %v1435_v14 = vld [vmem:[%s1797_s0 + $0x88] ss:$20 sps:$4 sm:$0xff]  }
  0x1b   :  { %v1432_v11 = vld [vmem:[%s1797_s0 + $0xd8] ss:$20 sps:$4 sm:$0xff]   ;;  %v1436_v15 = vld [vmem:[%s1797_s0 + $0x128] ss:$20 sps:$4 sm:$0xff]   ;;  %v1700_v18 = vld [vmem:[%s1798_s2] ss:$0 sm:$0xff] }
  0x1c   :  { %1162 = vmatpush3.bf16.msra.mxu0 %v1367_v26 }
  0x1d   :  { %1226 = vmatpush3.bf16.msra.mxu1 %v1368_v27  ;;  %1163 = vmatprep.subr.bf16.mxu0 %v1369_v28 }
  0x1e   :  { %1227 = vmatprep.subr.bf16.mxu1 %v1370_v29 }
  0x20   :  { %1164 = vmatpush3.bf16.msra.mxu0 %v1371_v30 }
  0x21   :  { %1228 = vmatpush3.bf16.msra.mxu1 %v1372_v31  ;;  %1293 = vmatprep.subr.bf16.mxu0 %v1379_v36 }
  0x22   :  { %1325 = vmatprep.subr.bf16.mxu1 %v1379_v36 }
  0x23   :  { %631 = vmatmul.mubr.bf16.vlgmr.msra.gmra.mxu0 %v1373_v32 }
  0x24   :  { %728 = vmatmul.mubr.bf16.vlgmr.msra.gmra.mxu1 %v1376_v34  ;;  %1294 = vmatpush3.bf16.msra.mxu0 %v1379_v36 }
  0x25   :  { %1333 = vmatpush3.bf16.msra.mxu1 %v1379_v36  ;;  %638 = vmatprep.mubr.bf16.mxu0 %v1380_v37 }
  0x26   :  { %735 = vmatprep.mubr.bf16.mxu1 %v1382_v38  ;;  %1295 = vmatprep.subr.bf16.mxu0 %v1386_v39 }
  0x27   :  { %1326 = vmatprep.subr.bf16.mxu1 %v1386_v39 }
  0x28   :  { %1296 = vmatpush3.bf16.msra.mxu0 %v1386_v39 }
  0x29   :  { %1334 = vmatpush3.bf16.msra.mxu1 %v1386_v39  ;;  %1297 = vmatprep.subr.bf16.mxu0 %v1393_v44 }
  0x2a   :  { %1327 = vmatprep.subr.bf16.mxu1 %v1393_v44 }
  0x2b   :  { %639 = vmatmul.mubr.bf16.gmra.mxu0 %v1384_v40 }
  0x2c   :  { %736 = vmatmul.mubr.bf16.gmra.mxu1 %v1385_v41  ;;  %646 = vmatprep.mubr.bf16.mxu0 %v1387_v42 }
  0x2d   :  { %743 = vmatprep.mubr.bf16.mxu1 %v1389_v43  ;;  %1298 = vmatpush3.bf16.msra.mxu0 %v1393_v44 }
  0x2e   :  { %1335 = vmatpush3.bf16.msra.mxu1 %v1393_v44  ;;  %1299 = vmatprep.subr.bf16.mxu0 %v1400_v45 }
  0x2f   :  { %1328 = vmatprep.subr.bf16.mxu1 %v1400_v45 }
  0x31   :  { %1300 = vmatpush3.bf16.msra.mxu0 %v1400_v45 }
  0x32   :  { %1336 = vmatpush3.bf16.msra.mxu1 %v1400_v45  ;;  %1301 = vmatprep.subr.bf16.mxu0 %v1407_v50 }
  0x33   :  { %647 = vmatmul.mubr.bf16.gmra.mxu0 %v1391_v46  ;;  %1329 = vmatprep.subr.bf16.mxu1 %v1407_v50 }
  0x34   :  { %744 = vmatmul.mubr.bf16.gmra.mxu1 %v1392_v47  ;;  %654 = vmatprep.mubr.bf16.mxu0 %v1394_v48 }
  0x35   :  { %751 = vmatprep.mubr.bf16.mxu1 %v1396_v49  ;;  %1302 = vmatpush3.bf16.msra.mxu0 %v1407_v50 }
  0x36   :  { %1337 = vmatpush3.bf16.msra.mxu1 %v1407_v50  ;;  %1303 = vmatprep.subr.bf16.mxu0 %v1414_v51 }
  0x37   :  { %1330 = vmatprep.subr.bf16.mxu1 %v1414_v51 }
  0x39   :  { %1304 = vmatpush3.bf16.msra.mxu0 %v1414_v51 }
  0x3a   :  { %1338 = vmatpush3.bf16.msra.mxu1 %v1414_v51  ;;  %1305 = vmatprep.subr.bf16.mxu0 %v1421_v55 }
  0x3b   :  { %655 = vmatmul.mubr.bf16.gmra.mxu0 %v1398_v52  ;;  %1331 = vmatprep.subr.bf16.mxu1 %v1421_v55 }
  0x3c   :  { %752 = vmatmul.mubr.bf16.gmra.mxu1 %v1399_v53  ;;  %662 = vmatprep.mubr.bf16.mxu0 %v1401_v54 }
  0x3d   :  { %759 = vmatprep.mubr.bf16.mxu1 %v1403_v56  ;;  %1306 = vmatpush3.bf16.msra.mxu0 %v1421_v55 }
  0x3e   :  { %1339 = vmatpush3.bf16.msra.mxu1 %v1421_v55  ;;  %1307 = vmatprep.subr.bf16.mxu0 %v1428_v57 }
  0x3f   :  { %1332 = vmatprep.subr.bf16.mxu1 %v1428_v57 }
  0x41   :  { %1308 = vmatpush3.bf16.msra.mxu0 %v1428_v57 }
  0x42   :  { %1340 = vmatpush3.bf16.msra.mxu1 %v1428_v57 }
  0x43   :  { %663 = vmatmul.mubr.bf16.gmra.mxu0 %v1405_v58 }
  0x44   :  { %760 = vmatmul.mubr.bf16.gmra.mxu1 %v1406_v59  ;;  %670 = vmatprep.mubr.bf16.mxu0 %v1408_v60 }
  0x45   :  { %767 = vmatprep.mubr.bf16.mxu1 %v1410_v61 }
  0x4b   :  { %671 = vmatmul.mubr.bf16.gmra.mxu0 %v1412_v62 }
  0x4c   :  { %768 = vmatmul.mubr.bf16.gmra.mxu1 %v1413_v63  ;;  %678 = vmatprep.mubr.bf16.mxu0 %v1415_v0 }
  0x4d   :  { %775 = vmatprep.mubr.bf16.mxu1 %v1417_v1 }
  0x53   :  { %679 = vmatmul.mubr.bf16.gmra.mxu0 %v1419_v2 }
  0x54   :  { %776 = vmatmul.mubr.bf16.gmra.mxu1 %v1420_v3  ;;  %686 = vmatprep.mubr.bf16.mxu0 %v1422_v4 }
  0x55   :  { %783 = vmatprep.mubr.bf16.mxu1 %v1424_v5 }
  0x5b   :  { %687 = vmatmul.mubr.bf16.gmra.mxu0 %v1426_v6 }
  0x5c   :  { %784 = vmatmul.mubr.bf16.gmra.mxu1 %v1427_v7  ;;  %1309 = vmatprep.mubr.bf16.mxu0 %v1429_v8 }
  0x5d   :  { %1317 = vmatprep.mubr.bf16.mxu1 %v1430_v9 }
  0x63   :  { %1310 = vmatmul.mubr.bf16.vlgmr.msra.gmra.mxu0 %v1431_v10 }
  0x64   :  { %1318 = vmatmul.mubr.bf16.vlgmr.msra.gmra.mxu1 %v1432_v11  ;;  %1313 = vmatprep.mubr.bf16.mxu0 %v1433_v12 }
  0x65   :  { %1321 = vmatprep.mubr.bf16.mxu1 %v1434_v13 }
  0x6b   :  { %1314 = vmatmul.mubr.bf16.gmra.mxu0 %v1435_v14 }
  0x6c   :  { %1322 = vmatmul.mubr.bf16.gmra.mxu1 %v1436_v15 }
  0xe3   :  { %v1165_v16 = vpop.f32.mrf.mxu0 }
  0xe4   :  { %v1229_v17 = vpop.f32.mrf.mxu1 }
  0xe5   :  { %v1166_v19 = vpop.f32.mrf.mxu0 }
  0xe6   :  { %v1167_v20 = vadd.f32 %v1166_v19, %v1165_v16  ;;  %v1230_v21 = vpop.f32.mrf.mxu1 }
  0xe7   :  { %v1168_v22 = vpop.f32.mrf.mxu0  ;;  %v1231_v24 = vadd.f32 %v1230_v21, %v1229_v17 }
  0xe8   :  { %v633_v23 = vadd.f32 %v1167_v20, %v1700_v18  ;;  %v1703_v25 = vpop.f32.mrf.mxu1 }
  0xe9   :  { %v1169_v26 = vpop.f32.mrf.mxu0 }
  0xea   :  { %v1705_v27 = vpop.f32.mrf.mxu1  ;;  %v1707_v28 = vadd.f32 %v1231_v24, %v633_v23  ;;  %v1170_v10 = vadd.f32 %v1169_v26, %v1168_v22 }
  0xeb   :  { %v1171_v29 = vpop.f32.mrf.mxu0 }
  0xec   :  { %1800 = vst [vmem:[#allocation2_spill] sm:$0xff] %v1707_v28  ;;  %v1235_v30 = vpop.f32.mrf.mxu1  ;;  %v636_v19 = vadd.f32 %v1170_v10, %v1700_v18 }
  0xed   :  { %v1172_v31 = vpop.f32.mrf.mxu0 }
  0xee   :  { %v1236_v32 = vpop.f32.mrf.mxu1  ;;  %v1173_v12 = vadd.f32 %v1172_v31, %v1171_v29  ;;  %v1234_v29 = vadd.f32 %v1705_v27, %v1703_v25 }
  0xef   :  { %v1174_v33 = vpop.f32.mrf.mxu0  ;;  %v1237_v31 = vadd.f32 %v1236_v32, %v1235_v30 }
  0xf0   :  { %v1238_v34 = vpop.f32.mrf.mxu1  ;;  %v641_v23 = vadd.f32 %v1173_v12, %v1700_v18 }
  0xf1   :  { %v1175_v35 = vpop.f32.mrf.mxu0 }
  0xf2   :  { %v1239_v36 = vpop.f32.mrf.mxu1  ;;  %v1176_v13 = vadd.f32 %v1175_v35, %v1174_v33 }
  0xf3   :  { %v1177_v37 = vpop.f32.mrf.mxu0  ;;  %v1240_v33 = vadd.f32 %v1239_v36, %v1238_v34 }
  0xf4   :  { %v1241_v38 = vpop.f32.mrf.mxu1  ;;  %v644_v24 = vadd.f32 %v1176_v13, %v1700_v18  ;;  %v733_v13 = vadd.f32 %v1234_v29, %v636_v19 }
  0xf5   :  { %v1178_v39 = vpop.f32.mrf.mxu0 }
  0xf6   :  { %v1242_v40 = vpop.f32.mrf.mxu1  ;;  %v1179_v14 = vadd.f32 %v1178_v39, %v1177_v37  ;;  %v741_v28 = vadd.f32 %v1240_v33, %v644_v24 }
  0xf7   :  { %v1180_v41 = vpop.f32.mrf.mxu0  ;;  %v1243_v39 = vadd.f32 %v1242_v40, %v1241_v38 }
  0xf8   :  { %v1709_v42 = vpop.f32.mrf.mxu1  ;;  %v649_v22 = vadd.f32 %v1179_v14, %v1700_v18  ;;  %v738_v14 = vadd.f32 %v1237_v31, %v641_v23 }
  0xf9   :  { %v1181_v43 = vpop.f32.mrf.mxu0 }
  0xfa   :  { %v1711_v44 = vpop.f32.mrf.mxu1  ;;  %v1182_v10 = vadd.f32 %v1181_v43, %v1180_v41  ;;  %v1741_v25 = vadd.f32 %v1243_v39, %v649_v22 }
  0xfb   :  { %v1183_v45 = vpop.f32.mrf.mxu0  ;;  %v1745_v27 = vadd.f32 %v1711_v44, %v1709_v42 }
  0xfc   :  { %v1713_v46 = vpop.f32.mrf.mxu1  ;;  %v1750_v38 = vadd.f32 %v1182_v10, %v1700_v18 }
  0xfd   :  { %v1184_v47 = vpop.f32.mrf.mxu0 }
  0xfe   :  { %v1248_v48 = vpop.f32.mrf.mxu1  ;;  %v1185_v20 = vadd.f32 %v1184_v47, %v1183_v45 }
  0xff   :  { %v1186_v49 = vpop.f32.mrf.mxu0  ;;  %v1249_v30 = vadd.f32 %v1248_v48, %v1713_v46 }
 0x100   :  { %v1715_v50 = vpop.f32.mrf.mxu1  ;;  %v657_v12 = vadd.f32 %v1185_v20, %v1700_v18 }
 0x101   :  { %v1187_v51 = vpop.f32.mrf.mxu0 }
 0x102   :  { %v1717_v52 = vpop.f32.mrf.mxu1  ;;  %v1188_v32 = vadd.f32 %v1187_v51, %v1186_v49 }
 0x103   :  { %v1189_v53 = vpop.f32.mrf.mxu0  ;;  %v1252_v19 = vadd.f32 %v1717_v52, %v1715_v50 }
 0x104   :  { %v1719_v54 = vpop.f32.mrf.mxu1 }
 0x105   :  { %v1190_v55 = vpop.f32.mrf.mxu0 }
 0x106   :  { %v1254_v56 = vpop.f32.mrf.mxu1  ;;  %v1191_v35 = vadd.f32 %v1190_v55, %v1189_v53 }
 0x107   :  { %v1192_v57 = vpop.f32.mrf.mxu0  ;;  %v1255_v55 = vadd.f32 %v1254_v56, %v1719_v54 }
 0x108   :  { %v1256_v58 = vpop.f32.mrf.mxu1  ;;  %v665_v34 = vadd.f32 %v1191_v35, %v1700_v18 }
 0x109   :  { %v1193_v59 = vpop.f32.mrf.mxu0 }
 0x10a   :  { %v1257_v60 = vpop.f32.mrf.mxu1  ;;  %v1194_v45 = vadd.f32 %v1193_v59, %v1192_v57  ;;  %v754_v59 = vadd.f32 %v1249_v30, %v657_v12 }
 0x10b   :  { %v1195_v61 = vpop.f32.mrf.mxu0  ;;  %v1258_v57 = vadd.f32 %v1257_v60, %v1256_v58 }
 0x10c   :  { %v1259_v62 = vpop.f32.mrf.mxu1  ;;  %v668_v40 = vadd.f32 %v1194_v45, %v1700_v18 }
 0x10d   :  { %v1196_v63 = vpop.f32.mrf.mxu0 }
 0x10e   :  { %v1260_v0 = vpop.f32.mrf.mxu1  ;;  %v1197_v26 = vadd.f32 %v1196_v63, %v1195_v61  ;;  %v765_v58 = vadd.f32 %v1258_v57, %v668_v40 }
 0x10f   :  { %v1198_v1 = vpop.f32.mrf.mxu0  ;;  %v1261_v41 = vadd.f32 %v1260_v0, %v1259_v62  ;;  %v762_v0 = vadd.f32 %v1255_v55, %v665_v34 }
 0x110   :  { %v1262_v2 = vpop.f32.mrf.mxu1  ;;  %v673_v61 = vadd.f32 %v1197_v26, %v1700_v18 }
 0x111   :  { %v1199_v3 = vpop.f32.mrf.mxu0 }
 0x112   :  { %v1263_v4 = vpop.f32.mrf.mxu1  ;;  %v1200_v47 = vadd.f32 %v1199_v3, %v1198_v1  ;;  %v770_v51 = vadd.f32 %v1261_v41, %v673_v61  ;;  %v660_v3 = vadd.f32 %v1188_v32, %v1700_v18 }
 0x113   :  { %v1201_v5 = vpop.f32.mrf.mxu0  ;;  %v1264_v46 = vadd.f32 %v1263_v4, %v1262_v2  ;;  %v1804_v4 = vld [vmem:[#allocation2_spill] sm:$0xff] }
 0x114   :  { %v1721_v6 = vpop.f32.mrf.mxu1  ;;  %v676_v43 = vadd.f32 %v1200_v47, %v1700_v18  ;;  %v757_v41 = vadd.f32 %v1252_v19, %v660_v3 }
 0x115   :  { %v1202_v7 = vpop.f32.mrf.mxu0 }
 0x116   :  { %v1723_v8 = vpop.f32.mrf.mxu1  ;;  %v1203_v48 = vadd.f32 %v1202_v7, %v1201_v5  ;;  %v773_v56 = vadd.f32 %v1264_v46, %v676_v43 }
 0x117   :  { %v1204_v9 = vpop.f32.mrf.mxu0  ;;  %v1267_v60 = vadd.f32 %v1723_v8, %v1721_v6 }
 0x118   :  { %v1725_v11 = vpop.f32.mrf.mxu1 }
 0x119   :  { %1801 = vst [vmem:[#allocation3_spill] sm:$0xff] %v1725_v11  ;;  %v1205_v15 = vpop.f32.mrf.mxu0 }
 0x11a   :  { %v1727_v16 = vpop.f32.mrf.mxu1  ;;  %v1206_v49 = vadd.f32 %v1205_v15, %v1204_v9 }
 0x11b   :  { %1802 = vst [vmem:[#allocation4_spill] sm:$0xff] %v1727_v16  ;;  %v1207_v17 = vpop.f32.mrf.mxu0 }
 0x11c   :  { %v1730_v21 = vpop.f32.mrf.mxu1  ;;  %v684_v50 = vadd.f32 %v1206_v49, %v1700_v18 }
 0x11d   :  { %1803 = vst [vmem:[#allocation5_spill] sm:$0xff] %v1730_v21  ;;  %v1208_v11 = vpop.f32.mrf.mxu0 }
 0x11e   :  { %v1272_v37 = vpop.f32.mrf.mxu1  ;;  %v1209_v42 = vadd.f32 %v1208_v11, %v1207_v17  ;;  %v681_v11 = vadd.f32 %v1203_v48, %v1700_v18  ;;  %v749_v48 = vadd.f32 %v1745_v27, %v1750_v38 }
 0x11f   :  { %v1210_v16 = vpop.f32.mrf.mxu0 }
 0x120   :  { %v1738_v21 = vpop.f32.mrf.mxu1  ;;  %v689_v2 = vadd.f32 %v1209_v42, %v1700_v18  ;;  %v778_v34 = vadd.f32 %v1267_v60, %v681_v11  ;;  %v1806_v43 = vld [vmem:[#allocation3_spill] sm:$0xff] }
 0x121   :  { %v1211_v63 = vpop.f32.mrf.mxu0 }
 0x122   :  { %v1275_v36 = vpop.f32.mrf.mxu1  ;;  %v1212_v23 = vadd.f32 %v1211_v63, %v1210_v16 }
 0x123   :  { %v1311_v53 = vpop.f32.mrf.mxu0  ;;  %v1276_v63 = vadd.f32 %v1275_v36, %v1738_v21 }
 0x124   :  { %v1319_v44 = vpop.f32.mrf.mxu1  ;;  %v835_v62 = vadd.f32 %v1311_v53, %v738_v14  ;;  %v1805_v17 = vld [vmem:[#allocation5_spill] sm:$0xff]  ;;  %v692_v6 = vadd.f32 %v1212_v23, %v1700_v18  ;;  %v1807_v53 = vld [vmem:[#allocation4_spill] sm:$0xff] }
 0x125   :  { %v826_v1 = vpop.f32.mrf.mxu0  ;;  %v867_v24 = vadd.f32 %v1319_v44, %v770_v51  ;;  %v1273_v22 = vadd.f32 %v1272_v37, %v1805_v17  ;;  %v1270_v55 = vadd.f32 %v1807_v53, %v1806_v43 }
 0x126   :  { %v858_v20 = vpop.f32.mrf.mxu1  ;;  %v827_v5 = vadd.f32 %v826_v1, %v1804_v4  ;;  %v891_v26 = vmax.f32 %v835_v62, 0.0  ;;  %v789_v42 = vadd.f32 %v1276_v63, %v692_v6 }
 0x127   :  { %v1312_v54 = vpop.f32.mrf.mxu0  ;;  %v859_v52 = vadd.f32 %v858_v20, %v762_v0  ;;  %v899_v8 = vmax.f32 %v867_v24, 0.0  ;;  %v786_v12 = vadd.f32 %v1273_v22, %v689_v2  ;;  %v781_v3 = vadd.f32 %v1270_v55, %v684_v50 }
 0x128   :  { %v838_v7 = vadd.f32 %v1312_v54, %v741_v28  ;;  %v1320_v9 = vpop.f32.mrf.mxu1  ;;  %v889_v10 = vmax.f32 %v827_v5, 0.0 }
 0x129   :  { %v870_v15 = vadd.f32 %v1320_v9, %v773_v56  ;;  %v829_v16 = vpop.f32.mrf.mxu0  ;;  %v897_v14 = vmax.f32 %v859_v52, 0.0 }
 0x12a   :  { %v892_v29 = vmax.f32 %v838_v7, 0.0  ;;  %v830_v31 = vadd.f32 %v829_v16, %v733_v13  ;;  %v861_v33 = vpop.f32.mrf.mxu1 }
 0x12b   :  { %v900_v35 = vmax.f32 %v870_v15, 0.0  ;;  %v862_v39 = vadd.f32 %v861_v33, %v765_v58  ;;  %v1315_v28 = vpop.f32.mrf.mxu0 }
 0x12c   :  { %v1110_v45 = vpack.c.bf16 %v892_v29, %v891_v26  ;;  %v890_v47 = vmax.f32 %v830_v31, 0.0  ;;  %v1323_v61 = vpop.f32.mrf.mxu1  ;;  %v851_v13 = vadd.f32 %v1315_v28, %v754_v59 }
 0x12d   :  { %v1130_v30 = vpack.c.bf16 %v900_v35, %v899_v8  ;;  %v898_v37 = vmax.f32 %v862_v39, 0.0  ;;  %v842_v32 = vpop.f32.mrf.mxu0  ;;  %v883_v36 = vadd.f32 %v1323_v61, %v786_v12 }
 0x12e   :  { %1142 = vst [vmem:[%s1799_s3 + $0x8] sm:$0xff] %v1110_v45   ;;  %v1105_v18 = vpack.c.bf16 %v890_v47, %v889_v10  ;;  %v874_v40 = vpop.f32.mrf.mxu1  ;;  %v843_v44 = vadd.f32 %v842_v32, %v1741_v25  ;;  %v895_v19 = vmax.f32 %v851_v13, 0.0 }
 0x12f   :  { %1146 = vst [vmem:[%s1799_s3 + $0x28] sm:$0xff] %v1130_v30   ;;  %v1125_v21 = vpack.c.bf16 %v898_v37, %v897_v14  ;;  %v1316_v57 = vpop.f32.mrf.mxu0  ;;  %v875_v49 = vadd.f32 %v874_v40, %v778_v34  ;;  %v903_v23 = vmax.f32 %v883_v36, 0.0 }
 0x130   :  { %1106 = vst [vmem:[%s1799_s3] sm:$0xff] %v1105_v18   ;;  %v854_v59 = vadd.f32 %v1316_v57, %v757_v41  ;;  %v1324_v46 = vpop.f32.mrf.mxu1  ;;  %v893_v54 = vmax.f32 %v843_v44, 0.0 }
 0x131   :  { %1145 = vst [vmem:[%s1799_s3 + $0x20] sm:$0xff] %v1125_v21   ;;  %v886_v51 = vadd.f32 %v1324_v46, %v789_v42  ;;  %v845_v1 = vpop.f32.mrf.mxu0  ;;  %v901_v60 = vmax.f32 %v875_v49, 0.0 }
 0x132   :  { %v896_v62 = vmax.f32 %v854_v59, 0.0  ;;  %v846_v0 = vadd.f32 %v845_v1, %v749_v48  ;;  %v877_v20 = vpop.f32.mrf.mxu1 }
 0x133   :  { %v904_v24 = vmax.f32 %v886_v51, 0.0  ;;  %v878_v25 = vadd.f32 %v877_v20, %v781_v3 }
 0x134   :  { %v1120_v56 = vpack.c.bf16 %v896_v62, %v895_v19  ;;  %v894_v58 = vmax.f32 %v846_v0, 0.0 }
 0x135   :  { %v1140_v27 = vpack.c.bf16 %v904_v24, %v903_v23  ;;  %v902_v38 = vmax.f32 %v878_v25, 0.0 }
 0x136   :  { %1144 = vst [vmem:[%s1799_s3 + $0x18] sm:$0xff] %v1120_v56   ;;  %v1115_v2 = vpack.c.bf16 %v894_v58, %v893_v54 }
 0x137   :  { %1148 = vst [vmem:[%s1799_s3 + $0x38] sm:$0xff] %v1140_v27   ;;  %v1135_v4 = vpack.c.bf16 %v902_v38, %v901_v60 }
 0x138   :  { %1143 = vst [vmem:[%s1799_s3 + $0x10] sm:$0xff] %v1115_v2  }
 0x139   :  { %1147 = vst [vmem:[%s1799_s3 + $0x30] sm:$0xff] %v1135_v4  }

// kernel: timm_cnn_encoder_forward.44
= control target key start
LH: loop header
LB: loop body
LE: loop exit
PB: predicated region body
PF: predicated region fallthrough
CT: control target
= control target key end

     0   :  { %s836_s1 = inlined_call_operand.vmem [shape: bf16[256,128], index: 1, kind: input, shape index: {}]   ;;  %s837_s0 = inlined_call_operand.vmem [shape: bf16[128,256], index: 0, kind: input, shape index: {}]   ;;  %s838_s2 = inlined_call_operand.vmem [shape: f32[1,128], index: 2, kind: input, shape index: {}]   ;;  %s839_s3 = inlined_call_operand.vmem [shape: bf16[128,128], index: 3, kind: output, shape index: {}]  }
   0x1   :  { %v635_v0 = vld [vmem:[%s836_s1 + $0x78] sm:$0xff]   ;;  %v637_v2 = vld [vmem:[%s836_s1 + $0x70] sm:$0xff]   ;;  %v639_v4 = vld [vmem:[%s836_s1 + $0x68] sm:$0xff]  }
   0x2   :  { %v636_v1 = vld [vmem:[%s836_s1 + $0x38] sm:$0xff]   ;;  %555 = vmatprep.subr.bf16.mxu0 %v635_v0  ;;  %619 = vmatprep.subr.bf16.mxu1 %v635_v0  ;;  %v638_v3 = vld [vmem:[%s836_s1 + $0x30] sm:$0xff]   ;;  %v640_v5 = vld [vmem:[%s836_s1 + $0x28] sm:$0xff]  }
   0x3   :  { %556 = vmatpush3.bf16.msra.mxu0 %v636_v1  ;;  %627 = vmatpush3.bf16.msra.mxu1 %v636_v1  ;;  %v641_v6 = vld [vmem:[%s836_s1 + $0x60] sm:$0xff]   ;;  %v643_v8 = vld [vmem:[%s836_s1 + $0x58] sm:$0xff]   ;;  %v645_v10 = vld [vmem:[%s836_s1 + $0x50] sm:$0xff]  }
   0x4   :  { %557 = vmatprep.subr.bf16.mxu0 %v637_v2  ;;  %620 = vmatprep.subr.bf16.mxu1 %v637_v2  ;;  %v642_v7 = vld [vmem:[%s836_s1 + $0x20] sm:$0xff]   ;;  %v644_v9 = vld [vmem:[%s836_s1 + $0x18] sm:$0xff]   ;;  %v646_v13 = vld [vmem:[%s836_s1 + $0x10] sm:$0xff]  }
   0x5   :  { %v653_v11 = vld [vmem:[%s837_s0 + $0x4] ss:$8 sps:$4 sm:$0xff]   ;;  %v651_v18 = vld [vmem:[%s837_s0] ss:$8 sps:$4 sm:$0xff]   ;;  %v657_v20 = vld [vmem:[%s837_s0 + $0x14] ss:$8 sps:$4 sm:$0xff]  }
   0x6   :  { %v656_v12 = vld [vmem:[%s837_s0 + $0x44] ss:$8 sps:$4 sm:$0xff]   ;;  %278 = vmatprep.mubr.bf16.mxu0 %v653_v11  ;;  %v654_v19 = vld [vmem:[%s837_s0 + $0x40] ss:$8 sps:$4 sm:$0xff]   ;;  %v659_v21 = vld [vmem:[%s837_s0 + $0x54] ss:$8 sps:$4 sm:$0xff]  }
   0x7   :  { %558 = vmatpush3.bf16.msra.mxu0 %v638_v3  ;;  %628 = vmatpush3.bf16.msra.mxu1 %v638_v3  ;;  %v647_v14 = vld [vmem:[%s836_s1 + $0x48] sm:$0xff]   ;;  %v649_v16 = vld [vmem:[%s836_s1 + $0x40] sm:$0xff]   ;;  %v661_v22 = vld [vmem:[%s837_s0 + $0x10] ss:$8 sps:$4 sm:$0xff]  }
   0x8   :  { %559 = vmatprep.subr.bf16.mxu0 %v639_v4  ;;  %621 = vmatprep.subr.bf16.mxu1 %v639_v4  ;;  %v648_v15 = vld [vmem:[%s836_s1 + $0x8] sm:$0xff]   ;;  %v650_v17 = vld [vmem:[%s836_s1] sm:$0xff]   ;;  %v662_v23 = vld [vmem:[%s837_s0 + $0x50] ss:$8 sps:$4 sm:$0xff]  }
   0x9   :  { %310 = vmatprep.mubr.bf16.mxu1 %v656_v12  ;;  %v663_v24 = vld [vmem:[%s837_s0 + $0x24] ss:$8 sps:$4 sm:$0xff]   ;;  %v667_v26 = vld [vmem:[%s837_s0 + $0x20] ss:$8 sps:$4 sm:$0xff]   ;;  %v669_v28 = vld [vmem:[%s837_s0 + $0x34] ss:$8 sps:$4 sm:$0xff]  }
   0xa   :  { %v665_v25 = vld [vmem:[%s837_s0 + $0x64] ss:$8 sps:$4 sm:$0xff]   ;;  %v668_v27 = vld [vmem:[%s837_s0 + $0x60] ss:$8 sps:$4 sm:$0xff]   ;;  %v671_v29 = vld [vmem:[%s837_s0 + $0x74] ss:$8 sps:$4 sm:$0xff]  }
   0xb   :  { %560 = vmatpush3.bf16.msra.mxu0 %v640_v5  ;;  %629 = vmatpush3.bf16.msra.mxu1 %v640_v5  ;;  %v673_v30 = vld [vmem:[%s837_s0 + $0x30] ss:$8 sps:$4 sm:$0xff]   ;;  %v794_v36 = vld [vmem:[%s838_s2] ss:$0 sm:$0xff] }
   0xc   :  { %561 = vmatprep.subr.bf16.mxu0 %v641_v6  ;;  %622 = vmatprep.subr.bf16.mxu1 %v641_v6  ;;  %v674_v31 = vld [vmem:[%s837_s0 + $0x70] ss:$8 sps:$4 sm:$0xff]  }
   0xf   :  { %562 = vmatpush3.bf16.msra.mxu0 %v642_v7  ;;  %630 = vmatpush3.bf16.msra.mxu1 %v642_v7 }
  0x10   :  { %563 = vmatprep.subr.bf16.mxu0 %v643_v8  ;;  %623 = vmatprep.subr.bf16.mxu1 %v643_v8 }
  0x13   :  { %564 = vmatpush3.bf16.msra.mxu0 %v644_v9  ;;  %631 = vmatpush3.bf16.msra.mxu1 %v644_v9 }
  0x14   :  { %565 = vmatprep.subr.bf16.mxu0 %v645_v10  ;;  %624 = vmatprep.subr.bf16.mxu1 %v645_v10 }
  0x17   :  { %566 = vmatpush3.bf16.msra.mxu0 %v646_v13  ;;  %632 = vmatpush3.bf16.msra.mxu1 %v646_v13 }
  0x18   :  { %567 = vmatprep.subr.bf16.mxu0 %v647_v14  ;;  %625 = vmatprep.subr.bf16.mxu1 %v647_v14 }
  0x1b   :  { %568 = vmatpush3.bf16.msra.mxu0 %v648_v15  ;;  %633 = vmatpush3.bf16.msra.mxu1 %v648_v15 }
  0x1c   :  { %569 = vmatprep.subr.bf16.mxu0 %v649_v16  ;;  %626 = vmatprep.subr.bf16.mxu1 %v649_v16 }
  0x1f   :  { %570 = vmatpush3.bf16.msra.mxu0 %v650_v17  ;;  %634 = vmatpush3.bf16.msra.mxu1 %v650_v17 }
  0x22   :  { %279 = vmatmul.mubr.bf16.vlgmr.msra.gmra.mxu0 %v651_v18  ;;  %311 = vmatmul.mubr.bf16.vlgmr.msra.gmra.mxu1 %v654_v19 }
  0x23   :  { %286 = vmatprep.mubr.bf16.mxu0 %v657_v20  ;;  %318 = vmatprep.mubr.bf16.mxu1 %v659_v21 }
  0x2a   :  { %287 = vmatmul.mubr.bf16.gmra.mxu0 %v661_v22  ;;  %319 = vmatmul.mubr.bf16.gmra.mxu1 %v662_v23 }
  0x2b   :  { %294 = vmatprep.mubr.bf16.mxu0 %v663_v24  ;;  %326 = vmatprep.mubr.bf16.mxu1 %v665_v25 }
  0x32   :  { %295 = vmatmul.mubr.bf16.gmra.mxu0 %v667_v26  ;;  %327 = vmatmul.mubr.bf16.gmra.mxu1 %v668_v27 }
  0x33   :  { %302 = vmatprep.mubr.bf16.mxu0 %v669_v28  ;;  %334 = vmatprep.mubr.bf16.mxu1 %v671_v29 }
  0x3a   :  { %303 = vmatmul.mubr.bf16.gmra.mxu0 %v673_v30  ;;  %335 = vmatmul.mubr.bf16.gmra.mxu1 %v674_v31 }
  0xe2   :  { %v571_v32 = vpop.f32.mrf.mxu0  ;;  %v595_v33 = vpop.f32.mrf.mxu1 }
  0xe4   :  { %v572_v34 = vpop.f32.mrf.mxu0  ;;  %v596_v35 = vpop.f32.mrf.mxu1 }
  0xe5   :  { %v573_v37 = vadd.f32 %v572_v34, %v571_v32  ;;  %v597_v38 = vadd.f32 %v596_v35, %v595_v33 }
  0xe6   :  { %v574_v39 = vpop.f32.mrf.mxu0  ;;  %v598_v40 = vpop.f32.mrf.mxu1 }
  0xe7   :  { %v281_v41 = vadd.f32 %v573_v37, %v794_v36  ;;  %v313_v42 = vadd.f32 %v597_v38, %v794_v36 }
  0xe8   :  { %v575_v43 = vpop.f32.mrf.mxu0  ;;  %v599_v44 = vpop.f32.mrf.mxu1 }
  0xe9   :  { %v576_v45 = vadd.f32 %v575_v43, %v574_v39  ;;  %v600_v46 = vadd.f32 %v599_v44, %v598_v40  ;;  %v343_v51 = vmax.f32 %v281_v41, 0.0  ;;  %v351_v52 = vmax.f32 %v313_v42, 0.0 }
  0xea   :  { %v577_v47 = vpop.f32.mrf.mxu0  ;;  %v601_v48 = vpop.f32.mrf.mxu1 }
  0xeb   :  { %v284_v49 = vadd.f32 %v576_v45, %v794_v36  ;;  %v316_v50 = vadd.f32 %v600_v46, %v794_v36 }
  0xec   :  { %v578_v53 = vpop.f32.mrf.mxu0  ;;  %v602_v54 = vpop.f32.mrf.mxu1 }
  0xed   :  { %v344_v55 = vmax.f32 %v284_v49, 0.0  ;;  %v352_v56 = vmax.f32 %v316_v50, 0.0  ;;  %v579_v57 = vadd.f32 %v578_v53, %v577_v47  ;;  %v603_v58 = vadd.f32 %v602_v54, %v601_v48 }
  0xee   :  { %v580_v59 = vpop.f32.mrf.mxu0  ;;  %v604_v60 = vpop.f32.mrf.mxu1 }
  0xef   :  { %v511_v61 = vpack.c.bf16 %v344_v55, %v343_v51  ;;  %v531_v62 = vpack.c.bf16 %v352_v56, %v351_v52  ;;  %v289_v63 = vadd.f32 %v579_v57, %v794_v36  ;;  %v321_v0 = vadd.f32 %v603_v58, %v794_v36 }
  0xf0   :  { %v581_v1 = vpop.f32.mrf.mxu0  ;;  %v605_v2 = vpop.f32.mrf.mxu1 }
  0xf1   :  { %512 = vst [vmem:[%s839_s3] sm:$0xff] %v511_v61   ;;  %551 = vst [vmem:[%s839_s3 + $0x20] sm:$0xff] %v531_v62   ;;  %v582_v3 = vadd.f32 %v581_v1, %v580_v59  ;;  %v606_v4 = vadd.f32 %v605_v2, %v604_v60  ;;  %v345_v9 = vmax.f32 %v289_v63, 0.0  ;;  %v353_v10 = vmax.f32 %v321_v0, 0.0 }
  0xf2   :  { %v583_v5 = vpop.f32.mrf.mxu0  ;;  %v607_v6 = vpop.f32.mrf.mxu1 }
  0xf3   :  { %v292_v7 = vadd.f32 %v582_v3, %v794_v36  ;;  %v324_v8 = vadd.f32 %v606_v4, %v794_v36 }
  0xf4   :  { %v584_v11 = vpop.f32.mrf.mxu0  ;;  %v608_v12 = vpop.f32.mrf.mxu1 }
  0xf5   :  { %v346_v13 = vmax.f32 %v292_v7, 0.0  ;;  %v354_v14 = vmax.f32 %v324_v8, 0.0  ;;  %v585_v15 = vadd.f32 %v584_v11, %v583_v5  ;;  %v609_v16 = vadd.f32 %v608_v12, %v607_v6 }
  0xf6   :  { %v586_v17 = vpop.f32.mrf.mxu0  ;;  %v610_v18 = vpop.f32.mrf.mxu1 }
  0xf7   :  { %v516_v19 = vpack.c.bf16 %v346_v13, %v345_v9  ;;  %v536_v20 = vpack.c.bf16 %v354_v14, %v353_v10  ;;  %v297_v21 = vadd.f32 %v585_v15, %v794_v36  ;;  %v329_v22 = vadd.f32 %v609_v16, %v794_v36 }
  0xf8   :  { %v587_v23 = vpop.f32.mrf.mxu0  ;;  %v611_v24 = vpop.f32.mrf.mxu1 }
  0xf9   :  { %548 = vst [vmem:[%s839_s3 + $0x8] sm:$0xff] %v516_v19   ;;  %552 = vst [vmem:[%s839_s3 + $0x28] sm:$0xff] %v536_v20   ;;  %v588_v25 = vadd.f32 %v587_v23, %v586_v17  ;;  %v612_v26 = vadd.f32 %v611_v24, %v610_v18  ;;  %v347_v31 = vmax.f32 %v297_v21, 0.0  ;;  %v355_v32 = vmax.f32 %v329_v22, 0.0 }
  0xfa   :  { %v589_v27 = vpop.f32.mrf.mxu0  ;;  %v613_v28 = vpop.f32.mrf.mxu1 }
  0xfb   :  { %v300_v29 = vadd.f32 %v588_v25, %v794_v36  ;;  %v332_v30 = vadd.f32 %v612_v26, %v794_v36 }
  0xfc   :  { %v590_v33 = vpop.f32.mrf.mxu0  ;;  %v614_v34 = vpop.f32.mrf.mxu1 }
  0xfd   :  { %v348_v35 = vmax.f32 %v300_v29, 0.0  ;;  %v356_v37 = vmax.f32 %v332_v30, 0.0  ;;  %v591_v38 = vadd.f32 %v590_v33, %v589_v27  ;;  %v615_v39 = vadd.f32 %v614_v34, %v613_v28 }
  0xfe   :  { %v592_v40 = vpop.f32.mrf.mxu0  ;;  %v616_v41 = vpop.f32.mrf.mxu1 }
  0xff   :  { %v521_v42 = vpack.c.bf16 %v348_v35, %v347_v31  ;;  %v541_v43 = vpack.c.bf16 %v356_v37, %v355_v32  ;;  %v305_v46 = vadd.f32 %v591_v38, %v794_v36  ;;  %v337_v47 = vadd.f32 %v615_v39, %v794_v36 }
 0x100   :  { %v593_v44 = vpop.f32.mrf.mxu0  ;;  %v617_v45 = vpop.f32.mrf.mxu1 }
 0x101   :  { %549 = vst [vmem:[%s839_s3 + $0x10] sm:$0xff] %v521_v42   ;;  %553 = vst [vmem:[%s839_s3 + $0x30] sm:$0xff] %v541_v43   ;;  %v594_v48 = vadd.f32 %v593_v44, %v592_v40  ;;  %v618_v49 = vadd.f32 %v617_v45, %v616_v41  ;;  %v349_v52 = vmax.f32 %v305_v46, 0.0  ;;  %v357_v53 = vmax.f32 %v337_v47, 0.0 }
 0x103   :  { %v308_v50 = vadd.f32 %v594_v48, %v794_v36  ;;  %v340_v51 = vadd.f32 %v618_v49, %v794_v36 }
 0x105   :  { %v350_v54 = vmax.f32 %v308_v50, 0.0  ;;  %v358_v55 = vmax.f32 %v340_v51, 0.0 }
 0x107   :  { %v526_v56 = vpack.c.bf16 %v350_v54, %v349_v52  ;;  %v546_v57 = vpack.c.bf16 %v358_v55, %v357_v53 }
 0x109   :  { %550 = vst [vmem:[%s839_s3 + $0x18] sm:$0xff] %v526_v56   ;;  %554 = vst [vmem:[%s839_s3 + $0x38] sm:$0xff] %v546_v57  }

// kernel: timm_cnn_encoder_forward.43
= control target key start
LH: loop header
LB: loop body
LE: loop exit
PB: predicated region body
PF: predicated region fallthrough
CT: control target
= control target key end

     0   :  { %v636_v1 = vmov 0   ;;  %v52_v25 = vlaneseq  ;;  %s961_s1 = inlined_call_operand.vmem [shape: bf16[128,256], index: 1, kind: input, shape index: {}]   ;;  %s962_s0 = inlined_call_operand.vmem [shape: bf16[128,128], index: 0, kind: input, shape index: {}]   ;;  %s963_s2 = inlined_call_operand.vmem [shape: f32[1,256], index: 2, kind: input, shape index: {}]   ;;  %s964_s3 = inlined_call_operand.vmem [shape: bf16[128,256], index: 3, kind: input, shape index: {}]   ;;  %s965_s4 = inlined_call_operand.vmem [shape: bf16[128,256], index: 4, kind: output, shape index: {}]  }
   0x1   :  { %v604_v0 = vld [vmem:[%s961_s1 + $0x74] ss:$8 sps:$4 sm:$0xff]   ;;  %222 = vmatprep.mubr.bf16.mxu0 %v636_v1  ;;  %262 = vmatprep.mubr.bf16.mxu1 %v636_v1  ;;  %v606_v2 = vld [vmem:[%s961_s1 + $0x70] ss:$8 sps:$4 sm:$0xff]   ;;  %v607_v3 = vld [vmem:[%s961_s1 + $0x64] ss:$8 sps:$4 sm:$0xff]  }
   0x2   :  { %190 = vmatprep.subr.bf16.mxu0 %v604_v0  ;;  %587 = vmatprep.subr.bf16.mxu1 %v604_v0  ;;  %v609_v4 = vld [vmem:[%s961_s1 + $0x60] ss:$8 sps:$4 sm:$0xff]   ;;  %v610_v5 = vld [vmem:[%s961_s1 + $0x54] ss:$8 sps:$4 sm:$0xff]   ;;  %v612_v6 = vld [vmem:[%s961_s1 + $0x50] ss:$8 sps:$4 sm:$0xff]  }
   0x3   :  { %191 = vmatpush1.bf16.msra.mxu0 %v606_v2  ;;  %595 = vmatpush1.bf16.msra.mxu1 %v606_v2  ;;  %v613_v7 = vld [vmem:[%s961_s1 + $0x44] ss:$8 sps:$4 sm:$0xff]   ;;  %v615_v8 = vld [vmem:[%s961_s1 + $0x40] ss:$8 sps:$4 sm:$0xff]   ;;  %v616_v9 = vld [vmem:[%s961_s1 + $0x34] ss:$8 sps:$4 sm:$0xff]  }
   0x4   :  { %192 = vmatprep.subr.bf16.mxu0 %v607_v3  ;;  %588 = vmatprep.subr.bf16.mxu1 %v607_v3  ;;  %v618_v10 = vld [vmem:[%s961_s1 + $0x30] ss:$8 sps:$4 sm:$0xff]   ;;  %v619_v11 = vld [vmem:[%s961_s1 + $0x24] ss:$8 sps:$4 sm:$0xff]   ;;  %v621_v12 = vld [vmem:[%s961_s1 + $0x20] ss:$8 sps:$4 sm:$0xff]  }
   0x5   :  { %v622_v13 = vld [vmem:[%s961_s1 + $0x14] ss:$8 sps:$4 sm:$0xff]   ;;  %v624_v14 = vld [vmem:[%s961_s1 + $0x10] ss:$8 sps:$4 sm:$0xff]   ;;  %v625_v15 = vld [vmem:[%s961_s1 + $0x4] ss:$8 sps:$4 sm:$0xff]  }
   0x6   :  { %v627_v16 = vld [vmem:[%s961_s1] ss:$8 sps:$4 sm:$0xff]   ;;  %v632_v21 = vld [vmem:[%s962_s0 + $0x10] sm:$0xff]   ;;  %v634_v23 = vld [vmem:[%s962_s0 + $0x18] sm:$0xff]   ;;  %v53_v26 = vshrl.u32 %v52_v25, 7 }
   0x7   :  { %193 = vmatpush1.bf16.msra.mxu0 %v609_v4  ;;  %596 = vmatpush1.bf16.msra.mxu1 %v609_v4  ;;  %v628_v17 = vld [vmem:[%s962_s0] sm:$0xff]   ;;  %v630_v19 = vld [vmem:[%s962_s0 + $0x8] sm:$0xff]   ;;  %v633_v22 = vld [vmem:[%s962_s0 + $0x30] sm:$0xff]  }
   0x8   :  { %194 = vmatprep.subr.bf16.mxu0 %v610_v5  ;;  %589 = vmatprep.subr.bf16.mxu1 %v610_v5  ;;  %v629_v18 = vld [vmem:[%s962_s0 + $0x20] sm:$0xff]   ;;  %v631_v20 = vld [vmem:[%s962_s0 + $0x28] sm:$0xff]   ;;  %v635_v24 = vld [vmem:[%s962_s0 + $0x38] sm:$0xff]   ;;  %v54_v27 = vsub.s32 0, %v53_v26  ;;  %v58_v30 = vsub.s32 1, %v53_v26 }
   0x9   :  { %v50_v28 = vld [vmem:[%s963_s2] sm:$0x3]  ;;  %v756_v33 = vld [vmem:[%s964_s3 + $0x8] sm:$0xff]  ;;  %v766_v36 = vld [vmem:[%s964_s3 + $0x10] sm:$0xff] }
   0xa   :  { %v303_v29 = vld [vmem:[%s964_s3] sm:$0xff]  ;;  %v751_v32 = vrot.slane %v50_v28, %v54_v27  ;;  %v761_v34 = vld [vmem:[%s964_s3 + $0x48] sm:$0xff]  ;;  %v771_v37 = vld [vmem:[%s964_s3 + $0x50] sm:$0xff]  ;;  %v773_v39 = vrot.slane %v50_v28, %v58_v30  ;;  %v321_v46 = vunpack.c.l.bf16 %v756_v33  ;;  %v322_v48 = vunpack.c.h.bf16 %v756_v33 }
   0xb   :  { %195 = vmatpush1.bf16.msra.mxu0 %v612_v6  ;;  %597 = vmatpush1.bf16.msra.mxu1 %v612_v6  ;;  %v311_v31 = vld [vmem:[%s964_s3 + $0x40] sm:$0xff]  ;;  %v319_v35 = vunpack.c.l.bf16 %v303_v29  ;;  %v320_v40 = vunpack.c.h.bf16 %v303_v29  ;;  %v778_v42 = vld [vmem:[%s964_s3 + $0x18] sm:$0xff]  ;;  %v337_v47 = vunpack.c.l.bf16 %v761_v34  ;;  %v338_v49 = vunpack.c.h.bf16 %v761_v34 }
   0xc   :  { %196 = vmatprep.subr.bf16.mxu0 %v613_v7  ;;  %590 = vmatprep.subr.bf16.mxu1 %v613_v7  ;;  %v335_v38 = vunpack.c.l.bf16 %v311_v31  ;;  %v336_v41 = vunpack.c.h.bf16 %v311_v31  ;;  %v783_v43 = vld [vmem:[%s964_s3 + $0x58] sm:$0xff]  ;;  %v323_v52 = vunpack.c.l.bf16 %v766_v36  ;;  %v339_v53 = vunpack.c.l.bf16 %v771_v37  ;;  %v796_v54 = vld [vmem:[%s964_s3 + $0x20] sm:$0xff] }
   0xd   :  { %v801_v55 = vld [vmem:[%s964_s3 + $0x60] sm:$0xff]  ;;  %v324_v58 = vunpack.c.h.bf16 %v766_v36  ;;  %v340_v59 = vunpack.c.h.bf16 %v771_v37  ;;  %v325_v60 = vunpack.c.l.bf16 %v778_v42  ;;  %v341_v61 = vunpack.c.l.bf16 %v783_v43 }
   0xe   :  { %v326_v4 = vunpack.c.h.bf16 %v778_v42  ;;  %v342_v5 = vunpack.c.h.bf16 %v783_v43  ;;  %v327_v6 = vunpack.c.l.bf16 %v796_v54  ;;  %v343_v7 = vunpack.c.l.bf16 %v801_v55 }
   0xf   :  { %197 = vmatpush1.bf16.msra.mxu0 %v615_v8  ;;  %598 = vmatpush1.bf16.msra.mxu1 %v615_v8 }
  0x10   :  { %198 = vmatprep.subr.bf16.mxu0 %v616_v9  ;;  %591 = vmatprep.subr.bf16.mxu1 %v616_v9 }
  0x13   :  { %199 = vmatpush1.bf16.msra.mxu0 %v618_v10  ;;  %599 = vmatpush1.bf16.msra.mxu1 %v618_v10  ;;  %v328_v10 = vunpack.c.h.bf16 %v796_v54 }
  0x14   :  { %200 = vmatprep.subr.bf16.mxu0 %v619_v11  ;;  %592 = vmatprep.subr.bf16.mxu1 %v619_v11  ;;  %v344_v11 = vunpack.c.h.bf16 %v801_v55 }
  0x17   :  { %201 = vmatpush1.bf16.msra.mxu0 %v621_v12  ;;  %600 = vmatpush1.bf16.msra.mxu1 %v621_v12  ;;  %v818_v12 = vld [vmem:[%s964_s3 + $0x28] sm:$0xff] }
  0x18   :  { %202 = vmatprep.subr.bf16.mxu0 %v622_v13  ;;  %593 = vmatprep.subr.bf16.mxu1 %v622_v13  ;;  %v823_v13 = vld [vmem:[%s964_s3 + $0x68] sm:$0xff]  ;;  %v329_v28 = vunpack.c.l.bf16 %v818_v12 }
  0x19   :  { %v345_v29 = vunpack.c.l.bf16 %v823_v13 }
  0x1b   :  { %203 = vmatpush1.bf16.msra.mxu0 %v624_v14  ;;  %601 = vmatpush1.bf16.msra.mxu1 %v624_v14 }
  0x1c   :  { %204 = vmatprep.subr.bf16.mxu0 %v625_v15  ;;  %594 = vmatprep.subr.bf16.mxu1 %v625_v15 }
  0x1f   :  { %205 = vmatpush1.bf16.msra.mxu0 %v627_v16  ;;  %602 = vmatpush1.bf16.msra.mxu1 %v627_v16 }
  0x22   :  { %223 = vmatmul.mubr.bf16.vlgmr.msra.gmra.mxu0 %v628_v17  ;;  %263 = vmatmul.mubr.bf16.vlgmr.msra.gmra.mxu1 %v629_v18 }
  0x23   :  { %232 = vmatprep.mubr.bf16.mxu0 %v636_v1  ;;  %272 = vmatprep.mubr.bf16.mxu1 %v636_v1 }
  0x2a   :  { %233 = vmatmul.mubr.bf16.gmra.mxu0 %v630_v19  ;;  %273 = vmatmul.mubr.bf16.gmra.mxu1 %v631_v20 }
  0x2b   :  { %242 = vmatprep.mubr.bf16.mxu0 %v636_v1  ;;  %282 = vmatprep.mubr.bf16.mxu1 %v636_v1 }
  0x32   :  { %243 = vmatmul.mubr.bf16.gmra.mxu0 %v632_v21  ;;  %283 = vmatmul.mubr.bf16.gmra.mxu1 %v633_v22 }
  0x33   :  { %252 = vmatprep.mubr.bf16.mxu0 %v636_v1  ;;  %292 = vmatprep.mubr.bf16.mxu1 %v636_v1 }
  0x3a   :  { %253 = vmatmul.mubr.bf16.gmra.mxu0 %v634_v23  ;;  %293 = vmatmul.mubr.bf16.gmra.mxu1 %v635_v24 }
  0xe2   :  { %v224_v44 = vpop.f32.mrf.mxu0  ;;  %v264_v45 = vpop.f32.mrf.mxu1 }
  0xe3   :  { %v225_v50 = vadd.f32 %v224_v44, %v751_v32  ;;  %v265_v51 = vadd.f32 %v264_v45, %v751_v32 }
  0xe4   :  { %v226_v56 = vpop.f32.mrf.mxu0  ;;  %v266_v57 = vpop.f32.mrf.mxu1 }
  0xe5   :  { %v351_v62 = vadd.f32 %v319_v35, %v225_v50  ;;  %v367_v63 = vadd.f32 %v335_v38, %v265_v51  ;;  %v227_v0 = vadd.f32 %v226_v56, %v773_v39  ;;  %v267_v1 = vadd.f32 %v266_v57, %v773_v39 }
  0xe6   :  { %v228_v2 = vpop.f32.mrf.mxu0  ;;  %v268_v3 = vpop.f32.mrf.mxu1  ;;  %v330_v56 = vunpack.c.h.bf16 %v818_v12  ;;  %v346_v57 = vunpack.c.h.bf16 %v823_v13 }
  0xe7   :  { %v352_v8 = vadd.f32 %v320_v40, %v227_v0  ;;  %v368_v9 = vadd.f32 %v336_v41, %v267_v1  ;;  %v383_v14 = vmax.f32 %v351_v62, 0.0  ;;  %v399_v15 = vmax.f32 %v367_v63, 0.0 }
  0xe8   :  { %v229_v16 = vadd.f32 %v228_v2, %v751_v32  ;;  %v269_v17 = vadd.f32 %v268_v3, %v751_v32  ;;  %v230_v18 = vpop.f32.mrf.mxu0  ;;  %v270_v19 = vpop.f32.mrf.mxu1  ;;  %v846_v2 = vld [vmem:[%s964_s3 + $0x30] sm:$0xff] }
  0xe9   :  { %v384_v20 = vmax.f32 %v352_v8, 0.0  ;;  %v400_v21 = vmax.f32 %v368_v9, 0.0  ;;  %v231_v22 = vadd.f32 %v230_v18, %v773_v39  ;;  %v271_v23 = vadd.f32 %v270_v19, %v773_v39 }
  0xea   :  { %v353_v24 = vadd.f32 %v321_v46, %v229_v16  ;;  %v369_v25 = vadd.f32 %v337_v47, %v269_v17  ;;  %v234_v26 = vpop.f32.mrf.mxu0  ;;  %v274_v27 = vpop.f32.mrf.mxu1 }
  0xeb   :  { %v571_v30 = vpack.c.bf16 %v384_v20, %v383_v14  ;;  %v579_v31 = vpack.c.bf16 %v400_v21, %v399_v15  ;;  %v354_v33 = vadd.f32 %v322_v48, %v231_v22  ;;  %v370_v34 = vadd.f32 %v338_v49, %v271_v23 }
  0xec   :  { %v385_v35 = vmax.f32 %v353_v24, 0.0  ;;  %v401_v36 = vmax.f32 %v369_v25, 0.0  ;;  %v235_v37 = vadd.f32 %v234_v26, %v751_v32  ;;  %v275_v38 = vadd.f32 %v274_v27, %v751_v32  ;;  %v236_v40 = vpop.f32.mrf.mxu0  ;;  %v276_v41 = vpop.f32.mrf.mxu1 }
  0xed   :  { %511 = vst [vmem:[%s965_s4] sm:$0xff] %v571_v30  ;;  %519 = vst [vmem:[%s965_s4 + $0x40] sm:$0xff] %v579_v31  ;;  %v386_v44 = vmax.f32 %v354_v33, 0.0  ;;  %v402_v45 = vmax.f32 %v370_v34, 0.0  ;;  %v237_v46 = vadd.f32 %v236_v40, %v773_v39  ;;  %v277_v47 = vadd.f32 %v276_v41, %v773_v39 }
  0xee   :  { %v355_v48 = vadd.f32 %v323_v52, %v235_v37  ;;  %v371_v49 = vadd.f32 %v339_v53, %v275_v38  ;;  %v238_v50 = vpop.f32.mrf.mxu0  ;;  %v278_v51 = vpop.f32.mrf.mxu1  ;;  %v851_v52 = vld [vmem:[%s964_s3 + $0x70] sm:$0xff]  ;;  %v331_v22 = vunpack.c.l.bf16 %v846_v2  ;;  %v332_v40 = vunpack.c.h.bf16 %v846_v2 }
  0xef   :  { %v572_v62 = vpack.c.bf16 %v386_v44, %v385_v35  ;;  %v580_v63 = vpack.c.bf16 %v402_v45, %v401_v36  ;;  %v356_v0 = vadd.f32 %v324_v58, %v237_v46  ;;  %v372_v1 = vadd.f32 %v340_v59, %v277_v47 }
  0xf0   :  { %v387_v53 = vmax.f32 %v355_v48, 0.0  ;;  %v403_v3 = vmax.f32 %v371_v49, 0.0  ;;  %v239_v8 = vadd.f32 %v238_v50, %v751_v32  ;;  %v279_v9 = vadd.f32 %v278_v51, %v751_v32  ;;  %v240_v14 = vpop.f32.mrf.mxu0  ;;  %v280_v15 = vpop.f32.mrf.mxu1 }
  0xf1   :  { %512 = vst [vmem:[%s965_s4 + $0x8] sm:$0xff] %v572_v62  ;;  %520 = vst [vmem:[%s965_s4 + $0x48] sm:$0xff] %v580_v63  ;;  %v388_v58 = vmax.f32 %v356_v0, 0.0  ;;  %v404_v59 = vmax.f32 %v372_v1, 0.0  ;;  %v241_v16 = vadd.f32 %v240_v14, %v773_v39  ;;  %v281_v17 = vadd.f32 %v280_v15, %v773_v39 }
  0xf2   :  { %v357_v18 = vadd.f32 %v325_v60, %v239_v8  ;;  %v373_v19 = vadd.f32 %v341_v61, %v279_v9  ;;  %v244_v20 = vpop.f32.mrf.mxu0  ;;  %v284_v21 = vpop.f32.mrf.mxu1  ;;  %v347_v23 = vunpack.c.l.bf16 %v851_v52  ;;  %v348_v41 = vunpack.c.h.bf16 %v851_v52 }
  0xf3   :  { %v573_v24 = vpack.c.bf16 %v388_v58, %v387_v53  ;;  %v581_v25 = vpack.c.bf16 %v404_v59, %v403_v3  ;;  %v358_v26 = vadd.f32 %v326_v4, %v241_v16  ;;  %v374_v27 = vadd.f32 %v342_v5, %v281_v17 }
  0xf4   :  { %v389_v30 = vmax.f32 %v357_v18, 0.0  ;;  %v405_v31 = vmax.f32 %v373_v19, 0.0  ;;  %v245_v60 = vadd.f32 %v244_v20, %v751_v32  ;;  %v285_v61 = vadd.f32 %v284_v21, %v751_v32  ;;  %v246_v33 = vpop.f32.mrf.mxu0  ;;  %v286_v34 = vpop.f32.mrf.mxu1 }
  0xf5   :  { %513 = vst [vmem:[%s965_s4 + $0x10] sm:$0xff] %v573_v24  ;;  %521 = vst [vmem:[%s965_s4 + $0x50] sm:$0xff] %v581_v25  ;;  %v390_v42 = vmax.f32 %v358_v26, 0.0  ;;  %v406_v4 = vmax.f32 %v374_v27, 0.0  ;;  %v247_v43 = vadd.f32 %v246_v33, %v773_v39  ;;  %v287_v5 = vadd.f32 %v286_v34, %v773_v39 }
  0xf6   :  { %v359_v35 = vadd.f32 %v327_v6, %v245_v60  ;;  %v375_v36 = vadd.f32 %v343_v7, %v285_v61  ;;  %v248_v37 = vpop.f32.mrf.mxu0  ;;  %v288_v38 = vpop.f32.mrf.mxu1  ;;  %v896_v6 = vld [vmem:[%s964_s3 + $0x38] sm:$0xff] }
  0xf7   :  { %v574_v44 = vpack.c.bf16 %v390_v42, %v389_v30  ;;  %v582_v45 = vpack.c.bf16 %v406_v4, %v405_v31  ;;  %v360_v46 = vadd.f32 %v328_v10, %v247_v43  ;;  %v376_v47 = vadd.f32 %v344_v11, %v287_v5  ;;  %v901_v7 = vld [vmem:[%s964_s3 + $0x78] sm:$0xff] }
  0xf8   :  { %v391_v48 = vmax.f32 %v359_v35, 0.0  ;;  %v407_v49 = vmax.f32 %v375_v36, 0.0  ;;  %v249_v50 = vadd.f32 %v248_v37, %v751_v32  ;;  %v289_v54 = vadd.f32 %v288_v38, %v751_v32  ;;  %v250_v10 = vpop.f32.mrf.mxu0  ;;  %v290_v51 = vpop.f32.mrf.mxu1 }
  0xf9   :  { %514 = vst [vmem:[%s965_s4 + $0x18] sm:$0xff] %v574_v44  ;;  %522 = vst [vmem:[%s965_s4 + $0x58] sm:$0xff] %v582_v45  ;;  %v392_v55 = vmax.f32 %v360_v46, 0.0  ;;  %v408_v11 = vmax.f32 %v376_v47, 0.0  ;;  %v251_v62 = vadd.f32 %v250_v10, %v773_v39  ;;  %v291_v63 = vadd.f32 %v290_v51, %v773_v39 }
  0xfa   :  { %v361_v0 = vadd.f32 %v329_v28, %v249_v50  ;;  %v377_v1 = vadd.f32 %v345_v29, %v289_v54  ;;  %v254_v53 = vpop.f32.mrf.mxu0  ;;  %v294_v3 = vpop.f32.mrf.mxu1  ;;  %v333_v8 = vunpack.c.l.bf16 %v896_v6  ;;  %v349_v9 = vunpack.c.l.bf16 %v901_v7 }
  0xfb   :  { %v575_v14 = vpack.c.bf16 %v392_v55, %v391_v48  ;;  %v583_v15 = vpack.c.bf16 %v408_v11, %v407_v49  ;;  %v362_v58 = vadd.f32 %v330_v56, %v251_v62  ;;  %v378_v59 = vadd.f32 %v346_v57, %v291_v63 }
  0xfc   :  { %v393_v16 = vmax.f32 %v361_v0, 0.0  ;;  %v409_v17 = vmax.f32 %v377_v1, 0.0  ;;  %v255_v28 = vadd.f32 %v254_v53, %v751_v32  ;;  %v295_v29 = vadd.f32 %v294_v3, %v751_v32  ;;  %v256_v18 = vpop.f32.mrf.mxu0  ;;  %v296_v19 = vpop.f32.mrf.mxu1 }
  0xfd   :  { %515 = vst [vmem:[%s965_s4 + $0x20] sm:$0xff] %v575_v14  ;;  %523 = vst [vmem:[%s965_s4 + $0x60] sm:$0xff] %v583_v15  ;;  %v394_v12 = vmax.f32 %v362_v58, 0.0  ;;  %v410_v56 = vmax.f32 %v378_v59, 0.0  ;;  %v257_v13 = vadd.f32 %v256_v18, %v773_v39  ;;  %v297_v57 = vadd.f32 %v296_v19, %v773_v39 }
  0xfe   :  { %v363_v20 = vadd.f32 %v331_v22, %v255_v28  ;;  %v379_v21 = vadd.f32 %v347_v23, %v295_v29  ;;  %v258_v24 = vpop.f32.mrf.mxu0  ;;  %v298_v25 = vpop.f32.mrf.mxu1  ;;  %v334_v26 = vunpack.c.h.bf16 %v896_v6  ;;  %v350_v27 = vunpack.c.h.bf16 %v901_v7 }
  0xff   :  { %v576_v30 = vpack.c.bf16 %v394_v12, %v393_v16  ;;  %v584_v31 = vpack.c.bf16 %v410_v56, %v409_v17  ;;  %v364_v60 = vadd.f32 %v332_v40, %v257_v13  ;;  %v380_v61 = vadd.f32 %v348_v41, %v297_v57 }
 0x100   :  { %v395_v33 = vmax.f32 %v363_v20, 0.0  ;;  %v411_v34 = vmax.f32 %v379_v21, 0.0  ;;  %v259_v42 = vadd.f32 %v258_v24, %v751_v32  ;;  %v299_v2 = vadd.f32 %v298_v25, %v751_v32  ;;  %v260_v22 = vpop.f32.mrf.mxu0  ;;  %v300_v4 = vpop.f32.mrf.mxu1 }
 0x101   :  { %516 = vst [vmem:[%s965_s4 + $0x28] sm:$0xff] %v576_v30  ;;  %524 = vst [vmem:[%s965_s4 + $0x68] sm:$0xff] %v584_v31  ;;  %v396_v52 = vmax.f32 %v364_v60, 0.0  ;;  %v412_v23 = vmax.f32 %v380_v61, 0.0  ;;  %v261_v43 = vadd.f32 %v260_v22, %v773_v39  ;;  %v301_v5 = vadd.f32 %v300_v4, %v773_v39 }
 0x102   :  { %v365_v35 = vadd.f32 %v333_v8, %v259_v42  ;;  %v381_v36 = vadd.f32 %v349_v9, %v299_v2 }
 0x103   :  { %v577_v37 = vpack.c.bf16 %v396_v52, %v395_v33  ;;  %v585_v32 = vpack.c.bf16 %v412_v23, %v411_v34  ;;  %v366_v38 = vadd.f32 %v334_v26, %v261_v43  ;;  %v382_v40 = vadd.f32 %v350_v27, %v301_v5 }
 0x104   :  { %v397_v41 = vmax.f32 %v365_v35, 0.0  ;;  %v413_v44 = vmax.f32 %v381_v36, 0.0 }
 0x105   :  { %517 = vst [vmem:[%s965_s4 + $0x30] sm:$0xff] %v577_v37  ;;  %525 = vst [vmem:[%s965_s4 + $0x70] sm:$0xff] %v585_v32  ;;  %v398_v45 = vmax.f32 %v366_v38, 0.0  ;;  %v414_v46 = vmax.f32 %v382_v40, 0.0 }
 0x107   :  { %v578_v47 = vpack.c.bf16 %v398_v45, %v397_v41  ;;  %v586_v39 = vpack.c.bf16 %v414_v46, %v413_v44 }
 0x109   :  { %518 = vst [vmem:[%s965_s4 + $0x38] sm:$0xff] %v578_v47  ;;  %526 = vst [vmem:[%s965_s4 + $0x78] sm:$0xff] %v586_v39 }

// kernel: timm_cnn_encoder_forward.50
= control target key start
LH: loop header
LB: loop body
LE: loop exit
PB: predicated region body
PF: predicated region fallthrough
CT: control target
= control target key end

     0   :  { %s2283_s1 = inlined_call_operand.vmem [shape: bf16[256,640], index: 1, kind: input, shape index: {}]   ;;  %s2284_s0 = inlined_call_operand.vmem [shape: bf16[128,256], index: 0, kind: input, shape index: {}]   ;;  %s2285_s2 = inlined_call_operand.vmem [shape: f32[1,640], index: 2, kind: input, shape index: {}]   ;;  %s2286_s3 = inlined_call_operand.vmem [shape: bf16[128,640], index: 3, kind: output, shape index: {}]  }
   0x1   :  { %v1553_v0 = vld [vmem:[%s2283_s1 + $0x11c] ss:$20 sps:$4 sm:$0xff]   ;;  %v1555_v1 = vld [vmem:[%s2283_s1 + $0x124] ss:$20 sps:$4 sm:$0xff]   ;;  %v1558_v3 = vld [vmem:[%s2283_s1 + $0x120] ss:$20 sps:$4 sm:$0xff]  }
   0x2   :  { %650 = vmatprep.subr.bf16.mxu0 %v1553_v0  ;;  %v1557_v2 = vld [vmem:[%s2283_s1 + $0x118] ss:$20 sps:$4 sm:$0xff]   ;;  %763 = vmatprep.subr.bf16.mxu1 %v1555_v1  ;;  %v1559_v4 = vld [vmem:[%s2283_s1 + $0xf4] ss:$20 sps:$4 sm:$0xff]   ;;  %v1561_v5 = vld [vmem:[%s2283_s1 + $0xfc] ss:$20 sps:$4 sm:$0xff]  }
   0x3   :  { %651 = vmatpush1.bf16.msra.mxu0 %v1557_v2  ;;  %764 = vmatpush1.bf16.msra.mxu1 %v1558_v3  ;;  %v1563_v6 = vld [vmem:[%s2283_s1 + $0xf0] ss:$20 sps:$4 sm:$0xff]   ;;  %v1564_v7 = vld [vmem:[%s2283_s1 + $0xf8] ss:$20 sps:$4 sm:$0xff]   ;;  %v1567_v9 = vld [vmem:[%s2283_s1 + $0xd4] ss:$20 sps:$4 sm:$0xff]  }
   0x4   :  { %652 = vmatprep.subr.bf16.mxu0 %v1559_v4  ;;  %765 = vmatprep.subr.bf16.mxu1 %v1561_v5  ;;  %v1565_v8 = vld [vmem:[%s2283_s1 + $0xcc] ss:$20 sps:$4 sm:$0xff]   ;;  %v1569_v10 = vld [vmem:[%s2283_s1 + $0xc8] ss:$20 sps:$4 sm:$0xff]   ;;  %v1570_v11 = vld [vmem:[%s2283_s1 + $0xd0] ss:$20 sps:$4 sm:$0xff]  }
   0x5   :  { %v1571_v12 = vld [vmem:[%s2283_s1 + $0xa4] ss:$20 sps:$4 sm:$0xff]   ;;  %v1573_v13 = vld [vmem:[%s2283_s1 + $0xac] ss:$20 sps:$4 sm:$0xff]   ;;  %v1576_v15 = vld [vmem:[%s2283_s1 + $0xa8] ss:$20 sps:$4 sm:$0xff]  }
   0x6   :  { %v1575_v14 = vld [vmem:[%s2283_s1 + $0xa0] ss:$20 sps:$4 sm:$0xff]   ;;  %v1577_v16 = vld [vmem:[%s2283_s1 + $0x7c] ss:$20 sps:$4 sm:$0xff]   ;;  %v1579_v17 = vld [vmem:[%s2283_s1 + $0x84] ss:$20 sps:$4 sm:$0xff]  }
   0x7   :  { %653 = vmatpush1.bf16.msra.mxu0 %v1563_v6  ;;  %766 = vmatpush1.bf16.msra.mxu1 %v1564_v7  ;;  %v1581_v18 = vld [vmem:[%s2283_s1 + $0x78] ss:$20 sps:$4 sm:$0xff]   ;;  %v1582_v19 = vld [vmem:[%s2283_s1 + $0x80] ss:$20 sps:$4 sm:$0xff]   ;;  %v1585_v21 = vld [vmem:[%s2283_s1 + $0x5c] ss:$20 sps:$4 sm:$0xff]  }
   0x8   :  { %654 = vmatprep.subr.bf16.mxu0 %v1565_v8  ;;  %767 = vmatprep.subr.bf16.mxu1 %v1567_v9  ;;  %v1583_v20 = vld [vmem:[%s2283_s1 + $0x54] ss:$20 sps:$4 sm:$0xff]   ;;  %v1587_v22 = vld [vmem:[%s2283_s1 + $0x50] ss:$20 sps:$4 sm:$0xff]   ;;  %v1588_v23 = vld [vmem:[%s2283_s1 + $0x58] ss:$20 sps:$4 sm:$0xff]  }
   0x9   :  { %v1589_v24 = vld [vmem:[%s2283_s1 + $0x2c] ss:$20 sps:$4 sm:$0xff]   ;;  %v1591_v25 = vld [vmem:[%s2283_s1 + $0x34] ss:$20 sps:$4 sm:$0xff]   ;;  %v1594_v27 = vld [vmem:[%s2283_s1 + $0x30] ss:$20 sps:$4 sm:$0xff]  }
   0xa   :  { %v1593_v26 = vld [vmem:[%s2283_s1 + $0x28] ss:$20 sps:$4 sm:$0xff]   ;;  %v1595_v28 = vld [vmem:[%s2283_s1 + $0x4] ss:$20 sps:$4 sm:$0xff]   ;;  %v1597_v29 = vld [vmem:[%s2283_s1 + $0xc] ss:$20 sps:$4 sm:$0xff]  }
   0xb   :  { %655 = vmatpush1.bf16.msra.mxu0 %v1569_v10  ;;  %768 = vmatpush1.bf16.msra.mxu1 %v1570_v11  ;;  %v1599_v30 = vld [vmem:[%s2283_s1] ss:$20 sps:$4 sm:$0xff]   ;;  %v1600_v31 = vld [vmem:[%s2283_s1 + $0x8] ss:$20 sps:$4 sm:$0xff]   ;;  %v1603_v33 = vld [vmem:[%s2283_s1 + $0x264] ss:$20 sps:$4 sm:$0xff]  }
   0xc   :  { %656 = vmatprep.subr.bf16.mxu0 %v1571_v12  ;;  %769 = vmatprep.subr.bf16.mxu1 %v1573_v13  ;;  %v1601_v32 = vld [vmem:[%s2283_s1 + $0x25c] ss:$20 sps:$4 sm:$0xff]   ;;  %v1605_v34 = vld [vmem:[%s2283_s1 + $0x258] ss:$20 sps:$4 sm:$0xff]   ;;  %v1606_v35 = vld [vmem:[%s2283_s1 + $0x260] ss:$20 sps:$4 sm:$0xff]  }
   0xd   :  { %v1607_v36 = vld [vmem:[%s2283_s1 + $0x234] ss:$20 sps:$4 sm:$0xff]   ;;  %v1609_v37 = vld [vmem:[%s2283_s1 + $0x23c] ss:$20 sps:$4 sm:$0xff]   ;;  %v1612_v39 = vld [vmem:[%s2283_s1 + $0x238] ss:$20 sps:$4 sm:$0xff]  }
   0xe   :  { %v1611_v38 = vld [vmem:[%s2283_s1 + $0x230] ss:$20 sps:$4 sm:$0xff]   ;;  %v1613_v40 = vld [vmem:[%s2283_s1 + $0x20c] ss:$20 sps:$4 sm:$0xff]   ;;  %v1615_v41 = vld [vmem:[%s2283_s1 + $0x214] ss:$20 sps:$4 sm:$0xff]  }
   0xf   :  { %657 = vmatpush1.bf16.msra.mxu0 %v1575_v14  ;;  %770 = vmatpush1.bf16.msra.mxu1 %v1576_v15  ;;  %v1617_v42 = vld [vmem:[%s2283_s1 + $0x208] ss:$20 sps:$4 sm:$0xff]   ;;  %v1618_v43 = vld [vmem:[%s2283_s1 + $0x210] ss:$20 sps:$4 sm:$0xff]   ;;  %v1621_v45 = vld [vmem:[%s2283_s1 + $0x1ec] ss:$20 sps:$4 sm:$0xff]  }
  0x10   :  { %658 = vmatprep.subr.bf16.mxu0 %v1577_v16  ;;  %771 = vmatprep.subr.bf16.mxu1 %v1579_v17  ;;  %v1619_v44 = vld [vmem:[%s2283_s1 + $0x1e4] ss:$20 sps:$4 sm:$0xff]   ;;  %v1623_v46 = vld [vmem:[%s2283_s1 + $0x1e0] ss:$20 sps:$4 sm:$0xff]   ;;  %v1624_v47 = vld [vmem:[%s2283_s1 + $0x1e8] ss:$20 sps:$4 sm:$0xff]  }
  0x11   :  { %v1856_v48 = vld [vmem:[%s2284_s0 + $0x4] ss:$8 sps:$4 sm:$0xff]   ;;  %v1625_v49 = vld [vmem:[%s2283_s1 + $0x1bc] ss:$20 sps:$4 sm:$0xff]   ;;  %v1630_v52 = vld [vmem:[%s2283_s1 + $0x1c0] ss:$20 sps:$4 sm:$0xff]  }
  0x12   :  { %v1627_v50 = vld [vmem:[%s2283_s1 + $0x1c4] ss:$20 sps:$4 sm:$0xff]   ;;  %682 = vmatprep.mubr.bf16.mxu0 %v1856_v48  ;;  %795 = vmatprep.mubr.bf16.mxu1 %v1856_v48  ;;  %v1631_v53 = vld [vmem:[%s2283_s1 + $0x194] ss:$20 sps:$4 sm:$0xff]   ;;  %v1633_v54 = vld [vmem:[%s2283_s1 + $0x19c] ss:$20 sps:$4 sm:$0xff]  }
  0x13   :  { %659 = vmatpush1.bf16.msra.mxu0 %v1581_v18  ;;  %772 = vmatpush1.bf16.msra.mxu1 %v1582_v19  ;;  %v1629_v51 = vld [vmem:[%s2283_s1 + $0x1b8] ss:$20 sps:$4 sm:$0xff]   ;;  %v1635_v55 = vld [vmem:[%s2283_s1 + $0x190] ss:$20 sps:$4 sm:$0xff]   ;;  %v1639_v58 = vld [vmem:[%s2283_s1 + $0x174] ss:$20 sps:$4 sm:$0xff]  }
  0x14   :  { %660 = vmatprep.subr.bf16.mxu0 %v1583_v20  ;;  %773 = vmatprep.subr.bf16.mxu1 %v1585_v21  ;;  %v1636_v56 = vld [vmem:[%s2283_s1 + $0x198] ss:$20 sps:$4 sm:$0xff]   ;;  %v1641_v59 = vld [vmem:[%s2283_s1 + $0x168] ss:$20 sps:$4 sm:$0xff]   ;;  %v1642_v60 = vld [vmem:[%s2283_s1 + $0x170] ss:$20 sps:$4 sm:$0xff]  }
  0x15   :  { %v1637_v57 = vld [vmem:[%s2283_s1 + $0x16c] ss:$20 sps:$4 sm:$0xff]   ;;  %v1643_v61 = vld [vmem:[%s2283_s1 + $0x144] ss:$20 sps:$4 sm:$0xff]   ;;  %v1648_v0 = vld [vmem:[%s2283_s1 + $0x148] ss:$20 sps:$4 sm:$0xff]  }
  0x16   :  { %v1645_v62 = vld [vmem:[%s2283_s1 + $0x14c] ss:$20 sps:$4 sm:$0xff]   ;;  %v1652_v1 = vld [vmem:[%s2283_s1 + $0x268] ss:$20 sps:$4 sm:$0xff]   ;;  %v1940_v8 = vld [vmem:[%s2284_s0 + $0x10] ss:$8 sps:$4 sm:$0xff]  }
  0x17   :  { %661 = vmatpush1.bf16.msra.mxu0 %v1587_v22  ;;  %774 = vmatpush1.bf16.msra.mxu1 %v1588_v23  ;;  %v1647_v63 = vld [vmem:[%s2283_s1 + $0x140] ss:$20 sps:$4 sm:$0xff]   ;;  %v1653_v3 = vld [vmem:[%s2283_s1 + $0x128] ss:$20 sps:$4 sm:$0xff]   ;;  %v1662_v7 = vld [vmem:[%s2283_s1 + $0x218] ss:$20 sps:$4 sm:$0xff]  }
  0x18   :  { %662 = vmatprep.subr.bf16.mxu0 %v1589_v24  ;;  %775 = vmatprep.subr.bf16.mxu1 %v1591_v25  ;;  %v1914_v2 = vld [vmem:[%s2284_s0] ss:$8 sps:$4 sm:$0xff]   ;;  %v1922_v4 = vld [vmem:[%s2284_s0 + $0x14] ss:$8 sps:$4 sm:$0xff]   ;;  %v1945_v9 = vld [vmem:[%s2284_s0 + $0x24] ss:$8 sps:$4 sm:$0xff]  }
  0x19   :  { %v1657_v5 = vld [vmem:[%s2283_s1 + $0x240] ss:$20 sps:$4 sm:$0xff]   ;;  %v1663_v10 = vld [vmem:[%s2283_s1 + $0xd8] ss:$20 sps:$4 sm:$0xff]   ;;  %v1667_v11 = vld [vmem:[%s2283_s1 + $0x1f0] ss:$20 sps:$4 sm:$0xff]  }
  0x1a   :  { %v1658_v6 = vld [vmem:[%s2283_s1 + $0x100] ss:$20 sps:$4 sm:$0xff]   ;;  %v1668_v12 = vld [vmem:[%s2283_s1 + $0xb0] ss:$20 sps:$4 sm:$0xff]   ;;  %v1672_v13 = vld [vmem:[%s2283_s1 + $0x1c8] ss:$20 sps:$4 sm:$0xff]  }
  0x1b   :  { %663 = vmatpush1.bf16.msra.mxu0 %v1593_v26  ;;  %776 = vmatpush1.bf16.msra.mxu1 %v1594_v27  ;;  %v1966_v14 = vld [vmem:[%s2284_s0 + $0x20] ss:$8 sps:$4 sm:$0xff]   ;;  %v1971_v15 = vld [vmem:[%s2284_s0 + $0x34] ss:$8 sps:$4 sm:$0xff]   ;;  %v1682_v19 = vld [vmem:[%s2283_s1 + $0x178] ss:$20 sps:$4 sm:$0xff]  }
  0x1c   :  { %664 = vmatprep.subr.bf16.mxu0 %v1595_v28  ;;  %777 = vmatprep.subr.bf16.mxu1 %v1597_v29  ;;  %v1673_v16 = vld [vmem:[%s2283_s1 + $0x88] ss:$20 sps:$4 sm:$0xff]   ;;  %v1677_v17 = vld [vmem:[%s2283_s1 + $0x1a0] ss:$20 sps:$4 sm:$0xff]   ;;  %v1666_v20 = vld [vmem:[%s2284_s0 + $0x30] ss:$8 sps:$4 sm:$0xff]  }
  0x1d   :  { %v1678_v18 = vld [vmem:[%s2283_s1 + $0x60] ss:$20 sps:$4 sm:$0xff]   ;;  %v1669_v21 = vld [vmem:[%s2284_s0 + $0x44] ss:$8 sps:$4 sm:$0xff]   ;;  %v1676_v27 = vld [vmem:[%s2284_s0 + $0x50] ss:$8 sps:$4 sm:$0xff]  }
  0x1e   :  { %v1683_v22 = vld [vmem:[%s2283_s1 + $0x38] ss:$20 sps:$4 sm:$0xff]   ;;  %v1687_v23 = vld [vmem:[%s2283_s1 + $0x150] ss:$20 sps:$4 sm:$0xff]   ;;  %v1671_v25 = vld [vmem:[%s2284_s0 + $0x40] ss:$8 sps:$4 sm:$0xff]  }
  0x1f   :  { %665 = vmatpush1.bf16.msra.mxu0 %v1599_v30  ;;  %778 = vmatpush1.bf16.msra.mxu1 %v1600_v31  ;;  %v1688_v24 = vld [vmem:[%s2283_s1 + $0x10] ss:$20 sps:$4 sm:$0xff]   ;;  %v1674_v26 = vld [vmem:[%s2284_s0 + $0x54] ss:$8 sps:$4 sm:$0xff]   ;;  %v1681_v29 = vld [vmem:[%s2284_s0 + $0x60] ss:$8 sps:$4 sm:$0xff]  }
  0x20   :  { %666 = vmatprep.subr.bf16.mxu0 %v1601_v32  ;;  %779 = vmatprep.subr.bf16.mxu1 %v1603_v33  ;;  %v1679_v28 = vld [vmem:[%s2284_s0 + $0x64] ss:$8 sps:$4 sm:$0xff]   ;;  %v1684_v30 = vld [vmem:[%s2284_s0 + $0x74] ss:$8 sps:$4 sm:$0xff]   ;;  %v1686_v31 = vld [vmem:[%s2284_s0 + $0x70] ss:$8 sps:$4 sm:$0xff]   ;;  %v129_v32 = vlaneseq }
  0x22   :  { %v2032_v33 = vshrl.u32 %v129_v32, 7 }
  0x23   :  { %667 = vmatpush2.bf16.msra.mxu0 %v1605_v34  ;;  %780 = vmatpush2.bf16.msra.mxu1 %v1606_v35 }
  0x24   :  { %668 = vmatprep.subr.bf16.mxu0 %v1607_v36  ;;  %781 = vmatprep.subr.bf16.mxu1 %v1609_v37  ;;  %v131_v34 = vsub.s32 0, %v2032_v33  ;;  %v139_v35 = vsub.s32 2, %v2032_v33  ;;  %v135_v36 = vsub.s32 1, %v2032_v33  ;;  %v143_v37 = vsub.s32 3, %v2032_v33 }
  0x27   :  { %669 = vmatpush2.bf16.msra.mxu0 %v1611_v38  ;;  %782 = vmatpush2.bf16.msra.mxu1 %v1612_v39  ;;  %v2041_v38 = vld [vmem:[%s2285_s2] sm:$0x1f] }
  0x28   :  { %670 = vmatprep.subr.bf16.mxu0 %v1613_v40  ;;  %783 = vmatprep.subr.bf16.mxu1 %v1615_v41  ;;  %v2044_v39 = vrot.slane %v2041_v38, %v131_v34  ;;  %v2047_v40 = vrot.slane %v2041_v38, %v139_v35  ;;  %v2050_v41 = vrot.slane %v2041_v38, %v135_v36 }
  0x2b   :  { %671 = vmatpush2.bf16.msra.mxu0 %v1617_v42  ;;  %784 = vmatpush2.bf16.msra.mxu1 %v1618_v43  ;;  %v2053_v42 = vrot.slane %v2041_v38, %v143_v37 }
  0x2c   :  { %672 = vmatprep.subr.bf16.mxu0 %v1619_v44  ;;  %785 = vmatprep.subr.bf16.mxu1 %v1621_v45 }
  0x2f   :  { %673 = vmatpush2.bf16.msra.mxu0 %v1623_v46  ;;  %786 = vmatpush2.bf16.msra.mxu1 %v1624_v47 }
  0x30   :  { %674 = vmatprep.subr.bf16.mxu0 %v1625_v49  ;;  %787 = vmatprep.subr.bf16.mxu1 %v1627_v50 }
  0x33   :  { %675 = vmatpush2.bf16.msra.mxu0 %v1629_v51  ;;  %788 = vmatpush2.bf16.msra.mxu1 %v1630_v52 }
  0x34   :  { %676 = vmatprep.subr.bf16.mxu0 %v1631_v53  ;;  %789 = vmatprep.subr.bf16.mxu1 %v1633_v54 }
  0x37   :  { %677 = vmatpush2.bf16.msra.mxu0 %v1635_v55  ;;  %790 = vmatpush2.bf16.msra.mxu1 %v1636_v56 }
  0x38   :  { %678 = vmatprep.subr.bf16.mxu0 %v1637_v57  ;;  %791 = vmatprep.subr.bf16.mxu1 %v1639_v58 }
  0x3b   :  { %679 = vmatpush2.bf16.msra.mxu0 %v1641_v59  ;;  %792 = vmatpush2.bf16.msra.mxu1 %v1642_v60 }
  0x3c   :  { %680 = vmatprep.subr.bf16.mxu0 %v1643_v61  ;;  %793 = vmatprep.subr.bf16.mxu1 %v1645_v62 }
  0x3f   :  { %681 = vmatpush2.bf16.msra.mxu0 %v1647_v63  ;;  %794 = vmatpush2.bf16.msra.mxu1 %v1648_v0 }
  0x40   :  { %1473 = vmatprep.subr.bf16.mxu0 %v1652_v1  ;;  %1537 = vmatprep.subr.bf16.mxu1 %v1652_v1 }
  0x42   :  { %683 = vmatmul.mubr.bf16.vlgmr.msra.gmra.mxu0 %v1914_v2  ;;  %796 = vmatmul.mubr.bf16.vlgmr.msra.gmra.mxu1 %v1914_v2 }
  0x43   :  { %1474 = vmatpush3.bf16.msra.mxu0 %v1653_v3  ;;  %1545 = vmatpush3.bf16.msra.mxu1 %v1653_v3 }
  0x44   :  { %692 = vmatprep.mubr.bf16.mxu0 %v1922_v4  ;;  %805 = vmatprep.mubr.bf16.mxu1 %v1922_v4 }
  0x45   :  { %1475 = vmatprep.subr.bf16.mxu0 %v1657_v5  ;;  %1538 = vmatprep.subr.bf16.mxu1 %v1657_v5 }
  0x47   :  { %1476 = vmatpush3.bf16.msra.mxu0 %v1658_v6  ;;  %1546 = vmatpush3.bf16.msra.mxu1 %v1658_v6 }
  0x48   :  { %1477 = vmatprep.subr.bf16.mxu0 %v1662_v7  ;;  %1539 = vmatprep.subr.bf16.mxu1 %v1662_v7 }
  0x4a   :  { %693 = vmatmul.mubr.bf16.gmra.mxu0 %v1940_v8  ;;  %806 = vmatmul.mubr.bf16.gmra.mxu1 %v1940_v8 }
  0x4b   :  { %702 = vmatprep.mubr.bf16.mxu0 %v1945_v9  ;;  %815 = vmatprep.mubr.bf16.mxu1 %v1945_v9 }
  0x4c   :  { %1478 = vmatpush3.bf16.msra.mxu0 %v1663_v10  ;;  %1547 = vmatpush3.bf16.msra.mxu1 %v1663_v10 }
  0x4d   :  { %1479 = vmatprep.subr.bf16.mxu0 %v1667_v11  ;;  %1540 = vmatprep.subr.bf16.mxu1 %v1667_v11 }
  0x50   :  { %1480 = vmatpush3.bf16.msra.mxu0 %v1668_v12  ;;  %1548 = vmatpush3.bf16.msra.mxu1 %v1668_v12 }
  0x51   :  { %1481 = vmatprep.subr.bf16.mxu0 %v1672_v13  ;;  %1541 = vmatprep.subr.bf16.mxu1 %v1672_v13 }
  0x52   :  { %703 = vmatmul.mubr.bf16.gmra.mxu0 %v1966_v14  ;;  %816 = vmatmul.mubr.bf16.gmra.mxu1 %v1966_v14 }
  0x53   :  { %712 = vmatprep.mubr.bf16.mxu0 %v1971_v15  ;;  %825 = vmatprep.mubr.bf16.mxu1 %v1971_v15 }
  0x54   :  { %1482 = vmatpush3.bf16.msra.mxu0 %v1673_v16  ;;  %1549 = vmatpush3.bf16.msra.mxu1 %v1673_v16 }
  0x55   :  { %1483 = vmatprep.subr.bf16.mxu0 %v1677_v17  ;;  %1542 = vmatprep.subr.bf16.mxu1 %v1677_v17 }
  0x58   :  { %1484 = vmatpush3.bf16.msra.mxu0 %v1678_v18  ;;  %1550 = vmatpush3.bf16.msra.mxu1 %v1678_v18 }
  0x59   :  { %1485 = vmatprep.subr.bf16.mxu0 %v1682_v19  ;;  %1543 = vmatprep.subr.bf16.mxu1 %v1682_v19 }
  0x5a   :  { %713 = vmatmul.mubr.bf16.gmra.mxu0 %v1666_v20  ;;  %826 = vmatmul.mubr.bf16.gmra.mxu1 %v1666_v20 }
  0x5b   :  { %722 = vmatprep.mubr.bf16.mxu0 %v1669_v21  ;;  %835 = vmatprep.mubr.bf16.mxu1 %v1669_v21 }
  0x5c   :  { %1486 = vmatpush3.bf16.msra.mxu0 %v1683_v22  ;;  %1551 = vmatpush3.bf16.msra.mxu1 %v1683_v22 }
  0x5d   :  { %1487 = vmatprep.subr.bf16.mxu0 %v1687_v23  ;;  %1544 = vmatprep.subr.bf16.mxu1 %v1687_v23 }
  0x60   :  { %1488 = vmatpush3.bf16.msra.mxu0 %v1688_v24  ;;  %1552 = vmatpush3.bf16.msra.mxu1 %v1688_v24 }
  0x62   :  { %723 = vmatmul.mubr.bf16.gmra.mxu0 %v1671_v25  ;;  %836 = vmatmul.mubr.bf16.gmra.mxu1 %v1671_v25 }
  0x63   :  { %732 = vmatprep.mubr.bf16.mxu0 %v1674_v26  ;;  %845 = vmatprep.mubr.bf16.mxu1 %v1674_v26 }
  0x6a   :  { %733 = vmatmul.mubr.bf16.gmra.mxu0 %v1676_v27  ;;  %846 = vmatmul.mubr.bf16.gmra.mxu1 %v1676_v27 }
  0x6b   :  { %742 = vmatprep.mubr.bf16.mxu0 %v1679_v28  ;;  %855 = vmatprep.mubr.bf16.mxu1 %v1679_v28 }
  0x72   :  { %743 = vmatmul.mubr.bf16.gmra.mxu0 %v1681_v29  ;;  %856 = vmatmul.mubr.bf16.gmra.mxu1 %v1681_v29 }
  0x73   :  { %752 = vmatprep.mubr.bf16.mxu0 %v1684_v30  ;;  %865 = vmatprep.mubr.bf16.mxu1 %v1684_v30 }
  0x7a   :  { %753 = vmatmul.mubr.bf16.gmra.mxu0 %v1686_v31  ;;  %866 = vmatmul.mubr.bf16.gmra.mxu1 %v1686_v31 }
  0x7b   :  { %908 = vmatprep.mubr.bf16.mxu0 %v1856_v48  ;;  %940 = vmatprep.mubr.bf16.mxu1 %v1669_v21 }
  0x82   :  { %909 = vmatmul.mubr.bf16.vlgmr.msra.gmra.mxu0 %v1914_v2  ;;  %941 = vmatmul.mubr.bf16.vlgmr.msra.gmra.mxu1 %v1671_v25 }
  0x83   :  { %916 = vmatprep.mubr.bf16.mxu0 %v1922_v4  ;;  %948 = vmatprep.mubr.bf16.mxu1 %v1674_v26 }
  0x8a   :  { %917 = vmatmul.mubr.bf16.gmra.mxu0 %v1940_v8  ;;  %949 = vmatmul.mubr.bf16.gmra.mxu1 %v1676_v27 }
  0x8b   :  { %924 = vmatprep.mubr.bf16.mxu0 %v1945_v9  ;;  %956 = vmatprep.mubr.bf16.mxu1 %v1679_v28 }
  0x92   :  { %925 = vmatmul.mubr.bf16.gmra.mxu0 %v1966_v14  ;;  %957 = vmatmul.mubr.bf16.gmra.mxu1 %v1681_v29 }
  0x93   :  { %932 = vmatprep.mubr.bf16.mxu0 %v1971_v15  ;;  %964 = vmatprep.mubr.bf16.mxu1 %v1684_v30 }
  0x9a   :  { %933 = vmatmul.mubr.bf16.gmra.mxu0 %v1666_v20  ;;  %965 = vmatmul.mubr.bf16.gmra.mxu1 %v1686_v31 }
 0x102   :  { %v684_v43 = vpop.f32.mrf.mxu0  ;;  %v797_v44 = vpop.f32.mrf.mxu1 }
 0x103   :  { %v685_v47 = vadd.f32 %v684_v43, %v2044_v39  ;;  %v798_v48 = vadd.f32 %v797_v44, %v2047_v40 }
 0x104   :  { %v686_v45 = vpop.f32.mrf.mxu0  ;;  %v799_v46 = vpop.f32.mrf.mxu1 }
 0x105   :  { %v687_v49 = vadd.f32 %v686_v45, %v2050_v41  ;;  %v800_v50 = vadd.f32 %v799_v46, %v2053_v42 }
 0x106   :  { %v688_v51 = vpop.f32.mrf.mxu0  ;;  %v801_v52 = vpop.f32.mrf.mxu1 }
 0x107   :  { %v1425_v53 = vpack.c.bf16 %v687_v49, %v685_v47  ;;  %v1426_v54 = vpack.c.bf16 %v800_v50, %v798_v48  ;;  %v689_v57 = vadd.f32 %v688_v51, %v2044_v39  ;;  %v802_v58 = vadd.f32 %v801_v52, %v2047_v40 }
 0x108   :  { %v690_v55 = vpop.f32.mrf.mxu0  ;;  %v803_v56 = vpop.f32.mrf.mxu1 }
 0x109   :  { %1229 = vst [vmem:[%s2286_s3] sm:$0xff] %v1425_v53  ;;  %1230 = vst [vmem:[%s2286_s3 + $0x8] sm:$0xff] %v1426_v54  ;;  %v691_v59 = vadd.f32 %v690_v55, %v2050_v41  ;;  %v804_v60 = vadd.f32 %v803_v56, %v2053_v42 }
 0x10a   :  { %v694_v61 = vpop.f32.mrf.mxu0  ;;  %v807_v62 = vpop.f32.mrf.mxu1 }
 0x10b   :  { %v1428_v63 = vpack.c.bf16 %v691_v59, %v689_v57  ;;  %v1429_v0 = vpack.c.bf16 %v804_v60, %v802_v58  ;;  %v695_v3 = vadd.f32 %v694_v61, %v2044_v39  ;;  %v808_v4 = vadd.f32 %v807_v62, %v2047_v40 }
 0x10c   :  { %v696_v1 = vpop.f32.mrf.mxu0  ;;  %v809_v2 = vpop.f32.mrf.mxu1 }
 0x10d   :  { %1232 = vst [vmem:[%s2286_s3 + $0x14] sm:$0xff] %v1428_v63  ;;  %1233 = vst [vmem:[%s2286_s3 + $0x1c] sm:$0xff] %v1429_v0  ;;  %v697_v5 = vadd.f32 %v696_v1, %v2050_v41  ;;  %v810_v6 = vadd.f32 %v809_v2, %v2053_v42 }
 0x10e   :  { %v698_v7 = vpop.f32.mrf.mxu0  ;;  %v811_v8 = vpop.f32.mrf.mxu1 }
 0x10f   :  { %v1431_v9 = vpack.c.bf16 %v697_v5, %v695_v3  ;;  %v1432_v10 = vpack.c.bf16 %v810_v6, %v808_v4  ;;  %v699_v13 = vadd.f32 %v698_v7, %v2044_v39  ;;  %v812_v14 = vadd.f32 %v811_v8, %v2047_v40 }
 0x110   :  { %v700_v11 = vpop.f32.mrf.mxu0  ;;  %v813_v12 = vpop.f32.mrf.mxu1 }
 0x111   :  { %1235 = vst [vmem:[%s2286_s3 + $0x28] sm:$0xff] %v1431_v9  ;;  %1236 = vst [vmem:[%s2286_s3 + $0x30] sm:$0xff] %v1432_v10  ;;  %v701_v15 = vadd.f32 %v700_v11, %v2050_v41  ;;  %v814_v16 = vadd.f32 %v813_v12, %v2053_v42 }
 0x112   :  { %v704_v17 = vpop.f32.mrf.mxu0  ;;  %v817_v18 = vpop.f32.mrf.mxu1 }
 0x113   :  { %v1434_v19 = vpack.c.bf16 %v701_v15, %v699_v13  ;;  %v1435_v20 = vpack.c.bf16 %v814_v16, %v812_v14  ;;  %v705_v23 = vadd.f32 %v704_v17, %v2044_v39  ;;  %v818_v24 = vadd.f32 %v817_v18, %v2047_v40 }
 0x114   :  { %v706_v21 = vpop.f32.mrf.mxu0  ;;  %v819_v22 = vpop.f32.mrf.mxu1 }
 0x115   :  { %1238 = vst [vmem:[%s2286_s3 + $0x3c] sm:$0xff] %v1434_v19  ;;  %1239 = vst [vmem:[%s2286_s3 + $0x44] sm:$0xff] %v1435_v20  ;;  %v707_v25 = vadd.f32 %v706_v21, %v2050_v41  ;;  %v820_v26 = vadd.f32 %v819_v22, %v2053_v42 }
 0x116   :  { %v708_v27 = vpop.f32.mrf.mxu0  ;;  %v821_v28 = vpop.f32.mrf.mxu1 }
 0x117   :  { %v1437_v29 = vpack.c.bf16 %v707_v25, %v705_v23  ;;  %v1438_v30 = vpack.c.bf16 %v820_v26, %v818_v24  ;;  %v709_v34 = vadd.f32 %v708_v27, %v2044_v39  ;;  %v822_v35 = vadd.f32 %v821_v28, %v2047_v40 }
 0x118   :  { %v710_v31 = vpop.f32.mrf.mxu0  ;;  %v823_v32 = vpop.f32.mrf.mxu1 }
 0x119   :  { %1241 = vst [vmem:[%s2286_s3 + $0x50] sm:$0xff] %v1437_v29  ;;  %1242 = vst [vmem:[%s2286_s3 + $0x58] sm:$0xff] %v1438_v30  ;;  %v711_v36 = vadd.f32 %v710_v31, %v2050_v41  ;;  %v824_v37 = vadd.f32 %v823_v32, %v2053_v42 }
 0x11a   :  { %v714_v43 = vpop.f32.mrf.mxu0  ;;  %v827_v44 = vpop.f32.mrf.mxu1 }
 0x11b   :  { %v1440_v45 = vpack.c.bf16 %v711_v36, %v709_v34  ;;  %v1441_v46 = vpack.c.bf16 %v824_v37, %v822_v35  ;;  %v715_v49 = vadd.f32 %v714_v43, %v2044_v39  ;;  %v828_v50 = vadd.f32 %v827_v44, %v2047_v40 }
 0x11c   :  { %v716_v47 = vpop.f32.mrf.mxu0  ;;  %v829_v48 = vpop.f32.mrf.mxu1 }
 0x11d   :  { %1244 = vst [vmem:[%s2286_s3 + $0x64] sm:$0xff] %v1440_v45  ;;  %1245 = vst [vmem:[%s2286_s3 + $0x6c] sm:$0xff] %v1441_v46  ;;  %v717_v51 = vadd.f32 %v716_v47, %v2050_v41  ;;  %v830_v52 = vadd.f32 %v829_v48, %v2053_v42 }
 0x11e   :  { %v718_v53 = vpop.f32.mrf.mxu0  ;;  %v831_v54 = vpop.f32.mrf.mxu1 }
 0x11f   :  { %v1443_v55 = vpack.c.bf16 %v717_v51, %v715_v49  ;;  %v1444_v56 = vpack.c.bf16 %v830_v52, %v828_v50  ;;  %v719_v59 = vadd.f32 %v718_v53, %v2044_v39  ;;  %v832_v60 = vadd.f32 %v831_v54, %v2047_v40 }
 0x120   :  { %v720_v57 = vpop.f32.mrf.mxu0  ;;  %v833_v58 = vpop.f32.mrf.mxu1 }
 0x121   :  { %1247 = vst [vmem:[%s2286_s3 + $0x78] sm:$0xff] %v1443_v55  ;;  %1248 = vst [vmem:[%s2286_s3 + $0x80] sm:$0xff] %v1444_v56  ;;  %v721_v61 = vadd.f32 %v720_v57, %v2050_v41  ;;  %v834_v62 = vadd.f32 %v833_v58, %v2053_v42 }
 0x122   :  { %v724_v63 = vpop.f32.mrf.mxu0  ;;  %v837_v0 = vpop.f32.mrf.mxu1 }
 0x123   :  { %v1446_v1 = vpack.c.bf16 %v721_v61, %v719_v59  ;;  %v1447_v2 = vpack.c.bf16 %v834_v62, %v832_v60  ;;  %v725_v5 = vadd.f32 %v724_v63, %v2044_v39  ;;  %v838_v6 = vadd.f32 %v837_v0, %v2047_v40 }
 0x124   :  { %v726_v3 = vpop.f32.mrf.mxu0  ;;  %v839_v4 = vpop.f32.mrf.mxu1 }
 0x125   :  { %1250 = vst [vmem:[%s2286_s3 + $0x8c] sm:$0xff] %v1446_v1  ;;  %1251 = vst [vmem:[%s2286_s3 + $0x94] sm:$0xff] %v1447_v2  ;;  %v727_v7 = vadd.f32 %v726_v3, %v2050_v41  ;;  %v840_v8 = vadd.f32 %v839_v4, %v2053_v42 }
 0x126   :  { %v728_v9 = vpop.f32.mrf.mxu0  ;;  %v841_v10 = vpop.f32.mrf.mxu1 }
 0x127   :  { %v1449_v11 = vpack.c.bf16 %v727_v7, %v725_v5  ;;  %v1450_v12 = vpack.c.bf16 %v840_v8, %v838_v6  ;;  %v729_v15 = vadd.f32 %v728_v9, %v2044_v39  ;;  %v842_v16 = vadd.f32 %v841_v10, %v2047_v40 }
 0x128   :  { %v730_v13 = vpop.f32.mrf.mxu0  ;;  %v843_v14 = vpop.f32.mrf.mxu1 }
 0x129   :  { %1253 = vst [vmem:[%s2286_s3 + $0xa0] sm:$0xff] %v1449_v11  ;;  %1254 = vst [vmem:[%s2286_s3 + $0xa8] sm:$0xff] %v1450_v12  ;;  %v731_v17 = vadd.f32 %v730_v13, %v2050_v41  ;;  %v844_v18 = vadd.f32 %v843_v14, %v2053_v42 }
 0x12a   :  { %v734_v19 = vpop.f32.mrf.mxu0  ;;  %v847_v20 = vpop.f32.mrf.mxu1 }
 0x12b   :  { %v1452_v21 = vpack.c.bf16 %v731_v17, %v729_v15  ;;  %v1453_v22 = vpack.c.bf16 %v844_v18, %v842_v16  ;;  %v735_v25 = vadd.f32 %v734_v19, %v2044_v39  ;;  %v848_v26 = vadd.f32 %v847_v20, %v2047_v40 }
 0x12c   :  { %v736_v23 = vpop.f32.mrf.mxu0  ;;  %v849_v24 = vpop.f32.mrf.mxu1  ;;  %v147_v15 = vsub.s32 4, %v2032_v33 }
 0x12d   :  { %1256 = vst [vmem:[%s2286_s3 + $0xb4] sm:$0xff] %v1452_v21  ;;  %1257 = vst [vmem:[%s2286_s3 + $0xbc] sm:$0xff] %v1453_v22  ;;  %v737_v27 = vadd.f32 %v736_v23, %v2050_v41  ;;  %v850_v28 = vadd.f32 %v849_v24, %v2053_v42 }
 0x12e   :  { %v738_v29 = vpop.f32.mrf.mxu0  ;;  %v851_v30 = vpop.f32.mrf.mxu1 }
 0x12f   :  { %v1455_v31 = vpack.c.bf16 %v737_v27, %v735_v25  ;;  %v1456_v32 = vpack.c.bf16 %v850_v28, %v848_v26  ;;  %v739_v36 = vadd.f32 %v738_v29, %v2044_v39  ;;  %v852_v37 = vadd.f32 %v851_v30, %v2047_v40 }
 0x130   :  { %v740_v34 = vpop.f32.mrf.mxu0  ;;  %v853_v35 = vpop.f32.mrf.mxu1  ;;  %v2211_v25 = vrot.slane %v2041_v38, %v147_v15 }
 0x131   :  { %1259 = vst [vmem:[%s2286_s3 + $0xc8] sm:$0xff] %v1455_v31  ;;  %1260 = vst [vmem:[%s2286_s3 + $0xd0] sm:$0xff] %v1456_v32  ;;  %v741_v43 = vadd.f32 %v740_v34, %v2050_v41  ;;  %v854_v44 = vadd.f32 %v853_v35, %v2053_v42 }
 0x132   :  { %v744_v45 = vpop.f32.mrf.mxu0  ;;  %v857_v46 = vpop.f32.mrf.mxu1 }
 0x133   :  { %v1458_v47 = vpack.c.bf16 %v741_v43, %v739_v36  ;;  %v1459_v48 = vpack.c.bf16 %v854_v44, %v852_v37  ;;  %v745_v51 = vadd.f32 %v744_v45, %v2044_v39  ;;  %v858_v52 = vadd.f32 %v857_v46, %v2047_v40 }
 0x134   :  { %v746_v49 = vpop.f32.mrf.mxu0  ;;  %v859_v50 = vpop.f32.mrf.mxu1 }
 0x135   :  { %1262 = vst [vmem:[%s2286_s3 + $0xdc] sm:$0xff] %v1458_v47  ;;  %1263 = vst [vmem:[%s2286_s3 + $0xe4] sm:$0xff] %v1459_v48  ;;  %v747_v53 = vadd.f32 %v746_v49, %v2050_v41  ;;  %v860_v54 = vadd.f32 %v859_v50, %v2053_v42 }
 0x136   :  { %v748_v55 = vpop.f32.mrf.mxu0  ;;  %v861_v56 = vpop.f32.mrf.mxu1 }
 0x137   :  { %v1461_v57 = vpack.c.bf16 %v747_v53, %v745_v51  ;;  %v1462_v58 = vpack.c.bf16 %v860_v54, %v858_v52  ;;  %v749_v61 = vadd.f32 %v748_v55, %v2044_v39  ;;  %v862_v62 = vadd.f32 %v861_v56, %v2047_v40 }
 0x138   :  { %v750_v59 = vpop.f32.mrf.mxu0  ;;  %v863_v60 = vpop.f32.mrf.mxu1 }
 0x139   :  { %1265 = vst [vmem:[%s2286_s3 + $0xf0] sm:$0xff] %v1461_v57  ;;  %1266 = vst [vmem:[%s2286_s3 + $0xf8] sm:$0xff] %v1462_v58  ;;  %v751_v63 = vadd.f32 %v750_v59, %v2050_v41  ;;  %v864_v0 = vadd.f32 %v863_v60, %v2053_v42 }
 0x13a   :  { %v754_v1 = vpop.f32.mrf.mxu0  ;;  %v867_v2 = vpop.f32.mrf.mxu1 }
 0x13b   :  { %v1464_v3 = vpack.c.bf16 %v751_v63, %v749_v61  ;;  %v1465_v4 = vpack.c.bf16 %v864_v0, %v862_v62  ;;  %v755_v7 = vadd.f32 %v754_v1, %v2044_v39  ;;  %v868_v8 = vadd.f32 %v867_v2, %v2047_v40 }
 0x13c   :  { %v756_v5 = vpop.f32.mrf.mxu0  ;;  %v869_v6 = vpop.f32.mrf.mxu1 }
 0x13d   :  { %1268 = vst [vmem:[%s2286_s3 + $0x104] sm:$0xff] %v1464_v3  ;;  %1269 = vst [vmem:[%s2286_s3 + $0x10c] sm:$0xff] %v1465_v4  ;;  %v757_v9 = vadd.f32 %v756_v5, %v2050_v41  ;;  %v870_v10 = vadd.f32 %v869_v6, %v2053_v42 }
 0x13e   :  { %v758_v11 = vpop.f32.mrf.mxu0  ;;  %v871_v12 = vpop.f32.mrf.mxu1 }
 0x13f   :  { %v1467_v13 = vpack.c.bf16 %v757_v9, %v755_v7  ;;  %v1468_v14 = vpack.c.bf16 %v870_v10, %v868_v8  ;;  %v759_v18 = vadd.f32 %v758_v11, %v2044_v39  ;;  %v872_v19 = vadd.f32 %v871_v12, %v2047_v40 }
 0x140   :  { %v760_v16 = vpop.f32.mrf.mxu0  ;;  %v873_v17 = vpop.f32.mrf.mxu1 }
 0x141   :  { %1271 = vst [vmem:[%s2286_s3 + $0x118] sm:$0xff] %v1467_v13  ;;  %1272 = vst [vmem:[%s2286_s3 + $0x120] sm:$0xff] %v1468_v14  ;;  %v761_v20 = vadd.f32 %v760_v16, %v2050_v41  ;;  %v874_v21 = vadd.f32 %v873_v17, %v2053_v42 }
 0x142   :  { %v1489_v22 = vpop.f32.mrf.mxu0  ;;  %v1513_v33 = vpop.f32.mrf.mxu1 }
 0x143   :  { %v1470_v23 = vpack.c.bf16 %v761_v20, %v759_v18  ;;  %v1471_v24 = vpack.c.bf16 %v874_v21, %v872_v19 }
 0x144   :  { %v1490_v26 = vpop.f32.mrf.mxu0  ;;  %v1514_v27 = vpop.f32.mrf.mxu1 }
 0x145   :  { %1274 = vst [vmem:[%s2286_s3 + $0x12c] sm:$0xff] %v1470_v23  ;;  %1275 = vst [vmem:[%s2286_s3 + $0x134] sm:$0xff] %v1471_v24  ;;  %v1491_v39 = vadd.f32 %v1490_v26, %v1489_v22  ;;  %v1515_v40 = vadd.f32 %v1514_v27, %v1513_v33 }
 0x146   :  { %v1492_v41 = vpop.f32.mrf.mxu0  ;;  %v1516_v42 = vpop.f32.mrf.mxu1 }
 0x147   :  { %v911_v28 = vadd.f32 %v1491_v39, %v2211_v25  ;;  %v943_v29 = vadd.f32 %v1515_v40, %v2211_v25 }
 0x148   :  { %v1493_v38 = vpop.f32.mrf.mxu0  ;;  %v1517_v30 = vpop.f32.mrf.mxu1 }
 0x149   :  { %v1427_v31 = vpack.c.bf16 %v911_v28, %v911_v28  ;;  %v1451_v32 = vpack.c.bf16 %v943_v29, %v943_v29  ;;  %v1494_v34 = vadd.f32 %v1493_v38, %v1492_v41  ;;  %v1518_v35 = vadd.f32 %v1517_v30, %v1516_v42 }
 0x14a   :  { %v1495_v36 = vpop.f32.mrf.mxu0  ;;  %v1519_v37 = vpop.f32.mrf.mxu1 }
 0x14b   :  { %1231 = vst [vmem:[%s2286_s3 + $0x10] sm:$0xf] %v1427_v31  ;;  %1255 = vst [vmem:[%s2286_s3 + $0xb0] sm:$0xf] %v1451_v32  ;;  %v914_v43 = vadd.f32 %v1494_v34, %v2211_v25  ;;  %v946_v44 = vadd.f32 %v1518_v35, %v2211_v25 }
 0x14c   :  { %v1496_v45 = vpop.f32.mrf.mxu0  ;;  %v1520_v46 = vpop.f32.mrf.mxu1 }
 0x14d   :  { %v1430_v47 = vpack.c.bf16 %v914_v43, %v914_v43  ;;  %v1454_v48 = vpack.c.bf16 %v946_v44, %v946_v44  ;;  %v1497_v49 = vadd.f32 %v1496_v45, %v1495_v36  ;;  %v1521_v50 = vadd.f32 %v1520_v46, %v1519_v37 }
 0x14e   :  { %v1498_v51 = vpop.f32.mrf.mxu0  ;;  %v1522_v52 = vpop.f32.mrf.mxu1 }
 0x14f   :  { %1234 = vst [vmem:[%s2286_s3 + $0x24] sm:$0xf] %v1430_v47  ;;  %1258 = vst [vmem:[%s2286_s3 + $0xc4] sm:$0xf] %v1454_v48  ;;  %v919_v53 = vadd.f32 %v1497_v49, %v2211_v25  ;;  %v951_v54 = vadd.f32 %v1521_v50, %v2211_v25 }
 0x150   :  { %v1499_v55 = vpop.f32.mrf.mxu0  ;;  %v1523_v56 = vpop.f32.mrf.mxu1 }
 0x151   :  { %v1433_v57 = vpack.c.bf16 %v919_v53, %v919_v53  ;;  %v1457_v58 = vpack.c.bf16 %v951_v54, %v951_v54  ;;  %v1500_v59 = vadd.f32 %v1499_v55, %v1498_v51  ;;  %v1524_v60 = vadd.f32 %v1523_v56, %v1522_v52 }
 0x152   :  { %v1501_v61 = vpop.f32.mrf.mxu0  ;;  %v1525_v62 = vpop.f32.mrf.mxu1 }
 0x153   :  { %1237 = vst [vmem:[%s2286_s3 + $0x38] sm:$0xf] %v1433_v57  ;;  %1261 = vst [vmem:[%s2286_s3 + $0xd8] sm:$0xf] %v1457_v58  ;;  %v922_v63 = vadd.f32 %v1500_v59, %v2211_v25  ;;  %v954_v0 = vadd.f32 %v1524_v60, %v2211_v25 }
 0x154   :  { %v1502_v1 = vpop.f32.mrf.mxu0  ;;  %v1526_v2 = vpop.f32.mrf.mxu1 }
 0x155   :  { %v1436_v3 = vpack.c.bf16 %v922_v63, %v922_v63  ;;  %v1460_v4 = vpack.c.bf16 %v954_v0, %v954_v0  ;;  %v1503_v5 = vadd.f32 %v1502_v1, %v1501_v61  ;;  %v1527_v6 = vadd.f32 %v1526_v2, %v1525_v62 }
 0x156   :  { %v1504_v7 = vpop.f32.mrf.mxu0  ;;  %v1528_v8 = vpop.f32.mrf.mxu1 }
 0x157   :  { %1240 = vst [vmem:[%s2286_s3 + $0x4c] sm:$0xf] %v1436_v3  ;;  %1264 = vst [vmem:[%s2286_s3 + $0xec] sm:$0xf] %v1460_v4  ;;  %v927_v9 = vadd.f32 %v1503_v5, %v2211_v25  ;;  %v959_v10 = vadd.f32 %v1527_v6, %v2211_v25 }
 0x158   :  { %v1505_v11 = vpop.f32.mrf.mxu0  ;;  %v1529_v12 = vpop.f32.mrf.mxu1 }
 0x159   :  { %v1439_v13 = vpack.c.bf16 %v927_v9, %v927_v9  ;;  %v1463_v14 = vpack.c.bf16 %v959_v10, %v959_v10  ;;  %v1506_v15 = vadd.f32 %v1505_v11, %v1504_v7  ;;  %v1530_v16 = vadd.f32 %v1529_v12, %v1528_v8 }
 0x15a   :  { %v1507_v17 = vpop.f32.mrf.mxu0  ;;  %v1531_v18 = vpop.f32.mrf.mxu1 }
 0x15b   :  { %1243 = vst [vmem:[%s2286_s3 + $0x60] sm:$0xf] %v1439_v13  ;;  %1267 = vst [vmem:[%s2286_s3 + $0x100] sm:$0xf] %v1463_v14  ;;  %v930_v19 = vadd.f32 %v1506_v15, %v2211_v25  ;;  %v962_v20 = vadd.f32 %v1530_v16, %v2211_v25 }
 0x15c   :  { %v1508_v21 = vpop.f32.mrf.mxu0  ;;  %v1532_v22 = vpop.f32.mrf.mxu1 }
 0x15d   :  { %v1442_v33 = vpack.c.bf16 %v930_v19, %v930_v19  ;;  %v1466_v23 = vpack.c.bf16 %v962_v20, %v962_v20  ;;  %v1509_v24 = vadd.f32 %v1508_v21, %v1507_v17  ;;  %v1533_v26 = vadd.f32 %v1532_v22, %v1531_v18 }
 0x15e   :  { %v1510_v27 = vpop.f32.mrf.mxu0  ;;  %v1534_v39 = vpop.f32.mrf.mxu1 }
 0x15f   :  { %1246 = vst [vmem:[%s2286_s3 + $0x74] sm:$0xf] %v1442_v33  ;;  %1270 = vst [vmem:[%s2286_s3 + $0x114] sm:$0xf] %v1466_v23  ;;  %v935_v40 = vadd.f32 %v1509_v24, %v2211_v25  ;;  %v967_v41 = vadd.f32 %v1533_v26, %v2211_v25 }
 0x160   :  { %v1511_v42 = vpop.f32.mrf.mxu0  ;;  %v1535_v28 = vpop.f32.mrf.mxu1 }
 0x161   :  { %v1445_v29 = vpack.c.bf16 %v935_v40, %v935_v40  ;;  %v1469_v38 = vpack.c.bf16 %v967_v41, %v967_v41  ;;  %v1512_v30 = vadd.f32 %v1511_v42, %v1510_v27  ;;  %v1536_v31 = vadd.f32 %v1535_v28, %v1534_v39 }
 0x163   :  { %1249 = vst [vmem:[%s2286_s3 + $0x88] sm:$0xf] %v1445_v29  ;;  %1273 = vst [vmem:[%s2286_s3 + $0x128] sm:$0xf] %v1469_v38  ;;  %v938_v32 = vadd.f32 %v1512_v30, %v2211_v25  ;;  %v970_v34 = vadd.f32 %v1536_v31, %v2211_v25 }
 0x165   :  { %v1448_v35 = vpack.c.bf16 %v938_v32, %v938_v32  ;;  %v1472_v36 = vpack.c.bf16 %v970_v34, %v970_v34 }
 0x167   :  { %1252 = vst [vmem:[%s2286_s3 + $0x9c] sm:$0xf] %v1448_v35  ;;  %1276 = vst [vmem:[%s2286_s3 + $0x13c] sm:$0xf] %v1472_v36 }

// kernel: timm_cnn_encoder_forward.53
= control target key start
LH: loop header
LB: loop body
LE: loop exit
PB: predicated region body
PF: predicated region fallthrough
CT: control target
= control target key end

     0   :  { %s761_s1 = inlined_call_operand.vmem [shape: bf16[512,128], index: 1, kind: input, shape index: {}]   ;;  %s762_s0 = inlined_call_operand.vmem [shape: bf16[32,512], index: 0, kind: input, shape index: {}]   ;;  %s763_s2 = inlined_call_operand.vmem [shape: f32[1,128], index: 2, kind: input, shape index: {}]   ;;  %s764_s3 = inlined_call_operand.vmem [shape: bf16[32,128], index: 3, kind: output, shape index: {}]  }
   0x1   :  { %v568_v0 = vld [vmem:[%s761_s1 + $0x78] sm:$0xff]   ;;  %v572_v4 = vld [vmem:[%s761_s1 + $0x70] sm:$0xff]   ;;  %v576_v8 = vld [vmem:[%s761_s1 + $0x68] sm:$0xff]  }
   0x2   :  { %v569_v1 = vld [vmem:[%s761_s1 + $0xf8] sm:$0xff]   ;;  %512 = vmatprep.subr.bf16.mxu0 %v568_v0  ;;  %v573_v5 = vld [vmem:[%s761_s1 + $0xf0] sm:$0xff]   ;;  %v577_v9 = vld [vmem:[%s761_s1 + $0xe8] sm:$0xff]  }
   0x3   :  { %v570_v2 = vld [vmem:[%s761_s1 + $0x38] sm:$0xff]   ;;  %540 = vmatprep.subr.bf16.mxu1 %v569_v1  ;;  %v574_v6 = vld [vmem:[%s761_s1 + $0x30] sm:$0xff]   ;;  %v578_v10 = vld [vmem:[%s761_s1 + $0x28] sm:$0xff]  }
   0x4   :  { %v571_v3 = vld [vmem:[%s761_s1 + $0xb8] sm:$0xff]   ;;  %513 = vmatpush3.bf16.msra.mxu0 %v570_v2  ;;  %v575_v7 = vld [vmem:[%s761_s1 + $0xb0] sm:$0xff]   ;;  %v579_v11 = vld [vmem:[%s761_s1 + $0xa8] sm:$0xff]  }
   0x5   :  { %541 = vmatpush3.bf16.msra.mxu1 %v571_v3  ;;  %514 = vmatprep.subr.bf16.mxu0 %v572_v4  ;;  %v580_v12 = vld [vmem:[%s761_s1 + $0x60] sm:$0xff]   ;;  %v584_v16 = vld [vmem:[%s761_s1 + $0x58] sm:$0xff]   ;;  %v588_v20 = vld [vmem:[%s761_s1 + $0x50] sm:$0xff]  }
   0x6   :  { %542 = vmatprep.subr.bf16.mxu1 %v573_v5  ;;  %v581_v13 = vld [vmem:[%s761_s1 + $0xe0] sm:$0xff]   ;;  %v585_v17 = vld [vmem:[%s761_s1 + $0xd8] sm:$0xff]   ;;  %v589_v21 = vld [vmem:[%s761_s1 + $0xd0] sm:$0xff]  }
   0x7   :  { %v582_v14 = vld [vmem:[%s761_s1 + $0x20] sm:$0xff]   ;;  %v586_v18 = vld [vmem:[%s761_s1 + $0x18] sm:$0xff]   ;;  %v590_v22 = vld [vmem:[%s761_s1 + $0x10] sm:$0xff]  }
   0x8   :  { %515 = vmatpush3.bf16.msra.mxu0 %v574_v6  ;;  %v583_v15 = vld [vmem:[%s761_s1 + $0xa0] sm:$0xff]   ;;  %v587_v19 = vld [vmem:[%s761_s1 + $0x98] sm:$0xff]   ;;  %v591_v23 = vld [vmem:[%s761_s1 + $0x90] sm:$0xff]  }
   0x9   :  { %543 = vmatpush3.bf16.msra.mxu1 %v575_v7  ;;  %516 = vmatprep.subr.bf16.mxu0 %v576_v8  ;;  %v592_v24 = vld [vmem:[%s761_s1 + $0x48] sm:$0xff]   ;;  %v596_v28 = vld [vmem:[%s761_s1 + $0x40] sm:$0xff]  }
   0xa   :  { %544 = vmatprep.subr.bf16.mxu1 %v577_v9  ;;  %v593_v25 = vld [vmem:[%s761_s1 + $0xc8] sm:$0xff]   ;;  %v597_v29 = vld [vmem:[%s761_s1 + $0xc0] sm:$0xff]  }
   0xb   :  { %v594_v26 = vld [vmem:[%s761_s1 + $0x8] sm:$0xff]   ;;  %v598_v30 = vld [vmem:[%s761_s1] sm:$0xff]  }
   0xc   :  { %517 = vmatpush3.bf16.msra.mxu0 %v578_v10  ;;  %v595_v27 = vld [vmem:[%s761_s1 + $0x88] sm:$0xff]   ;;  %v599_v31 = vld [vmem:[%s761_s1 + $0x80] sm:$0xff]  }
   0xd   :  { %545 = vmatpush3.bf16.msra.mxu1 %v579_v11  ;;  %518 = vmatprep.subr.bf16.mxu0 %v580_v12  ;;  %v600_v32 = vld [vmem:[%s762_s0] ss:$16 sps:$4 sm:$0xff]   ;;  %v602_v33 = vld [vmem:[%s762_s0 + $0x4] ss:$16 sps:$4 sm:$0xff]   ;;  %v603_v34 = vld [vmem:[%s762_s0 + $0x8] ss:$16 sps:$4 sm:$0xff]  }
   0xe   :  { %546 = vmatprep.subr.bf16.mxu1 %v581_v13  ;;  %v605_v35 = vld [vmem:[%s762_s0 + $0xc] ss:$16 sps:$4 sm:$0xff]   ;;  %358 = vmatprep.mubr.bf16.mxu0 %v602_v33  ;;  %v606_v36 = vld [vmem:[%s762_s0 + $0x24] ss:$16 sps:$4 sm:$0xff]   ;;  %v610_v38 = vld [vmem:[%s762_s0 + $0x20] ss:$16 sps:$4 sm:$0xff]  }
   0xf   :  { %407 = vmatprep.mubr.bf16.mxu1 %v605_v35  ;;  %v608_v37 = vld [vmem:[%s762_s0 + $0x2c] ss:$16 sps:$4 sm:$0xff]   ;;  %v611_v39 = vld [vmem:[%s762_s0 + $0x28] ss:$16 sps:$4 sm:$0xff]   ;;  %v452_v42 = vld [vmem:[%s763_s2] ss:$0 sm:$0xff] }
  0x10   :  { %519 = vmatpush3.bf16.msra.mxu0 %v582_v14 }
  0x11   :  { %547 = vmatpush3.bf16.msra.mxu1 %v583_v15  ;;  %520 = vmatprep.subr.bf16.mxu0 %v584_v16 }
  0x12   :  { %548 = vmatprep.subr.bf16.mxu1 %v585_v17 }
  0x14   :  { %521 = vmatpush3.bf16.msra.mxu0 %v586_v18 }
  0x15   :  { %549 = vmatpush3.bf16.msra.mxu1 %v587_v19  ;;  %522 = vmatprep.subr.bf16.mxu0 %v588_v20 }
  0x16   :  { %550 = vmatprep.subr.bf16.mxu1 %v589_v21 }
  0x18   :  { %523 = vmatpush3.bf16.msra.mxu0 %v590_v22 }
  0x19   :  { %551 = vmatpush3.bf16.msra.mxu1 %v591_v23  ;;  %524 = vmatprep.subr.bf16.mxu0 %v592_v24 }
  0x1a   :  { %552 = vmatprep.subr.bf16.mxu1 %v593_v25 }
  0x1c   :  { %525 = vmatpush3.bf16.msra.mxu0 %v594_v26 }
  0x1d   :  { %553 = vmatpush3.bf16.msra.mxu1 %v595_v27  ;;  %526 = vmatprep.subr.bf16.mxu0 %v596_v28 }
  0x1e   :  { %554 = vmatprep.subr.bf16.mxu1 %v597_v29 }
  0x20   :  { %527 = vmatpush3.bf16.msra.mxu0 %v598_v30 }
  0x21   :  { %555 = vmatpush3.bf16.msra.mxu1 %v599_v31 }
  0x23   :  { %359 = vmatmul.mubr.bf16.vlgmr.msra.gmra.mxu0 %v600_v32 }
  0x24   :  { %408 = vmatmul.mubr.bf16.vlgmr.msra.gmra.mxu1 %v603_v34  ;;  %366 = vmatprep.mubr.bf16.mxu0 %v606_v36 }
  0x25   :  { %415 = vmatprep.mubr.bf16.mxu1 %v608_v37 }
  0x2b   :  { %367 = vmatmul.mubr.bf16.gmra.mxu0 %v610_v38 }
  0x2c   :  { %416 = vmatmul.mubr.bf16.gmra.mxu1 %v611_v39 }
  0xe3   :  { %v528_v40 = vpop.f32.mrf.mxu0 }
  0xe4   :  { %v556_v41 = vpop.f32.mrf.mxu1 }
  0xe5   :  { %v529_v43 = vpop.f32.mrf.mxu0 }
  0xe6   :  { %v530_v44 = vadd.f32 %v529_v43, %v528_v40  ;;  %v557_v45 = vpop.f32.mrf.mxu1 }
  0xe7   :  { %v531_v46 = vpop.f32.mrf.mxu0  ;;  %v558_v50 = vadd.f32 %v557_v45, %v556_v41 }
  0xe8   :  { %v361_v47 = vadd.f32 %v530_v44, %v452_v42  ;;  %v559_v48 = vpop.f32.mrf.mxu1 }
  0xe9   :  { %v532_v49 = vpop.f32.mrf.mxu0 }
  0xea   :  { %v533_v51 = vadd.f32 %v532_v49, %v531_v46  ;;  %v560_v52 = vpop.f32.mrf.mxu1  ;;  %v410_v54 = vadd.f32 %v558_v50, %v361_v47 }
  0xeb   :  { %v534_v53 = vpop.f32.mrf.mxu0  ;;  %v561_v56 = vadd.f32 %v560_v52, %v559_v48 }
  0xec   :  { %v364_v55 = vadd.f32 %v533_v51, %v452_v42  ;;  %v562_v57 = vpop.f32.mrf.mxu1  ;;  %v424_v63 = vmax.f32 %v410_v54, 0.0 }
  0xed   :  { %v535_v58 = vpop.f32.mrf.mxu0 }
  0xee   :  { %v413_v59 = vadd.f32 %v561_v56, %v364_v55  ;;  %v536_v60 = vadd.f32 %v535_v58, %v534_v53  ;;  %v563_v61 = vpop.f32.mrf.mxu1 }
  0xef   :  { %v537_v62 = vpop.f32.mrf.mxu0  ;;  %v564_v5 = vadd.f32 %v563_v61, %v562_v57 }
  0xf0   :  { %v425_v0 = vmax.f32 %v413_v59, 0.0  ;;  %v369_v1 = vadd.f32 %v536_v60, %v452_v42  ;;  %v565_v2 = vpop.f32.mrf.mxu1 }
  0xf1   :  { %v538_v3 = vpop.f32.mrf.mxu0 }
  0xf2   :  { %v504_v4 = vpack.c.bf16 %v425_v0, %v424_v63  ;;  %v539_v6 = vadd.f32 %v538_v3, %v537_v62  ;;  %v566_v7 = vpop.f32.mrf.mxu1  ;;  %v418_v8 = vadd.f32 %v564_v5, %v369_v1 }
  0xf3   :  { %v567_v10 = vadd.f32 %v566_v7, %v565_v2 }
  0xf4   :  { %505 = vst [vmem:[%s764_s3] sm:$0xff] %v504_v4   ;;  %v372_v9 = vadd.f32 %v539_v6, %v452_v42  ;;  %v426_v12 = vmax.f32 %v418_v8, 0.0 }
  0xf6   :  { %v421_v11 = vadd.f32 %v567_v10, %v372_v9 }
  0xf8   :  { %v427_v13 = vmax.f32 %v421_v11, 0.0 }
  0xfa   :  { %v509_v14 = vpack.c.bf16 %v427_v13, %v426_v12 }
  0xfc   :  { %511 = vst [vmem:[%s764_s3 + $0x8] sm:$0xff] %v509_v14  }

// kernel: timm_cnn_encoder_forward.51
= control target key start
LH: loop header
LB: loop body
LE: loop exit
PB: predicated region body
PF: predicated region fallthrough
CT: control target
= control target key end

     0   :  { %s1632_s1 = inlined_call_operand.vmem [shape: bf16[1152,128], index: 1, kind: input, shape index: {}]   ;;  %s1633_s0 = inlined_call_operand.vmem [shape: bf16[32,1152], index: 0, kind: input, shape index: {}]   ;;  %s1634_s2 = inlined_call_operand.vmem [shape: f32[1,128], index: 2, kind: input, shape index: {}]   ;;  %s1635_s3 = inlined_call_operand.vmem [shape: bf16[32,128], index: 3, kind: output, shape index: {}]  }
   0x1   :  { %v1235_v0 = vld [vmem:[%s1632_s1 + $0x78] sm:$0xff]   ;;  %v1239_v4 = vld [vmem:[%s1632_s1 + $0x70] sm:$0xff]   ;;  %v1243_v8 = vld [vmem:[%s1632_s1 + $0x68] sm:$0xff]  }
   0x2   :  { %v1236_v1 = vld [vmem:[%s1632_s1 + $0x38] sm:$0xff]   ;;  %1093 = vmatprep.subr.bf16.mxu0 %v1235_v0  ;;  %v1240_v5 = vld [vmem:[%s1632_s1 + $0x30] sm:$0xff]   ;;  %v1244_v9 = vld [vmem:[%s1632_s1 + $0x28] sm:$0xff]  }
   0x3   :  { %v1237_v2 = vld [vmem:[%s1632_s1 + $0xf8] sm:$0xff]   ;;  %1094 = vmatpush3.bf16.msra.mxu0 %v1236_v1  ;;  %v1241_v6 = vld [vmem:[%s1632_s1 + $0xf0] sm:$0xff]   ;;  %v1245_v10 = vld [vmem:[%s1632_s1 + $0xe8] sm:$0xff]  }
   0x4   :  { %v1238_v3 = vld [vmem:[%s1632_s1 + $0xb8] sm:$0xff]   ;;  %1121 = vmatprep.subr.bf16.mxu1 %v1237_v2  ;;  %1095 = vmatprep.subr.bf16.mxu0 %v1239_v4  ;;  %v1242_v7 = vld [vmem:[%s1632_s1 + $0xb0] sm:$0xff]   ;;  %v1246_v11 = vld [vmem:[%s1632_s1 + $0xa8] sm:$0xff]  }
   0x5   :  { %1122 = vmatpush3.bf16.msra.mxu1 %v1238_v3  ;;  %v1247_v12 = vld [vmem:[%s1632_s1 + $0x60] sm:$0xff]   ;;  %v1251_v16 = vld [vmem:[%s1632_s1 + $0x58] sm:$0xff]   ;;  %v1255_v20 = vld [vmem:[%s1632_s1 + $0x50] sm:$0xff]  }
   0x6   :  { %1123 = vmatprep.subr.bf16.mxu1 %v1241_v6  ;;  %v1248_v13 = vld [vmem:[%s1632_s1 + $0x20] sm:$0xff]   ;;  %v1252_v17 = vld [vmem:[%s1632_s1 + $0x18] sm:$0xff]   ;;  %v1256_v21 = vld [vmem:[%s1632_s1 + $0x10] sm:$0xff]  }
   0x7   :  { %1096 = vmatpush3.bf16.msra.mxu0 %v1240_v5  ;;  %v1249_v14 = vld [vmem:[%s1632_s1 + $0xe0] sm:$0xff]   ;;  %v1253_v18 = vld [vmem:[%s1632_s1 + $0xd8] sm:$0xff]   ;;  %v1257_v22 = vld [vmem:[%s1632_s1 + $0xd0] sm:$0xff]  }
   0x8   :  { %1097 = vmatprep.subr.bf16.mxu0 %v1243_v8  ;;  %v1250_v15 = vld [vmem:[%s1632_s1 + $0xa0] sm:$0xff]   ;;  %v1254_v19 = vld [vmem:[%s1632_s1 + $0x98] sm:$0xff]   ;;  %v1258_v23 = vld [vmem:[%s1632_s1 + $0x90] sm:$0xff]  }
   0x9   :  { %1124 = vmatpush3.bf16.msra.mxu1 %v1242_v7  ;;  %v1259_v24 = vld [vmem:[%s1632_s1 + $0x48] sm:$0xff]   ;;  %v1263_v28 = vld [vmem:[%s1632_s1 + $0x40] sm:$0xff]   ;;  %v1270_v34 = vld [vmem:[%s1632_s1 + $0x178] sm:$0xff]  }
   0xa   :  { %1125 = vmatprep.subr.bf16.mxu1 %v1245_v10  ;;  %v1260_v25 = vld [vmem:[%s1632_s1 + $0x8] sm:$0xff]   ;;  %v1264_v29 = vld [vmem:[%s1632_s1] sm:$0xff]   ;;  %v1274_v37 = vld [vmem:[%s1632_s1 + $0x138] sm:$0xff]  }
   0xb   :  { %1098 = vmatpush3.bf16.msra.mxu0 %v1244_v9  ;;  %v1261_v26 = vld [vmem:[%s1632_s1 + $0xc8] sm:$0xff]   ;;  %v1265_v30 = vld [vmem:[%s1632_s1 + $0xc0] sm:$0xff]   ;;  %v1275_v38 = vld [vmem:[%s1632_s1 + $0x1f8] sm:$0xff]  }
   0xc   :  { %1099 = vmatprep.subr.bf16.mxu0 %v1247_v12  ;;  %v1262_v27 = vld [vmem:[%s1632_s1 + $0x88] sm:$0xff]   ;;  %v1266_v31 = vld [vmem:[%s1633_s0] ss:$36 sps:$4 sm:$0xff]   ;;  %v1276_v39 = vld [vmem:[%s1632_s1 + $0x1b8] sm:$0xff]  }
   0xd   :  { %1126 = vmatpush3.bf16.msra.mxu1 %v1246_v11  ;;  %v1268_v32 = vld [vmem:[%s1633_s0 + $0x4] ss:$36 sps:$4 sm:$0xff]   ;;  %v1273_v36 = vld [vmem:[%s1633_s0 + $0xc] ss:$36 sps:$4 sm:$0xff]   ;;  %v1289_v52 = vld [vmem:[%s1632_s1 + $0x158] sm:$0xff]  }
   0xe   :  { %1127 = vmatprep.subr.bf16.mxu1 %v1249_v14  ;;  %v1269_v33 = vld [vmem:[%s1632_s1 + $0x80] sm:$0xff]   ;;  %742 = vmatprep.mubr.bf16.mxu0 %v1268_v32  ;;  %v1271_v35 = vld [vmem:[%s1633_s0 + $0x8] ss:$36 sps:$4 sm:$0xff]   ;;  %v1277_v40 = vld [vmem:[%s1632_s1 + $0x170] sm:$0xff]  }
   0xf   :  { %1100 = vmatpush3.bf16.msra.mxu0 %v1248_v13  ;;  %791 = vmatprep.mubr.bf16.mxu1 %v1273_v36  ;;  %v1278_v41 = vld [vmem:[%s1632_s1 + $0x130] sm:$0xff]   ;;  %v1281_v44 = vld [vmem:[%s1632_s1 + $0x168] sm:$0xff]   ;;  %v1285_v48 = vld [vmem:[%s1632_s1 + $0x160] sm:$0xff]  }
  0x10   :  { %1101 = vmatprep.subr.bf16.mxu0 %v1251_v16  ;;  %v1279_v42 = vld [vmem:[%s1632_s1 + $0x1f0] sm:$0xff]   ;;  %v1282_v45 = vld [vmem:[%s1632_s1 + $0x128] sm:$0xff]   ;;  %v1286_v49 = vld [vmem:[%s1632_s1 + $0x120] sm:$0xff]  }
  0x11   :  { %1128 = vmatpush3.bf16.msra.mxu1 %v1250_v15  ;;  %v1280_v43 = vld [vmem:[%s1632_s1 + $0x1b0] sm:$0xff]   ;;  %v1283_v46 = vld [vmem:[%s1632_s1 + $0x1e8] sm:$0xff]   ;;  %v1287_v50 = vld [vmem:[%s1632_s1 + $0x1e0] sm:$0xff]  }
  0x12   :  { %1129 = vmatprep.subr.bf16.mxu1 %v1253_v18  ;;  %v1284_v47 = vld [vmem:[%s1632_s1 + $0x1a8] sm:$0xff]   ;;  %v1288_v51 = vld [vmem:[%s1632_s1 + $0x1a0] sm:$0xff]   ;;  %v1290_v53 = vld [vmem:[%s1632_s1 + $0x118] sm:$0xff]  }
  0x13   :  { %1102 = vmatpush3.bf16.msra.mxu0 %v1252_v17  ;;  %v1291_v54 = vld [vmem:[%s1633_s0 + $0x4c] ss:$36 sps:$4 sm:$0xff]   ;;  %v1293_v55 = vld [vmem:[%s1632_s1 + $0x1d8] sm:$0xff]   ;;  %v1307_v4 = vld [vmem:[%s1632_s1 + $0x140] sm:$0xff]  }
  0x14   :  { %1103 = vmatprep.subr.bf16.mxu0 %v1255_v20  ;;  %v1294_v56 = vld [vmem:[%s1633_s0 + $0x48] ss:$36 sps:$4 sm:$0xff]   ;;  %v1295_v57 = vld [vmem:[%s1632_s1 + $0x198] sm:$0xff]   ;;  %v1298_v59 = vld [vmem:[%s1632_s1 + $0x150] sm:$0xff]  }
  0x15   :  { %1130 = vmatpush3.bf16.msra.mxu1 %v1254_v19  ;;  %v1296_v58 = vld [vmem:[%s1633_s0 + $0x54] ss:$36 sps:$4 sm:$0xff]   ;;  %v1303_v0 = vld [vmem:[%s1632_s1 + $0x148] sm:$0xff]   ;;  %v1308_v5 = vld [vmem:[%s1632_s1 + $0x100] sm:$0xff]  }
  0x16   :  { %1131 = vmatprep.subr.bf16.mxu1 %v1257_v22  ;;  %v1299_v60 = vld [vmem:[%s1633_s0 + $0x50] ss:$36 sps:$4 sm:$0xff]   ;;  %v1304_v1 = vld [vmem:[%s1632_s1 + $0x108] sm:$0xff]   ;;  %v1309_v6 = vld [vmem:[%s1632_s1 + $0x1c0] sm:$0xff]  }
  0x17   :  { %1104 = vmatpush3.bf16.msra.mxu0 %v1256_v21  ;;  %v1300_v61 = vld [vmem:[%s1632_s1 + $0x110] sm:$0xff]   ;;  %v1305_v2 = vld [vmem:[%s1632_s1 + $0x1c8] sm:$0xff]   ;;  %v1313_v9 = vld [vmem:[%s1632_s1 + $0x180] sm:$0xff]  }
  0x18   :  { %1105 = vmatprep.subr.bf16.mxu0 %v1259_v24  ;;  %v1301_v62 = vld [vmem:[%s1632_s1 + $0x1d0] sm:$0xff]   ;;  %v1306_v3 = vld [vmem:[%s1632_s1 + $0x188] sm:$0xff]   ;;  %v1314_v10 = vld [vmem:[%s1632_s1 + $0x238] sm:$0xff]  }
  0x19   :  { %1132 = vmatpush3.bf16.msra.mxu1 %v1258_v23  ;;  %v1302_v63 = vld [vmem:[%s1632_s1 + $0x190] sm:$0xff]   ;;  %v1315_v11 = vld [vmem:[%s1633_s0 + $0x18] ss:$36 sps:$4 sm:$0xff]   ;;  %v1322_v16 = vld [vmem:[%s1632_s1 + $0x228] sm:$0xff]  }
  0x1a   :  { %1133 = vmatprep.subr.bf16.mxu1 %v1261_v26  ;;  %v1310_v7 = vld [vmem:[%s1633_s0 + $0x10] ss:$36 sps:$4 sm:$0xff]   ;;  %v1317_v12 = vld [vmem:[%s1633_s0 + $0x1c] ss:$36 sps:$4 sm:$0xff]   ;;  %v1323_v17 = vld [vmem:[%s1633_s0 + $0x64] ss:$36 sps:$4 sm:$0xff]  }
  0x1b   :  { %1106 = vmatpush3.bf16.msra.mxu0 %v1260_v25  ;;  %v1312_v8 = vld [vmem:[%s1633_s0 + $0x14] ss:$36 sps:$4 sm:$0xff]   ;;  %v1319_v14 = vld [vmem:[%s1633_s0 + $0x5c] ss:$36 sps:$4 sm:$0xff]   ;;  %v1329_v23 = vld [vmem:[%s1632_s1 + $0x208] sm:$0xff]  }
  0x1c   :  { %1107 = vmatprep.subr.bf16.mxu0 %v1263_v28  ;;  %v1318_v13 = vld [vmem:[%s1632_s1 + $0x230] sm:$0xff]   ;;  %v1321_v15 = vld [vmem:[%s1633_s0 + $0x58] ss:$36 sps:$4 sm:$0xff]   ;;  %v1325_v18 = vld [vmem:[%s1633_s0 + $0x60] ss:$36 sps:$4 sm:$0xff]  }
  0x1d   :  { %1134 = vmatpush3.bf16.msra.mxu1 %v1262_v27  ;;  %v1326_v19 = vld [vmem:[%s1632_s1 + $0x220] sm:$0xff]   ;;  %v1327_v20 = vld [vmem:[%s1632_s1 + $0x218] sm:$0xff]   ;;  %v1328_v22 = vld [vmem:[%s1632_s1 + $0x210] sm:$0xff]  }
  0x1e   :  { %1135 = vmatprep.subr.bf16.mxu1 %v1265_v30  ;;  %v1331_v21 = vld [vmem:[%s1633_s0 + $0x20] ss:$36 sps:$4 sm:$0xff]   ;;  %v1332_v25 = vld [vmem:[%s1633_s0 + $0x68] ss:$36 sps:$4 sm:$0xff]  }
  0x1f   :  { %1108 = vmatpush3.bf16.msra.mxu0 %v1264_v29  ;;  %v1330_v24 = vld [vmem:[%s1632_s1 + $0x200] sm:$0xff]  }
  0x20   :  { %1149 = vmatprep.subr.bf16.mxu0 %v1270_v34 }
  0x21   :  { %1136 = vmatpush3.bf16.msra.mxu1 %v1269_v33 }
  0x22   :  { %743 = vmatmul.mubr.bf16.vlgmr.msra.gmra.mxu0 %v1266_v31  ;;  %1177 = vmatprep.subr.bf16.mxu1 %v1275_v38 }
  0x23   :  { %1150 = vmatpush3.bf16.msra.mxu0 %v1274_v37  ;;  %750 = vmatprep.mubr.bf16.mxu0 %v1291_v54 }
  0x24   :  { %792 = vmatmul.mubr.bf16.vlgmr.msra.gmra.mxu1 %v1271_v35  ;;  %1151 = vmatprep.subr.bf16.mxu0 %v1277_v40 }
  0x25   :  { %1178 = vmatpush3.bf16.msra.mxu1 %v1276_v39  ;;  %799 = vmatprep.mubr.bf16.mxu1 %v1296_v58 }
  0x26   :  { %1179 = vmatprep.subr.bf16.mxu1 %v1279_v42 }
  0x27   :  { %1152 = vmatpush3.bf16.msra.mxu0 %v1278_v41 }
  0x28   :  { %1153 = vmatprep.subr.bf16.mxu0 %v1281_v44 }
  0x29   :  { %1180 = vmatpush3.bf16.msra.mxu1 %v1280_v43 }
  0x2a   :  { %1181 = vmatprep.subr.bf16.mxu1 %v1283_v46  ;;  %751 = vmatmul.mubr.bf16.gmra.mxu0 %v1294_v56 }
  0x2b   :  { %1154 = vmatpush3.bf16.msra.mxu0 %v1282_v45  ;;  %840 = vmatprep.mubr.bf16.mxu0 %v1312_v8 }
  0x2c   :  { %1155 = vmatprep.subr.bf16.mxu0 %v1285_v48  ;;  %800 = vmatmul.mubr.bf16.gmra.mxu1 %v1299_v60 }
  0x2d   :  { %1182 = vmatpush3.bf16.msra.mxu1 %v1284_v47  ;;  %889 = vmatprep.mubr.bf16.mxu1 %v1317_v12 }
  0x2e   :  { %1183 = vmatprep.subr.bf16.mxu1 %v1287_v50 }
  0x2f   :  { %1156 = vmatpush3.bf16.msra.mxu0 %v1286_v49 }
  0x30   :  { %1157 = vmatprep.subr.bf16.mxu0 %v1289_v52 }
  0x31   :  { %1184 = vmatpush3.bf16.msra.mxu1 %v1288_v51 }
  0x32   :  { %1185 = vmatprep.subr.bf16.mxu1 %v1293_v55 }
  0x33   :  { %1158 = vmatpush3.bf16.msra.mxu0 %v1290_v53 }
  0x34   :  { %1159 = vmatprep.subr.bf16.mxu0 %v1298_v59 }
  0x35   :  { %1186 = vmatpush3.bf16.msra.mxu1 %v1295_v57  ;;  %v983_v57 = vld [vmem:[%s1634_s2] ss:$0 sm:$0xff] }
  0x36   :  { %1187 = vmatprep.subr.bf16.mxu1 %v1301_v62 }
  0x37   :  { %1160 = vmatpush3.bf16.msra.mxu0 %v1300_v61 }
  0x38   :  { %1161 = vmatprep.subr.bf16.mxu0 %v1303_v0 }
  0x39   :  { %1188 = vmatpush3.bf16.msra.mxu1 %v1302_v63 }
  0x3a   :  { %1189 = vmatprep.subr.bf16.mxu1 %v1305_v2 }
  0x3b   :  { %1162 = vmatpush3.bf16.msra.mxu0 %v1304_v1 }
  0x3c   :  { %1163 = vmatprep.subr.bf16.mxu0 %v1307_v4 }
  0x3d   :  { %1190 = vmatpush3.bf16.msra.mxu1 %v1306_v3 }
  0x3e   :  { %1191 = vmatprep.subr.bf16.mxu1 %v1309_v6 }
  0x3f   :  { %1164 = vmatpush3.bf16.msra.mxu0 %v1308_v5 }
  0x40   :  { %1215 = vmatprep.subr.bf16.mxu0 %v1314_v10 }
  0x41   :  { %1192 = vmatpush3.bf16.msra.mxu1 %v1313_v9 }
  0x42   :  { %841 = vmatmul.mubr.bf16.vlgmr.msra.gmra.mxu0 %v1310_v7 }
  0x43   :  { %1216 = vmatpush3.bf16.msra.mxu0 %v1314_v10  ;;  %848 = vmatprep.mubr.bf16.mxu0 %v1319_v14 }
  0x44   :  { %890 = vmatmul.mubr.bf16.vlgmr.msra.gmra.mxu1 %v1315_v11  ;;  %1217 = vmatprep.subr.bf16.mxu0 %v1318_v13 }
  0x45   :  { %897 = vmatprep.mubr.bf16.mxu1 %v1323_v17 }
  0x47   :  { %1218 = vmatpush3.bf16.msra.mxu0 %v1318_v13 }
  0x48   :  { %1219 = vmatprep.subr.bf16.mxu0 %v1322_v16 }
  0x4a   :  { %849 = vmatmul.mubr.bf16.gmra.mxu0 %v1321_v15 }
  0x4b   :  { %1220 = vmatpush3.bf16.msra.mxu0 %v1322_v16  ;;  %1231 = vmatprep.mubr.bf16.mxu0 %v1331_v21 }
  0x4c   :  { %898 = vmatmul.mubr.bf16.gmra.mxu1 %v1325_v18  ;;  %1221 = vmatprep.subr.bf16.mxu0 %v1326_v19 }
  0x4f   :  { %1222 = vmatpush3.bf16.msra.mxu0 %v1326_v19 }
  0x50   :  { %1223 = vmatprep.subr.bf16.mxu0 %v1327_v20 }
  0x53   :  { %1224 = vmatpush3.bf16.msra.mxu0 %v1327_v20 }
  0x54   :  { %1225 = vmatprep.subr.bf16.mxu0 %v1328_v22 }
  0x57   :  { %1226 = vmatpush3.bf16.msra.mxu0 %v1328_v22 }
  0x58   :  { %1227 = vmatprep.subr.bf16.mxu0 %v1329_v23 }
  0x5b   :  { %1228 = vmatpush3.bf16.msra.mxu0 %v1329_v23 }
  0x5c   :  { %1229 = vmatprep.subr.bf16.mxu0 %v1330_v24 }
  0x5f   :  { %1230 = vmatpush3.bf16.msra.mxu0 %v1330_v24 }
  0x62   :  { %1232 = vmatmul.mubr.bf16.vlgmr.msra.gmra.mxu0 %v1332_v25 }
  0xe2   :  { %v1109_v26 = vpop.f32.mrf.mxu0 }
  0xe4   :  { %v1137_v27 = vpop.f32.mrf.mxu1  ;;  %v1110_v28 = vpop.f32.mrf.mxu0 }
  0xe5   :  { %v1111_v54 = vadd.f32 %v1110_v28, %v1109_v26 }
  0xe6   :  { %v1138_v29 = vpop.f32.mrf.mxu1  ;;  %v1112_v30 = vpop.f32.mrf.mxu0 }
  0xe7   :  { %v745_v62 = vadd.f32 %v1111_v54, %v983_v57  ;;  %v1139_v63 = vadd.f32 %v1138_v29, %v1137_v27 }
  0xe8   :  { %v1140_v31 = vpop.f32.mrf.mxu1  ;;  %v1113_v32 = vpop.f32.mrf.mxu0 }
  0xe9   :  { %v1114_v59 = vadd.f32 %v1113_v32, %v1112_v30  ;;  %v794_v10 = vadd.f32 %v1139_v63, %v745_v62 }
  0xea   :  { %v1115_v33 = vpop.f32.mrf.mxu0  ;;  %v1141_v34 = vpop.f32.mrf.mxu1 }
  0xeb   :  { %v748_v5 = vadd.f32 %v1114_v59, %v983_v57  ;;  %v1142_v6 = vadd.f32 %v1141_v34, %v1140_v31 }
  0xec   :  { %v1143_v35 = vpop.f32.mrf.mxu1  ;;  %v1116_v36 = vpop.f32.mrf.mxu0 }
  0xed   :  { %v1117_v53 = vadd.f32 %v1116_v36, %v1115_v33  ;;  %v797_v16 = vadd.f32 %v1142_v6, %v748_v5 }
  0xee   :  { %v1144_v37 = vpop.f32.mrf.mxu1  ;;  %v1118_v38 = vpop.f32.mrf.mxu0 }
  0xef   :  { %v753_v60 = vadd.f32 %v1117_v53, %v983_v57  ;;  %v1145_v61 = vadd.f32 %v1144_v37, %v1143_v35 }
  0xf0   :  { %v1146_v39 = vpop.f32.mrf.mxu1  ;;  %v1119_v40 = vpop.f32.mrf.mxu0 }
  0xf1   :  { %v1120_v58 = vadd.f32 %v1119_v40, %v1118_v38  ;;  %v802_v7 = vadd.f32 %v1145_v61, %v753_v60 }
  0xf2   :  { %v1147_v42 = vpop.f32.mrf.mxu1 }
  0xf3   :  { %v756_v2 = vadd.f32 %v1120_v58, %v983_v57  ;;  %v1148_v3 = vadd.f32 %v1147_v42, %v1146_v39 }
  0xf5   :  { %v805_v12 = vadd.f32 %v1148_v3, %v756_v2 }
 0x102   :  { %v1165_v41 = vpop.f32.mrf.mxu0 }
 0x104   :  { %v1166_v43 = vpop.f32.mrf.mxu0  ;;  %v1193_v44 = vpop.f32.mrf.mxu1 }
 0x105   :  { %v1167_v8 = vadd.f32 %v1166_v43, %v1165_v41 }
 0x106   :  { %v1168_v45 = vpop.f32.mrf.mxu0  ;;  %v1194_v46 = vpop.f32.mrf.mxu1 }
 0x107   :  { %v843_v17 = vadd.f32 %v1167_v8, %v794_v10  ;;  %v1195_v18 = vadd.f32 %v1194_v46, %v1193_v44 }
 0x108   :  { %v1169_v47 = vpop.f32.mrf.mxu0  ;;  %v1196_v48 = vpop.f32.mrf.mxu1 }
 0x109   :  { %v1170_v13 = vadd.f32 %v1169_v47, %v1168_v45  ;;  %v892_v27 = vadd.f32 %v1195_v18, %v843_v17 }
 0x10a   :  { %v1171_v49 = vpop.f32.mrf.mxu0  ;;  %v1197_v50 = vpop.f32.mrf.mxu1 }
 0x10b   :  { %v846_v22 = vadd.f32 %v1170_v13, %v797_v16  ;;  %v1198_v23 = vadd.f32 %v1197_v50, %v1196_v48 }
 0x10c   :  { %v1172_v51 = vpop.f32.mrf.mxu0  ;;  %v1199_v52 = vpop.f32.mrf.mxu1 }
 0x10d   :  { %v1173_v4 = vadd.f32 %v1172_v51, %v1171_v49  ;;  %v895_v32 = vadd.f32 %v1198_v23, %v846_v22 }
 0x10e   :  { %v1174_v55 = vpop.f32.mrf.mxu0  ;;  %v1200_v56 = vpop.f32.mrf.mxu1 }
 0x10f   :  { %v851_v14 = vadd.f32 %v1173_v4, %v802_v7  ;;  %v1201_v15 = vadd.f32 %v1200_v56, %v1199_v52 }
 0x110   :  { %v1175_v0 = vpop.f32.mrf.mxu0  ;;  %v1202_v1 = vpop.f32.mrf.mxu1 }
 0x111   :  { %v1176_v9 = vadd.f32 %v1175_v0, %v1174_v55  ;;  %v900_v24 = vadd.f32 %v1201_v15, %v851_v14 }
 0x112   :  { %v1203_v11 = vpop.f32.mrf.mxu1 }
 0x113   :  { %v854_v19 = vadd.f32 %v1176_v9, %v805_v12  ;;  %v1204_v20 = vadd.f32 %v1203_v11, %v1202_v1 }
 0x115   :  { %v903_v28 = vadd.f32 %v1204_v20, %v854_v19 }
 0x122   :  { %v1233_v21 = vpop.f32.mrf.mxu0 }
 0x123   :  { %v949_v26 = vadd.f32 %v1233_v21, %v900_v24 }
 0x124   :  { %v940_v25 = vpop.f32.mrf.mxu0 }
 0x125   :  { %v941_v30 = vadd.f32 %v940_v25, %v892_v27  ;;  %v957_v34 = vmax.f32 %v949_v26, 0.0 }
 0x126   :  { %v1234_v29 = vpop.f32.mrf.mxu0 }
 0x127   :  { %v952_v31 = vadd.f32 %v1234_v29, %v903_v28  ;;  %v955_v37 = vmax.f32 %v941_v30, 0.0 }
 0x128   :  { %v943_v33 = vpop.f32.mrf.mxu0 }
 0x129   :  { %v958_v35 = vmax.f32 %v952_v31, 0.0  ;;  %v944_v36 = vadd.f32 %v943_v33, %v895_v32 }
 0x12b   :  { %v1090_v38 = vpack.c.bf16 %v958_v35, %v957_v34  ;;  %v956_v39 = vmax.f32 %v944_v36, 0.0 }
 0x12d   :  { %1092 = vst [vmem:[%s1635_s3 + $0x8] sm:$0xff] %v1090_v38   ;;  %v1085_v40 = vpack.c.bf16 %v956_v39, %v955_v37 }
 0x12f   :  { %1086 = vst [vmem:[%s1635_s3] sm:$0xff] %v1085_v40  }

// kernel: timm_cnn_encoder_forward.52
= control target key start
LH: loop header
LB: loop body
LE: loop exit
PB: predicated region body
PF: predicated region fallthrough
CT: control target
= control target key end

     0   :  { %v571_v1 = vmov 0   ;;  %v56_v35 = vlaneseq  ;;  %s786_s1 = inlined_call_operand.vmem [shape: bf16[128,512], index: 1, kind: input, shape index: {}]   ;;  %s787_s0 = inlined_call_operand.vmem [shape: bf16[32,128], index: 0, kind: input, shape index: {}]   ;;  %s788_s2 = inlined_call_operand.vmem [shape: f32[1,512], index: 2, kind: input, shape index: {}]   ;;  %s789_s3 = inlined_call_operand.vmem [shape: bf16[32,512], index: 3, kind: input, shape index: {}]   ;;  %s790_s4 = inlined_call_operand.vmem [shape: bf16[32,512], index: 4, kind: output, shape index: {}]  }
   0x1   :  { %v521_v0 = vld [vmem:[%s786_s1 + $0xe4] ss:$16 sps:$4 sm:$0xff]   ;;  %280 = vmatprep.mubr.bf16.mxu0 %v571_v1  ;;  %333 = vmatprep.mubr.bf16.mxu1 %v571_v1  ;;  %v523_v2 = vld [vmem:[%s786_s1 + $0xec] ss:$16 sps:$4 sm:$0xff]   ;;  %v525_v3 = vld [vmem:[%s786_s1 + $0xe0] ss:$16 sps:$4 sm:$0xff]  }
   0x2   :  { %248 = vmatprep.subr.bf16.mxu0 %v521_v0  ;;  %v526_v4 = vld [vmem:[%s786_s1 + $0xe8] ss:$16 sps:$4 sm:$0xff]   ;;  %301 = vmatprep.subr.bf16.mxu1 %v523_v2  ;;  %v527_v5 = vld [vmem:[%s786_s1 + $0xc4] ss:$16 sps:$4 sm:$0xff]   ;;  %v529_v6 = vld [vmem:[%s786_s1 + $0xcc] ss:$16 sps:$4 sm:$0xff]  }
   0x3   :  { %249 = vmatpush1.bf16.msra.mxu0 %v525_v3  ;;  %302 = vmatpush1.bf16.msra.mxu1 %v526_v4  ;;  %v531_v7 = vld [vmem:[%s786_s1 + $0xc0] ss:$16 sps:$4 sm:$0xff]   ;;  %v532_v8 = vld [vmem:[%s786_s1 + $0xc8] ss:$16 sps:$4 sm:$0xff]   ;;  %v533_v9 = vld [vmem:[%s786_s1 + $0xa4] ss:$16 sps:$4 sm:$0xff]  }
   0x4   :  { %250 = vmatprep.subr.bf16.mxu0 %v527_v5  ;;  %303 = vmatprep.subr.bf16.mxu1 %v529_v6  ;;  %v535_v10 = vld [vmem:[%s786_s1 + $0xac] ss:$16 sps:$4 sm:$0xff]   ;;  %v537_v11 = vld [vmem:[%s786_s1 + $0xa0] ss:$16 sps:$4 sm:$0xff]   ;;  %v538_v12 = vld [vmem:[%s786_s1 + $0xa8] ss:$16 sps:$4 sm:$0xff]  }
   0x5   :  { %v539_v13 = vld [vmem:[%s786_s1 + $0x84] ss:$16 sps:$4 sm:$0xff]   ;;  %v541_v14 = vld [vmem:[%s786_s1 + $0x8c] ss:$16 sps:$4 sm:$0xff]   ;;  %v543_v15 = vld [vmem:[%s786_s1 + $0x80] ss:$16 sps:$4 sm:$0xff]  }
   0x6   :  { %v544_v16 = vld [vmem:[%s786_s1 + $0x88] ss:$16 sps:$4 sm:$0xff]   ;;  %v545_v17 = vld [vmem:[%s786_s1 + $0x64] ss:$16 sps:$4 sm:$0xff]   ;;  %v547_v18 = vld [vmem:[%s786_s1 + $0x6c] ss:$16 sps:$4 sm:$0xff]  }
   0x7   :  { %251 = vmatpush1.bf16.msra.mxu0 %v531_v7  ;;  %304 = vmatpush1.bf16.msra.mxu1 %v532_v8  ;;  %v549_v19 = vld [vmem:[%s786_s1 + $0x60] ss:$16 sps:$4 sm:$0xff]   ;;  %v550_v20 = vld [vmem:[%s786_s1 + $0x68] ss:$16 sps:$4 sm:$0xff]   ;;  %v551_v21 = vld [vmem:[%s786_s1 + $0x44] ss:$16 sps:$4 sm:$0xff]  }
   0x8   :  { %252 = vmatprep.subr.bf16.mxu0 %v533_v9  ;;  %305 = vmatprep.subr.bf16.mxu1 %v535_v10  ;;  %v553_v22 = vld [vmem:[%s786_s1 + $0x4c] ss:$16 sps:$4 sm:$0xff]   ;;  %v555_v23 = vld [vmem:[%s786_s1 + $0x40] ss:$16 sps:$4 sm:$0xff]   ;;  %v556_v24 = vld [vmem:[%s786_s1 + $0x48] ss:$16 sps:$4 sm:$0xff]  }
   0x9   :  { %v557_v25 = vld [vmem:[%s786_s1 + $0x24] ss:$16 sps:$4 sm:$0xff]   ;;  %v559_v26 = vld [vmem:[%s786_s1 + $0x2c] ss:$16 sps:$4 sm:$0xff]   ;;  %v561_v27 = vld [vmem:[%s786_s1 + $0x20] ss:$16 sps:$4 sm:$0xff]  }
   0xa   :  { %v562_v28 = vld [vmem:[%s786_s1 + $0x28] ss:$16 sps:$4 sm:$0xff]   ;;  %v563_v29 = vld [vmem:[%s786_s1 + $0x4] ss:$16 sps:$4 sm:$0xff]   ;;  %v565_v30 = vld [vmem:[%s786_s1 + $0xc] ss:$16 sps:$4 sm:$0xff]  }
   0xb   :  { %253 = vmatpush1.bf16.msra.mxu0 %v537_v11  ;;  %306 = vmatpush1.bf16.msra.mxu1 %v538_v12  ;;  %v567_v31 = vld [vmem:[%s786_s1] ss:$16 sps:$4 sm:$0xff]   ;;  %v568_v32 = vld [vmem:[%s786_s1 + $0x8] ss:$16 sps:$4 sm:$0xff]   ;;  %v57_v36 = vshrl.u32 %v56_v35, 7 }
   0xc   :  { %254 = vmatprep.subr.bf16.mxu0 %v539_v13  ;;  %307 = vmatprep.subr.bf16.mxu1 %v541_v14  ;;  %v569_v33 = vld [vmem:[%s787_s0] sm:$0xff]   ;;  %v570_v34 = vld [vmem:[%s787_s0 + $0x8] sm:$0xff]   ;;  %v356_v50 = vld [vmem:[%s789_s3 + $0x10] sm:$0xff] }
   0xd   :  { %v58_v37 = vsub.s32 0, %v57_v36  ;;  %v66_v38 = vsub.s32 2, %v57_v36  ;;  %v54_v39 = vld [vmem:[%s788_s2] sm:$0xf]  ;;  %v62_v40 = vsub.s32 1, %v57_v36  ;;  %v70_v41 = vsub.s32 3, %v57_v36 }
   0xe   :  { %v354_v42 = vld [vmem:[%s789_s3] sm:$0xff]  ;;  %v355_v43 = vld [vmem:[%s789_s3 + $0x8] sm:$0xff]  ;;  %v357_v51 = vld [vmem:[%s789_s3 + $0x18] sm:$0xff]  ;;  %v366_v62 = vunpack.c.l.bf16 %v356_v50  ;;  %v367_v6 = vunpack.c.h.bf16 %v356_v50 }
   0xf   :  { %255 = vmatpush1.bf16.msra.mxu0 %v543_v15  ;;  %308 = vmatpush1.bf16.msra.mxu1 %v544_v16  ;;  %v712_v44 = vrot.slane %v54_v39, %v58_v37  ;;  %v714_v45 = vrot.slane %v54_v39, %v66_v38  ;;  %v362_v46 = vunpack.c.l.bf16 %v354_v42  ;;  %v364_v47 = vunpack.c.l.bf16 %v355_v43  ;;  %v731_v58 = vld [vmem:[%s789_s3 + $0x20] sm:$0xff]  ;;  %v736_v59 = vld [vmem:[%s789_s3 + $0x28] sm:$0xff]  ;;  %v360_v14 = vld [vmem:[%s789_s3 + $0x30] sm:$0xff] }
  0x10   :  { %256 = vmatprep.subr.bf16.mxu0 %v545_v17  ;;  %309 = vmatprep.subr.bf16.mxu1 %v547_v18  ;;  %v716_v48 = vrot.slane %v54_v39, %v62_v40  ;;  %v718_v49 = vrot.slane %v54_v39, %v70_v41  ;;  %v363_v56 = vunpack.c.h.bf16 %v354_v42  ;;  %v365_v57 = vunpack.c.h.bf16 %v355_v43  ;;  %v361_v15 = vld [vmem:[%s789_s3 + $0x38] sm:$0xff] }
  0x11   :  { %v368_v63 = vunpack.c.l.bf16 %v357_v51  ;;  %v369_v7 = vunpack.c.h.bf16 %v357_v51  ;;  %v370_v8 = vunpack.c.l.bf16 %v731_v58  ;;  %v372_v9 = vunpack.c.l.bf16 %v736_v59 }
  0x12   :  { %v371_v12 = vunpack.c.h.bf16 %v731_v58  ;;  %v373_v13 = vunpack.c.h.bf16 %v736_v59 }
  0x13   :  { %257 = vmatpush1.bf16.msra.mxu0 %v549_v19  ;;  %310 = vmatpush1.bf16.msra.mxu1 %v550_v20 }
  0x14   :  { %258 = vmatprep.subr.bf16.mxu0 %v551_v21  ;;  %311 = vmatprep.subr.bf16.mxu1 %v553_v22 }
  0x17   :  { %259 = vmatpush1.bf16.msra.mxu0 %v555_v23  ;;  %312 = vmatpush1.bf16.msra.mxu1 %v556_v24 }
  0x18   :  { %260 = vmatprep.subr.bf16.mxu0 %v557_v25  ;;  %313 = vmatprep.subr.bf16.mxu1 %v559_v26 }
  0x1b   :  { %261 = vmatpush1.bf16.msra.mxu0 %v561_v27  ;;  %314 = vmatpush1.bf16.msra.mxu1 %v562_v28 }
  0x1c   :  { %262 = vmatprep.subr.bf16.mxu0 %v563_v29  ;;  %315 = vmatprep.subr.bf16.mxu1 %v565_v30  ;;  %v374_v30 = vunpack.c.l.bf16 %v360_v14 }
  0x1f   :  { %263 = vmatpush1.bf16.msra.mxu0 %v567_v31  ;;  %316 = vmatpush1.bf16.msra.mxu1 %v568_v32  ;;  %v376_v31 = vunpack.c.l.bf16 %v361_v15 }
  0x22   :  { %281 = vmatmul.mubr.bf16.vlgmr.msra.gmra.mxu0 %v569_v33  ;;  %334 = vmatmul.mubr.bf16.vlgmr.msra.gmra.mxu1 %v569_v33 }
  0x23   :  { %290 = vmatprep.mubr.bf16.mxu0 %v571_v1  ;;  %343 = vmatprep.mubr.bf16.mxu1 %v571_v1 }
  0x2a   :  { %291 = vmatmul.mubr.bf16.gmra.mxu0 %v570_v34  ;;  %344 = vmatmul.mubr.bf16.gmra.mxu1 %v570_v34 }
  0xe2   :  { %v282_v52 = vpop.f32.mrf.mxu0  ;;  %v335_v53 = vpop.f32.mrf.mxu1 }
  0xe3   :  { %v283_v54 = vadd.f32 %v282_v52, %v712_v44  ;;  %v336_v55 = vadd.f32 %v335_v53, %v714_v45 }
  0xe4   :  { %v284_v60 = vpop.f32.mrf.mxu0  ;;  %v337_v61 = vpop.f32.mrf.mxu1 }
  0xe5   :  { %v378_v0 = vadd.f32 %v362_v46, %v283_v54  ;;  %v380_v1 = vadd.f32 %v364_v47, %v336_v55  ;;  %v285_v2 = vadd.f32 %v284_v60, %v716_v48  ;;  %v338_v3 = vadd.f32 %v337_v61, %v718_v49 }
  0xe6   :  { %v286_v4 = vpop.f32.mrf.mxu0  ;;  %v339_v5 = vpop.f32.mrf.mxu1  ;;  %v375_v54 = vunpack.c.h.bf16 %v360_v14  ;;  %v377_v55 = vunpack.c.h.bf16 %v361_v15 }
  0xe7   :  { %v379_v10 = vadd.f32 %v363_v56, %v285_v2  ;;  %v381_v11 = vadd.f32 %v365_v57, %v338_v3  ;;  %v394_v16 = vmax.f32 %v378_v0, 0.0  ;;  %v396_v17 = vmax.f32 %v380_v1, 0.0 }
  0xe8   :  { %v287_v18 = vadd.f32 %v286_v4, %v712_v44  ;;  %v340_v19 = vadd.f32 %v339_v5, %v714_v45  ;;  %v288_v20 = vpop.f32.mrf.mxu0  ;;  %v341_v21 = vpop.f32.mrf.mxu1 }
  0xe9   :  { %v395_v22 = vmax.f32 %v379_v10, 0.0  ;;  %v397_v23 = vmax.f32 %v381_v11, 0.0  ;;  %v289_v24 = vadd.f32 %v288_v20, %v716_v48  ;;  %v342_v25 = vadd.f32 %v341_v21, %v718_v49 }
  0xea   :  { %v382_v26 = vadd.f32 %v366_v62, %v287_v18  ;;  %v384_v27 = vadd.f32 %v368_v63, %v340_v19  ;;  %v292_v28 = vpop.f32.mrf.mxu0  ;;  %v345_v29 = vpop.f32.mrf.mxu1 }
  0xeb   :  { %v512_v32 = vpack.c.bf16 %v395_v22, %v394_v16  ;;  %v513_v33 = vpack.c.bf16 %v397_v23, %v396_v17  ;;  %v383_v34 = vadd.f32 %v367_v6, %v289_v24  ;;  %v385_v35 = vadd.f32 %v369_v7, %v342_v25 }
  0xec   :  { %v398_v36 = vmax.f32 %v382_v26, 0.0  ;;  %v400_v37 = vmax.f32 %v384_v27, 0.0  ;;  %v293_v38 = vadd.f32 %v292_v28, %v712_v44  ;;  %v346_v39 = vadd.f32 %v345_v29, %v714_v45  ;;  %v294_v40 = vpop.f32.mrf.mxu0  ;;  %v347_v41 = vpop.f32.mrf.mxu1 }
  0xed   :  { %458 = vst [vmem:[%s790_s4] sm:$0xff] %v512_v32  ;;  %459 = vst [vmem:[%s790_s4 + $0x8] sm:$0xff] %v513_v33  ;;  %v399_v42 = vmax.f32 %v383_v34, 0.0  ;;  %v401_v43 = vmax.f32 %v385_v35, 0.0  ;;  %v295_v46 = vadd.f32 %v294_v40, %v716_v48  ;;  %v348_v47 = vadd.f32 %v347_v41, %v718_v49 }
  0xee   :  { %v386_v50 = vadd.f32 %v370_v8, %v293_v38  ;;  %v388_v51 = vadd.f32 %v372_v9, %v346_v39  ;;  %v296_v52 = vpop.f32.mrf.mxu0  ;;  %v349_v53 = vpop.f32.mrf.mxu1 }
  0xef   :  { %v514_v56 = vpack.c.bf16 %v399_v42, %v398_v36  ;;  %v515_v57 = vpack.c.bf16 %v401_v43, %v400_v37  ;;  %v387_v58 = vadd.f32 %v371_v12, %v295_v46  ;;  %v389_v59 = vadd.f32 %v373_v13, %v348_v47 }
  0xf0   :  { %v402_v60 = vmax.f32 %v386_v50, 0.0  ;;  %v404_v61 = vmax.f32 %v388_v51, 0.0  ;;  %v297_v62 = vadd.f32 %v296_v52, %v712_v44  ;;  %v350_v63 = vadd.f32 %v349_v53, %v714_v45  ;;  %v298_v0 = vpop.f32.mrf.mxu0  ;;  %v351_v1 = vpop.f32.mrf.mxu1 }
  0xf1   :  { %460 = vst [vmem:[%s790_s4 + $0x10] sm:$0xff] %v514_v56  ;;  %461 = vst [vmem:[%s790_s4 + $0x18] sm:$0xff] %v515_v57  ;;  %v403_v2 = vmax.f32 %v387_v58, 0.0  ;;  %v405_v3 = vmax.f32 %v389_v59, 0.0  ;;  %v299_v4 = vadd.f32 %v298_v0, %v716_v48  ;;  %v352_v5 = vadd.f32 %v351_v1, %v718_v49 }
  0xf2   :  { %v390_v6 = vadd.f32 %v374_v30, %v297_v62  ;;  %v392_v44 = vadd.f32 %v376_v31, %v350_v63 }
  0xf3   :  { %v516_v7 = vpack.c.bf16 %v403_v2, %v402_v60  ;;  %v517_v45 = vpack.c.bf16 %v405_v3, %v404_v61  ;;  %v391_v8 = vadd.f32 %v375_v54, %v299_v4  ;;  %v393_v9 = vadd.f32 %v377_v55, %v352_v5 }
  0xf4   :  { %v406_v10 = vmax.f32 %v390_v6, 0.0  ;;  %v408_v11 = vmax.f32 %v392_v44, 0.0 }
  0xf5   :  { %462 = vst [vmem:[%s790_s4 + $0x20] sm:$0xff] %v516_v7  ;;  %463 = vst [vmem:[%s790_s4 + $0x28] sm:$0xff] %v517_v45  ;;  %v407_v12 = vmax.f32 %v391_v8, 0.0  ;;  %v409_v48 = vmax.f32 %v393_v9, 0.0 }
  0xf7   :  { %v518_v13 = vpack.c.bf16 %v407_v12, %v406_v10  ;;  %v519_v49 = vpack.c.bf16 %v409_v48, %v408_v11 }
  0xf9   :  { %464 = vst [vmem:[%s790_s4 + $0x30] sm:$0xff] %v518_v13  ;;  %465 = vst [vmem:[%s790_s4 + $0x38] sm:$0xff] %v519_v49 }

// kernel: timm_cnn_encoder_forward.62
= control target key start
LH: loop header
LB: loop body
LE: loop exit
PB: predicated region body
PF: predicated region fallthrough
CT: control target
= control target key end

     0   :  { %s3022_s12 = smov 0   ;;  %s3024_s13 = smov 0   ;;  %s3758_s0 = inlined_call_operand.vmem [shape: bf16[32,512], index: 0, kind: input, shape index: {}]   ;;  %s3759_s1 = inlined_call_operand.vmem [shape: bf16[512,1280], index: 1, kind: input, shape index: {}]   ;;  %s3760_s2 = inlined_call_operand.vmem [shape: f32[1,1280], index: 2, kind: input, shape index: {}]   ;;  %s3761_s3 = inlined_call_operand.vmem [shape: bf16[32,1280], index: 3, kind: output, shape index: {}]  }
   0x1   :  { %s3026_s14 = smov 0   ;;  %s3028_s15 = smov 0  }
   0x2   :  { %s3030_s16 = smov 0  }
   0x3 LB: > { %s22_s17 = sadd.s32 1, %s2996_s15  ;;  %s2286_s18 = sadd.s32 4294967295, %s3000_s16   ;;  %s3000_s16 = sphi %s3030_s16, %s13_s16   ;;  %s2996_s15 = sphi %s3028_s15, %s3766_s15   ;;  %s2992_s14 = sphi %s3026_s14, %s3765_s14   ;;  %s2988_s13 = sphi %s3024_s13, %s3764_s13   ;;  %s2984_s12 = sphi %s3022_s12, %s3763_s12  }
   0x4   : > { %p23_p0 = scmp.ge.s32.totalorder %s22_s17, 2  ;;  %p65_p1 = scmp.ne.s32.totalorder %s2988_s13, %s2984_s12 }
   0x5   : > { %p66_p2 = scmp.eq.s32.totalorder %s3000_s16, 0  ;;  %p123_p4 = scmp.eq.s32.totalorder %s2286_s18, 1 }
   0x6   : > { %s3768_s17 = smov (%p23_p0, %s22_s17), 0  ;;  %s58_s20 = sadd.s32 1, %s2988_s13 }
   0x7   : > { %p67_p3 = por %p66_p2, %p65_p1  ;;  %s55_s19 = ssub.s32 %s2996_s15, %s3768_s17 }
   0x8   : > { %p56_p5 = scmp.eq.s32.totalorder %s55_s19, 0  ;;  %p3057_p6 = por %p123_p4, %p65_p1 }
   0x9   : > { %p2290_p7 = scmp.ge.s32.totalorder %s3000_s16, 2 }
   0xa   : > { %s3062_s22 = scalar_select %p56_p5, %s2988_s13, %s58_s20  }
   0xb   : > { %155 = sbr.rel (%p2290_p7) target bundleno = 127 (0x7f), region = 20 }
  0x10   : > { %158 = sbr.rel (!%p67_p3) target bundleno = 127 (0x7f), region = 24  ;;  %s160_s23 = sand.u32 (%p67_p3), 1, %s2988_s13  }
  0x11   : > { %s2612_s24 = smul.u32 (%p67_p3), 20, %s2996_s15 }
  0x12   : > { %s2682_s25 = smul.u32 (%p67_p3), 1280, %s160_s23 }
  0x13   : > { %s3070_s28 = scalar_lea.vmem (%p67_p3), %s3759_s1, %s2612_s24 }
  0x14   : > { %v180_v0 = vld [vmem:[%s3070_s28] sm:$0xff] (%p67_p3)  ;;  %v182_v1 = vld [vmem:[%s3070_s28 + $0x8] sm:$0xff] (%p67_p3)  ;;  %s3075_s29 = scalar_lea.vmem (%p67_p3), [#allocation2], %s2682_s25  ;;  %v186_v3 = vld [vmem:[%s3070_s28 + $0x30] sm:$0xff] (%p67_p3) }
  0x15   : > { %v184_v2 = vld [vmem:[%s3070_s28 + $0x28] sm:$0xff]  ;;  %181 = vst [vmem:[%s3075_s29] sm:$0xff] %v180_v0  ;;  %183 = vst [vmem:[%s3075_s29 + $0x8] sm:$0xff] %v182_v1  ;;  %v188_v4 = vld [vmem:[%s3070_s28 + $0x50] sm:$0xff] }
  0x16   : > { %185 = vst [vmem:[%s3075_s29 + $0x14] sm:$0xff] %v184_v2  ;;  %v190_v5 = vld [vmem:[%s3070_s28 + $0x58] sm:$0xff]  ;;  %187 = vst [vmem:[%s3075_s29 + $0x1c] sm:$0xff] %v186_v3  ;;  %v194_v7 = vld [vmem:[%s3070_s28 + $0x80] sm:$0xff] }
  0x17   : > { %189 = vst [vmem:[%s3075_s29 + $0x28] sm:$0xff] %v188_v4  ;;  %191 = vst [vmem:[%s3075_s29 + $0x30] sm:$0xff] %v190_v5  ;;  %v192_v6 = vld [vmem:[%s3070_s28 + $0x78] sm:$0xff]  ;;  %v196_v8 = vld [vmem:[%s3070_s28 + $0xa0] sm:$0xff] }
  0x18   : > { %193 = vst [vmem:[%s3075_s29 + $0x3c] sm:$0xff] %v192_v6  ;;  %195 = vst [vmem:[%s3075_s29 + $0x44] sm:$0xff] %v194_v7  ;;  %v198_v9 = vld [vmem:[%s3070_s28 + $0xa8] sm:$0xff]  ;;  %v202_v11 = vld [vmem:[%s3070_s28 + $0xd0] sm:$0xff] }
  0x19   : > { %197 = vst [vmem:[%s3075_s29 + $0x50] sm:$0xff] %v196_v8  ;;  %v200_v10 = vld [vmem:[%s3070_s28 + $0xc8] sm:$0xff]  ;;  %199 = vst [vmem:[%s3075_s29 + $0x58] sm:$0xff] %v198_v9  ;;  %v204_v12 = vld [vmem:[%s3070_s28 + $0xf0] sm:$0xff] }
  0x1a   : > { %201 = vst [vmem:[%s3075_s29 + $0x64] sm:$0xff] %v200_v10  ;;  %203 = vst [vmem:[%s3075_s29 + $0x6c] sm:$0xff] %v202_v11  ;;  %v206_v13 = vld [vmem:[%s3070_s28 + $0xf8] sm:$0xff]  ;;  %v210_v15 = vld [vmem:[%s3070_s28 + $0x120] sm:$0xff] }
  0x1b   : > { %v208_v14 = vld [vmem:[%s3070_s28 + $0x118] sm:$0xff]  ;;  %205 = vst [vmem:[%s3075_s29 + $0x78] sm:$0xff] %v204_v12  ;;  %207 = vst [vmem:[%s3075_s29 + $0x80] sm:$0xff] %v206_v13  ;;  %v212_v16 = vld [vmem:[%s3070_s28 + $0x140] sm:$0xff] }
  0x1c   : > { %209 = vst [vmem:[%s3075_s29 + $0x8c] sm:$0xff] %v208_v14  ;;  %v214_v17 = vld [vmem:[%s3070_s28 + $0x148] sm:$0xff]  ;;  %211 = vst [vmem:[%s3075_s29 + $0x94] sm:$0xff] %v210_v15  ;;  %v218_v19 = vld [vmem:[%s3070_s28 + $0x170] sm:$0xff] }
  0x1d   : > { %213 = vst [vmem:[%s3075_s29 + $0xa0] sm:$0xff] %v212_v16  ;;  %215 = vst [vmem:[%s3075_s29 + $0xa8] sm:$0xff] %v214_v17  ;;  %v216_v18 = vld [vmem:[%s3070_s28 + $0x168] sm:$0xff]  ;;  %v220_v20 = vld [vmem:[%s3070_s28 + $0x190] sm:$0xff] }
  0x1e   : > { %217 = vst [vmem:[%s3075_s29 + $0xb4] sm:$0xff] %v216_v18  ;;  %219 = vst [vmem:[%s3075_s29 + $0xbc] sm:$0xff] %v218_v19  ;;  %v222_v21 = vld [vmem:[%s3070_s28 + $0x198] sm:$0xff]  ;;  %v226_v23 = vld [vmem:[%s3070_s28 + $0x1c0] sm:$0xff] }
  0x1f   : > { %221 = vst [vmem:[%s3075_s29 + $0xc8] sm:$0xff] %v220_v20  ;;  %v224_v22 = vld [vmem:[%s3070_s28 + $0x1b8] sm:$0xff]  ;;  %223 = vst [vmem:[%s3075_s29 + $0xd0] sm:$0xff] %v222_v21  ;;  %v228_v24 = vld [vmem:[%s3070_s28 + $0x1e0] sm:$0xff] }
  0x20   : > { %225 = vst [vmem:[%s3075_s29 + $0xdc] sm:$0xff] %v224_v22  ;;  %227 = vst [vmem:[%s3075_s29 + $0xe4] sm:$0xff] %v226_v23  ;;  %v230_v25 = vld [vmem:[%s3070_s28 + $0x1e8] sm:$0xff]  ;;  %v234_v27 = vld [vmem:[%s3070_s28 + $0x210] sm:$0xff] }
  0x21   : > { %v232_v26 = vld [vmem:[%s3070_s28 + $0x208] sm:$0xff]  ;;  %229 = vst [vmem:[%s3075_s29 + $0xf0] sm:$0xff] %v228_v24  ;;  %231 = vst [vmem:[%s3075_s29 + $0xf8] sm:$0xff] %v230_v25  ;;  %v236_v28 = vld [vmem:[%s3070_s28 + $0x230] sm:$0xff] }
  0x22   : > { %233 = vst [vmem:[%s3075_s29 + $0x104] sm:$0xff] %v232_v26  ;;  %v238_v29 = vld [vmem:[%s3070_s28 + $0x238] sm:$0xff]  ;;  %235 = vst [vmem:[%s3075_s29 + $0x10c] sm:$0xff] %v234_v27  ;;  %v242_v31 = vld [vmem:[%s3070_s28 + $0x260] sm:$0xff] }
  0x23   : > { %237 = vst [vmem:[%s3075_s29 + $0x118] sm:$0xff] %v236_v28  ;;  %239 = vst [vmem:[%s3075_s29 + $0x120] sm:$0xff] %v238_v29  ;;  %v240_v30 = vld [vmem:[%s3070_s28 + $0x258] sm:$0xff]  ;;  %v244_v32 = vld [vmem:[%s3070_s28 + $0x280] sm:$0xff] }
  0x24   : > { %241 = vst [vmem:[%s3075_s29 + $0x12c] sm:$0xff] %v240_v30  ;;  %243 = vst [vmem:[%s3075_s29 + $0x134] sm:$0xff] %v242_v31  ;;  %v246_v33 = vld [vmem:[%s3070_s28 + $0x288] sm:$0xff]  ;;  %v250_v35 = vld [vmem:[%s3070_s28 + $0x2b0] sm:$0xff] }
  0x25   : > { %245 = vst [vmem:[%s3075_s29 + $0x140] sm:$0xff] %v244_v32  ;;  %v248_v34 = vld [vmem:[%s3070_s28 + $0x2a8] sm:$0xff]  ;;  %247 = vst [vmem:[%s3075_s29 + $0x148] sm:$0xff] %v246_v33  ;;  %v252_v36 = vld [vmem:[%s3070_s28 + $0x2d0] sm:$0xff] }
  0x26   : > { %249 = vst [vmem:[%s3075_s29 + $0x154] sm:$0xff] %v248_v34  ;;  %251 = vst [vmem:[%s3075_s29 + $0x15c] sm:$0xff] %v250_v35  ;;  %v254_v37 = vld [vmem:[%s3070_s28 + $0x2d8] sm:$0xff]  ;;  %v258_v39 = vld [vmem:[%s3070_s28 + $0x300] sm:$0xff] }
  0x27   : > { %v256_v38 = vld [vmem:[%s3070_s28 + $0x2f8] sm:$0xff]  ;;  %253 = vst [vmem:[%s3075_s29 + $0x168] sm:$0xff] %v252_v36  ;;  %255 = vst [vmem:[%s3075_s29 + $0x170] sm:$0xff] %v254_v37  ;;  %v260_v40 = vld [vmem:[%s3070_s28 + $0x320] sm:$0xff] }
  0x28   : > { %257 = vst [vmem:[%s3075_s29 + $0x17c] sm:$0xff] %v256_v38  ;;  %v262_v41 = vld [vmem:[%s3070_s28 + $0x328] sm:$0xff]  ;;  %259 = vst [vmem:[%s3075_s29 + $0x184] sm:$0xff] %v258_v39  ;;  %v266_v43 = vld [vmem:[%s3070_s28 + $0x350] sm:$0xff] }
  0x29   : > { %261 = vst [vmem:[%s3075_s29 + $0x190] sm:$0xff] %v260_v40  ;;  %263 = vst [vmem:[%s3075_s29 + $0x198] sm:$0xff] %v262_v41  ;;  %v264_v42 = vld [vmem:[%s3070_s28 + $0x348] sm:$0xff]  ;;  %v268_v44 = vld [vmem:[%s3070_s28 + $0x370] sm:$0xff] }
  0x2a   : > { %265 = vst [vmem:[%s3075_s29 + $0x1a4] sm:$0xff] %v264_v42  ;;  %267 = vst [vmem:[%s3075_s29 + $0x1ac] sm:$0xff] %v266_v43  ;;  %v270_v45 = vld [vmem:[%s3070_s28 + $0x378] sm:$0xff]  ;;  %v274_v47 = vld [vmem:[%s3070_s28 + $0x3a0] sm:$0xff] }
  0x2b   : > { %269 = vst [vmem:[%s3075_s29 + $0x1b8] sm:$0xff] %v268_v44  ;;  %v272_v46 = vld [vmem:[%s3070_s28 + $0x398] sm:$0xff]  ;;  %271 = vst [vmem:[%s3075_s29 + $0x1c0] sm:$0xff] %v270_v45  ;;  %v276_v48 = vld [vmem:[%s3070_s28 + $0x3c0] sm:$0xff] }
  0x2c   : > { %273 = vst [vmem:[%s3075_s29 + $0x1cc] sm:$0xff] %v272_v46  ;;  %275 = vst [vmem:[%s3075_s29 + $0x1d4] sm:$0xff] %v274_v47  ;;  %v278_v49 = vld [vmem:[%s3070_s28 + $0x3c8] sm:$0xff]  ;;  %v282_v51 = vld [vmem:[%s3070_s28 + $0x3f0] sm:$0xff] }
  0x2d   : > { %v280_v50 = vld [vmem:[%s3070_s28 + $0x3e8] sm:$0xff]  ;;  %277 = vst [vmem:[%s3075_s29 + $0x1e0] sm:$0xff] %v276_v48  ;;  %279 = vst [vmem:[%s3075_s29 + $0x1e8] sm:$0xff] %v278_v49  ;;  %v284_v52 = vld [vmem:[%s3070_s28 + $0x410] sm:$0xff] }
  0x2e   : > { %281 = vst [vmem:[%s3075_s29 + $0x1f4] sm:$0xff] %v280_v50  ;;  %v286_v53 = vld [vmem:[%s3070_s28 + $0x418] sm:$0xff]  ;;  %283 = vst [vmem:[%s3075_s29 + $0x1fc] sm:$0xff] %v282_v51  ;;  %v290_v55 = vld [vmem:[%s3070_s28 + $0x440] sm:$0xff] }
  0x2f   : > { %285 = vst [vmem:[%s3075_s29 + $0x208] sm:$0xff] %v284_v52  ;;  %287 = vst [vmem:[%s3075_s29 + $0x210] sm:$0xff] %v286_v53  ;;  %v288_v54 = vld [vmem:[%s3070_s28 + $0x438] sm:$0xff]  ;;  %v292_v56 = vld [vmem:[%s3070_s28 + $0x460] sm:$0xff] }
  0x30   : > { %289 = vst [vmem:[%s3075_s29 + $0x21c] sm:$0xff] %v288_v54  ;;  %291 = vst [vmem:[%s3075_s29 + $0x224] sm:$0xff] %v290_v55  ;;  %v294_v57 = vld [vmem:[%s3070_s28 + $0x468] sm:$0xff]  ;;  %v298_v59 = vld [vmem:[%s3070_s28 + $0x490] sm:$0xff] }
  0x31   : > { %293 = vst [vmem:[%s3075_s29 + $0x230] sm:$0xff] %v292_v56  ;;  %v296_v58 = vld [vmem:[%s3070_s28 + $0x488] sm:$0xff]  ;;  %295 = vst [vmem:[%s3075_s29 + $0x238] sm:$0xff] %v294_v57  ;;  %v300_v60 = vld [vmem:[%s3070_s28 + $0x4b0] sm:$0xff] }
  0x32   : > { %297 = vst [vmem:[%s3075_s29 + $0x244] sm:$0xff] %v296_v58  ;;  %299 = vst [vmem:[%s3075_s29 + $0x24c] sm:$0xff] %v298_v59  ;;  %v302_v61 = vld [vmem:[%s3070_s28 + $0x4b8] sm:$0xff]  ;;  %v306_v63 = vld [vmem:[%s3070_s28 + $0x4e0] sm:$0xff] }
  0x33   : > { %v304_v62 = vld [vmem:[%s3070_s28 + $0x4d8] sm:$0xff]  ;;  %301 = vst [vmem:[%s3075_s29 + $0x258] sm:$0xff] %v300_v60  ;;  %303 = vst [vmem:[%s3075_s29 + $0x260] sm:$0xff] %v302_v61  ;;  %v308_v0 = vld [vmem:[%s3070_s28 + $0x500] sm:$0xff] }
  0x34   : > { %305 = vst [vmem:[%s3075_s29 + $0x26c] sm:$0xff] %v304_v62  ;;  %v310_v1 = vld [vmem:[%s3070_s28 + $0x508] sm:$0xff]  ;;  %307 = vst [vmem:[%s3075_s29 + $0x274] sm:$0xff] %v306_v63  ;;  %v314_v3 = vld [vmem:[%s3070_s28 + $0x530] sm:$0xff] }
  0x35   : > { %309 = vst [vmem:[%s3075_s29 + $0x280] sm:$0xff] %v308_v0  ;;  %311 = vst [vmem:[%s3075_s29 + $0x288] sm:$0xff] %v310_v1  ;;  %v312_v2 = vld [vmem:[%s3070_s28 + $0x528] sm:$0xff]  ;;  %v316_v4 = vld [vmem:[%s3070_s28 + $0x550] sm:$0xff] }
  0x36   : > { %313 = vst [vmem:[%s3075_s29 + $0x294] sm:$0xff] %v312_v2  ;;  %315 = vst [vmem:[%s3075_s29 + $0x29c] sm:$0xff] %v314_v3  ;;  %v318_v5 = vld [vmem:[%s3070_s28 + $0x558] sm:$0xff]  ;;  %v322_v7 = vld [vmem:[%s3070_s28 + $0x580] sm:$0xff] }
  0x37   : > { %317 = vst [vmem:[%s3075_s29 + $0x2a8] sm:$0xff] %v316_v4  ;;  %v320_v6 = vld [vmem:[%s3070_s28 + $0x578] sm:$0xff]  ;;  %319 = vst [vmem:[%s3075_s29 + $0x2b0] sm:$0xff] %v318_v5  ;;  %v324_v8 = vld [vmem:[%s3070_s28 + $0x5a0] sm:$0xff] }
  0x38   : > { %321 = vst [vmem:[%s3075_s29 + $0x2bc] sm:$0xff] %v320_v6  ;;  %323 = vst [vmem:[%s3075_s29 + $0x2c4] sm:$0xff] %v322_v7  ;;  %v326_v9 = vld [vmem:[%s3070_s28 + $0x5a8] sm:$0xff]  ;;  %v330_v11 = vld [vmem:[%s3070_s28 + $0x5d0] sm:$0xff] }
  0x39   : > { %v328_v10 = vld [vmem:[%s3070_s28 + $0x5c8] sm:$0xff]  ;;  %325 = vst [vmem:[%s3075_s29 + $0x2d0] sm:$0xff] %v324_v8  ;;  %327 = vst [vmem:[%s3075_s29 + $0x2d8] sm:$0xff] %v326_v9  ;;  %v332_v12 = vld [vmem:[%s3070_s28 + $0x5f0] sm:$0xff] }
  0x3a   : > { %329 = vst [vmem:[%s3075_s29 + $0x2e4] sm:$0xff] %v328_v10  ;;  %v334_v13 = vld [vmem:[%s3070_s28 + $0x5f8] sm:$0xff]  ;;  %331 = vst [vmem:[%s3075_s29 + $0x2ec] sm:$0xff] %v330_v11  ;;  %v338_v15 = vld [vmem:[%s3070_s28 + $0x620] sm:$0xff] }
  0x3b   : > { %333 = vst [vmem:[%s3075_s29 + $0x2f8] sm:$0xff] %v332_v12  ;;  %335 = vst [vmem:[%s3075_s29 + $0x300] sm:$0xff] %v334_v13  ;;  %v336_v14 = vld [vmem:[%s3070_s28 + $0x618] sm:$0xff]  ;;  %v340_v16 = vld [vmem:[%s3070_s28 + $0x640] sm:$0xff] }
  0x3c   : > { %337 = vst [vmem:[%s3075_s29 + $0x30c] sm:$0xff] %v336_v14  ;;  %339 = vst [vmem:[%s3075_s29 + $0x314] sm:$0xff] %v338_v15  ;;  %v342_v17 = vld [vmem:[%s3070_s28 + $0x648] sm:$0xff]  ;;  %v346_v19 = vld [vmem:[%s3070_s28 + $0x670] sm:$0xff] }
  0x3d   : > { %341 = vst [vmem:[%s3075_s29 + $0x320] sm:$0xff] %v340_v16  ;;  %v344_v18 = vld [vmem:[%s3070_s28 + $0x668] sm:$0xff]  ;;  %343 = vst [vmem:[%s3075_s29 + $0x328] sm:$0xff] %v342_v17  ;;  %v348_v20 = vld [vmem:[%s3070_s28 + $0x690] sm:$0xff] }
  0x3e   : > { %345 = vst [vmem:[%s3075_s29 + $0x334] sm:$0xff] %v344_v18  ;;  %347 = vst [vmem:[%s3075_s29 + $0x33c] sm:$0xff] %v346_v19  ;;  %v350_v21 = vld [vmem:[%s3070_s28 + $0x698] sm:$0xff]  ;;  %v354_v23 = vld [vmem:[%s3070_s28 + $0x6c0] sm:$0xff] }
  0x3f   : > { %v352_v22 = vld [vmem:[%s3070_s28 + $0x6b8] sm:$0xff]  ;;  %349 = vst [vmem:[%s3075_s29 + $0x348] sm:$0xff] %v348_v20  ;;  %351 = vst [vmem:[%s3075_s29 + $0x350] sm:$0xff] %v350_v21  ;;  %v356_v24 = vld [vmem:[%s3070_s28 + $0x6e0] sm:$0xff] }
  0x40   : > { %353 = vst [vmem:[%s3075_s29 + $0x35c] sm:$0xff] %v352_v22  ;;  %v358_v25 = vld [vmem:[%s3070_s28 + $0x6e8] sm:$0xff]  ;;  %355 = vst [vmem:[%s3075_s29 + $0x364] sm:$0xff] %v354_v23  ;;  %v362_v27 = vld [vmem:[%s3070_s28 + $0x710] sm:$0xff] }
  0x41   : > { %357 = vst [vmem:[%s3075_s29 + $0x370] sm:$0xff] %v356_v24  ;;  %359 = vst [vmem:[%s3075_s29 + $0x378] sm:$0xff] %v358_v25  ;;  %v360_v26 = vld [vmem:[%s3070_s28 + $0x708] sm:$0xff]  ;;  %v364_v28 = vld [vmem:[%s3070_s28 + $0x730] sm:$0xff] }
  0x42   : > { %361 = vst [vmem:[%s3075_s29 + $0x384] sm:$0xff] %v360_v26  ;;  %363 = vst [vmem:[%s3075_s29 + $0x38c] sm:$0xff] %v362_v27  ;;  %v366_v29 = vld [vmem:[%s3070_s28 + $0x738] sm:$0xff]  ;;  %v370_v31 = vld [vmem:[%s3070_s28 + $0x760] sm:$0xff] }
  0x43   : > { %365 = vst [vmem:[%s3075_s29 + $0x398] sm:$0xff] %v364_v28  ;;  %v368_v30 = vld [vmem:[%s3070_s28 + $0x758] sm:$0xff]  ;;  %367 = vst [vmem:[%s3075_s29 + $0x3a0] sm:$0xff] %v366_v29  ;;  %v372_v32 = vld [vmem:[%s3070_s28 + $0x780] sm:$0xff] }
  0x44   : > { %369 = vst [vmem:[%s3075_s29 + $0x3ac] sm:$0xff] %v368_v30  ;;  %371 = vst [vmem:[%s3075_s29 + $0x3b4] sm:$0xff] %v370_v31  ;;  %v374_v33 = vld [vmem:[%s3070_s28 + $0x788] sm:$0xff]  ;;  %v378_v35 = vld [vmem:[%s3070_s28 + $0x7b0] sm:$0xff] }
  0x45   : > { %v376_v34 = vld [vmem:[%s3070_s28 + $0x7a8] sm:$0xff]  ;;  %373 = vst [vmem:[%s3075_s29 + $0x3c0] sm:$0xff] %v372_v32  ;;  %375 = vst [vmem:[%s3075_s29 + $0x3c8] sm:$0xff] %v374_v33  ;;  %v380_v36 = vld [vmem:[%s3070_s28 + $0x7d0] sm:$0xff] }
  0x46   : > { %377 = vst [vmem:[%s3075_s29 + $0x3d4] sm:$0xff] %v376_v34  ;;  %v382_v37 = vld [vmem:[%s3070_s28 + $0x7d8] sm:$0xff]  ;;  %379 = vst [vmem:[%s3075_s29 + $0x3dc] sm:$0xff] %v378_v35  ;;  %v386_v39 = vld [vmem:[%s3070_s28 + $0x800] sm:$0xff] }
  0x47   : > { %381 = vst [vmem:[%s3075_s29 + $0x3e8] sm:$0xff] %v380_v36  ;;  %383 = vst [vmem:[%s3075_s29 + $0x3f0] sm:$0xff] %v382_v37  ;;  %v384_v38 = vld [vmem:[%s3070_s28 + $0x7f8] sm:$0xff]  ;;  %v388_v40 = vld [vmem:[%s3070_s28 + $0x820] sm:$0xff] }
  0x48   : > { %385 = vst [vmem:[%s3075_s29 + $0x3fc] sm:$0xff] %v384_v38  ;;  %387 = vst [vmem:[%s3075_s29 + $0x404] sm:$0xff] %v386_v39  ;;  %v390_v41 = vld [vmem:[%s3070_s28 + $0x828] sm:$0xff]  ;;  %v394_v43 = vld [vmem:[%s3070_s28 + $0x850] sm:$0xff] }
  0x49   : > { %389 = vst [vmem:[%s3075_s29 + $0x410] sm:$0xff] %v388_v40  ;;  %v392_v42 = vld [vmem:[%s3070_s28 + $0x848] sm:$0xff]  ;;  %391 = vst [vmem:[%s3075_s29 + $0x418] sm:$0xff] %v390_v41  ;;  %v396_v44 = vld [vmem:[%s3070_s28 + $0x870] sm:$0xff] }
  0x4a   : > { %393 = vst [vmem:[%s3075_s29 + $0x424] sm:$0xff] %v392_v42  ;;  %395 = vst [vmem:[%s3075_s29 + $0x42c] sm:$0xff] %v394_v43  ;;  %v398_v45 = vld [vmem:[%s3070_s28 + $0x878] sm:$0xff]  ;;  %v402_v47 = vld [vmem:[%s3070_s28 + $0x8a0] sm:$0xff] }
  0x4b   : > { %v400_v46 = vld [vmem:[%s3070_s28 + $0x898] sm:$0xff]  ;;  %397 = vst [vmem:[%s3075_s29 + $0x438] sm:$0xff] %v396_v44  ;;  %399 = vst [vmem:[%s3075_s29 + $0x440] sm:$0xff] %v398_v45  ;;  %v404_v48 = vld [vmem:[%s3070_s28 + $0x8c0] sm:$0xff] }
  0x4c   : > { %401 = vst [vmem:[%s3075_s29 + $0x44c] sm:$0xff] %v400_v46  ;;  %v406_v49 = vld [vmem:[%s3070_s28 + $0x8c8] sm:$0xff]  ;;  %403 = vst [vmem:[%s3075_s29 + $0x454] sm:$0xff] %v402_v47  ;;  %v410_v51 = vld [vmem:[%s3070_s28 + $0x8f0] sm:$0xff] }
  0x4d   : > { %405 = vst [vmem:[%s3075_s29 + $0x460] sm:$0xff] %v404_v48  ;;  %407 = vst [vmem:[%s3075_s29 + $0x468] sm:$0xff] %v406_v49  ;;  %v408_v50 = vld [vmem:[%s3070_s28 + $0x8e8] sm:$0xff]  ;;  %v412_v52 = vld [vmem:[%s3070_s28 + $0x910] sm:$0xff] }
  0x4e   : > { %409 = vst [vmem:[%s3075_s29 + $0x474] sm:$0xff] %v408_v50  ;;  %411 = vst [vmem:[%s3075_s29 + $0x47c] sm:$0xff] %v410_v51  ;;  %v414_v53 = vld [vmem:[%s3070_s28 + $0x918] sm:$0xff]  ;;  %v418_v55 = vld [vmem:[%s3070_s28 + $0x940] sm:$0xff] }
  0x4f   : > { %413 = vst [vmem:[%s3075_s29 + $0x488] sm:$0xff] %v412_v52  ;;  %v416_v54 = vld [vmem:[%s3070_s28 + $0x938] sm:$0xff]  ;;  %415 = vst [vmem:[%s3075_s29 + $0x490] sm:$0xff] %v414_v53  ;;  %v420_v56 = vld [vmem:[%s3070_s28 + $0x960] sm:$0xff] }
  0x50   : > { %417 = vst [vmem:[%s3075_s29 + $0x49c] sm:$0xff] %v416_v54  ;;  %419 = vst [vmem:[%s3075_s29 + $0x4a4] sm:$0xff] %v418_v55  ;;  %v422_v57 = vld [vmem:[%s3070_s28 + $0x968] sm:$0xff]  ;;  %v426_v59 = vld [vmem:[%s3070_s28 + $0x990] sm:$0xff] }
  0x51   : > { %v424_v58 = vld [vmem:[%s3070_s28 + $0x988] sm:$0xff]  ;;  %421 = vst [vmem:[%s3075_s29 + $0x4b0] sm:$0xff] %v420_v56  ;;  %423 = vst [vmem:[%s3075_s29 + $0x4b8] sm:$0xff] %v422_v57  ;;  %v428_v60 = vld [vmem:[%s3070_s28 + $0x9b0] sm:$0xff] }
  0x52   : > { %425 = vst [vmem:[%s3075_s29 + $0x4c4] sm:$0xff] %v424_v58  ;;  %v430_v61 = vld [vmem:[%s3070_s28 + $0x9b8] sm:$0xff]  ;;  %427 = vst [vmem:[%s3075_s29 + $0x4cc] sm:$0xff] %v426_v59  ;;  %v434_v63 = vld [vmem:[%s3070_s28 + $0x9e0] sm:$0xff] }
  0x53   : > { %429 = vst [vmem:[%s3075_s29 + $0x4d8] sm:$0xff] %v428_v60  ;;  %431 = vst [vmem:[%s3075_s29 + $0x4e0] sm:$0xff] %v430_v61  ;;  %v432_v62 = vld [vmem:[%s3070_s28 + $0x9d8] sm:$0xff]  ;;  %v2292_v0 = vld [vmem:[%s3070_s28 + $0x10] sm:$0xf] }
  0x54   : > { %433 = vst [vmem:[%s3075_s29 + $0x4ec] sm:$0xff] %v432_v62  ;;  %435 = vst [vmem:[%s3075_s29 + $0x4f4] sm:$0xff] %v434_v63  ;;  %v2294_v1 = vld [vmem:[%s3070_s28 + $0x38] sm:$0xf]  ;;  %v2296_v2 = vld [vmem:[%s3070_s28 + $0x60] sm:$0xf] }
  0x55   : > { %2293 = vst [vmem:[%s3075_s29 + $0x10] sm:$0xf] %v2292_v0  ;;  %v2298_v3 = vld [vmem:[%s3070_s28 + $0x88] sm:$0xf]  ;;  %2295 = vst [vmem:[%s3075_s29 + $0x24] sm:$0xf] %v2294_v1 }
  0x56   : > { %2297 = vst [vmem:[%s3075_s29 + $0x38] sm:$0xf] %v2296_v2  ;;  %2299 = vst [vmem:[%s3075_s29 + $0x4c] sm:$0xf] %v2298_v3  ;;  %v2300_v4 = vld [vmem:[%s3070_s28 + $0xb0] sm:$0xf] }
  0x57   : > { %v2302_v5 = vld [vmem:[%s3070_s28 + $0xd8] sm:$0xf]  ;;  %v2304_v6 = vld [vmem:[%s3070_s28 + $0x100] sm:$0xf]  ;;  %2301 = vst [vmem:[%s3075_s29 + $0x60] sm:$0xf] %v2300_v4 }
  0x58   : > { %2303 = vst [vmem:[%s3075_s29 + $0x74] sm:$0xf] %v2302_v5  ;;  %2305 = vst [vmem:[%s3075_s29 + $0x88] sm:$0xf] %v2304_v6  ;;  %v2306_v7 = vld [vmem:[%s3070_s28 + $0x128] sm:$0xf] }
  0x59   : > { %v2308_v8 = vld [vmem:[%s3070_s28 + $0x150] sm:$0xf]  ;;  %v2310_v9 = vld [vmem:[%s3070_s28 + $0x178] sm:$0xf]  ;;  %2307 = vst [vmem:[%s3075_s29 + $0x9c] sm:$0xf] %v2306_v7 }
  0x5a   : > { %2309 = vst [vmem:[%s3075_s29 + $0xb0] sm:$0xf] %v2308_v8  ;;  %2311 = vst [vmem:[%s3075_s29 + $0xc4] sm:$0xf] %v2310_v9  ;;  %v2312_v10 = vld [vmem:[%s3070_s28 + $0x1a0] sm:$0xf] }
  0x5b   : > { %v2314_v11 = vld [vmem:[%s3070_s28 + $0x1c8] sm:$0xf]  ;;  %v2316_v12 = vld [vmem:[%s3070_s28 + $0x1f0] sm:$0xf]  ;;  %2313 = vst [vmem:[%s3075_s29 + $0xd8] sm:$0xf] %v2312_v10 }
  0x5c   : > { %2315 = vst [vmem:[%s3075_s29 + $0xec] sm:$0xf] %v2314_v11  ;;  %2317 = vst [vmem:[%s3075_s29 + $0x100] sm:$0xf] %v2316_v12  ;;  %v2318_v13 = vld [vmem:[%s3070_s28 + $0x218] sm:$0xf] }
  0x5d   : > { %v2320_v14 = vld [vmem:[%s3070_s28 + $0x240] sm:$0xf]  ;;  %v2322_v15 = vld [vmem:[%s3070_s28 + $0x268] sm:$0xf]  ;;  %2319 = vst [vmem:[%s3075_s29 + $0x114] sm:$0xf] %v2318_v13 }
  0x5e   : > { %2321 = vst [vmem:[%s3075_s29 + $0x128] sm:$0xf] %v2320_v14  ;;  %2323 = vst [vmem:[%s3075_s29 + $0x13c] sm:$0xf] %v2322_v15  ;;  %v2324_v16 = vld [vmem:[%s3070_s28 + $0x290] sm:$0xf] }
  0x5f   : > { %v2326_v17 = vld [vmem:[%s3070_s28 + $0x2b8] sm:$0xf]  ;;  %v2328_v18 = vld [vmem:[%s3070_s28 + $0x2e0] sm:$0xf]  ;;  %2325 = vst [vmem:[%s3075_s29 + $0x150] sm:$0xf] %v2324_v16 }
  0x60   : > { %2327 = vst [vmem:[%s3075_s29 + $0x164] sm:$0xf] %v2326_v17  ;;  %2329 = vst [vmem:[%s3075_s29 + $0x178] sm:$0xf] %v2328_v18  ;;  %v2330_v19 = vld [vmem:[%s3070_s28 + $0x308] sm:$0xf] }
  0x61   : > { %v2332_v20 = vld [vmem:[%s3070_s28 + $0x330] sm:$0xf]  ;;  %v2334_v21 = vld [vmem:[%s3070_s28 + $0x358] sm:$0xf]  ;;  %2331 = vst [vmem:[%s3075_s29 + $0x18c] sm:$0xf] %v2330_v19 }
  0x62   : > { %2333 = vst [vmem:[%s3075_s29 + $0x1a0] sm:$0xf] %v2332_v20  ;;  %2335 = vst [vmem:[%s3075_s29 + $0x1b4] sm:$0xf] %v2334_v21  ;;  %v2336_v22 = vld [vmem:[%s3070_s28 + $0x380] sm:$0xf] }
  0x63   : > { %v2338_v23 = vld [vmem:[%s3070_s28 + $0x3a8] sm:$0xf]  ;;  %v2340_v24 = vld [vmem:[%s3070_s28 + $0x3d0] sm:$0xf]  ;;  %2337 = vst [vmem:[%s3075_s29 + $0x1c8] sm:$0xf] %v2336_v22 }
  0x64   : > { %2339 = vst [vmem:[%s3075_s29 + $0x1dc] sm:$0xf] %v2338_v23  ;;  %2341 = vst [vmem:[%s3075_s29 + $0x1f0] sm:$0xf] %v2340_v24  ;;  %v2342_v25 = vld [vmem:[%s3070_s28 + $0x3f8] sm:$0xf] }
  0x65   : > { %v2344_v26 = vld [vmem:[%s3070_s28 + $0x420] sm:$0xf]  ;;  %v2346_v27 = vld [vmem:[%s3070_s28 + $0x448] sm:$0xf]  ;;  %2343 = vst [vmem:[%s3075_s29 + $0x204] sm:$0xf] %v2342_v25 }
  0x66   : > { %2345 = vst [vmem:[%s3075_s29 + $0x218] sm:$0xf] %v2344_v26  ;;  %2347 = vst [vmem:[%s3075_s29 + $0x22c] sm:$0xf] %v2346_v27  ;;  %v2348_v28 = vld [vmem:[%s3070_s28 + $0x470] sm:$0xf] }
  0x67   : > { %v2350_v29 = vld [vmem:[%s3070_s28 + $0x498] sm:$0xf]  ;;  %v2352_v30 = vld [vmem:[%s3070_s28 + $0x4c0] sm:$0xf]  ;;  %2349 = vst [vmem:[%s3075_s29 + $0x240] sm:$0xf] %v2348_v28 }
  0x68   : > { %2351 = vst [vmem:[%s3075_s29 + $0x254] sm:$0xf] %v2350_v29  ;;  %2353 = vst [vmem:[%s3075_s29 + $0x268] sm:$0xf] %v2352_v30  ;;  %v2354_v31 = vld [vmem:[%s3070_s28 + $0x4e8] sm:$0xf] }
  0x69   : > { %v2356_v32 = vld [vmem:[%s3070_s28 + $0x510] sm:$0xf]  ;;  %v2358_v33 = vld [vmem:[%s3070_s28 + $0x538] sm:$0xf]  ;;  %2355 = vst [vmem:[%s3075_s29 + $0x27c] sm:$0xf] %v2354_v31 }
  0x6a   : > { %2357 = vst [vmem:[%s3075_s29 + $0x290] sm:$0xf] %v2356_v32  ;;  %2359 = vst [vmem:[%s3075_s29 + $0x2a4] sm:$0xf] %v2358_v33  ;;  %v2360_v34 = vld [vmem:[%s3070_s28 + $0x560] sm:$0xf] }
  0x6b   : > { %v2362_v35 = vld [vmem:[%s3070_s28 + $0x588] sm:$0xf]  ;;  %v2364_v36 = vld [vmem:[%s3070_s28 + $0x5b0] sm:$0xf]  ;;  %2361 = vst [vmem:[%s3075_s29 + $0x2b8] sm:$0xf] %v2360_v34 }
  0x6c   : > { %2363 = vst [vmem:[%s3075_s29 + $0x2cc] sm:$0xf] %v2362_v35  ;;  %2365 = vst [vmem:[%s3075_s29 + $0x2e0] sm:$0xf] %v2364_v36  ;;  %v2366_v37 = vld [vmem:[%s3070_s28 + $0x5d8] sm:$0xf] }
  0x6d   : > { %v2368_v38 = vld [vmem:[%s3070_s28 + $0x600] sm:$0xf]  ;;  %v2370_v39 = vld [vmem:[%s3070_s28 + $0x628] sm:$0xf]  ;;  %2367 = vst [vmem:[%s3075_s29 + $0x2f4] sm:$0xf] %v2366_v37 }
  0x6e   : > { %2369 = vst [vmem:[%s3075_s29 + $0x308] sm:$0xf] %v2368_v38  ;;  %2371 = vst [vmem:[%s3075_s29 + $0x31c] sm:$0xf] %v2370_v39  ;;  %v2372_v40 = vld [vmem:[%s3070_s28 + $0x650] sm:$0xf] }
  0x6f   : > { %v2374_v41 = vld [vmem:[%s3070_s28 + $0x678] sm:$0xf]  ;;  %v2376_v42 = vld [vmem:[%s3070_s28 + $0x6a0] sm:$0xf]  ;;  %2373 = vst [vmem:[%s3075_s29 + $0x330] sm:$0xf] %v2372_v40 }
  0x70   : > { %2375 = vst [vmem:[%s3075_s29 + $0x344] sm:$0xf] %v2374_v41  ;;  %2377 = vst [vmem:[%s3075_s29 + $0x358] sm:$0xf] %v2376_v42  ;;  %v2378_v43 = vld [vmem:[%s3070_s28 + $0x6c8] sm:$0xf] }
  0x71   : > { %v2380_v44 = vld [vmem:[%s3070_s28 + $0x6f0] sm:$0xf]  ;;  %v2382_v45 = vld [vmem:[%s3070_s28 + $0x718] sm:$0xf]  ;;  %2379 = vst [vmem:[%s3075_s29 + $0x36c] sm:$0xf] %v2378_v43 }
  0x72   : > { %2381 = vst [vmem:[%s3075_s29 + $0x380] sm:$0xf] %v2380_v44  ;;  %2383 = vst [vmem:[%s3075_s29 + $0x394] sm:$0xf] %v2382_v45  ;;  %v2384_v46 = vld [vmem:[%s3070_s28 + $0x740] sm:$0xf] }
  0x73   : > { %v2386_v47 = vld [vmem:[%s3070_s28 + $0x768] sm:$0xf]  ;;  %v2388_v48 = vld [vmem:[%s3070_s28 + $0x790] sm:$0xf]  ;;  %2385 = vst [vmem:[%s3075_s29 + $0x3a8] sm:$0xf] %v2384_v46 }
  0x74   : > { %2387 = vst [vmem:[%s3075_s29 + $0x3bc] sm:$0xf] %v2386_v47  ;;  %2389 = vst [vmem:[%s3075_s29 + $0x3d0] sm:$0xf] %v2388_v48  ;;  %v2390_v49 = vld [vmem:[%s3070_s28 + $0x7b8] sm:$0xf] }
  0x75   : > { %v2392_v50 = vld [vmem:[%s3070_s28 + $0x7e0] sm:$0xf]  ;;  %v2394_v51 = vld [vmem:[%s3070_s28 + $0x808] sm:$0xf]  ;;  %2391 = vst [vmem:[%s3075_s29 + $0x3e4] sm:$0xf] %v2390_v49 }
  0x76   : > { %2393 = vst [vmem:[%s3075_s29 + $0x3f8] sm:$0xf] %v2392_v50  ;;  %2395 = vst [vmem:[%s3075_s29 + $0x40c] sm:$0xf] %v2394_v51  ;;  %v2396_v52 = vld [vmem:[%s3070_s28 + $0x830] sm:$0xf] }
  0x77   : > { %v2398_v53 = vld [vmem:[%s3070_s28 + $0x858] sm:$0xf]  ;;  %v2400_v54 = vld [vmem:[%s3070_s28 + $0x880] sm:$0xf]  ;;  %2397 = vst [vmem:[%s3075_s29 + $0x420] sm:$0xf] %v2396_v52 }
  0x78   : > { %2399 = vst [vmem:[%s3075_s29 + $0x434] sm:$0xf] %v2398_v53  ;;  %2401 = vst [vmem:[%s3075_s29 + $0x448] sm:$0xf] %v2400_v54  ;;  %v2402_v55 = vld [vmem:[%s3070_s28 + $0x8a8] sm:$0xf] }
  0x79   : > { %v2404_v56 = vld [vmem:[%s3070_s28 + $0x8d0] sm:$0xf]  ;;  %v2406_v57 = vld [vmem:[%s3070_s28 + $0x8f8] sm:$0xf]  ;;  %2403 = vst [vmem:[%s3075_s29 + $0x45c] sm:$0xf] %v2402_v55 }
  0x7a   : > { %2405 = vst [vmem:[%s3075_s29 + $0x470] sm:$0xf] %v2404_v56  ;;  %2407 = vst [vmem:[%s3075_s29 + $0x484] sm:$0xf] %v2406_v57  ;;  %v2408_v58 = vld [vmem:[%s3070_s28 + $0x920] sm:$0xf] }
  0x7b   : > { %v2410_v59 = vld [vmem:[%s3070_s28 + $0x948] sm:$0xf]  ;;  %v2412_v60 = vld [vmem:[%s3070_s28 + $0x970] sm:$0xf]  ;;  %2409 = vst [vmem:[%s3075_s29 + $0x498] sm:$0xf] %v2408_v58 }
  0x7c   : > { %2411 = vst [vmem:[%s3075_s29 + $0x4ac] sm:$0xf] %v2410_v59  ;;  %2413 = vst [vmem:[%s3075_s29 + $0x4c0] sm:$0xf] %v2412_v60  ;;  %v2414_v61 = vld [vmem:[%s3070_s28 + $0x998] sm:$0xf] }
  0x7d   : > { %v2416_v62 = vld [vmem:[%s3070_s28 + $0x9c0] sm:$0xf]  ;;  %v2418_v63 = vld [vmem:[%s3070_s28 + $0x9e8] sm:$0xf]  ;;  %2415 = vst [vmem:[%s3075_s29 + $0x4d4] sm:$0xf] %v2414_v61 }
  0x7e   : > { %2417 = vst [vmem:[%s3075_s29 + $0x4e8] sm:$0xf] %v2416_v62  ;;  %2419 = vst [vmem:[%s3075_s29 + $0x4fc] sm:$0xf] %v2418_v63 }
  0x7f PF: > { %p2420_p8 = scmp.ge.s32.totalorder %s3000_s16, 1  ;;  %p584_p9 = scmp.lt.s32.totalorder %s3000_s16, 3 }
  0x81   : > { %p585_p10 = pnand %p2420_p8, %p584_p9 }
  0x82   : > { %s591_s30 = sand.u32 (!%p585_p10), 1, %s2984_s12  }
  0x83   : > { %588 = sbr.rel (%p585_p10) target bundleno = 522 (0x20a), region = 54 }
  0x84   : > { %s2683_s6 = smul.u32 (!%p585_p10), 1280, %s591_s30 }
  0x85   : > { %s2684_s10 = smul.u32 (!%p585_p10), 80, %s591_s30 }
  0x86   : > { %s3475_s9 = scalar_lea.vmem (!%p585_p10), [#allocation2], %s2683_s6  ;;  %s631_s6 = smul.u32 (!%p585_p10), 5, %s2992_s14 }
  0x87   : > { %s3705_s11 = scalar_lea.vmem (!%p585_p10), [#allocation3], %s2684_s10 }
  0x88   : > { %v3464_v0 = vld [vmem:[%s3758_s0 + $0x4] ss:$16 sps:$4 sm:$0xff]   ;;  %v3471_v1 = vld [vmem:[%s3758_s0 + $0xc] ss:$16 sps:$4 sm:$0xff]   ;;  %p632_p11 = scmp.lt.s32.totalorder %s631_s6, 9  ;;  %s2625_s12 = smul.u32 (%p3057_p6), 20, %s2992_s14 }
  0x89   : > { %1770 = vmatprep.mubr.bf16.mxu0 %v3464_v0  ;;  %1823 = vmatprep.mubr.bf16.mxu1 %v3471_v1  ;;  %v2725_v2 = vld [vmem:[%s3475_s9 + $0x11c] ss:$20 sps:$4 sm:$0xff]   ;;  %v2729_v4 = vld [vmem:[%s3475_s9 + $0x118] ss:$20 sps:$4 sm:$0xff]   ;;  %v2731_v6 = vld [vmem:[%s3475_s9 + $0xf4] ss:$20 sps:$4 sm:$0xff]  }
  0x8a   : > { %v2727_v3 = vld [vmem:[%s3475_s9 + $0x39c] ss:$20 sps:$4 sm:$0xff]   ;;  %1738 = vmatprep.subr.bf16.mxu0 %v2725_v2  ;;  %v2730_v5 = vld [vmem:[%s3475_s9 + $0x398] ss:$20 sps:$4 sm:$0xff]   ;;  %v2733_v7 = vld [vmem:[%s3475_s9 + $0x374] ss:$20 sps:$4 sm:$0xff]   ;;  %s2136_s18 = scalar_lea.vmem (%p3057_p6), %s3761_s3, %s2625_s12 }
  0x8b   : > { %1791 = vmatprep.subr.bf16.mxu1 %v2727_v3  ;;  %1739 = vmatpush1.bf16.msra.mxu0 %v2729_v4  ;;  %v2735_v8 = vld [vmem:[%s3475_s9 + $0xf0] ss:$20 sps:$4 sm:$0xff]   ;;  %v2737_v10 = vld [vmem:[%s3475_s9 + $0xcc] ss:$20 sps:$4 sm:$0xff]   ;;  %v2741_v12 = vld [vmem:[%s3475_s9 + $0xc8] ss:$20 sps:$4 sm:$0xff]  }
  0x8c   : > { %1792 = vmatpush1.bf16.msra.mxu1 %v2730_v5  ;;  %1740 = vmatprep.subr.bf16.mxu0 %v2731_v6  ;;  %v2736_v9 = vld [vmem:[%s3475_s9 + $0x370] ss:$20 sps:$4 sm:$0xff]   ;;  %v2739_v11 = vld [vmem:[%s3475_s9 + $0x34c] ss:$20 sps:$4 sm:$0xff]   ;;  %v2742_v13 = vld [vmem:[%s3475_s9 + $0x348] ss:$20 sps:$4 sm:$0xff]  }
  0x8d   : > { %1793 = vmatprep.subr.bf16.mxu1 %v2733_v7  ;;  %v2743_v14 = vld [vmem:[%s3475_s9 + $0xa4] ss:$20 sps:$4 sm:$0xff]   ;;  %v2747_v16 = vld [vmem:[%s3475_s9 + $0xa0] ss:$20 sps:$4 sm:$0xff]   ;;  %v2749_v18 = vld [vmem:[%s3475_s9 + $0x7c] ss:$20 sps:$4 sm:$0xff]  }
  0x8e   : > { %v2745_v15 = vld [vmem:[%s3475_s9 + $0x324] ss:$20 sps:$4 sm:$0xff]   ;;  %v2748_v17 = vld [vmem:[%s3475_s9 + $0x320] ss:$20 sps:$4 sm:$0xff]   ;;  %v2751_v19 = vld [vmem:[%s3475_s9 + $0x2fc] ss:$20 sps:$4 sm:$0xff]  }
  0x8f   : > { %1741 = vmatpush1.bf16.msra.mxu0 %v2735_v8  ;;  %v2753_v20 = vld [vmem:[%s3475_s9 + $0x78] ss:$20 sps:$4 sm:$0xff]   ;;  %v2755_v22 = vld [vmem:[%s3475_s9 + $0x54] ss:$20 sps:$4 sm:$0xff]   ;;  %v2759_v24 = vld [vmem:[%s3475_s9 + $0x50] ss:$20 sps:$4 sm:$0xff]  }
  0x90   : > { %1794 = vmatpush1.bf16.msra.mxu1 %v2736_v9  ;;  %1742 = vmatprep.subr.bf16.mxu0 %v2737_v10  ;;  %v2754_v21 = vld [vmem:[%s3475_s9 + $0x2f8] ss:$20 sps:$4 sm:$0xff]   ;;  %v2757_v23 = vld [vmem:[%s3475_s9 + $0x2d4] ss:$20 sps:$4 sm:$0xff]   ;;  %v2760_v25 = vld [vmem:[%s3475_s9 + $0x2d0] ss:$20 sps:$4 sm:$0xff]  }
  0x91   : > { %1795 = vmatprep.subr.bf16.mxu1 %v2739_v11  ;;  %v2761_v26 = vld [vmem:[%s3475_s9 + $0x2c] ss:$20 sps:$4 sm:$0xff]   ;;  %v2765_v28 = vld [vmem:[%s3475_s9 + $0x28] ss:$20 sps:$4 sm:$0xff]   ;;  %v2767_v30 = vld [vmem:[%s3475_s9 + $0x4] ss:$20 sps:$4 sm:$0xff]  }
  0x92   : > { %v2763_v27 = vld [vmem:[%s3475_s9 + $0x2ac] ss:$20 sps:$4 sm:$0xff]   ;;  %v2766_v29 = vld [vmem:[%s3475_s9 + $0x2a8] ss:$20 sps:$4 sm:$0xff]   ;;  %v2769_v31 = vld [vmem:[%s3475_s9 + $0x284] ss:$20 sps:$4 sm:$0xff]  }
  0x93   : > { %1743 = vmatpush1.bf16.msra.mxu0 %v2741_v12  ;;  %v2771_v32 = vld [vmem:[%s3475_s9] ss:$20 sps:$4 sm:$0xff]   ;;  %v2773_v34 = vld [vmem:[%s3475_s9 + $0x25c] ss:$20 sps:$4 sm:$0xff]   ;;  %v2777_v36 = vld [vmem:[%s3475_s9 + $0x258] ss:$20 sps:$4 sm:$0xff]  }
  0x94   : > { %1796 = vmatpush1.bf16.msra.mxu1 %v2742_v13  ;;  %1744 = vmatprep.subr.bf16.mxu0 %v2743_v14  ;;  %v2772_v33 = vld [vmem:[%s3475_s9 + $0x280] ss:$20 sps:$4 sm:$0xff]   ;;  %v2775_v35 = vld [vmem:[%s3475_s9 + $0x4dc] ss:$20 sps:$4 sm:$0xff]   ;;  %v2778_v37 = vld [vmem:[%s3475_s9 + $0x4d8] ss:$20 sps:$4 sm:$0xff]  }
  0x95   : > { %1797 = vmatprep.subr.bf16.mxu1 %v2745_v15  ;;  %v2779_v38 = vld [vmem:[%s3475_s9 + $0x234] ss:$20 sps:$4 sm:$0xff]   ;;  %v2783_v40 = vld [vmem:[%s3475_s9 + $0x230] ss:$20 sps:$4 sm:$0xff]   ;;  %v2785_v42 = vld [vmem:[%s3475_s9 + $0x20c] ss:$20 sps:$4 sm:$0xff]  }
  0x96   : > { %v2781_v39 = vld [vmem:[%s3475_s9 + $0x4b4] ss:$20 sps:$4 sm:$0xff]   ;;  %v2784_v41 = vld [vmem:[%s3475_s9 + $0x4b0] ss:$20 sps:$4 sm:$0xff]   ;;  %v2787_v43 = vld [vmem:[%s3475_s9 + $0x48c] ss:$20 sps:$4 sm:$0xff]  }
  0x97   : > { %1745 = vmatpush1.bf16.msra.mxu0 %v2747_v16  ;;  %v2789_v44 = vld [vmem:[%s3475_s9 + $0x208] ss:$20 sps:$4 sm:$0xff]   ;;  %v2791_v46 = vld [vmem:[%s3475_s9 + $0x1e4] ss:$20 sps:$4 sm:$0xff]   ;;  %v2795_v48 = vld [vmem:[%s3475_s9 + $0x1e0] ss:$20 sps:$4 sm:$0xff]  }
  0x98   : > { %1798 = vmatpush1.bf16.msra.mxu1 %v2748_v17  ;;  %1746 = vmatprep.subr.bf16.mxu0 %v2749_v18  ;;  %v2790_v45 = vld [vmem:[%s3475_s9 + $0x488] ss:$20 sps:$4 sm:$0xff]   ;;  %v2793_v47 = vld [vmem:[%s3475_s9 + $0x464] ss:$20 sps:$4 sm:$0xff]   ;;  %v2796_v49 = vld [vmem:[%s3475_s9 + $0x460] ss:$20 sps:$4 sm:$0xff]  }
  0x99   : > { %1799 = vmatprep.subr.bf16.mxu1 %v2751_v19  ;;  %v2797_v50 = vld [vmem:[%s3475_s9 + $0x1bc] ss:$20 sps:$4 sm:$0xff]   ;;  %v2801_v52 = vld [vmem:[%s3475_s9 + $0x1b8] ss:$20 sps:$4 sm:$0xff]   ;;  %v2803_v54 = vld [vmem:[%s3475_s9 + $0x194] ss:$20 sps:$4 sm:$0xff]  }
  0x9a   : > { %v2799_v51 = vld [vmem:[%s3475_s9 + $0x43c] ss:$20 sps:$4 sm:$0xff]   ;;  %v2802_v53 = vld [vmem:[%s3475_s9 + $0x438] ss:$20 sps:$4 sm:$0xff]   ;;  %v2805_v55 = vld [vmem:[%s3475_s9 + $0x414] ss:$20 sps:$4 sm:$0xff]  }
  0x9b   : > { %1747 = vmatpush1.bf16.msra.mxu0 %v2753_v20  ;;  %v2807_v56 = vld [vmem:[%s3475_s9 + $0x190] ss:$20 sps:$4 sm:$0xff]   ;;  %v2809_v58 = vld [vmem:[%s3475_s9 + $0x16c] ss:$20 sps:$4 sm:$0xff]   ;;  %v2813_v60 = vld [vmem:[%s3475_s9 + $0x168] ss:$20 sps:$4 sm:$0xff]  }
  0x9c   : > { %1800 = vmatpush1.bf16.msra.mxu1 %v2754_v21  ;;  %1748 = vmatprep.subr.bf16.mxu0 %v2755_v22  ;;  %v2808_v57 = vld [vmem:[%s3475_s9 + $0x410] ss:$20 sps:$4 sm:$0xff]   ;;  %v2811_v59 = vld [vmem:[%s3475_s9 + $0x3ec] ss:$20 sps:$4 sm:$0xff]   ;;  %v2814_v61 = vld [vmem:[%s3475_s9 + $0x3e8] ss:$20 sps:$4 sm:$0xff]  }
  0x9d   : > { %1801 = vmatprep.subr.bf16.mxu1 %v2757_v23  ;;  %v2815_v62 = vld [vmem:[%s3475_s9 + $0x144] ss:$20 sps:$4 sm:$0xff]   ;;  %v2819_v2 = vld [vmem:[%s3475_s9 + $0x140] ss:$20 sps:$4 sm:$0xff]   ;;  %v2835_v10 = vld [vmem:[%s3475_s9 + $0xfc] ss:$20 sps:$4 sm:$0xff]  }
  0x9e   : > { %v2817_v63 = vld [vmem:[%s3475_s9 + $0x3c4] ss:$20 sps:$4 sm:$0xff]   ;;  %v2820_v3 = vld [vmem:[%s3475_s9 + $0x3c0] ss:$20 sps:$4 sm:$0xff]   ;;  %v2838_v11 = vld [vmem:[%s3475_s9 + $0x37c] ss:$20 sps:$4 sm:$0xff]  }
  0x9f   : > { %1749 = vmatpush1.bf16.msra.mxu0 %v2759_v24  ;;  %v2829_v4 = vld [vmem:[%s3475_s9 + $0x124] ss:$20 sps:$4 sm:$0xff]   ;;  %v3546_v6 = vld [vmem:[%s3758_s0] ss:$16 sps:$4 sm:$0xff]   ;;  %v2841_v15 = vld [vmem:[%s3475_s9 + $0xd4] ss:$20 sps:$4 sm:$0xff]  }
  0xa0   : > { %1802 = vmatpush1.bf16.msra.mxu1 %v2760_v25  ;;  %1750 = vmatprep.subr.bf16.mxu0 %v2761_v26  ;;  %v2832_v5 = vld [vmem:[%s3475_s9 + $0x3a4] ss:$20 sps:$4 sm:$0xff]   ;;  %v2827_v8 = vld [vmem:[%s3475_s9 + $0x120] ss:$20 sps:$4 sm:$0xff]   ;;  %v2845_v22 = vld [vmem:[%s3475_s9 + $0xa8] ss:$20 sps:$4 sm:$0xff]  }
  0xa1   : > { %1803 = vmatprep.subr.bf16.mxu1 %v2763_v27  ;;  %v3551_v7 = vld [vmem:[%s3758_s0 + $0x8] ss:$16 sps:$4 sm:$0xff]   ;;  %v2830_v9 = vld [vmem:[%s3475_s9 + $0x3a0] ss:$20 sps:$4 sm:$0xff]   ;;  %v2839_v18 = vld [vmem:[%s3475_s9 + $0xd0] ss:$20 sps:$4 sm:$0xff]  }
  0xa2   : > { %v3560_v12 = vld [vmem:[%s3758_s0 + $0x24] ss:$16 sps:$4 sm:$0xff]   ;;  %v2833_v13 = vld [vmem:[%s3475_s9 + $0xf8] ss:$20 sps:$4 sm:$0xff]   ;;  %v3572_v17 = vld [vmem:[%s3758_s0 + $0x20] ss:$16 sps:$4 sm:$0xff]  }
  0xa3   : > { %1751 = vmatpush1.bf16.msra.mxu0 %v2765_v28  ;;  %v2836_v14 = vld [vmem:[%s3475_s9 + $0x378] ss:$20 sps:$4 sm:$0xff]   ;;  %v2844_v16 = vld [vmem:[%s3475_s9 + $0x354] ss:$20 sps:$4 sm:$0xff]   ;;  %v2842_v19 = vld [vmem:[%s3475_s9 + $0x350] ss:$20 sps:$4 sm:$0xff]  }
  0xa4   : > { %1804 = vmatpush1.bf16.msra.mxu1 %v2766_v29  ;;  %1752 = vmatprep.subr.bf16.mxu0 %v2767_v30  ;;  %v2847_v20 = vld [vmem:[%s3475_s9 + $0xac] ss:$20 sps:$4 sm:$0xff]   ;;  %v2848_v23 = vld [vmem:[%s3475_s9 + $0x328] ss:$20 sps:$4 sm:$0xff]   ;;  %v2853_v24 = vld [vmem:[%s3475_s9 + $0x84] ss:$20 sps:$4 sm:$0xff]  }
  0xa5   : > { %1805 = vmatprep.subr.bf16.mxu1 %v2769_v31  ;;  %v2850_v21 = vld [vmem:[%s3475_s9 + $0x32c] ss:$20 sps:$4 sm:$0xff]   ;;  %v2856_v25 = vld [vmem:[%s3475_s9 + $0x304] ss:$20 sps:$4 sm:$0xff]   ;;  %v2859_v29 = vld [vmem:[%s3475_s9 + $0x5c] ss:$20 sps:$4 sm:$0xff]  }
  0xa6   : > { %v3586_v26 = vld [vmem:[%s3758_s0 + $0x2c] ss:$16 sps:$4 sm:$0xff]   ;;  %v2851_v27 = vld [vmem:[%s3475_s9 + $0x80] ss:$20 sps:$4 sm:$0xff]   ;;  %v3596_v31 = vld [vmem:[%s3758_s0 + $0x28] ss:$16 sps:$4 sm:$0xff]  }
  0xa7   : > { %1753 = vmatpush1.bf16.msra.mxu0 %v2771_v32  ;;  %v2854_v28 = vld [vmem:[%s3475_s9 + $0x300] ss:$20 sps:$4 sm:$0xff]   ;;  %v2862_v30 = vld [vmem:[%s3475_s9 + $0x2dc] ss:$20 sps:$4 sm:$0xff]   ;;  %v2860_v32 = vld [vmem:[%s3475_s9 + $0x2d8] ss:$20 sps:$4 sm:$0xff]  }
  0xa8   : > { %1806 = vmatpush1.bf16.msra.mxu1 %v2772_v33  ;;  %1754 = vmatprep.subr.bf16.mxu0 %v2773_v34  ;;  %v2865_v33 = vld [vmem:[%s3475_s9 + $0x34] ss:$20 sps:$4 sm:$0xff]   ;;  %s3770_s6 = smov (!%p632_p11, %s631_s6), 9 }
  0xa9   : > { %1807 = vmatprep.subr.bf16.mxu1 %v2775_v35  ;;  %v2868_v34 = vld [vmem:[%s3475_s9 + $0x2b4] ss:$20 sps:$4 sm:$0xff]   ;;  %v2863_v35 = vld [vmem:[%s3475_s9 + $0x30] ss:$20 sps:$4 sm:$0xff]  }
  0xab   : > { %1755 = vmatpush2.bf16.msra.mxu0 %v2777_v36  ;;  %v2866_v36 = vld [vmem:[%s3475_s9 + $0x2b0] ss:$20 sps:$4 sm:$0xff]  }
  0xac   : > { %1808 = vmatpush2.bf16.msra.mxu1 %v2778_v37  ;;  %1756 = vmatprep.subr.bf16.mxu0 %v2779_v38  ;;  %v2871_v37 = vld [vmem:[%s3475_s9 + $0xc] ss:$20 sps:$4 sm:$0xff]  }
  0xad   : > { %1809 = vmatprep.subr.bf16.mxu1 %v2781_v39  ;;  %v2874_v38 = vld [vmem:[%s3475_s9 + $0x28c] ss:$20 sps:$4 sm:$0xff]   ;;  %v2869_v39 = vld [vmem:[%s3475_s9 + $0x8] ss:$20 sps:$4 sm:$0xff]  }
  0xaf   : > { %1757 = vmatpush2.bf16.msra.mxu0 %v2783_v40  ;;  %v2872_v40 = vld [vmem:[%s3475_s9 + $0x288] ss:$20 sps:$4 sm:$0xff]  }
  0xb0   : > { %1810 = vmatpush2.bf16.msra.mxu1 %v2784_v41  ;;  %1758 = vmatprep.subr.bf16.mxu0 %v2785_v42  ;;  %v2877_v41 = vld [vmem:[%s3475_s9 + $0x264] ss:$20 sps:$4 sm:$0xff]  }
  0xb1   : > { %1811 = vmatprep.subr.bf16.mxu1 %v2787_v43  ;;  %v2880_v42 = vld [vmem:[%s3475_s9 + $0x4e4] ss:$20 sps:$4 sm:$0xff]   ;;  %v2875_v43 = vld [vmem:[%s3475_s9 + $0x260] ss:$20 sps:$4 sm:$0xff]  }
  0xb3   : > { %1759 = vmatpush2.bf16.msra.mxu0 %v2789_v44  ;;  %v2878_v44 = vld [vmem:[%s3475_s9 + $0x4e0] ss:$20 sps:$4 sm:$0xff]  }
  0xb4   : > { %1812 = vmatpush2.bf16.msra.mxu1 %v2790_v45  ;;  %1760 = vmatprep.subr.bf16.mxu0 %v2791_v46  ;;  %v2883_v45 = vld [vmem:[%s3475_s9 + $0x23c] ss:$20 sps:$4 sm:$0xff]  }
  0xb5   : > { %1813 = vmatprep.subr.bf16.mxu1 %v2793_v47  ;;  %v2886_v46 = vld [vmem:[%s3475_s9 + $0x4bc] ss:$20 sps:$4 sm:$0xff]   ;;  %v2881_v47 = vld [vmem:[%s3475_s9 + $0x238] ss:$20 sps:$4 sm:$0xff]  }
  0xb7   : > { %1761 = vmatpush2.bf16.msra.mxu0 %v2795_v48  ;;  %v2884_v48 = vld [vmem:[%s3475_s9 + $0x4b8] ss:$20 sps:$4 sm:$0xff]  }
  0xb8   : > { %1814 = vmatpush2.bf16.msra.mxu1 %v2796_v49  ;;  %1762 = vmatprep.subr.bf16.mxu0 %v2797_v50  ;;  %v2889_v49 = vld [vmem:[%s3475_s9 + $0x214] ss:$20 sps:$4 sm:$0xff]  }
  0xb9   : > { %1815 = vmatprep.subr.bf16.mxu1 %v2799_v51  ;;  %v2892_v50 = vld [vmem:[%s3475_s9 + $0x494] ss:$20 sps:$4 sm:$0xff]   ;;  %v2887_v51 = vld [vmem:[%s3475_s9 + $0x210] ss:$20 sps:$4 sm:$0xff]  }
  0xbb   : > { %1763 = vmatpush2.bf16.msra.mxu0 %v2801_v52  ;;  %v2890_v52 = vld [vmem:[%s3475_s9 + $0x490] ss:$20 sps:$4 sm:$0xff]  }
  0xbc   : > { %1816 = vmatpush2.bf16.msra.mxu1 %v2802_v53  ;;  %1764 = vmatprep.subr.bf16.mxu0 %v2803_v54  ;;  %v2895_v53 = vld [vmem:[%s3475_s9 + $0x1ec] ss:$20 sps:$4 sm:$0xff]  }
  0xbd   : > { %1817 = vmatprep.subr.bf16.mxu1 %v2805_v55  ;;  %v2898_v54 = vld [vmem:[%s3475_s9 + $0x46c] ss:$20 sps:$4 sm:$0xff]   ;;  %v2893_v55 = vld [vmem:[%s3475_s9 + $0x1e8] ss:$20 sps:$4 sm:$0xff]  }
  0xbf   : > { %1765 = vmatpush2.bf16.msra.mxu0 %v2807_v56  ;;  %v2896_v56 = vld [vmem:[%s3475_s9 + $0x468] ss:$20 sps:$4 sm:$0xff]  }
  0xc0   : > { %1818 = vmatpush2.bf16.msra.mxu1 %v2808_v57  ;;  %1766 = vmatprep.subr.bf16.mxu0 %v2809_v58  ;;  %v2901_v57 = vld [vmem:[%s3475_s9 + $0x1c4] ss:$20 sps:$4 sm:$0xff]  }
  0xc1   : > { %1819 = vmatprep.subr.bf16.mxu1 %v2811_v59  ;;  %v2904_v58 = vld [vmem:[%s3475_s9 + $0x444] ss:$20 sps:$4 sm:$0xff]   ;;  %v2899_v59 = vld [vmem:[%s3475_s9 + $0x1c0] ss:$20 sps:$4 sm:$0xff]  }
  0xc3   : > { %1767 = vmatpush2.bf16.msra.mxu0 %v2813_v60  ;;  %v2902_v60 = vld [vmem:[%s3475_s9 + $0x440] ss:$20 sps:$4 sm:$0xff]  }
  0xc4   : > { %1820 = vmatpush2.bf16.msra.mxu1 %v2814_v61  ;;  %1768 = vmatprep.subr.bf16.mxu0 %v2815_v62  ;;  %v2912_v61 = vld [vmem:[%s3475_s9 + $0x19c] ss:$20 sps:$4 sm:$0xff]  }
  0xc5   : > { %1821 = vmatprep.subr.bf16.mxu1 %v2817_v63  ;;  %v2915_v62 = vld [vmem:[%s3475_s9 + $0x41c] ss:$20 sps:$4 sm:$0xff]   ;;  %v2910_v63 = vld [vmem:[%s3475_s9 + $0x198] ss:$20 sps:$4 sm:$0xff]  }
  0xc7   : > { %1769 = vmatpush2.bf16.msra.mxu0 %v2819_v2  ;;  %v2913_v2 = vld [vmem:[%s3475_s9 + $0x418] ss:$20 sps:$4 sm:$0xff]  }
  0xc8   : > { %1822 = vmatpush2.bf16.msra.mxu1 %v2820_v3  ;;  %1844 = vmatprep.subr.bf16.mxu0 %v2829_v4  ;;  %v2919_v3 = vld [vmem:[%s3475_s9 + $0x174] ss:$20 sps:$4 sm:$0xff]  }
  0xc9   : > { %1897 = vmatprep.subr.bf16.mxu1 %v2832_v5  ;;  %v2922_v4 = vld [vmem:[%s3475_s9 + $0x3f4] ss:$20 sps:$4 sm:$0xff]   ;;  %v2917_v5 = vld [vmem:[%s3475_s9 + $0x170] ss:$20 sps:$4 sm:$0xff]  }
  0xca   : > { %1771 = vmatmul.mubr.bf16.vlgmr.msra.gmra.mxu0 %v3546_v6 }
  0xcb   : > { %1824 = vmatmul.mubr.bf16.vlgmr.msra.gmra.mxu1 %v3551_v7  ;;  %1845 = vmatpush1.bf16.msra.mxu0 %v2827_v8  ;;  %v2920_v8 = vld [vmem:[%s3475_s9 + $0x3f0] ss:$20 sps:$4 sm:$0xff]  }
  0xcc   : > { %1898 = vmatpush1.bf16.msra.mxu1 %v2830_v9  ;;  %1846 = vmatprep.subr.bf16.mxu0 %v2835_v10  ;;  %v2925_v9 = vld [vmem:[%s3475_s9 + $0x14c] ss:$20 sps:$4 sm:$0xff]  }
  0xcd   : > { %1899 = vmatprep.subr.bf16.mxu1 %v2838_v11  ;;  %1780 = vmatprep.mubr.bf16.mxu0 %v3560_v12  ;;  %v2928_v10 = vld [vmem:[%s3475_s9 + $0x3cc] ss:$20 sps:$4 sm:$0xff]   ;;  %v2923_v11 = vld [vmem:[%s3475_s9 + $0x148] ss:$20 sps:$4 sm:$0xff]  }
  0xce   : > { %1833 = vmatprep.mubr.bf16.mxu1 %v3586_v26 }
  0xcf   : > { %1847 = vmatpush1.bf16.msra.mxu0 %v2833_v13  ;;  %v2926_v13 = vld [vmem:[%s3475_s9 + $0x3c8] ss:$20 sps:$4 sm:$0xff]  }
  0xd0   : > { %1900 = vmatpush1.bf16.msra.mxu1 %v2836_v14  ;;  %1848 = vmatprep.subr.bf16.mxu0 %v2841_v15  ;;  %v2929_v14 = vld [vmem:[%s3475_s9 + $0x268] ss:$20 sps:$4 sm:$0xff]  }
  0xd1   : > { %1901 = vmatprep.subr.bf16.mxu1 %v2844_v16  ;;  %v2930_v15 = vld [vmem:[%s3475_s9 + $0x4e8] ss:$20 sps:$4 sm:$0xff]  }
  0xd2   : > { %1781 = vmatmul.mubr.bf16.gmra.mxu0 %v3572_v17  ;;  %v2931_v16 = vld [vmem:[%s3475_s9 + $0x128] ss:$20 sps:$4 sm:$0xff]  }
  0xd3   : > { %1849 = vmatpush1.bf16.msra.mxu0 %v2839_v18  ;;  %1876 = vmatprep.mubr.bf16.mxu0 %v3464_v0  ;;  %v2857_v0 = vld [vmem:[%s3475_s9 + $0x58] ss:$20 sps:$4 sm:$0xff]   ;;  %v2932_v18 = vld [vmem:[%s3475_s9 + $0x3a8] ss:$20 sps:$4 sm:$0xff]  }
  0xd4   : > { %1902 = vmatpush1.bf16.msra.mxu1 %v2842_v19  ;;  %1850 = vmatprep.subr.bf16.mxu0 %v2847_v20  ;;  %v2933_v19 = vld [vmem:[%s3475_s9 + $0x240] ss:$20 sps:$4 sm:$0xff]  }
  0xd5   : > { %1903 = vmatprep.subr.bf16.mxu1 %v2850_v21  ;;  %1834 = vmatmul.mubr.bf16.gmra.mxu1 %v3596_v31  ;;  %v2934_v20 = vld [vmem:[%s3475_s9 + $0x4c0] ss:$20 sps:$4 sm:$0xff]  }
  0xd6   : > { %1929 = vmatprep.mubr.bf16.mxu1 %v3471_v1  ;;  %v2935_v21 = vld [vmem:[%s3475_s9 + $0x100] ss:$20 sps:$4 sm:$0xff]  }
  0xd7   : > { %1851 = vmatpush1.bf16.msra.mxu0 %v2845_v22  ;;  %v2936_v22 = vld [vmem:[%s3475_s9 + $0x380] ss:$20 sps:$4 sm:$0xff]  }
  0xd8   : > { %1904 = vmatpush1.bf16.msra.mxu1 %v2848_v23  ;;  %1852 = vmatprep.subr.bf16.mxu0 %v2853_v24  ;;  %v2937_v23 = vld [vmem:[%s3475_s9 + $0x218] ss:$20 sps:$4 sm:$0xff]  }
  0xd9   : > { %1905 = vmatprep.subr.bf16.mxu1 %v2856_v25  ;;  %v2938_v24 = vld [vmem:[%s3475_s9 + $0x498] ss:$20 sps:$4 sm:$0xff]  }
  0xda   : > { %v2939_v25 = vld [vmem:[%s3475_s9 + $0xd8] ss:$20 sps:$4 sm:$0xff]  }
  0xdb   : > { %1853 = vmatpush1.bf16.msra.mxu0 %v2851_v27  ;;  %v2940_v27 = vld [vmem:[%s3475_s9 + $0x358] ss:$20 sps:$4 sm:$0xff]  }
  0xdc   : > { %1906 = vmatpush1.bf16.msra.mxu1 %v2854_v28  ;;  %1854 = vmatprep.subr.bf16.mxu0 %v2859_v29  ;;  %v2941_v28 = vld [vmem:[%s3475_s9 + $0x1f0] ss:$20 sps:$4 sm:$0xff]  }
  0xdd   : > { %1907 = vmatprep.subr.bf16.mxu1 %v2862_v30  ;;  %v2942_v29 = vld [vmem:[%s3475_s9 + $0x470] ss:$20 sps:$4 sm:$0xff]  }
  0xde   : > { %v2943_v30 = vld [vmem:[%s3475_s9 + $0xb0] ss:$20 sps:$4 sm:$0xff]  }
  0xdf   : > { %1855 = vmatpush1.bf16.msra.mxu0 %v2857_v0  ;;  %v2944_v0 = vld [vmem:[%s3475_s9 + $0x330] ss:$20 sps:$4 sm:$0xff]  }
  0xe0   : > { %1908 = vmatpush1.bf16.msra.mxu1 %v2860_v32  ;;  %1856 = vmatprep.subr.bf16.mxu0 %v2865_v33  ;;  %v2945_v32 = vld [vmem:[%s3475_s9 + $0x1c8] ss:$20 sps:$4 sm:$0xff]  }
  0xe1   : > { %1909 = vmatprep.subr.bf16.mxu1 %v2868_v34  ;;  %v2946_v33 = vld [vmem:[%s3475_s9 + $0x448] ss:$20 sps:$4 sm:$0xff]   ;;  %v2961_v34 = vld [vmem:[%s3758_s0 + $0x4] ss:$16 sps:$4 sm:$0xff]  }
  0xe3   : > { %1857 = vmatpush1.bf16.msra.mxu0 %v2863_v35  ;;  %v2947_v35 = vld [vmem:[%s3475_s9 + $0x88] ss:$20 sps:$4 sm:$0xff]  }
  0xe4   : > { %1910 = vmatpush1.bf16.msra.mxu1 %v2866_v36  ;;  %1858 = vmatprep.subr.bf16.mxu0 %v2871_v37  ;;  %v2948_v36 = vld [vmem:[%s3475_s9 + $0x308] ss:$20 sps:$4 sm:$0xff]   ;;  %v2949_v37 = vld [vmem:[%s3475_s9 + $0x1a0] ss:$20 sps:$4 sm:$0xff]  }
  0xe5   : > { %1911 = vmatprep.subr.bf16.mxu1 %v2874_v38  ;;  %v2950_v38 = vld [vmem:[%s3475_s9 + $0x420] ss:$20 sps:$4 sm:$0xff]  }
  0xe7   : > { %1859 = vmatpush1.bf16.msra.mxu0 %v2869_v39  ;;  %v2951_v39 = vld [vmem:[%s3475_s9 + $0x60] ss:$20 sps:$4 sm:$0xff]  }
  0xe8   : > { %1912 = vmatpush1.bf16.msra.mxu1 %v2872_v40  ;;  %1860 = vmatprep.subr.bf16.mxu0 %v2877_v41  ;;  %v2952_v40 = vld [vmem:[%s3475_s9 + $0x2e0] ss:$20 sps:$4 sm:$0xff]   ;;  %v2954_v41 = vld [vmem:[%s3475_s9 + $0x3f8] ss:$20 sps:$4 sm:$0xff]  }
  0xe9   : > { %1913 = vmatprep.subr.bf16.mxu1 %v2880_v42  ;;  %v2955_v42 = vld [vmem:[%s3475_s9 + $0x38] ss:$20 sps:$4 sm:$0xff]  }
  0xeb   : > { %1861 = vmatpush2.bf16.msra.mxu0 %v2875_v43  ;;  %v2956_v43 = vld [vmem:[%s3475_s9 + $0x2b8] ss:$20 sps:$4 sm:$0xff]  }
  0xec   : > { %1914 = vmatpush2.bf16.msra.mxu1 %v2878_v44  ;;  %1862 = vmatprep.subr.bf16.mxu0 %v2883_v45  ;;  %v2957_v44 = vld [vmem:[%s3475_s9 + $0x150] ss:$20 sps:$4 sm:$0xff]  }
  0xed   : > { %1915 = vmatprep.subr.bf16.mxu1 %v2886_v46  ;;  %v2958_v45 = vld [vmem:[%s3475_s9 + $0x3d0] ss:$20 sps:$4 sm:$0xff]  }
  0xee   : > { %v2959_v46 = vld [vmem:[%s3475_s9 + $0x10] ss:$20 sps:$4 sm:$0xff]  }
  0xef   : > { %1863 = vmatpush2.bf16.msra.mxu0 %v2881_v47  ;;  %v2960_v47 = vld [vmem:[%s3475_s9 + $0x290] ss:$20 sps:$4 sm:$0xff]  }
  0xf0   : > { %1916 = vmatpush2.bf16.msra.mxu1 %v2884_v48  ;;  %1864 = vmatprep.subr.bf16.mxu0 %v2889_v49  ;;  %v841_v48 = vlaneseq }
  0xf1   : > { %1917 = vmatprep.subr.bf16.mxu1 %v2892_v50 }
  0xf2   : > { %v3692_v49 = vshrl.u32 %v841_v48, 7 }
  0xf3   : > { %1865 = vmatpush2.bf16.msra.mxu0 %v2887_v51 }
  0xf4   : > { %1918 = vmatpush2.bf16.msra.mxu1 %v2890_v52  ;;  %1866 = vmatprep.subr.bf16.mxu0 %v2895_v53 }
  0xf5   : > { %1919 = vmatprep.subr.bf16.mxu1 %v2898_v54 }
  0xf7   : > { %1867 = vmatpush2.bf16.msra.mxu0 %v2893_v55 }
  0xf8   : > { %1920 = vmatpush2.bf16.msra.mxu1 %v2896_v56  ;;  %1868 = vmatprep.subr.bf16.mxu0 %v2901_v57 }
  0xf9   : > { %1921 = vmatprep.subr.bf16.mxu1 %v2904_v58 }
  0xfb   : > { %1869 = vmatpush2.bf16.msra.mxu0 %v2899_v59 }
  0xfc   : > { %1922 = vmatpush2.bf16.msra.mxu1 %v2902_v60  ;;  %1870 = vmatprep.subr.bf16.mxu0 %v2912_v61 }
  0xfd   : > { %1923 = vmatprep.subr.bf16.mxu1 %v2915_v62 }
  0xff   : > { %1871 = vmatpush2.bf16.msra.mxu0 %v2910_v63 }
 0x100   : > { %1924 = vmatpush2.bf16.msra.mxu1 %v2913_v2  ;;  %1872 = vmatprep.subr.bf16.mxu0 %v2919_v3 }
 0x101   : > { %1925 = vmatprep.subr.bf16.mxu1 %v2922_v4 }
 0x103   : > { %1873 = vmatpush2.bf16.msra.mxu0 %v2917_v5 }
 0x104   : > { %1926 = vmatpush2.bf16.msra.mxu1 %v2920_v8  ;;  %1874 = vmatprep.subr.bf16.mxu0 %v2925_v9 }
 0x105   : > { %1927 = vmatprep.subr.bf16.mxu1 %v2928_v10 }
 0x107   : > { %1875 = vmatpush2.bf16.msra.mxu0 %v2923_v11 }
 0x108   : > { %1928 = vmatpush2.bf16.msra.mxu1 %v2926_v13  ;;  %2626 = vmatprep.subr.bf16.mxu0 %v2929_v14 }
 0x109   : > { %2654 = vmatprep.subr.bf16.mxu1 %v2930_v15 }
 0x10a   : > { %1877 = vmatmul.mubr.bf16.vlgmr.msra.gmra.mxu0 %v3546_v6 }
 0x10b   : > { %1930 = vmatmul.mubr.bf16.vlgmr.msra.gmra.mxu1 %v3551_v7  ;;  %2627 = vmatpush3.bf16.msra.mxu0 %v2931_v16 }
 0x10c   : > { %2655 = vmatpush3.bf16.msra.mxu1 %v2932_v18  ;;  %2628 = vmatprep.subr.bf16.mxu0 %v2933_v19 }
 0x10d   : > { %2656 = vmatprep.subr.bf16.mxu1 %v2934_v20  ;;  %1886 = vmatprep.mubr.bf16.mxu0 %v3560_v12 }
 0x10e   : > { %1939 = vmatprep.mubr.bf16.mxu1 %v3586_v26 }
 0x10f   : > { %2629 = vmatpush3.bf16.msra.mxu0 %v2935_v21 }
 0x110   : > { %2657 = vmatpush3.bf16.msra.mxu1 %v2936_v22  ;;  %2630 = vmatprep.subr.bf16.mxu0 %v2937_v23 }
 0x111   : > { %2658 = vmatprep.subr.bf16.mxu1 %v2938_v24 }
 0x112   : > { %1887 = vmatmul.mubr.bf16.gmra.mxu0 %v3572_v17 }
 0x113   : > { %1940 = vmatmul.mubr.bf16.gmra.mxu1 %v3596_v31  ;;  %2631 = vmatpush3.bf16.msra.mxu0 %v2939_v25 }
 0x114   : > { %2659 = vmatpush3.bf16.msra.mxu1 %v2940_v27  ;;  %2632 = vmatprep.subr.bf16.mxu0 %v2941_v28  ;;  %v851_v28 = vsub.s32 2, %v3692_v49 }
 0x115   : > { %2660 = vmatprep.subr.bf16.mxu1 %v2942_v29  ;;  %1982 = vmatprep.mubr.bf16.mxu0 %v2961_v34  ;;  %v855_v29 = vsub.s32 3, %v3692_v49 }
 0x116   : > { %2031 = vmatprep.mubr.bf16.mxu1 %v3471_v1  ;;  %v2953_v1 = vld [vmem:[%s3475_s9 + $0x178] ss:$20 sps:$4 sm:$0xff]   ;;  %s634_s9 = scalar_lea.vmem %s3760_s2, %s3770_s6 }
 0x117   : > { %2633 = vmatpush3.bf16.msra.mxu0 %v2943_v30 }
 0x118   : > { %2661 = vmatpush3.bf16.msra.mxu1 %v2944_v0  ;;  %2634 = vmatprep.subr.bf16.mxu0 %v2945_v32 }
 0x119   : > { %2662 = vmatprep.subr.bf16.mxu1 %v2946_v33 }
 0x11b   : > { %2635 = vmatpush3.bf16.msra.mxu0 %v2947_v35 }
 0x11c   : > { %2663 = vmatpush3.bf16.msra.mxu1 %v2948_v36  ;;  %2636 = vmatprep.subr.bf16.mxu0 %v2949_v37 }
 0x11d   : > { %2664 = vmatprep.subr.bf16.mxu1 %v2950_v38 }
 0x11f   : > { %2637 = vmatpush3.bf16.msra.mxu0 %v2951_v39 }
 0x120   : > { %2665 = vmatpush3.bf16.msra.mxu1 %v2952_v40  ;;  %2638 = vmatprep.subr.bf16.mxu0 %v2953_v1 }
 0x121   : > { %2666 = vmatprep.subr.bf16.mxu1 %v2954_v41 }
 0x123   : > { %2639 = vmatpush3.bf16.msra.mxu0 %v2955_v42 }
 0x124   : > { %2667 = vmatpush3.bf16.msra.mxu1 %v2956_v43  ;;  %2640 = vmatprep.subr.bf16.mxu0 %v2957_v44 }
 0x125   : > { %2668 = vmatprep.subr.bf16.mxu1 %v2958_v45 }
 0x127   : > { %2641 = vmatpush3.bf16.msra.mxu0 %v2959_v46 }
 0x128   : > { %2669 = vmatpush3.bf16.msra.mxu1 %v2960_v47 }
 0x12a   : > { %1983 = vmatmul.mubr.bf16.vlgmr.msra.gmra.mxu0 %v3546_v6  ;;  %v843_v6 = vsub.s32 0, %v3692_v49 }
 0x12b   : > { %2032 = vmatmul.mubr.bf16.vlgmr.msra.gmra.mxu1 %v3551_v7  ;;  %1990 = vmatprep.mubr.bf16.mxu0 %v3560_v12  ;;  %v3698_v7 = vld [vmem:[%s634_s9] sm:$0x1f]  ;;  %v847_v12 = vsub.s32 1, %v3692_v49 }
 0x12c   : > { %2039 = vmatprep.mubr.bf16.mxu1 %v3586_v26  ;;  %v852_v30 = vrot.slane %v3698_v7, %v851_v28  ;;  %v856_v0 = vrot.slane %v3698_v7, %v855_v29 }
 0x12d   : > { %v848_v26 = vrot.slane %v3698_v7, %v847_v12 }
 0x132   : > { %1991 = vmatmul.mubr.bf16.gmra.mxu0 %v3572_v17  ;;  %v844_v17 = vrot.slane %v3698_v7, %v843_v6 }
 0x133   : > { %2040 = vmatmul.mubr.bf16.gmra.mxu1 %v3596_v31 }
 0x18a   : > { %v1772_v31 = vpop.f32.mrf.mxu0 }
 0x18b   : > { %v1825_v50 = vpop.f32.mrf.mxu1  ;;  %v1773_v51 = vadd.f32 %v1772_v31, %v844_v17 }
 0x18c   : > { %v1774_v52 = vpop.f32.mrf.mxu0 }
 0x18d   : > { %v1827_v53 = vpop.f32.mrf.mxu1  ;;  %v1826_v54 = vadd.f32 %v1825_v50, %v1773_v51  ;;  %v1775_v55 = vadd.f32 %v1774_v52, %v848_v26 }
 0x18e   : > { %v1776_v56 = vpop.f32.mrf.mxu0 }
 0x18f   : > { %v1829_v57 = vpop.f32.mrf.mxu1  ;;  %v1828_v58 = vadd.f32 %v1827_v53, %v1775_v55  ;;  %v1777_v59 = vadd.f32 %v1776_v56, %v844_v17 }
 0x190   : > { %v1778_v60 = vpop.f32.mrf.mxu0 }
 0x191   : > { %v2613_v61 = vpack.c.bf16 %v1828_v58, %v1826_v54  ;;  %v1779_v62 = vadd.f32 %v1778_v60, %v848_v26  ;;  %v1831_v63 = vpop.f32.mrf.mxu1  ;;  %v1830_v3 = vadd.f32 %v1829_v57, %v1777_v59 }
 0x192   : > { %v1782_v2 = vpop.f32.mrf.mxu0 }
 0x193   : > { %2112 = vst [vmem:[%s3705_s11] sm:$0xff] %v2613_v61  ;;  %v1832_v4 = vadd.f32 %v1831_v63, %v1779_v62  ;;  %v1783_v10 = vadd.f32 %v1782_v2, %v844_v17  ;;  %v859_v63 = vsub.s32 4, %v3692_v49 }
 0x194   : > { %v1784_v5 = vpop.f32.mrf.mxu0 }
 0x195   : > { %v2616_v8 = vpack.c.bf16 %v1832_v4, %v1830_v3  ;;  %v1785_v11 = vadd.f32 %v1784_v5, %v848_v26  ;;  %v1835_v13 = vpop.f32.mrf.mxu1  ;;  %v860_v4 = vrot.slane %v3698_v7, %v859_v63 }
 0x196   : > { %v1786_v9 = vpop.f32.mrf.mxu0  ;;  %v1836_v15 = vadd.f32 %v1835_v13, %v1783_v10 }
 0x197   : > { %2115 = vst [vmem:[%s3705_s11 + $0x14] sm:$0xff] %v2616_v8  ;;  %v1787_v16 = vadd.f32 %v1786_v9, %v844_v17  ;;  %v1837_v18 = vpop.f32.mrf.mxu1 }
 0x198   : > { %v1788_v14 = vpop.f32.mrf.mxu0  ;;  %v1838_v19 = vadd.f32 %v1837_v18, %v1785_v11 }
 0x199   : > { %v1789_v20 = vadd.f32 %v1788_v14, %v848_v26  ;;  %v1839_v21 = vpop.f32.mrf.mxu1 }
 0x19a   : > { %v2619_v22 = vpack.c.bf16 %v1838_v19, %v1836_v15  ;;  %v1840_v23 = vadd.f32 %v1839_v21, %v1787_v16 }
 0x19b   : > { %v1841_v24 = vpop.f32.mrf.mxu1 }
 0x19c   : > { %2118 = vst [vmem:[%s3705_s11 + $0x28] sm:$0xff] %v2619_v22  ;;  %v1842_v25 = vadd.f32 %v1841_v24, %v1789_v20 }
 0x19e   : > { %v2622_v27 = vpack.c.bf16 %v1842_v25, %v1840_v23 }
 0x1a0   : > { %2121 = vst [vmem:[%s3705_s11 + $0x3c] sm:$0xff] %v2622_v27 }
 0x1ca   : > { %v1878_v32 = vpop.f32.mrf.mxu0 }
 0x1cb   : > { %v1931_v33 = vpop.f32.mrf.mxu1  ;;  %v1879_v34 = vadd.f32 %v1878_v32, %v852_v30 }
 0x1cc   : > { %v1880_v35 = vpop.f32.mrf.mxu0 }
 0x1cd   : > { %v1933_v36 = vpop.f32.mrf.mxu1  ;;  %v1932_v37 = vadd.f32 %v1931_v33, %v1879_v34  ;;  %v1881_v38 = vadd.f32 %v1880_v35, %v856_v0 }
 0x1ce   : > { %v1882_v39 = vpop.f32.mrf.mxu0 }
 0x1cf   : > { %v1935_v40 = vpop.f32.mrf.mxu1  ;;  %v1934_v1 = vadd.f32 %v1933_v36, %v1881_v38  ;;  %v1883_v41 = vadd.f32 %v1882_v39, %v852_v30 }
 0x1d0   : > { %v1884_v42 = vpop.f32.mrf.mxu0 }
 0x1d1   : > { %v1937_v43 = vpop.f32.mrf.mxu1  ;;  %v2614_v44 = vpack.c.bf16 %v1934_v1, %v1932_v37  ;;  %v1885_v45 = vadd.f32 %v1884_v42, %v856_v0  ;;  %v1936_v48 = vadd.f32 %v1935_v40, %v1883_v41  ;;  %v2151_v41 = vld [vmem:[%s3705_s11] sm:$0xff] (%p3057_p6) }
 0x1d2   : > { %v1888_v46 = vpop.f32.mrf.mxu0  ;;  %2152 = vst [vmem:[%s2136_s18] sm:$0xff] (%p3057_p6), %v2151_v41 }
 0x1d3   : > { %v1941_v47 = vpop.f32.mrf.mxu1  ;;  %2113 = vst [vmem:[%s3705_s11 + $0x8] sm:$0xff] %v2614_v44  ;;  %v1938_v6 = vadd.f32 %v1937_v43, %v1885_v45  ;;  %v1889_v12 = vadd.f32 %v1888_v46, %v852_v30  ;;  %v2155_v43 = vld [vmem:[%s3705_s11 + $0x14] sm:$0xff] (%p3057_p6)  ;;  %v2159_v45 = vld [vmem:[%s3705_s11 + $0x28] sm:$0xff] (%p3057_p6) }
 0x1d4   : > { %v1890_v17 = vpop.f32.mrf.mxu0  ;;  %2156 = vst [vmem:[%s2136_s18 + $0x28] sm:$0xff] (%p3057_p6), %v2155_v43  ;;  %2160 = vst [vmem:[%s2136_s18 + $0x50] sm:$0xff] (%p3057_p6), %v2159_v45 }
 0x1d5   : > { %v1943_v26 = vpop.f32.mrf.mxu1  ;;  %v2617_v31 = vpack.c.bf16 %v1938_v6, %v1936_v48  ;;  %v1891_v50 = vadd.f32 %v1890_v17, %v856_v0  ;;  %v1942_v51 = vadd.f32 %v1941_v47, %v1889_v12  ;;  %v2163_v47 = vld [vmem:[%s3705_s11 + $0x3c] sm:$0xff] (%p3057_p6) }
 0x1d6   : > { %v1892_v52 = vpop.f32.mrf.mxu0  ;;  %2164 = vst [vmem:[%s2136_s18 + $0x78] sm:$0xff] (%p3057_p6), %v2163_v47 }
 0x1d7   : > { %v1945_v53 = vpop.f32.mrf.mxu1  ;;  %2116 = vst [vmem:[%s3705_s11 + $0x1c] sm:$0xff] %v2617_v31  ;;  %v1893_v54 = vadd.f32 %v1892_v52, %v852_v30  ;;  %v1944_v55 = vadd.f32 %v1943_v26, %v1891_v50 }
 0x1d8   : > { %v1894_v56 = vpop.f32.mrf.mxu0 }
 0x1d9   : > { %v1947_v57 = vpop.f32.mrf.mxu1  ;;  %v2620_v58 = vpack.c.bf16 %v1944_v55, %v1942_v51  ;;  %v1895_v59 = vadd.f32 %v1894_v56, %v856_v0  ;;  %v1946_v60 = vadd.f32 %v1945_v53, %v1893_v54 }
 0x1da   : > { %v2153_v42 = vld [vmem:[%s3705_s11 + $0x8] sm:$0xff] (%p3057_p6) }
 0x1db   : > { %2119 = vst [vmem:[%s3705_s11 + $0x30] sm:$0xff] %v2620_v58  ;;  %v1948_v61 = vadd.f32 %v1947_v57, %v1895_v59  ;;  %2154 = vst [vmem:[%s2136_s18 + $0x8] sm:$0xff] (%p3057_p6), %v2153_v42 }
 0x1dd   : > { %v2623_v62 = vpack.c.bf16 %v1948_v61, %v1946_v60 }
 0x1de   : > { %v2157_v44 = vld [vmem:[%s3705_s11 + $0x1c] sm:$0xff] (%p3057_p6) }
 0x1df   : > { %2122 = vst [vmem:[%s3705_s11 + $0x44] sm:$0xff] %v2623_v62  ;;  %2158 = vst [vmem:[%s2136_s18 + $0x30] sm:$0xff] (%p3057_p6), %v2157_v44 }
 0x1e2   : > { %v2161_v46 = vld [vmem:[%s3705_s11 + $0x30] sm:$0xff] (%p3057_p6) }
 0x1e3   : > { %2162 = vst [vmem:[%s2136_s18 + $0x58] sm:$0xff] (%p3057_p6), %v2161_v46 }
 0x1e6   : > { %v2165_v48 = vld [vmem:[%s3705_s11 + $0x44] sm:$0xff] (%p3057_p6) }
 0x1e7   : > { %2166 = vst [vmem:[%s2136_s18 + $0x80] sm:$0xff] (%p3057_p6), %v2165_v48 }
 0x1ea   : > { %v2642_v2 = vpop.f32.mrf.mxu0 }
 0x1eb   : > { %v2670_v3 = vpop.f32.mrf.mxu1 }
 0x1ec   : > { %v2643_v5 = vpop.f32.mrf.mxu0 }
 0x1ed   : > { %v2671_v8 = vpop.f32.mrf.mxu1  ;;  %v2644_v9 = vadd.f32 %v2643_v5, %v2642_v2 }
 0x1ee   : > { %v2645_v10 = vpop.f32.mrf.mxu0  ;;  %v2672_v14 = vadd.f32 %v2671_v8, %v2670_v3 }
 0x1ef   : > { %v2673_v11 = vpop.f32.mrf.mxu1  ;;  %v1985_v13 = vadd.f32 %v2644_v9, %v860_v4 }
 0x1f0   : > { %v2646_v15 = vpop.f32.mrf.mxu0 }
 0x1f1   : > { %v2674_v16 = vpop.f32.mrf.mxu1  ;;  %v2034_v18 = vadd.f32 %v2672_v14, %v1985_v13  ;;  %v2647_v19 = vadd.f32 %v2646_v15, %v2645_v10 }
 0x1f2   : > { %v2648_v20 = vpop.f32.mrf.mxu0  ;;  %v2675_v23 = vadd.f32 %v2674_v16, %v2673_v11 }
 0x1f3   : > { %v2676_v21 = vpop.f32.mrf.mxu1  ;;  %v2615_v49 = vpack.c.bf16 %v2034_v18, %v2034_v18  ;;  %v1988_v22 = vadd.f32 %v2647_v19, %v860_v4 }
 0x1f4   : > { %v2649_v24 = vpop.f32.mrf.mxu0 }
 0x1f5   : > { %v2677_v7 = vpop.f32.mrf.mxu1  ;;  %2114 = vst [vmem:[%s3705_s11 + $0x10] sm:$0xf] %v2615_v49  ;;  %v2037_v25 = vadd.f32 %v2675_v23, %v1988_v22  ;;  %v2650_v27 = vadd.f32 %v2649_v24, %v2648_v20 }
 0x1f6   : > { %v2651_v28 = vpop.f32.mrf.mxu0  ;;  %v2678_v32 = vadd.f32 %v2677_v7, %v2676_v21 }
 0x1f7   : > { %v2679_v29 = vpop.f32.mrf.mxu1  ;;  %v2618_v30 = vpack.c.bf16 %v2037_v25, %v2037_v25  ;;  %v1993_v0 = vadd.f32 %v2650_v27, %v860_v4 }
 0x1f8   : > { %v2652_v33 = vpop.f32.mrf.mxu0 }
 0x1f9   : > { %v2680_v34 = vpop.f32.mrf.mxu1  ;;  %2117 = vst [vmem:[%s3705_s11 + $0x24] sm:$0xf] %v2618_v30  ;;  %v2042_v35 = vadd.f32 %v2678_v32, %v1993_v0  ;;  %v2653_v36 = vadd.f32 %v2652_v33, %v2651_v28 }
 0x1fa   : > { %v2681_v39 = vadd.f32 %v2680_v34, %v2679_v29 }
 0x1fb   : > { %v2621_v37 = vpack.c.bf16 %v2042_v35, %v2042_v35  ;;  %v1996_v38 = vadd.f32 %v2653_v36, %v860_v4 }
 0x1fc   : > { %v2602_v6 = vld [vmem:[%s3705_s11 + $0x10] sm:$0xf] (%p3057_p6) }
 0x1fd   : > { %2120 = vst [vmem:[%s3705_s11 + $0x38] sm:$0xf] %v2621_v37  ;;  %v2045_v40 = vadd.f32 %v2681_v39, %v1996_v38  ;;  %2130 = sbr.rel (!%p3057_p6) target bundleno = 522 (0x20a), region = 62  ;;  %2603 = vst [vmem:[%s2136_s18 + $0x10] sm:$0xf] (%p3057_p6), %v2602_v6 }
 0x1ff   : > { %v2624_v1 = vpack.c.bf16 %v2045_v40, %v2045_v40 }
 0x200   : > { %v2604_v12 = vld [vmem:[%s3705_s11 + $0x24] sm:$0xf] (%p3057_p6) }
 0x201   : > { %2123 = vst [vmem:[%s3705_s11 + $0x4c] sm:$0xf] %v2624_v1  ;;  %2605 = vst [vmem:[%s2136_s18 + $0x38] sm:$0xf] (%p3057_p6), %v2604_v12 }
 0x204   : > { %v2606_v17 = vld [vmem:[%s3705_s11 + $0x38] sm:$0xf] }
 0x205   : > { %2607 = vst [vmem:[%s2136_s18 + $0x60] sm:$0xf] %v2606_v17 }
 0x208   : > { %v2608_v26 = vld [vmem:[%s3705_s11 + $0x4c] sm:$0xf] }
 0x209   : > { %2609 = vst [vmem:[%s2136_s18 + $0x88] sm:$0xf] %v2608_v26 }
 0x20a PF: > { %s13_s16 = sadd.s32 1, %s3000_s16   ;;  %s3763_s12 = smov %s2988_s13 }
 0x20b   : > { %p10_p12 = scmp.ge.s32.totalorder %s13_s16, 4   ;;  %s3764_s13 = smov %s3062_s22 }
 0x20c   : > { %s3765_s14 = smov %s2996_s15  ;;  %s3766_s15 = smov %s3768_s17 }
 0x20d   :  { %12 = sbr.rel (!%p10_p12) target bundleno = 3 (0x3), region = 137 }

// kernel: timm_cnn_encoder_forward.64
= control target key start
LH: loop header
LB: loop body
LE: loop exit
PB: predicated region body
PF: predicated region fallthrough
CT: control target
= control target key end

     0   :  { %s1391_s15 = smov 0   ;;  %s1393_s16 = smov 0   ;;  %s1677_s0 = inlined_call_operand.vmem [shape: bf16[8,256], index: 0, kind: input, shape index: {}]   ;;  %s1678_s1 = inlined_call_operand.vmem [shape: bf16[256,1024], index: 1, kind: input, shape index: {}]   ;;  %s1679_s2 = inlined_call_operand.vmem [shape: f32[1,1024], index: 2, kind: input, shape index: {}]   ;;  %s1680_s3 = inlined_call_operand.vmem [shape: bf16[8,1024], index: 3, kind: input, shape index: {}]   ;;  %s1681_s4 = inlined_call_operand.vmem [shape: bf16[8,1024], index: 4, kind: output, shape index: {}]  }
   0x1   :  { %s1395_s17 = smov 0   ;;  %s1397_s18 = smov 0  }
   0x2   :  { %s1399_s19 = smov 0  }
   0x3 LB: > { %s23_s20 = sadd.s32 1, %s1360_s18  ;;  %p66_p1 = scmp.ne.s32.totalorder %s1352_s16, %s1348_s15  ;;  %s1364_s19 = sphi %s1399_s19, %s14_s19   ;;  %s1360_s18 = sphi %s1397_s18, %s1685_s18   ;;  %s1356_s17 = sphi %s1395_s17, %s1684_s17   ;;  %s1352_s16 = sphi %s1393_s16, %s1683_s16   ;;  %s1348_s15 = sphi %s1391_s15, %s1682_s15  }
   0x4   : > { %p24_p0 = scmp.ge.s32.totalorder %s23_s20, 2  ;;  %p67_p2 = scmp.eq.s32.totalorder %s1364_s19, 0 }
   0x5   : > { %s59_s22 = sadd.s32 1, %s1352_s16  ;;  %p1104_p5 = scmp.ge.s32.totalorder %s1364_s19, 2 }
   0x6   : > { %s1687_s20 = smov (%p24_p0, %s23_s20), 0  ;;  %p68_p3 = por %p67_p2, %p66_p1 }
   0x7   : > { %s56_s21 = ssub.s32 %s1360_s18, %s1687_s20  ;;  %182 = sbr.rel (%p1104_p5) target bundleno = 48 (0x30), region = 20 }
   0x8   : > { %p57_p4 = scmp.eq.s32.totalorder %s56_s21, 0 }
   0xa   : > { %s1426_s23 = scalar_select %p57_p4, %s1352_s16, %s59_s22  }
   0xc   : > { %185 = sbr.rel (!%p68_p3) target bundleno = 48 (0x30), region = 24  ;;  %s187_s24 = sand.u32 (%p68_p3), 1, %s1352_s16  }
   0xd   : > { %s1185_s25 = sshll.u32 (%p68_p3), %s1360_s18, 4  ;;  %s1105_s26 = sshll.u32 (%p68_p3), %s187_s24, 9 }
   0xe   : > { %s1434_s29 = scalar_lea.vmem (%p68_p3), %s1678_s1, %s1185_s25  ;;  %s1439_s30 = scalar_lea.vmem (%p68_p3), [#allocation2], %s1105_s26 }
   0xf   : > { %v205_v0 = vld [vmem:[%s1434_s29] sm:$0xff] (%p68_p3)  ;;  %v207_v1 = vld [vmem:[%s1434_s29 + $0x8] sm:$0xff] (%p68_p3) }
  0x10   : > { %v209_v2 = vld [vmem:[%s1434_s29 + $0x20] sm:$0xff] (%p68_p3)  ;;  %206 = vst [vmem:[%s1439_s30] sm:$0xff] (%p68_p3), %v205_v0  ;;  %208 = vst [vmem:[%s1439_s30 + $0x8] sm:$0xff] (%p68_p3), %v207_v1  ;;  %v211_v3 = vld [vmem:[%s1434_s29 + $0x28] sm:$0xff] (%p68_p3) }
  0x11   : > { %210 = vst [vmem:[%s1439_s30 + $0x10] sm:$0xff] %v209_v2  ;;  %v213_v4 = vld [vmem:[%s1434_s29 + $0x40] sm:$0xff]  ;;  %v215_v5 = vld [vmem:[%s1434_s29 + $0x48] sm:$0xff]  ;;  %212 = vst [vmem:[%s1439_s30 + $0x18] sm:$0xff] %v211_v3 }
  0x12   : > { %214 = vst [vmem:[%s1439_s30 + $0x20] sm:$0xff] %v213_v4  ;;  %216 = vst [vmem:[%s1439_s30 + $0x28] sm:$0xff] %v215_v5  ;;  %v217_v6 = vld [vmem:[%s1434_s29 + $0x60] sm:$0xff]  ;;  %v219_v7 = vld [vmem:[%s1434_s29 + $0x68] sm:$0xff] }
  0x13   : > { %v221_v8 = vld [vmem:[%s1434_s29 + $0x80] sm:$0xff]  ;;  %218 = vst [vmem:[%s1439_s30 + $0x30] sm:$0xff] %v217_v6  ;;  %220 = vst [vmem:[%s1439_s30 + $0x38] sm:$0xff] %v219_v7  ;;  %v223_v9 = vld [vmem:[%s1434_s29 + $0x88] sm:$0xff] }
  0x14   : > { %222 = vst [vmem:[%s1439_s30 + $0x40] sm:$0xff] %v221_v8  ;;  %v225_v10 = vld [vmem:[%s1434_s29 + $0xa0] sm:$0xff]  ;;  %v227_v11 = vld [vmem:[%s1434_s29 + $0xa8] sm:$0xff]  ;;  %224 = vst [vmem:[%s1439_s30 + $0x48] sm:$0xff] %v223_v9 }
  0x15   : > { %226 = vst [vmem:[%s1439_s30 + $0x50] sm:$0xff] %v225_v10  ;;  %228 = vst [vmem:[%s1439_s30 + $0x58] sm:$0xff] %v227_v11  ;;  %v229_v12 = vld [vmem:[%s1434_s29 + $0xc0] sm:$0xff]  ;;  %v231_v13 = vld [vmem:[%s1434_s29 + $0xc8] sm:$0xff] }
  0x16   : > { %v233_v14 = vld [vmem:[%s1434_s29 + $0xe0] sm:$0xff]  ;;  %230 = vst [vmem:[%s1439_s30 + $0x60] sm:$0xff] %v229_v12  ;;  %232 = vst [vmem:[%s1439_s30 + $0x68] sm:$0xff] %v231_v13  ;;  %v235_v15 = vld [vmem:[%s1434_s29 + $0xe8] sm:$0xff] }
  0x17   : > { %234 = vst [vmem:[%s1439_s30 + $0x70] sm:$0xff] %v233_v14  ;;  %v237_v16 = vld [vmem:[%s1434_s29 + $0x100] sm:$0xff]  ;;  %v239_v17 = vld [vmem:[%s1434_s29 + $0x108] sm:$0xff]  ;;  %236 = vst [vmem:[%s1439_s30 + $0x78] sm:$0xff] %v235_v15 }
  0x18   : > { %238 = vst [vmem:[%s1439_s30 + $0x80] sm:$0xff] %v237_v16  ;;  %240 = vst [vmem:[%s1439_s30 + $0x88] sm:$0xff] %v239_v17  ;;  %v241_v18 = vld [vmem:[%s1434_s29 + $0x120] sm:$0xff]  ;;  %v243_v19 = vld [vmem:[%s1434_s29 + $0x128] sm:$0xff] }
  0x19   : > { %v245_v20 = vld [vmem:[%s1434_s29 + $0x140] sm:$0xff]  ;;  %242 = vst [vmem:[%s1439_s30 + $0x90] sm:$0xff] %v241_v18  ;;  %244 = vst [vmem:[%s1439_s30 + $0x98] sm:$0xff] %v243_v19  ;;  %v247_v21 = vld [vmem:[%s1434_s29 + $0x148] sm:$0xff] }
  0x1a   : > { %246 = vst [vmem:[%s1439_s30 + $0xa0] sm:$0xff] %v245_v20  ;;  %v249_v22 = vld [vmem:[%s1434_s29 + $0x160] sm:$0xff]  ;;  %v251_v23 = vld [vmem:[%s1434_s29 + $0x168] sm:$0xff]  ;;  %248 = vst [vmem:[%s1439_s30 + $0xa8] sm:$0xff] %v247_v21 }
  0x1b   : > { %250 = vst [vmem:[%s1439_s30 + $0xb0] sm:$0xff] %v249_v22  ;;  %252 = vst [vmem:[%s1439_s30 + $0xb8] sm:$0xff] %v251_v23  ;;  %v253_v24 = vld [vmem:[%s1434_s29 + $0x180] sm:$0xff]  ;;  %v255_v25 = vld [vmem:[%s1434_s29 + $0x188] sm:$0xff] }
  0x1c   : > { %v257_v26 = vld [vmem:[%s1434_s29 + $0x1a0] sm:$0xff]  ;;  %254 = vst [vmem:[%s1439_s30 + $0xc0] sm:$0xff] %v253_v24  ;;  %256 = vst [vmem:[%s1439_s30 + $0xc8] sm:$0xff] %v255_v25  ;;  %v259_v27 = vld [vmem:[%s1434_s29 + $0x1a8] sm:$0xff] }
  0x1d   : > { %258 = vst [vmem:[%s1439_s30 + $0xd0] sm:$0xff] %v257_v26  ;;  %v261_v28 = vld [vmem:[%s1434_s29 + $0x1c0] sm:$0xff]  ;;  %v263_v29 = vld [vmem:[%s1434_s29 + $0x1c8] sm:$0xff]  ;;  %260 = vst [vmem:[%s1439_s30 + $0xd8] sm:$0xff] %v259_v27 }
  0x1e   : > { %262 = vst [vmem:[%s1439_s30 + $0xe0] sm:$0xff] %v261_v28  ;;  %264 = vst [vmem:[%s1439_s30 + $0xe8] sm:$0xff] %v263_v29  ;;  %v265_v30 = vld [vmem:[%s1434_s29 + $0x1e0] sm:$0xff]  ;;  %v267_v31 = vld [vmem:[%s1434_s29 + $0x1e8] sm:$0xff] }
  0x1f   : > { %v269_v32 = vld [vmem:[%s1434_s29 + $0x200] sm:$0xff]  ;;  %266 = vst [vmem:[%s1439_s30 + $0xf0] sm:$0xff] %v265_v30  ;;  %268 = vst [vmem:[%s1439_s30 + $0xf8] sm:$0xff] %v267_v31  ;;  %v271_v33 = vld [vmem:[%s1434_s29 + $0x208] sm:$0xff] }
  0x20   : > { %270 = vst [vmem:[%s1439_s30 + $0x100] sm:$0xff] %v269_v32  ;;  %v273_v34 = vld [vmem:[%s1434_s29 + $0x220] sm:$0xff]  ;;  %v275_v35 = vld [vmem:[%s1434_s29 + $0x228] sm:$0xff]  ;;  %272 = vst [vmem:[%s1439_s30 + $0x108] sm:$0xff] %v271_v33 }
  0x21   : > { %274 = vst [vmem:[%s1439_s30 + $0x110] sm:$0xff] %v273_v34  ;;  %276 = vst [vmem:[%s1439_s30 + $0x118] sm:$0xff] %v275_v35  ;;  %v277_v36 = vld [vmem:[%s1434_s29 + $0x240] sm:$0xff]  ;;  %v279_v37 = vld [vmem:[%s1434_s29 + $0x248] sm:$0xff] }
  0x22   : > { %v281_v38 = vld [vmem:[%s1434_s29 + $0x260] sm:$0xff]  ;;  %278 = vst [vmem:[%s1439_s30 + $0x120] sm:$0xff] %v277_v36  ;;  %280 = vst [vmem:[%s1439_s30 + $0x128] sm:$0xff] %v279_v37  ;;  %v283_v39 = vld [vmem:[%s1434_s29 + $0x268] sm:$0xff] }
  0x23   : > { %282 = vst [vmem:[%s1439_s30 + $0x130] sm:$0xff] %v281_v38  ;;  %v285_v40 = vld [vmem:[%s1434_s29 + $0x280] sm:$0xff]  ;;  %v287_v41 = vld [vmem:[%s1434_s29 + $0x288] sm:$0xff]  ;;  %284 = vst [vmem:[%s1439_s30 + $0x138] sm:$0xff] %v283_v39 }
  0x24   : > { %286 = vst [vmem:[%s1439_s30 + $0x140] sm:$0xff] %v285_v40  ;;  %288 = vst [vmem:[%s1439_s30 + $0x148] sm:$0xff] %v287_v41  ;;  %v289_v42 = vld [vmem:[%s1434_s29 + $0x2a0] sm:$0xff]  ;;  %v291_v43 = vld [vmem:[%s1434_s29 + $0x2a8] sm:$0xff] }
  0x25   : > { %v293_v44 = vld [vmem:[%s1434_s29 + $0x2c0] sm:$0xff]  ;;  %290 = vst [vmem:[%s1439_s30 + $0x150] sm:$0xff] %v289_v42  ;;  %292 = vst [vmem:[%s1439_s30 + $0x158] sm:$0xff] %v291_v43  ;;  %v295_v45 = vld [vmem:[%s1434_s29 + $0x2c8] sm:$0xff] }
  0x26   : > { %294 = vst [vmem:[%s1439_s30 + $0x160] sm:$0xff] %v293_v44  ;;  %v297_v46 = vld [vmem:[%s1434_s29 + $0x2e0] sm:$0xff]  ;;  %v299_v47 = vld [vmem:[%s1434_s29 + $0x2e8] sm:$0xff]  ;;  %296 = vst [vmem:[%s1439_s30 + $0x168] sm:$0xff] %v295_v45 }
  0x27   : > { %298 = vst [vmem:[%s1439_s30 + $0x170] sm:$0xff] %v297_v46  ;;  %300 = vst [vmem:[%s1439_s30 + $0x178] sm:$0xff] %v299_v47  ;;  %v301_v48 = vld [vmem:[%s1434_s29 + $0x300] sm:$0xff]  ;;  %v303_v49 = vld [vmem:[%s1434_s29 + $0x308] sm:$0xff] }
  0x28   : > { %v305_v50 = vld [vmem:[%s1434_s29 + $0x320] sm:$0xff]  ;;  %302 = vst [vmem:[%s1439_s30 + $0x180] sm:$0xff] %v301_v48  ;;  %304 = vst [vmem:[%s1439_s30 + $0x188] sm:$0xff] %v303_v49  ;;  %v307_v51 = vld [vmem:[%s1434_s29 + $0x328] sm:$0xff] }
  0x29   : > { %306 = vst [vmem:[%s1439_s30 + $0x190] sm:$0xff] %v305_v50  ;;  %v309_v52 = vld [vmem:[%s1434_s29 + $0x340] sm:$0xff]  ;;  %v311_v53 = vld [vmem:[%s1434_s29 + $0x348] sm:$0xff]  ;;  %308 = vst [vmem:[%s1439_s30 + $0x198] sm:$0xff] %v307_v51 }
  0x2a   : > { %310 = vst [vmem:[%s1439_s30 + $0x1a0] sm:$0xff] %v309_v52  ;;  %312 = vst [vmem:[%s1439_s30 + $0x1a8] sm:$0xff] %v311_v53  ;;  %v313_v54 = vld [vmem:[%s1434_s29 + $0x360] sm:$0xff]  ;;  %v315_v55 = vld [vmem:[%s1434_s29 + $0x368] sm:$0xff] }
  0x2b   : > { %v317_v56 = vld [vmem:[%s1434_s29 + $0x380] sm:$0xff]  ;;  %314 = vst [vmem:[%s1439_s30 + $0x1b0] sm:$0xff] %v313_v54  ;;  %316 = vst [vmem:[%s1439_s30 + $0x1b8] sm:$0xff] %v315_v55  ;;  %v319_v57 = vld [vmem:[%s1434_s29 + $0x388] sm:$0xff] }
  0x2c   : > { %318 = vst [vmem:[%s1439_s30 + $0x1c0] sm:$0xff] %v317_v56  ;;  %v321_v58 = vld [vmem:[%s1434_s29 + $0x3a0] sm:$0xff]  ;;  %v323_v59 = vld [vmem:[%s1434_s29 + $0x3a8] sm:$0xff]  ;;  %320 = vst [vmem:[%s1439_s30 + $0x1c8] sm:$0xff] %v319_v57 }
  0x2d   : > { %322 = vst [vmem:[%s1439_s30 + $0x1d0] sm:$0xff] %v321_v58  ;;  %324 = vst [vmem:[%s1439_s30 + $0x1d8] sm:$0xff] %v323_v59  ;;  %v325_v60 = vld [vmem:[%s1434_s29 + $0x3c0] sm:$0xff]  ;;  %v327_v61 = vld [vmem:[%s1434_s29 + $0x3c8] sm:$0xff] }
  0x2e   : > { %v329_v62 = vld [vmem:[%s1434_s29 + $0x3e0] sm:$0xff]  ;;  %326 = vst [vmem:[%s1439_s30 + $0x1e0] sm:$0xff] %v325_v60  ;;  %328 = vst [vmem:[%s1439_s30 + $0x1e8] sm:$0xff] %v327_v61  ;;  %v331_v63 = vld [vmem:[%s1434_s29 + $0x3e8] sm:$0xff] }
  0x2f   : > { %330 = vst [vmem:[%s1439_s30 + $0x1f0] sm:$0xff] %v329_v62  ;;  %332 = vst [vmem:[%s1439_s30 + $0x1f8] sm:$0xff] %v331_v63 }
  0x30 PF: > { %p1108_p6 = scmp.ge.s32.totalorder %s1364_s19, 1  ;;  %p358_p7 = scmp.lt.s32.totalorder %s1364_s19, 3 }
  0x32   : > { %p359_p8 = pnand %p1108_p6, %p358_p7 }
  0x33   : > { %s365_s5 = sand.u32 (!%p359_p8), 1, %s1348_s15   ;;  %s1110_s10 = sshll.u32 (!%p359_p8), %s1356_s17, 2 }
  0x34   : > { %362 = sbr.rel (%p359_p8) target bundleno = 328 (0x148), region = 55  ;;  %s1109_s8 = sshll.u32 (!%p359_p8), %s365_s5, 9 }
  0x35   : > { %s1576_s9 = scalar_lea.vmem (!%p359_p8), [#allocation2], %s1109_s8  ;;  %p419_p9 = scmp.lt.s32.totalorder (!%p359_p8), %s1110_s10, 7 }
  0x39   : > { %v1572_v0 = vld [vmem:[%s1677_s0] sm:$0xff]  ;;  %v1230_v3 = vld [vmem:[%s1576_s9 + $0xec] ss:$16 sps:$4 sm:$0xff]   ;;  %v1233_v5 = vld [vmem:[%s1576_s9 + $0xe8] ss:$16 sps:$4 sm:$0xff]   ;;  %s1689_s10 = smov (!%p419_p9, %s1110_s10), 7 }
  0x3a   : > { %v1116_v1 = vcombine.high %v1572_v0, %v1572_v0  ;;  %v1228_v2 = vld [vmem:[%s1576_s9 + $0xe4] ss:$16 sps:$4 sm:$0xff]   ;;  %v1232_v4 = vld [vmem:[%s1576_s9 + $0xe0] ss:$16 sps:$4 sm:$0xff]   ;;  %898 = vmatprep.subr.bf16.mxu1 %v1230_v3  ;;  %v1236_v7 = vld [vmem:[%s1576_s9 + $0xcc] ss:$16 sps:$4 sm:$0xff]   ;;  %v1115_v3 = vcombine.low %v1572_v0, %v1572_v0  ;;  %s421_s14 = scalar_lea.vmem %s1679_s2, %s1689_s10 }
  0x3b   : > { %857 = vmatprep.subr.bf16.mxu0 %v1228_v2  ;;  %v1234_v6 = vld [vmem:[%s1576_s9 + $0xc4] ss:$16 sps:$4 sm:$0xff]   ;;  %899 = vmatpush1.bf16.msra.mxu1 %v1233_v5  ;;  %v1238_v8 = vld [vmem:[%s1576_s9 + $0xc0] ss:$16 sps:$4 sm:$0xff]   ;;  %v1239_v9 = vld [vmem:[%s1576_s9 + $0xc8] ss:$16 sps:$4 sm:$0xff]  }
  0x3c   : > { %889 = vmatprep.mubr.bf16.mxu0 %v1116_v1  ;;  %930 = vmatprep.mubr.bf16.mxu1 %v1116_v1  ;;  %v1240_v10 = vld [vmem:[%s1576_s9 + $0xa4] ss:$16 sps:$4 sm:$0xff]   ;;  %v1242_v11 = vld [vmem:[%s1576_s9 + $0xac] ss:$16 sps:$4 sm:$0xff]   ;;  %v1244_v12 = vld [vmem:[%s1576_s9 + $0xa0] ss:$16 sps:$4 sm:$0xff]  }
  0x3d   : > { %858 = vmatpush1.bf16.msra.mxu0 %v1232_v4  ;;  %900 = vmatprep.subr.bf16.mxu1 %v1236_v7  ;;  %v1245_v13 = vld [vmem:[%s1576_s9 + $0xa8] ss:$16 sps:$4 sm:$0xff]   ;;  %v1246_v14 = vld [vmem:[%s1576_s9 + $0x84] ss:$16 sps:$4 sm:$0xff]   ;;  %v1248_v15 = vld [vmem:[%s1576_s9 + $0x8c] ss:$16 sps:$4 sm:$0xff]   ;;  %v510_v4 = vlaneseq }
  0x3e   : > { %859 = vmatprep.subr.bf16.mxu0 %v1234_v6  ;;  %v1250_v16 = vld [vmem:[%s1576_s9 + $0x80] ss:$16 sps:$4 sm:$0xff]   ;;  %v1251_v17 = vld [vmem:[%s1576_s9 + $0x88] ss:$16 sps:$4 sm:$0xff]   ;;  %v1252_v18 = vld [vmem:[%s1576_s9 + $0x64] ss:$16 sps:$4 sm:$0xff]  }
  0x3f   : > { %901 = vmatpush1.bf16.msra.mxu1 %v1239_v9  ;;  %v1254_v19 = vld [vmem:[%s1576_s9 + $0x6c] ss:$16 sps:$4 sm:$0xff]   ;;  %v1256_v20 = vld [vmem:[%s1576_s9 + $0x60] ss:$16 sps:$4 sm:$0xff]   ;;  %v1257_v21 = vld [vmem:[%s1576_s9 + $0x68] ss:$16 sps:$4 sm:$0xff]  }
  0x40   : > { %902 = vmatprep.subr.bf16.mxu1 %v1242_v11  ;;  %v1258_v22 = vld [vmem:[%s1576_s9 + $0x44] ss:$16 sps:$4 sm:$0xff]   ;;  %v1260_v23 = vld [vmem:[%s1576_s9 + $0x4c] ss:$16 sps:$4 sm:$0xff]   ;;  %v1262_v24 = vld [vmem:[%s1576_s9 + $0x40] ss:$16 sps:$4 sm:$0xff]  }
  0x41   : > { %860 = vmatpush1.bf16.msra.mxu0 %v1238_v8  ;;  %v1263_v25 = vld [vmem:[%s1576_s9 + $0x48] ss:$16 sps:$4 sm:$0xff]   ;;  %v1264_v26 = vld [vmem:[%s1576_s9 + $0x24] ss:$16 sps:$4 sm:$0xff]   ;;  %v1266_v27 = vld [vmem:[%s1576_s9 + $0x2c] ss:$16 sps:$4 sm:$0xff]  }
  0x42   : > { %861 = vmatprep.subr.bf16.mxu0 %v1240_v10  ;;  %v1268_v28 = vld [vmem:[%s1576_s9 + $0x20] ss:$16 sps:$4 sm:$0xff]   ;;  %v1269_v29 = vld [vmem:[%s1576_s9 + $0x28] ss:$16 sps:$4 sm:$0xff]   ;;  %v1270_v30 = vld [vmem:[%s1576_s9 + $0x4] ss:$16 sps:$4 sm:$0xff]  }
  0x43   : > { %903 = vmatpush1.bf16.msra.mxu1 %v1245_v13  ;;  %v1272_v31 = vld [vmem:[%s1576_s9 + $0xc] ss:$16 sps:$4 sm:$0xff]   ;;  %v1274_v32 = vld [vmem:[%s1576_s9] ss:$16 sps:$4 sm:$0xff]   ;;  %v1275_v33 = vld [vmem:[%s1576_s9 + $0x8] ss:$16 sps:$4 sm:$0xff]  }
  0x44   : > { %904 = vmatprep.subr.bf16.mxu1 %v1248_v15  ;;  %v1276_v34 = vld [vmem:[%s1576_s9 + $0x1e4] ss:$16 sps:$4 sm:$0xff]   ;;  %v1278_v35 = vld [vmem:[%s1576_s9 + $0x1ec] ss:$16 sps:$4 sm:$0xff]   ;;  %v1280_v36 = vld [vmem:[%s1576_s9 + $0x1e0] ss:$16 sps:$4 sm:$0xff]  }
  0x45   : > { %862 = vmatpush1.bf16.msra.mxu0 %v1244_v12  ;;  %v1281_v37 = vld [vmem:[%s1576_s9 + $0x1e8] ss:$16 sps:$4 sm:$0xff]   ;;  %v1282_v38 = vld [vmem:[%s1576_s9 + $0x1c4] ss:$16 sps:$4 sm:$0xff]   ;;  %v1284_v39 = vld [vmem:[%s1576_s9 + $0x1cc] ss:$16 sps:$4 sm:$0xff]  }
  0x46   : > { %863 = vmatprep.subr.bf16.mxu0 %v1246_v14  ;;  %v1286_v40 = vld [vmem:[%s1576_s9 + $0x1c0] ss:$16 sps:$4 sm:$0xff]   ;;  %v1287_v41 = vld [vmem:[%s1576_s9 + $0x1c8] ss:$16 sps:$4 sm:$0xff]   ;;  %v1288_v42 = vld [vmem:[%s1576_s9 + $0x1a4] ss:$16 sps:$4 sm:$0xff]  }
  0x47   : > { %905 = vmatpush1.bf16.msra.mxu1 %v1251_v17  ;;  %v1290_v43 = vld [vmem:[%s1576_s9 + $0x1ac] ss:$16 sps:$4 sm:$0xff]   ;;  %v1292_v44 = vld [vmem:[%s1576_s9 + $0x1a0] ss:$16 sps:$4 sm:$0xff]   ;;  %v1293_v45 = vld [vmem:[%s1576_s9 + $0x1a8] ss:$16 sps:$4 sm:$0xff]  }
  0x48   : > { %906 = vmatprep.subr.bf16.mxu1 %v1254_v19  ;;  %v1294_v46 = vld [vmem:[%s1576_s9 + $0x184] ss:$16 sps:$4 sm:$0xff]   ;;  %v1296_v47 = vld [vmem:[%s1576_s9 + $0x18c] ss:$16 sps:$4 sm:$0xff]   ;;  %v1298_v48 = vld [vmem:[%s1576_s9 + $0x180] ss:$16 sps:$4 sm:$0xff]  }
  0x49   : > { %864 = vmatpush1.bf16.msra.mxu0 %v1250_v16  ;;  %v1299_v49 = vld [vmem:[%s1576_s9 + $0x188] ss:$16 sps:$4 sm:$0xff]   ;;  %v1300_v50 = vld [vmem:[%s1576_s9 + $0x164] ss:$16 sps:$4 sm:$0xff]   ;;  %v1302_v51 = vld [vmem:[%s1576_s9 + $0x16c] ss:$16 sps:$4 sm:$0xff]  }
  0x4a   : > { %865 = vmatprep.subr.bf16.mxu0 %v1252_v18  ;;  %v1304_v52 = vld [vmem:[%s1576_s9 + $0x160] ss:$16 sps:$4 sm:$0xff]   ;;  %v1305_v53 = vld [vmem:[%s1576_s9 + $0x168] ss:$16 sps:$4 sm:$0xff]   ;;  %v1306_v54 = vld [vmem:[%s1576_s9 + $0x144] ss:$16 sps:$4 sm:$0xff]  }
  0x4b   : > { %907 = vmatpush1.bf16.msra.mxu1 %v1257_v21  ;;  %v1308_v55 = vld [vmem:[%s1576_s9 + $0x14c] ss:$16 sps:$4 sm:$0xff]   ;;  %v1310_v56 = vld [vmem:[%s1576_s9 + $0x140] ss:$16 sps:$4 sm:$0xff]   ;;  %v1311_v57 = vld [vmem:[%s1576_s9 + $0x148] ss:$16 sps:$4 sm:$0xff]  }
  0x4c   : > { %908 = vmatprep.subr.bf16.mxu1 %v1260_v23  ;;  %v1312_v58 = vld [vmem:[%s1576_s9 + $0x124] ss:$16 sps:$4 sm:$0xff]   ;;  %v1314_v59 = vld [vmem:[%s1576_s9 + $0x12c] ss:$16 sps:$4 sm:$0xff]   ;;  %v1316_v60 = vld [vmem:[%s1576_s9 + $0x120] ss:$16 sps:$4 sm:$0xff]  }
  0x4d   : > { %866 = vmatpush1.bf16.msra.mxu0 %v1256_v20  ;;  %v1317_v61 = vld [vmem:[%s1576_s9 + $0x128] ss:$16 sps:$4 sm:$0xff]   ;;  %v1318_v62 = vld [vmem:[%s1576_s9 + $0x104] ss:$16 sps:$4 sm:$0xff]   ;;  %v1320_v63 = vld [vmem:[%s1576_s9 + $0x10c] ss:$16 sps:$4 sm:$0xff]  }
  0x4e   : > { %867 = vmatprep.subr.bf16.mxu0 %v1258_v22  ;;  %v1322_v1 = vld [vmem:[%s1576_s9 + $0x100] ss:$16 sps:$4 sm:$0xff]   ;;  %v1323_v2 = vld [vmem:[%s1576_s9 + $0x108] ss:$16 sps:$4 sm:$0xff]   ;;  %v511_v5 = vshrl.u32 %v510_v4, 7  ;;  %s1112_s11 = sshll.u32 %s1689_s10, 2 }
  0x4f   : > { %909 = vmatpush1.bf16.msra.mxu1 %v1263_v25  ;;  %s431_s22 = scalar_lea.vmem %s1680_s3, %s1112_s11  ;;  %v508_v7 = vld [vmem:[%s421_s14] sm:$0xf]  ;;  %s441_s25 = scalar_lea.vmem %s1681_s4, %s1112_s11 }
  0x50   : > { %910 = vmatprep.subr.bf16.mxu1 %v1266_v27  ;;  %v512_v0 = vsub.s32 0, %v511_v5  ;;  %v520_v6 = vsub.s32 2, %v511_v5  ;;  %v516_v8 = vsub.s32 1, %v511_v5  ;;  %v524_v9 = vsub.s32 3, %v511_v5  ;;  %v939_v10 = vld [vmem:[%s431_s22] sm:$0xff]  ;;  %v940_v11 = vld [vmem:[%s431_s22 + $0x8] sm:$0xff] }
  0x51   : > { %868 = vmatpush1.bf16.msra.mxu0 %v1262_v24  ;;  %v941_v14 = vunpack.c.l.bf16 %v939_v10  ;;  %v943_v15 = vunpack.c.l.bf16 %v940_v11  ;;  %v942_v22 = vunpack.c.h.bf16 %v939_v10  ;;  %v944_v23 = vunpack.c.h.bf16 %v940_v11 }
  0x52   : > { %869 = vmatprep.subr.bf16.mxu0 %v1264_v26  ;;  %v513_v12 = vrot.slane %v508_v7, %v512_v0  ;;  %v521_v13 = vrot.slane %v508_v7, %v520_v6  ;;  %v517_v16 = vrot.slane %v508_v7, %v516_v8  ;;  %v525_v17 = vrot.slane %v508_v7, %v524_v9 }
  0x53   : > { %911 = vmatpush1.bf16.msra.mxu1 %v1269_v29 }
  0x54   : > { %912 = vmatprep.subr.bf16.mxu1 %v1272_v31 }
  0x55   : > { %870 = vmatpush1.bf16.msra.mxu0 %v1268_v28 }
  0x56   : > { %871 = vmatprep.subr.bf16.mxu0 %v1270_v30 }
  0x57   : > { %913 = vmatpush1.bf16.msra.mxu1 %v1275_v33 }
  0x58   : > { %914 = vmatprep.subr.bf16.mxu1 %v1278_v35 }
  0x59   : > { %872 = vmatpush1.bf16.msra.mxu0 %v1274_v32 }
  0x5a   : > { %873 = vmatprep.subr.bf16.mxu0 %v1276_v34 }
  0x5b   : > { %915 = vmatpush2.bf16.msra.mxu1 %v1281_v37 }
  0x5c   : > { %916 = vmatprep.subr.bf16.mxu1 %v1284_v39 }
  0x5d   : > { %874 = vmatpush2.bf16.msra.mxu0 %v1280_v36 }
  0x5e   : > { %875 = vmatprep.subr.bf16.mxu0 %v1282_v38 }
  0x5f   : > { %917 = vmatpush2.bf16.msra.mxu1 %v1287_v41 }
  0x60   : > { %918 = vmatprep.subr.bf16.mxu1 %v1290_v43 }
  0x61   : > { %876 = vmatpush2.bf16.msra.mxu0 %v1286_v40 }
  0x62   : > { %877 = vmatprep.subr.bf16.mxu0 %v1288_v42 }
  0x63   : > { %919 = vmatpush2.bf16.msra.mxu1 %v1293_v45 }
  0x64   : > { %920 = vmatprep.subr.bf16.mxu1 %v1296_v47 }
  0x65   : > { %878 = vmatpush2.bf16.msra.mxu0 %v1292_v44 }
  0x66   : > { %879 = vmatprep.subr.bf16.mxu0 %v1294_v46 }
  0x67   : > { %921 = vmatpush2.bf16.msra.mxu1 %v1299_v49 }
  0x68   : > { %922 = vmatprep.subr.bf16.mxu1 %v1302_v51 }
  0x69   : > { %880 = vmatpush2.bf16.msra.mxu0 %v1298_v48 }
  0x6a   : > { %881 = vmatprep.subr.bf16.mxu0 %v1300_v50 }
  0x6b   : > { %923 = vmatpush2.bf16.msra.mxu1 %v1305_v53 }
  0x6c   : > { %924 = vmatprep.subr.bf16.mxu1 %v1308_v55 }
  0x6d   : > { %882 = vmatpush2.bf16.msra.mxu0 %v1304_v52 }
  0x6e   : > { %883 = vmatprep.subr.bf16.mxu0 %v1306_v54 }
  0x6f   : > { %925 = vmatpush2.bf16.msra.mxu1 %v1311_v57 }
  0x70   : > { %926 = vmatprep.subr.bf16.mxu1 %v1314_v59 }
  0x71   : > { %884 = vmatpush2.bf16.msra.mxu0 %v1310_v56 }
  0x72   : > { %885 = vmatprep.subr.bf16.mxu0 %v1312_v58 }
  0x73   : > { %927 = vmatpush2.bf16.msra.mxu1 %v1317_v61 }
  0x74   : > { %928 = vmatprep.subr.bf16.mxu1 %v1320_v63 }
  0x75   : > { %886 = vmatpush2.bf16.msra.mxu0 %v1316_v60 }
  0x76   : > { %887 = vmatprep.subr.bf16.mxu0 %v1318_v62 }
  0x77   : > { %929 = vmatpush2.bf16.msra.mxu1 %v1323_v2 }
  0x79   : > { %888 = vmatpush2.bf16.msra.mxu0 %v1322_v1 }
  0x7a   : > { %931 = vmatmul.mubr.bf16.vlgmr.msra.gmra.mxu1 %v1115_v3 }
  0x7c   : > { %890 = vmatmul.mubr.bf16.vlgmr.msra.gmra.mxu0 %v1115_v3 }
 0x13a   : > { %v932_v19 = vpop.f32.mrf.mxu1 }
 0x13b   : > { %v933_v21 = vadd.f32 %v932_v19, %v521_v13 }
 0x13c   : > { %v891_v18 = vpop.f32.mrf.mxu0  ;;  %v934_v25 = vpop.f32.mrf.mxu1 }
 0x13d   : > { %v892_v20 = vadd.f32 %v891_v18, %v513_v12  ;;  %v947_v27 = vadd.f32 %v943_v15, %v933_v21  ;;  %v935_v29 = vadd.f32 %v934_v25, %v525_v17 }
 0x13e   : > { %v893_v24 = vpop.f32.mrf.mxu0  ;;  %v936_v31 = vpop.f32.mrf.mxu1 }
 0x13f   : > { %v945_v26 = vadd.f32 %v941_v14, %v892_v20  ;;  %v894_v28 = vadd.f32 %v893_v24, %v517_v16  ;;  %v951_v32 = vmax.f32 %v947_v27, 0.0  ;;  %v948_v34 = vadd.f32 %v944_v23, %v935_v29 }
 0x140   : > { %v895_v30 = vpop.f32.mrf.mxu0  ;;  %v937_v36 = vpop.f32.mrf.mxu1 }
 0x141   : > { %v946_v33 = vadd.f32 %v942_v22, %v894_v28  ;;  %v949_v37 = vmax.f32 %v945_v26, 0.0  ;;  %v952_v39 = vmax.f32 %v948_v34, 0.0 }
 0x142   : > { %v896_v35 = vpop.f32.mrf.mxu0 }
 0x143   : > { %v950_v38 = vmax.f32 %v946_v33, 0.0  ;;  %v1187_v41 = vpack.c.bf16 %v952_v39, %v951_v32 }
 0x145   : > { %v1186_v40 = vpack.c.bf16 %v950_v38, %v949_v37  ;;  %970 = vst [vmem:[%s441_s25 + $0x8] sm:$0xff] %v1187_v41 }
 0x147   : > { %969 = vst [vmem:[%s441_s25] sm:$0xff] %v1186_v40 }
 0x148 PF: > { %s14_s19 = sadd.s32 1, %s1364_s19   ;;  %s1682_s15 = smov %s1352_s16 }
 0x149   : > { %p11_p10 = scmp.ge.s32.totalorder %s14_s19, 4   ;;  %s1683_s16 = smov %s1426_s23 }
 0x14a   : > { %s1684_s17 = smov %s1360_s18  ;;  %s1685_s18 = smov %s1687_s20 }
 0x14b   :  { %13 = sbr.rel (!%p11_p10) target bundleno = 3 (0x3), region = 103 }

// kernel: timm_cnn_encoder_forward.65
= control target key start
LH: loop header
LB: loop body
LE: loop exit
PB: predicated region body
PF: predicated region fallthrough
CT: control target
= control target key end

     0   :  { %s1777_s1 = inlined_call_operand.vmem [shape: bf16[1024,256], index: 1, kind: input, shape index: {}]   ;;  %s1778_s0 = inlined_call_operand.vmem [shape: bf16[8,1024], index: 0, kind: input, shape index: {}]   ;;  %s1779_s2 = inlined_call_operand.vmem [shape: f32[1,256], index: 2, kind: input, shape index: {}]   ;;  %s1780_s3 = inlined_call_operand.vmem [shape: bf16[8,256], index: 3, kind: output, shape index: {}]  }
   0x1   :  { %v1143_v0 = vld [vmem:[%s1777_s1 + $0x74] ss:$8 sps:$4 sm:$0xff]   ;;  %v1147_v2 = vld [vmem:[%s1777_s1 + $0x70] ss:$8 sps:$4 sm:$0xff]   ;;  %v1149_v4 = vld [vmem:[%s1777_s1 + $0x64] ss:$8 sps:$4 sm:$0xff]  }
   0x2   :  { %v1145_v1 = vld [vmem:[%s1777_s1 + $0x174] ss:$8 sps:$4 sm:$0xff]   ;;  %826 = vmatprep.subr.bf16.mxu0 %v1143_v0  ;;  %v1148_v3 = vld [vmem:[%s1777_s1 + $0x170] ss:$8 sps:$4 sm:$0xff]   ;;  %v1151_v5 = vld [vmem:[%s1777_s1 + $0x164] ss:$8 sps:$4 sm:$0xff]  }
   0x3   :  { %867 = vmatprep.subr.bf16.mxu1 %v1145_v1  ;;  %827 = vmatpush1.bf16.msra.mxu0 %v1147_v2  ;;  %v1153_v6 = vld [vmem:[%s1777_s1 + $0x60] ss:$8 sps:$4 sm:$0xff]   ;;  %v1155_v8 = vld [vmem:[%s1777_s1 + $0x54] ss:$8 sps:$4 sm:$0xff]   ;;  %v1159_v10 = vld [vmem:[%s1777_s1 + $0x50] ss:$8 sps:$4 sm:$0xff]  }
   0x4   :  { %868 = vmatpush1.bf16.msra.mxu1 %v1148_v3  ;;  %828 = vmatprep.subr.bf16.mxu0 %v1149_v4  ;;  %v1154_v7 = vld [vmem:[%s1777_s1 + $0x160] ss:$8 sps:$4 sm:$0xff]   ;;  %v1157_v9 = vld [vmem:[%s1777_s1 + $0x154] ss:$8 sps:$4 sm:$0xff]   ;;  %v1160_v11 = vld [vmem:[%s1777_s1 + $0x150] ss:$8 sps:$4 sm:$0xff]  }
   0x5   :  { %869 = vmatprep.subr.bf16.mxu1 %v1151_v5  ;;  %v1161_v12 = vld [vmem:[%s1777_s1 + $0x44] ss:$8 sps:$4 sm:$0xff]   ;;  %v1165_v14 = vld [vmem:[%s1777_s1 + $0x40] ss:$8 sps:$4 sm:$0xff]   ;;  %v1167_v16 = vld [vmem:[%s1777_s1 + $0x34] ss:$8 sps:$4 sm:$0xff]  }
   0x6   :  { %v1163_v13 = vld [vmem:[%s1777_s1 + $0x144] ss:$8 sps:$4 sm:$0xff]   ;;  %v1166_v15 = vld [vmem:[%s1777_s1 + $0x140] ss:$8 sps:$4 sm:$0xff]   ;;  %v1169_v17 = vld [vmem:[%s1777_s1 + $0x134] ss:$8 sps:$4 sm:$0xff]  }
   0x7   :  { %829 = vmatpush1.bf16.msra.mxu0 %v1153_v6  ;;  %v1171_v18 = vld [vmem:[%s1777_s1 + $0x30] ss:$8 sps:$4 sm:$0xff]   ;;  %v1173_v20 = vld [vmem:[%s1777_s1 + $0x24] ss:$8 sps:$4 sm:$0xff]   ;;  %v1177_v22 = vld [vmem:[%s1777_s1 + $0x20] ss:$8 sps:$4 sm:$0xff]  }
   0x8   :  { %870 = vmatpush1.bf16.msra.mxu1 %v1154_v7  ;;  %830 = vmatprep.subr.bf16.mxu0 %v1155_v8  ;;  %v1172_v19 = vld [vmem:[%s1777_s1 + $0x130] ss:$8 sps:$4 sm:$0xff]   ;;  %v1175_v21 = vld [vmem:[%s1777_s1 + $0x124] ss:$8 sps:$4 sm:$0xff]   ;;  %v1178_v23 = vld [vmem:[%s1777_s1 + $0x120] ss:$8 sps:$4 sm:$0xff]  }
   0x9   :  { %871 = vmatprep.subr.bf16.mxu1 %v1157_v9  ;;  %v1179_v24 = vld [vmem:[%s1777_s1 + $0x14] ss:$8 sps:$4 sm:$0xff]   ;;  %v1183_v26 = vld [vmem:[%s1777_s1 + $0x10] ss:$8 sps:$4 sm:$0xff]   ;;  %v1185_v28 = vld [vmem:[%s1777_s1 + $0x4] ss:$8 sps:$4 sm:$0xff]  }
   0xa   :  { %v1181_v25 = vld [vmem:[%s1777_s1 + $0x114] ss:$8 sps:$4 sm:$0xff]   ;;  %v1184_v27 = vld [vmem:[%s1777_s1 + $0x110] ss:$8 sps:$4 sm:$0xff]   ;;  %v1187_v29 = vld [vmem:[%s1777_s1 + $0x104] ss:$8 sps:$4 sm:$0xff]  }
   0xb   :  { %831 = vmatpush1.bf16.msra.mxu0 %v1159_v10  ;;  %v1189_v30 = vld [vmem:[%s1777_s1] ss:$8 sps:$4 sm:$0xff]   ;;  %v1191_v32 = vld [vmem:[%s1777_s1 + $0xf4] ss:$8 sps:$4 sm:$0xff]   ;;  %v1195_v34 = vld [vmem:[%s1777_s1 + $0xf0] ss:$8 sps:$4 sm:$0xff]  }
   0xc   :  { %872 = vmatpush1.bf16.msra.mxu1 %v1160_v11  ;;  %832 = vmatprep.subr.bf16.mxu0 %v1161_v12  ;;  %v1190_v31 = vld [vmem:[%s1777_s1 + $0x100] ss:$8 sps:$4 sm:$0xff]   ;;  %v1193_v33 = vld [vmem:[%s1777_s1 + $0x1f4] ss:$8 sps:$4 sm:$0xff]   ;;  %v1196_v35 = vld [vmem:[%s1777_s1 + $0x1f0] ss:$8 sps:$4 sm:$0xff]  }
   0xd   :  { %873 = vmatprep.subr.bf16.mxu1 %v1163_v13  ;;  %v1197_v36 = vld [vmem:[%s1777_s1 + $0xe4] ss:$8 sps:$4 sm:$0xff]   ;;  %v1201_v38 = vld [vmem:[%s1777_s1 + $0xe0] ss:$8 sps:$4 sm:$0xff]   ;;  %v1203_v40 = vld [vmem:[%s1777_s1 + $0xd4] ss:$8 sps:$4 sm:$0xff]  }
   0xe   :  { %v1199_v37 = vld [vmem:[%s1777_s1 + $0x1e4] ss:$8 sps:$4 sm:$0xff]   ;;  %v1202_v39 = vld [vmem:[%s1777_s1 + $0x1e0] ss:$8 sps:$4 sm:$0xff]   ;;  %v1205_v41 = vld [vmem:[%s1777_s1 + $0x1d4] ss:$8 sps:$4 sm:$0xff]  }
   0xf   :  { %833 = vmatpush1.bf16.msra.mxu0 %v1165_v14  ;;  %v1207_v42 = vld [vmem:[%s1777_s1 + $0xd0] ss:$8 sps:$4 sm:$0xff]   ;;  %v1209_v44 = vld [vmem:[%s1777_s1 + $0xc4] ss:$8 sps:$4 sm:$0xff]   ;;  %v1213_v49 = vld [vmem:[%s1777_s1 + $0xc0] ss:$8 sps:$4 sm:$0xff]  }
  0x10   :  { %874 = vmatpush1.bf16.msra.mxu1 %v1166_v15  ;;  %834 = vmatprep.subr.bf16.mxu0 %v1167_v16  ;;  %v1208_v43 = vld [vmem:[%s1777_s1 + $0x1d0] ss:$8 sps:$4 sm:$0xff]   ;;  %v1211_v45 = vld [vmem:[%s1777_s1 + $0x1c4] ss:$8 sps:$4 sm:$0xff]   ;;  %v1214_v50 = vld [vmem:[%s1777_s1 + $0x1c0] ss:$8 sps:$4 sm:$0xff]  }
  0x11   :  { %875 = vmatprep.subr.bf16.mxu1 %v1169_v17  ;;  %v14_v46 = vld [vmem:[%s1778_s0] sm:$0xff]  ;;  %v15_v48 = vld [vmem:[%s1778_s0 + $0x8] sm:$0xff]  ;;  %v1215_v52 = vld [vmem:[%s1777_s1 + $0xb4] ss:$8 sps:$4 sm:$0xff]  }
  0x12   :  { %v1006_v47 = vcombine.high %v14_v46, %v14_v46  ;;  %v1008_v51 = vcombine.high %v15_v48, %v15_v48  ;;  %v1217_v53 = vld [vmem:[%s1777_s1 + $0x1b4] ss:$8 sps:$4 sm:$0xff]   ;;  %v1219_v54 = vld [vmem:[%s1777_s1 + $0xb0] ss:$8 sps:$4 sm:$0xff]   ;;  %v1221_v56 = vld [vmem:[%s1777_s1 + $0xa4] ss:$8 sps:$4 sm:$0xff]   ;;  %v1005_v6 = vcombine.low %v14_v46, %v14_v46  ;;  %v1007_v7 = vcombine.low %v15_v48, %v15_v48 }
  0x13   :  { %835 = vmatpush1.bf16.msra.mxu0 %v1171_v18  ;;  %v1220_v55 = vld [vmem:[%s1777_s1 + $0x1b0] ss:$8 sps:$4 sm:$0xff]   ;;  %v1223_v57 = vld [vmem:[%s1777_s1 + $0x1a4] ss:$8 sps:$4 sm:$0xff]   ;;  %v1225_v58 = vld [vmem:[%s1777_s1 + $0xa0] ss:$8 sps:$4 sm:$0xff]  }
  0x14   :  { %876 = vmatpush1.bf16.msra.mxu1 %v1172_v19  ;;  %836 = vmatprep.subr.bf16.mxu0 %v1173_v20  ;;  %v1226_v59 = vld [vmem:[%s1777_s1 + $0x1a0] ss:$8 sps:$4 sm:$0xff]   ;;  %v1227_v60 = vld [vmem:[%s1777_s1 + $0x94] ss:$8 sps:$4 sm:$0xff]   ;;  %v1231_v62 = vld [vmem:[%s1777_s1 + $0x90] ss:$8 sps:$4 sm:$0xff]  }
  0x15   :  { %877 = vmatprep.subr.bf16.mxu1 %v1175_v21  ;;  %858 = vmatprep.mubr.bf16.mxu0 %v1006_v47  ;;  %v1229_v61 = vld [vmem:[%s1777_s1 + $0x194] ss:$8 sps:$4 sm:$0xff]   ;;  %v1232_v63 = vld [vmem:[%s1777_s1 + $0x190] ss:$8 sps:$4 sm:$0xff]   ;;  %v1233_v0 = vld [vmem:[%s1777_s1 + $0x84] ss:$8 sps:$4 sm:$0xff]  }
  0x16   :  { %899 = vmatprep.mubr.bf16.mxu1 %v1008_v51  ;;  %v1235_v1 = vld [vmem:[%s1777_s1 + $0x184] ss:$8 sps:$4 sm:$0xff]   ;;  %v1237_v2 = vld [vmem:[%s1777_s1 + $0x80] ss:$8 sps:$4 sm:$0xff]   ;;  %v1245_v4 = vld [vmem:[%s1777_s1 + $0x274] ss:$8 sps:$4 sm:$0xff]  }
  0x17   :  { %837 = vmatpush1.bf16.msra.mxu0 %v1177_v22  ;;  %v1238_v3 = vld [vmem:[%s1777_s1 + $0x180] ss:$8 sps:$4 sm:$0xff]   ;;  %v1248_v5 = vld [vmem:[%s1777_s1 + $0x374] ss:$8 sps:$4 sm:$0xff]   ;;  %v1243_v8 = vld [vmem:[%s1777_s1 + $0x270] ss:$8 sps:$4 sm:$0xff]  }
  0x18   :  { %878 = vmatpush1.bf16.msra.mxu1 %v1178_v23  ;;  %838 = vmatprep.subr.bf16.mxu0 %v1179_v24  ;;  %v1246_v9 = vld [vmem:[%s1777_s1 + $0x370] ss:$8 sps:$4 sm:$0xff]   ;;  %v1251_v10 = vld [vmem:[%s1777_s1 + $0x264] ss:$8 sps:$4 sm:$0xff]   ;;  %v1249_v12 = vld [vmem:[%s1777_s1 + $0x260] ss:$8 sps:$4 sm:$0xff]  }
  0x19   :  { %879 = vmatprep.subr.bf16.mxu1 %v1181_v25  ;;  %v1254_v11 = vld [vmem:[%s1777_s1 + $0x364] ss:$8 sps:$4 sm:$0xff]   ;;  %v1252_v13 = vld [vmem:[%s1777_s1 + $0x360] ss:$8 sps:$4 sm:$0xff]   ;;  %v1257_v14 = vld [vmem:[%s1777_s1 + $0x254] ss:$8 sps:$4 sm:$0xff]  }
  0x1a   :  { %v1260_v15 = vld [vmem:[%s1777_s1 + $0x354] ss:$8 sps:$4 sm:$0xff]   ;;  %v1255_v16 = vld [vmem:[%s1777_s1 + $0x250] ss:$8 sps:$4 sm:$0xff]   ;;  %v1263_v18 = vld [vmem:[%s1777_s1 + $0x244] ss:$8 sps:$4 sm:$0xff]  }
  0x1b   :  { %839 = vmatpush1.bf16.msra.mxu0 %v1183_v26  ;;  %v1258_v17 = vld [vmem:[%s1777_s1 + $0x350] ss:$8 sps:$4 sm:$0xff]   ;;  %v1266_v19 = vld [vmem:[%s1777_s1 + $0x344] ss:$8 sps:$4 sm:$0xff]   ;;  %v1261_v20 = vld [vmem:[%s1777_s1 + $0x240] ss:$8 sps:$4 sm:$0xff]  }
  0x1c   :  { %880 = vmatpush1.bf16.msra.mxu1 %v1184_v27  ;;  %840 = vmatprep.subr.bf16.mxu0 %v1185_v28  ;;  %v1264_v21 = vld [vmem:[%s1777_s1 + $0x340] ss:$8 sps:$4 sm:$0xff]   ;;  %v1269_v22 = vld [vmem:[%s1777_s1 + $0x234] ss:$8 sps:$4 sm:$0xff]   ;;  %v1267_v24 = vld [vmem:[%s1777_s1 + $0x230] ss:$8 sps:$4 sm:$0xff]  }
  0x1d   :  { %881 = vmatprep.subr.bf16.mxu1 %v1187_v29  ;;  %v1272_v23 = vld [vmem:[%s1777_s1 + $0x334] ss:$8 sps:$4 sm:$0xff]   ;;  %v1270_v25 = vld [vmem:[%s1777_s1 + $0x330] ss:$8 sps:$4 sm:$0xff]   ;;  %v1275_v26 = vld [vmem:[%s1777_s1 + $0x224] ss:$8 sps:$4 sm:$0xff]  }
  0x1e   :  { %v1278_v27 = vld [vmem:[%s1777_s1 + $0x324] ss:$8 sps:$4 sm:$0xff]   ;;  %v1273_v28 = vld [vmem:[%s1777_s1 + $0x220] ss:$8 sps:$4 sm:$0xff]   ;;  %v1308_v51 = vld [vmem:[%s1777_s1 + $0x3d4] ss:$8 sps:$4 sm:$0xff]  }
  0x1f   :  { %841 = vmatpush1.bf16.msra.mxu0 %v1189_v30  ;;  %v1276_v29 = vld [vmem:[%s1777_s1 + $0x320] ss:$8 sps:$4 sm:$0xff]   ;;  %v1281_v30 = vld [vmem:[%s1777_s1 + $0x214] ss:$8 sps:$4 sm:$0xff]   ;;  %v1299_v46 = vld [vmem:[%s1777_s1 + $0x2e4] ss:$8 sps:$4 sm:$0xff]  }
  0x20   :  { %882 = vmatpush1.bf16.msra.mxu1 %v1190_v31  ;;  %842 = vmatprep.subr.bf16.mxu0 %v1191_v32  ;;  %v1284_v31 = vld [vmem:[%s1777_s1 + $0x314] ss:$8 sps:$4 sm:$0xff]   ;;  %v1302_v47 = vld [vmem:[%s1777_s1 + $0x3e4] ss:$8 sps:$4 sm:$0xff]   ;;  %v1297_v48 = vld [vmem:[%s1777_s1 + $0x2e0] ss:$8 sps:$4 sm:$0xff]  }
  0x21   :  { %883 = vmatprep.subr.bf16.mxu1 %v1193_v33  ;;  %v1642_v32 = vld [vmem:[%s1778_s0 + $0x10] sm:$0xff]  ;;  %v1647_v33 = vld [vmem:[%s1778_s0 + $0x18] sm:$0xff] }
  0x23   :  { %843 = vmatpush2.bf16.msra.mxu0 %v1195_v34  ;;  %v1010_v34 = vcombine.high %v1642_v32, %v1642_v32 }
  0x24   :  { %884 = vmatpush2.bf16.msra.mxu1 %v1196_v35  ;;  %844 = vmatprep.subr.bf16.mxu0 %v1197_v36  ;;  %v1012_v35 = vcombine.high %v1647_v33, %v1647_v33  ;;  %v1279_v36 = vld [vmem:[%s1777_s1 + $0x210] ss:$8 sps:$4 sm:$0xff]  }
  0x25   :  { %885 = vmatprep.subr.bf16.mxu1 %v1199_v37  ;;  %v1282_v37 = vld [vmem:[%s1777_s1 + $0x310] ss:$8 sps:$4 sm:$0xff]  }
  0x27   :  { %845 = vmatpush2.bf16.msra.mxu0 %v1201_v38  ;;  %v1287_v38 = vld [vmem:[%s1777_s1 + $0x204] ss:$8 sps:$4 sm:$0xff]  }
  0x28   :  { %886 = vmatpush2.bf16.msra.mxu1 %v1202_v39  ;;  %846 = vmatprep.subr.bf16.mxu0 %v1203_v40  ;;  %v1290_v39 = vld [vmem:[%s1777_s1 + $0x304] ss:$8 sps:$4 sm:$0xff]   ;;  %v1285_v40 = vld [vmem:[%s1777_s1 + $0x200] ss:$8 sps:$4 sm:$0xff]  }
  0x29   :  { %887 = vmatprep.subr.bf16.mxu1 %v1205_v41  ;;  %v1288_v41 = vld [vmem:[%s1777_s1 + $0x300] ss:$8 sps:$4 sm:$0xff]  }
  0x2b   :  { %847 = vmatpush2.bf16.msra.mxu0 %v1207_v42  ;;  %v1293_v42 = vld [vmem:[%s1777_s1 + $0x2f4] ss:$8 sps:$4 sm:$0xff]  }
  0x2c   :  { %888 = vmatpush2.bf16.msra.mxu1 %v1208_v43  ;;  %848 = vmatprep.subr.bf16.mxu0 %v1209_v44  ;;  %v1296_v43 = vld [vmem:[%s1777_s1 + $0x3f4] ss:$8 sps:$4 sm:$0xff]   ;;  %v1291_v44 = vld [vmem:[%s1777_s1 + $0x2f0] ss:$8 sps:$4 sm:$0xff]  }
  0x2d   :  { %889 = vmatprep.subr.bf16.mxu1 %v1211_v45  ;;  %v1294_v45 = vld [vmem:[%s1777_s1 + $0x3f0] ss:$8 sps:$4 sm:$0xff]  }
  0x2f   :  { %849 = vmatpush2.bf16.msra.mxu0 %v1213_v49  ;;  %v1300_v49 = vld [vmem:[%s1777_s1 + $0x3e0] ss:$8 sps:$4 sm:$0xff]  }
  0x30   :  { %890 = vmatpush2.bf16.msra.mxu1 %v1214_v50  ;;  %850 = vmatprep.subr.bf16.mxu0 %v1215_v52  ;;  %v1305_v50 = vld [vmem:[%s1777_s1 + $0x2d4] ss:$8 sps:$4 sm:$0xff]   ;;  %v1303_v52 = vld [vmem:[%s1777_s1 + $0x2d0] ss:$8 sps:$4 sm:$0xff]  }
  0x31   :  { %891 = vmatprep.subr.bf16.mxu1 %v1217_v53  ;;  %v1306_v53 = vld [vmem:[%s1777_s1 + $0x3d0] ss:$8 sps:$4 sm:$0xff]  }
  0x33   :  { %851 = vmatpush2.bf16.msra.mxu0 %v1219_v54  ;;  %v1311_v54 = vld [vmem:[%s1777_s1 + $0x2c4] ss:$8 sps:$4 sm:$0xff]  }
  0x34   :  { %892 = vmatpush2.bf16.msra.mxu1 %v1220_v55  ;;  %852 = vmatprep.subr.bf16.mxu0 %v1221_v56  ;;  %v1314_v55 = vld [vmem:[%s1777_s1 + $0x3c4] ss:$8 sps:$4 sm:$0xff]   ;;  %v1309_v56 = vld [vmem:[%s1777_s1 + $0x2c0] ss:$8 sps:$4 sm:$0xff]  }
  0x35   :  { %893 = vmatprep.subr.bf16.mxu1 %v1223_v57  ;;  %v1312_v57 = vld [vmem:[%s1777_s1 + $0x3c0] ss:$8 sps:$4 sm:$0xff]  }
  0x37   :  { %853 = vmatpush2.bf16.msra.mxu0 %v1225_v58  ;;  %v1317_v58 = vld [vmem:[%s1777_s1 + $0x2b4] ss:$8 sps:$4 sm:$0xff]  }
  0x38   :  { %894 = vmatpush2.bf16.msra.mxu1 %v1226_v59  ;;  %854 = vmatprep.subr.bf16.mxu0 %v1227_v60  ;;  %v1320_v59 = vld [vmem:[%s1777_s1 + $0x3b4] ss:$8 sps:$4 sm:$0xff]   ;;  %v1315_v60 = vld [vmem:[%s1777_s1 + $0x2b0] ss:$8 sps:$4 sm:$0xff]  }
  0x39   :  { %895 = vmatprep.subr.bf16.mxu1 %v1229_v61  ;;  %v1318_v61 = vld [vmem:[%s1777_s1 + $0x3b0] ss:$8 sps:$4 sm:$0xff]  }
  0x3b   :  { %855 = vmatpush2.bf16.msra.mxu0 %v1231_v62  ;;  %v1323_v62 = vld [vmem:[%s1777_s1 + $0x2a4] ss:$8 sps:$4 sm:$0xff]  }
  0x3c   :  { %896 = vmatpush2.bf16.msra.mxu1 %v1232_v63  ;;  %856 = vmatprep.subr.bf16.mxu0 %v1233_v0  ;;  %v1326_v63 = vld [vmem:[%s1777_s1 + $0x3a4] ss:$8 sps:$4 sm:$0xff]   ;;  %v1321_v0 = vld [vmem:[%s1777_s1 + $0x2a0] ss:$8 sps:$4 sm:$0xff]  }
  0x3d   :  { %897 = vmatprep.subr.bf16.mxu1 %v1235_v1  ;;  %v1324_v1 = vld [vmem:[%s1777_s1 + $0x3a0] ss:$8 sps:$4 sm:$0xff]  }
  0x3f   :  { %857 = vmatpush2.bf16.msra.mxu0 %v1237_v2  ;;  %v1329_v2 = vld [vmem:[%s1777_s1 + $0x294] ss:$8 sps:$4 sm:$0xff]  }
  0x40   :  { %898 = vmatpush2.bf16.msra.mxu1 %v1238_v3  ;;  %908 = vmatprep.subr.bf16.mxu0 %v1245_v4  ;;  %v1332_v3 = vld [vmem:[%s1777_s1 + $0x394] ss:$8 sps:$4 sm:$0xff]   ;;  %v1327_v4 = vld [vmem:[%s1777_s1 + $0x290] ss:$8 sps:$4 sm:$0xff]  }
  0x41   :  { %949 = vmatprep.subr.bf16.mxu1 %v1248_v5  ;;  %v1330_v5 = vld [vmem:[%s1777_s1 + $0x390] ss:$8 sps:$4 sm:$0xff]  }
  0x42   :  { %859 = vmatmul.mubr.bf16.vlgmr.msra.gmra.mxu0 %v1005_v6  ;;  %v1335_v6 = vld [vmem:[%s1777_s1 + $0x284] ss:$8 sps:$4 sm:$0xff]  }
  0x43   :  { %900 = vmatmul.mubr.bf16.vlgmr.msra.gmra.mxu1 %v1007_v7  ;;  %909 = vmatpush1.bf16.msra.mxu0 %v1243_v8  ;;  %v1338_v7 = vld [vmem:[%s1777_s1 + $0x384] ss:$8 sps:$4 sm:$0xff]   ;;  %v1333_v8 = vld [vmem:[%s1777_s1 + $0x280] ss:$8 sps:$4 sm:$0xff]  }
  0x44   :  { %950 = vmatpush1.bf16.msra.mxu1 %v1246_v9  ;;  %910 = vmatprep.subr.bf16.mxu0 %v1251_v10  ;;  %v1336_v9 = vld [vmem:[%s1777_s1 + $0x380] ss:$8 sps:$4 sm:$0xff]   ;;  %v1009_v10 = vcombine.low %v1642_v32, %v1642_v32 }
  0x45   :  { %951 = vmatprep.subr.bf16.mxu1 %v1254_v11  ;;  %940 = vmatprep.mubr.bf16.mxu0 %v1010_v34  ;;  %v1011_v11 = vcombine.low %v1647_v33, %v1647_v33 }
  0x46   :  { %981 = vmatprep.mubr.bf16.mxu1 %v1012_v35 }
  0x47   :  { %911 = vmatpush1.bf16.msra.mxu0 %v1249_v12 }
  0x48   :  { %952 = vmatpush1.bf16.msra.mxu1 %v1252_v13  ;;  %912 = vmatprep.subr.bf16.mxu0 %v1257_v14 }
  0x49   :  { %953 = vmatprep.subr.bf16.mxu1 %v1260_v15 }
  0x4b   :  { %913 = vmatpush1.bf16.msra.mxu0 %v1255_v16 }
  0x4c   :  { %954 = vmatpush1.bf16.msra.mxu1 %v1258_v17  ;;  %914 = vmatprep.subr.bf16.mxu0 %v1263_v18 }
  0x4d   :  { %955 = vmatprep.subr.bf16.mxu1 %v1266_v19 }
  0x4f   :  { %915 = vmatpush1.bf16.msra.mxu0 %v1261_v20  ;;  %v148_v20 = vlaneseq }
  0x50   :  { %956 = vmatpush1.bf16.msra.mxu1 %v1264_v21  ;;  %916 = vmatprep.subr.bf16.mxu0 %v1269_v22 }
  0x51   :  { %957 = vmatprep.subr.bf16.mxu1 %v1272_v23  ;;  %v149_v21 = vshrl.u32 %v148_v20, 7  ;;  %v146_v23 = vld [vmem:[%s1779_s2] sm:$0x3] }
  0x53   :  { %917 = vmatpush1.bf16.msra.mxu0 %v1267_v24  ;;  %v150_v22 = vsub.s32 0, %v149_v21  ;;  %v154_v24 = vsub.s32 1, %v149_v21 }
  0x54   :  { %958 = vmatpush1.bf16.msra.mxu1 %v1270_v25  ;;  %918 = vmatprep.subr.bf16.mxu0 %v1275_v26 }
  0x55   :  { %959 = vmatprep.subr.bf16.mxu1 %v1278_v27  ;;  %v151_v25 = vrot.slane %v146_v23, %v150_v22  ;;  %v155_v26 = vrot.slane %v146_v23, %v154_v24 }
  0x57   :  { %919 = vmatpush1.bf16.msra.mxu0 %v1273_v28 }
  0x58   :  { %960 = vmatpush1.bf16.msra.mxu1 %v1276_v29  ;;  %920 = vmatprep.subr.bf16.mxu0 %v1281_v30 }
  0x59   :  { %961 = vmatprep.subr.bf16.mxu1 %v1284_v31 }
  0x5b   :  { %921 = vmatpush1.bf16.msra.mxu0 %v1279_v36 }
  0x5c   :  { %962 = vmatpush1.bf16.msra.mxu1 %v1282_v37  ;;  %922 = vmatprep.subr.bf16.mxu0 %v1287_v38 }
  0x5d   :  { %963 = vmatprep.subr.bf16.mxu1 %v1290_v39 }
  0x5f   :  { %923 = vmatpush1.bf16.msra.mxu0 %v1285_v40 }
  0x60   :  { %964 = vmatpush1.bf16.msra.mxu1 %v1288_v41  ;;  %924 = vmatprep.subr.bf16.mxu0 %v1293_v42 }
  0x61   :  { %965 = vmatprep.subr.bf16.mxu1 %v1296_v43 }
  0x63   :  { %925 = vmatpush2.bf16.msra.mxu0 %v1291_v44 }
  0x64   :  { %966 = vmatpush2.bf16.msra.mxu1 %v1294_v45  ;;  %926 = vmatprep.subr.bf16.mxu0 %v1299_v46 }
  0x65   :  { %967 = vmatprep.subr.bf16.mxu1 %v1302_v47 }
  0x67   :  { %927 = vmatpush2.bf16.msra.mxu0 %v1297_v48 }
  0x68   :  { %968 = vmatpush2.bf16.msra.mxu1 %v1300_v49  ;;  %928 = vmatprep.subr.bf16.mxu0 %v1305_v50 }
  0x69   :  { %969 = vmatprep.subr.bf16.mxu1 %v1308_v51 }
  0x6b   :  { %929 = vmatpush2.bf16.msra.mxu0 %v1303_v52 }
  0x6c   :  { %970 = vmatpush2.bf16.msra.mxu1 %v1306_v53  ;;  %930 = vmatprep.subr.bf16.mxu0 %v1311_v54 }
  0x6d   :  { %971 = vmatprep.subr.bf16.mxu1 %v1314_v55 }
  0x6f   :  { %931 = vmatpush2.bf16.msra.mxu0 %v1309_v56 }
  0x70   :  { %972 = vmatpush2.bf16.msra.mxu1 %v1312_v57  ;;  %932 = vmatprep.subr.bf16.mxu0 %v1317_v58 }
  0x71   :  { %973 = vmatprep.subr.bf16.mxu1 %v1320_v59 }
  0x73   :  { %933 = vmatpush2.bf16.msra.mxu0 %v1315_v60 }
  0x74   :  { %974 = vmatpush2.bf16.msra.mxu1 %v1318_v61  ;;  %934 = vmatprep.subr.bf16.mxu0 %v1323_v62 }
  0x75   :  { %975 = vmatprep.subr.bf16.mxu1 %v1326_v63 }
  0x77   :  { %935 = vmatpush2.bf16.msra.mxu0 %v1321_v0 }
  0x78   :  { %976 = vmatpush2.bf16.msra.mxu1 %v1324_v1  ;;  %936 = vmatprep.subr.bf16.mxu0 %v1329_v2 }
  0x79   :  { %977 = vmatprep.subr.bf16.mxu1 %v1332_v3 }
  0x7b   :  { %937 = vmatpush2.bf16.msra.mxu0 %v1327_v4 }
  0x7c   :  { %978 = vmatpush2.bf16.msra.mxu1 %v1330_v5  ;;  %938 = vmatprep.subr.bf16.mxu0 %v1335_v6 }
  0x7d   :  { %979 = vmatprep.subr.bf16.mxu1 %v1338_v7 }
  0x7f   :  { %939 = vmatpush2.bf16.msra.mxu0 %v1333_v8 }
  0x80   :  { %980 = vmatpush2.bf16.msra.mxu1 %v1336_v9 }
  0x82   :  { %941 = vmatmul.mubr.bf16.vlgmr.msra.gmra.mxu0 %v1009_v10 }
  0x83   :  { %982 = vmatmul.mubr.bf16.vlgmr.msra.gmra.mxu1 %v1011_v11 }
 0x102   :  { %v860_v12 = vpop.f32.mrf.mxu0 }
 0x103   :  { %v901_v13 = vpop.f32.mrf.mxu1  ;;  %v861_v27 = vadd.f32 %v860_v12, %v151_v25 }
 0x104   :  { %v862_v14 = vpop.f32.mrf.mxu0 }
 0x105   :  { %v903_v15 = vpop.f32.mrf.mxu1  ;;  %v863_v28 = vadd.f32 %v862_v14, %v155_v26  ;;  %v902_v29 = vadd.f32 %v901_v13, %v861_v27 }
 0x106   :  { %v864_v16 = vpop.f32.mrf.mxu0 }
 0x107   :  { %v905_v17 = vpop.f32.mrf.mxu1  ;;  %v904_v32 = vadd.f32 %v903_v15, %v863_v28 }
 0x108   :  { %v865_v18 = vpop.f32.mrf.mxu0 }
 0x109   :  { %v906_v19 = vpop.f32.mrf.mxu1 }
 0x142   :  { %v942_v30 = vpop.f32.mrf.mxu0 }
 0x143   :  { %v983_v31 = vpop.f32.mrf.mxu1  ;;  %v943_v33 = vadd.f32 %v942_v30, %v902_v29 }
 0x144   :  { %v944_v34 = vpop.f32.mrf.mxu0 }
 0x145   :  { %v985_v35 = vpop.f32.mrf.mxu1  ;;  %v984_v36 = vadd.f32 %v983_v31, %v943_v33  ;;  %v945_v37 = vadd.f32 %v944_v34, %v904_v32 }
 0x146   :  { %v946_v38 = vpop.f32.mrf.mxu0 }
 0x147   :  { %v987_v39 = vpop.f32.mrf.mxu1  ;;  %v986_v40 = vadd.f32 %v985_v35, %v945_v37  ;;  %v990_v43 = vmax.f32 %v984_v36, 0.0 }
 0x148   :  { %v947_v41 = vpop.f32.mrf.mxu0 }
 0x149   :  { %v988_v42 = vpop.f32.mrf.mxu1  ;;  %v991_v44 = vmax.f32 %v986_v40, 0.0 }
 0x14b   :  { %v1142_v45 = vpack.c.bf16 %v991_v44, %v990_v43 }
 0x14d   :  { %1000 = vst [vmem:[%s1780_s3] sm:$0xff] %v1142_v45 }

// kernel: timm_cnn_encoder_forward.63
= control target key start
LH: loop header
LB: loop body
LE: loop exit
PB: predicated region body
PF: predicated region fallthrough
CT: control target
= control target key end

     0   :  { %s3754_s12 = smov 0   ;;  %s3756_s13 = smov 0   ;;  %s4622_s0 = inlined_call_operand.vmem [shape: bf16[8,2304], index: 0, kind: input, shape index: {}]   ;;  %s4623_s1 = inlined_call_operand.vmem [shape: bf16[2304,256], index: 1, kind: input, shape index: {}]   ;;  %s4624_s2 = inlined_call_operand.vmem [shape: f32[1,256], index: 2, kind: input, shape index: {}]   ;;  %s4625_s3 = inlined_call_operand.vmem [shape: bf16[8,256], index: 3, kind: output, shape index: {}]  }
   0x1   :  { %s3758_s14 = smov 0   ;;  %s3760_s15 = smov 0  }
   0x2   :  { %s3762_s16 = smov 0  }
   0x3 LB: > { %s22_s17 = sadd.s32 1, %s3728_s15  ;;  %p65_p1 = scmp.ne.s32.totalorder %s3720_s13, %s3716_s12  ;;  %s3732_s16 = sphi %s3762_s16, %s13_s16   ;;  %s3728_s15 = sphi %s3760_s15, %s4629_s15   ;;  %s3724_s14 = sphi %s3758_s14, %s4628_s14   ;;  %s3720_s13 = sphi %s3756_s13, %s4627_s13   ;;  %s3716_s12 = sphi %s3754_s12, %s4626_s12  }
   0x4   : > { %p23_p0 = scmp.ge.s32.totalorder %s22_s17, 2  ;;  %p66_p2 = scmp.eq.s32.totalorder %s3732_s16, 0 }
   0x5   : > { %s58_s19 = sadd.s32 1, %s3720_s13  ;;  %p3123_p5 = scmp.ge.s32.totalorder %s3732_s16, 2 }
   0x6   : > { %s4631_s17 = smov (%p23_p0, %s22_s17), 0  ;;  %p67_p3 = por %p66_p2, %p65_p1 }
   0x7   : > { %s55_s18 = ssub.s32 %s3728_s15, %s4631_s17  ;;  %153 = sbr.rel (%p3123_p5) target bundleno = 208 (0xd0), region = 20 }
   0x8   : > { %p56_p4 = scmp.eq.s32.totalorder %s55_s18, 0 }
   0xa   : > { %s3789_s20 = scalar_select %p56_p4, %s3720_s13, %s58_s19  }
   0xc   : > { %156 = sbr.rel (!%p67_p3) target bundleno = 208 (0xd0), region = 24  ;;  %s158_s21 = sand.u32 (%p67_p3), 1, %s3720_s13  }
   0xd   : > { %s3124_s22 = sshll.u32 (%p67_p3), %s3728_s15, 2  ;;  %s3490_s23 = smul.u32 (%p67_p3), 1152, %s158_s21 }
   0xe   : > { %s3797_s26 = scalar_lea.vmem (%p67_p3), %s4623_s1, %s3124_s22 }
   0xf   : > { %v179_v0 = vld [vmem:[%s3797_s26] sm:$0xf] (%p67_p3)  ;;  %v181_v1 = vld [vmem:[%s3797_s26 + $0x8] sm:$0xf] (%p67_p3)  ;;  %v183_v2 = vld [vmem:[%s3797_s26 + $0x10] sm:$0xf] (%p67_p3) }
  0x10   : > { %v185_v3 = vld [vmem:[%s3797_s26 + $0x18] sm:$0xf] (%p67_p3)  ;;  %v187_v4 = vld [vmem:[%s3797_s26 + $0x20] sm:$0xf] (%p67_p3)  ;;  %s3804_s27 = scalar_lea.vmem (%p67_p3), [#allocation2], %s3490_s23 }
  0x11   : > { %180 = vst [vmem:[%s3804_s27] sm:$0xf] %v179_v0  ;;  %182 = vst [vmem:[%s3804_s27 + $0x4] sm:$0xf] %v181_v1  ;;  %v189_v5 = vld [vmem:[%s3797_s26 + $0x28] sm:$0xf] }
  0x12   : > { %184 = vst [vmem:[%s3804_s27 + $0x8] sm:$0xf] %v183_v2  ;;  %186 = vst [vmem:[%s3804_s27 + $0xc] sm:$0xf] %v185_v3  ;;  %v191_v6 = vld [vmem:[%s3797_s26 + $0x30] sm:$0xf] }
  0x13   : > { %188 = vst [vmem:[%s3804_s27 + $0x10] sm:$0xf] %v187_v4  ;;  %v193_v7 = vld [vmem:[%s3797_s26 + $0x38] sm:$0xf]  ;;  %190 = vst [vmem:[%s3804_s27 + $0x14] sm:$0xf] %v189_v5 }
  0x14   : > { %192 = vst [vmem:[%s3804_s27 + $0x18] sm:$0xf] %v191_v6  ;;  %194 = vst [vmem:[%s3804_s27 + $0x1c] sm:$0xf] %v193_v7  ;;  %v195_v8 = vld [vmem:[%s3797_s26 + $0x40] sm:$0xf] }
  0x15   : > { %v197_v9 = vld [vmem:[%s3797_s26 + $0x48] sm:$0xf]  ;;  %v199_v10 = vld [vmem:[%s3797_s26 + $0x50] sm:$0xf]  ;;  %196 = vst [vmem:[%s3804_s27 + $0x20] sm:$0xf] %v195_v8 }
  0x16   : > { %198 = vst [vmem:[%s3804_s27 + $0x24] sm:$0xf] %v197_v9  ;;  %200 = vst [vmem:[%s3804_s27 + $0x28] sm:$0xf] %v199_v10  ;;  %v201_v11 = vld [vmem:[%s3797_s26 + $0x58] sm:$0xf] }
  0x17   : > { %v203_v12 = vld [vmem:[%s3797_s26 + $0x60] sm:$0xf]  ;;  %v205_v13 = vld [vmem:[%s3797_s26 + $0x68] sm:$0xf]  ;;  %202 = vst [vmem:[%s3804_s27 + $0x2c] sm:$0xf] %v201_v11 }
  0x18   : > { %204 = vst [vmem:[%s3804_s27 + $0x30] sm:$0xf] %v203_v12  ;;  %206 = vst [vmem:[%s3804_s27 + $0x34] sm:$0xf] %v205_v13  ;;  %v207_v14 = vld [vmem:[%s3797_s26 + $0x70] sm:$0xf] }
  0x19   : > { %v209_v15 = vld [vmem:[%s3797_s26 + $0x78] sm:$0xf]  ;;  %v211_v16 = vld [vmem:[%s3797_s26 + $0x80] sm:$0xf]  ;;  %208 = vst [vmem:[%s3804_s27 + $0x38] sm:$0xf] %v207_v14 }
  0x1a   : > { %210 = vst [vmem:[%s3804_s27 + $0x3c] sm:$0xf] %v209_v15  ;;  %212 = vst [vmem:[%s3804_s27 + $0x40] sm:$0xf] %v211_v16  ;;  %v213_v17 = vld [vmem:[%s3797_s26 + $0x88] sm:$0xf] }
  0x1b   : > { %v215_v18 = vld [vmem:[%s3797_s26 + $0x90] sm:$0xf]  ;;  %v217_v19 = vld [vmem:[%s3797_s26 + $0x98] sm:$0xf]  ;;  %214 = vst [vmem:[%s3804_s27 + $0x44] sm:$0xf] %v213_v17 }
  0x1c   : > { %216 = vst [vmem:[%s3804_s27 + $0x48] sm:$0xf] %v215_v18  ;;  %218 = vst [vmem:[%s3804_s27 + $0x4c] sm:$0xf] %v217_v19  ;;  %v219_v20 = vld [vmem:[%s3797_s26 + $0xa0] sm:$0xf] }
  0x1d   : > { %v221_v21 = vld [vmem:[%s3797_s26 + $0xa8] sm:$0xf]  ;;  %v223_v22 = vld [vmem:[%s3797_s26 + $0xb0] sm:$0xf]  ;;  %220 = vst [vmem:[%s3804_s27 + $0x50] sm:$0xf] %v219_v20 }
  0x1e   : > { %222 = vst [vmem:[%s3804_s27 + $0x54] sm:$0xf] %v221_v21  ;;  %224 = vst [vmem:[%s3804_s27 + $0x58] sm:$0xf] %v223_v22  ;;  %v225_v23 = vld [vmem:[%s3797_s26 + $0xb8] sm:$0xf] }
  0x1f   : > { %v227_v24 = vld [vmem:[%s3797_s26 + $0xc0] sm:$0xf]  ;;  %v229_v25 = vld [vmem:[%s3797_s26 + $0xc8] sm:$0xf]  ;;  %226 = vst [vmem:[%s3804_s27 + $0x5c] sm:$0xf] %v225_v23 }
  0x20   : > { %228 = vst [vmem:[%s3804_s27 + $0x60] sm:$0xf] %v227_v24  ;;  %230 = vst [vmem:[%s3804_s27 + $0x64] sm:$0xf] %v229_v25  ;;  %v231_v26 = vld [vmem:[%s3797_s26 + $0xd0] sm:$0xf] }
  0x21   : > { %v233_v27 = vld [vmem:[%s3797_s26 + $0xd8] sm:$0xf]  ;;  %v235_v28 = vld [vmem:[%s3797_s26 + $0xe0] sm:$0xf]  ;;  %232 = vst [vmem:[%s3804_s27 + $0x68] sm:$0xf] %v231_v26 }
  0x22   : > { %234 = vst [vmem:[%s3804_s27 + $0x6c] sm:$0xf] %v233_v27  ;;  %236 = vst [vmem:[%s3804_s27 + $0x70] sm:$0xf] %v235_v28  ;;  %v237_v29 = vld [vmem:[%s3797_s26 + $0xe8] sm:$0xf] }
  0x23   : > { %v239_v30 = vld [vmem:[%s3797_s26 + $0xf0] sm:$0xf]  ;;  %v241_v31 = vld [vmem:[%s3797_s26 + $0xf8] sm:$0xf]  ;;  %238 = vst [vmem:[%s3804_s27 + $0x74] sm:$0xf] %v237_v29 }
  0x24   : > { %240 = vst [vmem:[%s3804_s27 + $0x78] sm:$0xf] %v239_v30  ;;  %242 = vst [vmem:[%s3804_s27 + $0x7c] sm:$0xf] %v241_v31  ;;  %v243_v32 = vld [vmem:[%s3797_s26 + $0x100] sm:$0xf] }
  0x25   : > { %v245_v33 = vld [vmem:[%s3797_s26 + $0x108] sm:$0xf]  ;;  %v247_v34 = vld [vmem:[%s3797_s26 + $0x110] sm:$0xf]  ;;  %244 = vst [vmem:[%s3804_s27 + $0x80] sm:$0xf] %v243_v32 }
  0x26   : > { %246 = vst [vmem:[%s3804_s27 + $0x84] sm:$0xf] %v245_v33  ;;  %248 = vst [vmem:[%s3804_s27 + $0x88] sm:$0xf] %v247_v34  ;;  %v249_v35 = vld [vmem:[%s3797_s26 + $0x118] sm:$0xf] }
  0x27   : > { %v251_v36 = vld [vmem:[%s3797_s26 + $0x120] sm:$0xf]  ;;  %v253_v37 = vld [vmem:[%s3797_s26 + $0x128] sm:$0xf]  ;;  %250 = vst [vmem:[%s3804_s27 + $0x8c] sm:$0xf] %v249_v35 }
  0x28   : > { %252 = vst [vmem:[%s3804_s27 + $0x90] sm:$0xf] %v251_v36  ;;  %254 = vst [vmem:[%s3804_s27 + $0x94] sm:$0xf] %v253_v37  ;;  %v255_v38 = vld [vmem:[%s3797_s26 + $0x130] sm:$0xf] }
  0x29   : > { %v257_v39 = vld [vmem:[%s3797_s26 + $0x138] sm:$0xf]  ;;  %v259_v40 = vld [vmem:[%s3797_s26 + $0x140] sm:$0xf]  ;;  %256 = vst [vmem:[%s3804_s27 + $0x98] sm:$0xf] %v255_v38 }
  0x2a   : > { %258 = vst [vmem:[%s3804_s27 + $0x9c] sm:$0xf] %v257_v39  ;;  %260 = vst [vmem:[%s3804_s27 + $0xa0] sm:$0xf] %v259_v40  ;;  %v261_v41 = vld [vmem:[%s3797_s26 + $0x148] sm:$0xf] }
  0x2b   : > { %v263_v42 = vld [vmem:[%s3797_s26 + $0x150] sm:$0xf]  ;;  %v265_v43 = vld [vmem:[%s3797_s26 + $0x158] sm:$0xf]  ;;  %262 = vst [vmem:[%s3804_s27 + $0xa4] sm:$0xf] %v261_v41 }
  0x2c   : > { %264 = vst [vmem:[%s3804_s27 + $0xa8] sm:$0xf] %v263_v42  ;;  %266 = vst [vmem:[%s3804_s27 + $0xac] sm:$0xf] %v265_v43  ;;  %v267_v44 = vld [vmem:[%s3797_s26 + $0x160] sm:$0xf] }
  0x2d   : > { %v269_v45 = vld [vmem:[%s3797_s26 + $0x168] sm:$0xf]  ;;  %v271_v46 = vld [vmem:[%s3797_s26 + $0x170] sm:$0xf]  ;;  %268 = vst [vmem:[%s3804_s27 + $0xb0] sm:$0xf] %v267_v44 }
  0x2e   : > { %270 = vst [vmem:[%s3804_s27 + $0xb4] sm:$0xf] %v269_v45  ;;  %272 = vst [vmem:[%s3804_s27 + $0xb8] sm:$0xf] %v271_v46  ;;  %v273_v47 = vld [vmem:[%s3797_s26 + $0x178] sm:$0xf] }
  0x2f   : > { %v275_v48 = vld [vmem:[%s3797_s26 + $0x180] sm:$0xf]  ;;  %v277_v49 = vld [vmem:[%s3797_s26 + $0x188] sm:$0xf]  ;;  %274 = vst [vmem:[%s3804_s27 + $0xbc] sm:$0xf] %v273_v47 }
  0x30   : > { %276 = vst [vmem:[%s3804_s27 + $0xc0] sm:$0xf] %v275_v48  ;;  %278 = vst [vmem:[%s3804_s27 + $0xc4] sm:$0xf] %v277_v49  ;;  %v279_v50 = vld [vmem:[%s3797_s26 + $0x190] sm:$0xf] }
  0x31   : > { %v281_v51 = vld [vmem:[%s3797_s26 + $0x198] sm:$0xf]  ;;  %v283_v52 = vld [vmem:[%s3797_s26 + $0x1a0] sm:$0xf]  ;;  %280 = vst [vmem:[%s3804_s27 + $0xc8] sm:$0xf] %v279_v50 }
  0x32   : > { %282 = vst [vmem:[%s3804_s27 + $0xcc] sm:$0xf] %v281_v51  ;;  %284 = vst [vmem:[%s3804_s27 + $0xd0] sm:$0xf] %v283_v52  ;;  %v285_v53 = vld [vmem:[%s3797_s26 + $0x1a8] sm:$0xf] }
  0x33   : > { %v287_v54 = vld [vmem:[%s3797_s26 + $0x1b0] sm:$0xf]  ;;  %v289_v55 = vld [vmem:[%s3797_s26 + $0x1b8] sm:$0xf]  ;;  %286 = vst [vmem:[%s3804_s27 + $0xd4] sm:$0xf] %v285_v53 }
  0x34   : > { %288 = vst [vmem:[%s3804_s27 + $0xd8] sm:$0xf] %v287_v54  ;;  %290 = vst [vmem:[%s3804_s27 + $0xdc] sm:$0xf] %v289_v55  ;;  %v291_v56 = vld [vmem:[%s3797_s26 + $0x1c0] sm:$0xf] }
  0x35   : > { %v293_v57 = vld [vmem:[%s3797_s26 + $0x1c8] sm:$0xf]  ;;  %v295_v58 = vld [vmem:[%s3797_s26 + $0x1d0] sm:$0xf]  ;;  %292 = vst [vmem:[%s3804_s27 + $0xe0] sm:$0xf] %v291_v56 }
  0x36   : > { %294 = vst [vmem:[%s3804_s27 + $0xe4] sm:$0xf] %v293_v57  ;;  %296 = vst [vmem:[%s3804_s27 + $0xe8] sm:$0xf] %v295_v58  ;;  %v297_v59 = vld [vmem:[%s3797_s26 + $0x1d8] sm:$0xf] }
  0x37   : > { %v299_v60 = vld [vmem:[%s3797_s26 + $0x1e0] sm:$0xf]  ;;  %v301_v61 = vld [vmem:[%s3797_s26 + $0x1e8] sm:$0xf]  ;;  %298 = vst [vmem:[%s3804_s27 + $0xec] sm:$0xf] %v297_v59 }
  0x38   : > { %300 = vst [vmem:[%s3804_s27 + $0xf0] sm:$0xf] %v299_v60  ;;  %302 = vst [vmem:[%s3804_s27 + $0xf4] sm:$0xf] %v301_v61  ;;  %v303_v62 = vld [vmem:[%s3797_s26 + $0x1f0] sm:$0xf] }
  0x39   : > { %v305_v63 = vld [vmem:[%s3797_s26 + $0x1f8] sm:$0xf]  ;;  %v307_v0 = vld [vmem:[%s3797_s26 + $0x200] sm:$0xf]  ;;  %304 = vst [vmem:[%s3804_s27 + $0xf8] sm:$0xf] %v303_v62 }
  0x3a   : > { %306 = vst [vmem:[%s3804_s27 + $0xfc] sm:$0xf] %v305_v63  ;;  %308 = vst [vmem:[%s3804_s27 + $0x100] sm:$0xf] %v307_v0  ;;  %v309_v1 = vld [vmem:[%s3797_s26 + $0x208] sm:$0xf] }
  0x3b   : > { %v311_v2 = vld [vmem:[%s3797_s26 + $0x210] sm:$0xf]  ;;  %v313_v3 = vld [vmem:[%s3797_s26 + $0x218] sm:$0xf]  ;;  %310 = vst [vmem:[%s3804_s27 + $0x104] sm:$0xf] %v309_v1 }
  0x3c   : > { %312 = vst [vmem:[%s3804_s27 + $0x108] sm:$0xf] %v311_v2  ;;  %314 = vst [vmem:[%s3804_s27 + $0x10c] sm:$0xf] %v313_v3  ;;  %v315_v4 = vld [vmem:[%s3797_s26 + $0x220] sm:$0xf] }
  0x3d   : > { %v317_v5 = vld [vmem:[%s3797_s26 + $0x228] sm:$0xf]  ;;  %v319_v6 = vld [vmem:[%s3797_s26 + $0x230] sm:$0xf]  ;;  %316 = vst [vmem:[%s3804_s27 + $0x110] sm:$0xf] %v315_v4 }
  0x3e   : > { %318 = vst [vmem:[%s3804_s27 + $0x114] sm:$0xf] %v317_v5  ;;  %320 = vst [vmem:[%s3804_s27 + $0x118] sm:$0xf] %v319_v6  ;;  %v321_v7 = vld [vmem:[%s3797_s26 + $0x238] sm:$0xf] }
  0x3f   : > { %v323_v8 = vld [vmem:[%s3797_s26 + $0x240] sm:$0xf]  ;;  %v325_v9 = vld [vmem:[%s3797_s26 + $0x248] sm:$0xf]  ;;  %322 = vst [vmem:[%s3804_s27 + $0x11c] sm:$0xf] %v321_v7 }
  0x40   : > { %324 = vst [vmem:[%s3804_s27 + $0x120] sm:$0xf] %v323_v8  ;;  %326 = vst [vmem:[%s3804_s27 + $0x124] sm:$0xf] %v325_v9  ;;  %v327_v10 = vld [vmem:[%s3797_s26 + $0x250] sm:$0xf] }
  0x41   : > { %v329_v11 = vld [vmem:[%s3797_s26 + $0x258] sm:$0xf]  ;;  %v331_v12 = vld [vmem:[%s3797_s26 + $0x260] sm:$0xf]  ;;  %328 = vst [vmem:[%s3804_s27 + $0x128] sm:$0xf] %v327_v10 }
  0x42   : > { %330 = vst [vmem:[%s3804_s27 + $0x12c] sm:$0xf] %v329_v11  ;;  %332 = vst [vmem:[%s3804_s27 + $0x130] sm:$0xf] %v331_v12  ;;  %v333_v13 = vld [vmem:[%s3797_s26 + $0x268] sm:$0xf] }
  0x43   : > { %v335_v14 = vld [vmem:[%s3797_s26 + $0x270] sm:$0xf]  ;;  %v337_v15 = vld [vmem:[%s3797_s26 + $0x278] sm:$0xf]  ;;  %334 = vst [vmem:[%s3804_s27 + $0x134] sm:$0xf] %v333_v13 }
  0x44   : > { %336 = vst [vmem:[%s3804_s27 + $0x138] sm:$0xf] %v335_v14  ;;  %338 = vst [vmem:[%s3804_s27 + $0x13c] sm:$0xf] %v337_v15  ;;  %v339_v16 = vld [vmem:[%s3797_s26 + $0x280] sm:$0xf] }
  0x45   : > { %v341_v17 = vld [vmem:[%s3797_s26 + $0x288] sm:$0xf]  ;;  %v343_v18 = vld [vmem:[%s3797_s26 + $0x290] sm:$0xf]  ;;  %340 = vst [vmem:[%s3804_s27 + $0x140] sm:$0xf] %v339_v16 }
  0x46   : > { %342 = vst [vmem:[%s3804_s27 + $0x144] sm:$0xf] %v341_v17  ;;  %344 = vst [vmem:[%s3804_s27 + $0x148] sm:$0xf] %v343_v18  ;;  %v345_v19 = vld [vmem:[%s3797_s26 + $0x298] sm:$0xf] }
  0x47   : > { %v347_v20 = vld [vmem:[%s3797_s26 + $0x2a0] sm:$0xf]  ;;  %v349_v21 = vld [vmem:[%s3797_s26 + $0x2a8] sm:$0xf]  ;;  %346 = vst [vmem:[%s3804_s27 + $0x14c] sm:$0xf] %v345_v19 }
  0x48   : > { %348 = vst [vmem:[%s3804_s27 + $0x150] sm:$0xf] %v347_v20  ;;  %350 = vst [vmem:[%s3804_s27 + $0x154] sm:$0xf] %v349_v21  ;;  %v351_v22 = vld [vmem:[%s3797_s26 + $0x2b0] sm:$0xf] }
  0x49   : > { %v353_v23 = vld [vmem:[%s3797_s26 + $0x2b8] sm:$0xf]  ;;  %v355_v24 = vld [vmem:[%s3797_s26 + $0x2c0] sm:$0xf]  ;;  %352 = vst [vmem:[%s3804_s27 + $0x158] sm:$0xf] %v351_v22 }
  0x4a   : > { %354 = vst [vmem:[%s3804_s27 + $0x15c] sm:$0xf] %v353_v23  ;;  %356 = vst [vmem:[%s3804_s27 + $0x160] sm:$0xf] %v355_v24  ;;  %v357_v25 = vld [vmem:[%s3797_s26 + $0x2c8] sm:$0xf] }
  0x4b   : > { %v359_v26 = vld [vmem:[%s3797_s26 + $0x2d0] sm:$0xf]  ;;  %v361_v27 = vld [vmem:[%s3797_s26 + $0x2d8] sm:$0xf]  ;;  %358 = vst [vmem:[%s3804_s27 + $0x164] sm:$0xf] %v357_v25 }
  0x4c   : > { %360 = vst [vmem:[%s3804_s27 + $0x168] sm:$0xf] %v359_v26  ;;  %362 = vst [vmem:[%s3804_s27 + $0x16c] sm:$0xf] %v361_v27  ;;  %v363_v28 = vld [vmem:[%s3797_s26 + $0x2e0] sm:$0xf] }
  0x4d   : > { %v365_v29 = vld [vmem:[%s3797_s26 + $0x2e8] sm:$0xf]  ;;  %v367_v30 = vld [vmem:[%s3797_s26 + $0x2f0] sm:$0xf]  ;;  %364 = vst [vmem:[%s3804_s27 + $0x170] sm:$0xf] %v363_v28 }
  0x4e   : > { %366 = vst [vmem:[%s3804_s27 + $0x174] sm:$0xf] %v365_v29  ;;  %368 = vst [vmem:[%s3804_s27 + $0x178] sm:$0xf] %v367_v30  ;;  %v369_v31 = vld [vmem:[%s3797_s26 + $0x2f8] sm:$0xf] }
  0x4f   : > { %v371_v32 = vld [vmem:[%s3797_s26 + $0x300] sm:$0xf]  ;;  %v373_v33 = vld [vmem:[%s3797_s26 + $0x308] sm:$0xf]  ;;  %370 = vst [vmem:[%s3804_s27 + $0x17c] sm:$0xf] %v369_v31 }
  0x50   : > { %372 = vst [vmem:[%s3804_s27 + $0x180] sm:$0xf] %v371_v32  ;;  %374 = vst [vmem:[%s3804_s27 + $0x184] sm:$0xf] %v373_v33  ;;  %v375_v34 = vld [vmem:[%s3797_s26 + $0x310] sm:$0xf] }
  0x51   : > { %v377_v35 = vld [vmem:[%s3797_s26 + $0x318] sm:$0xf]  ;;  %v379_v36 = vld [vmem:[%s3797_s26 + $0x320] sm:$0xf]  ;;  %376 = vst [vmem:[%s3804_s27 + $0x188] sm:$0xf] %v375_v34 }
  0x52   : > { %378 = vst [vmem:[%s3804_s27 + $0x18c] sm:$0xf] %v377_v35  ;;  %380 = vst [vmem:[%s3804_s27 + $0x190] sm:$0xf] %v379_v36  ;;  %v381_v37 = vld [vmem:[%s3797_s26 + $0x328] sm:$0xf] }
  0x53   : > { %v383_v38 = vld [vmem:[%s3797_s26 + $0x330] sm:$0xf]  ;;  %v385_v39 = vld [vmem:[%s3797_s26 + $0x338] sm:$0xf]  ;;  %382 = vst [vmem:[%s3804_s27 + $0x194] sm:$0xf] %v381_v37 }
  0x54   : > { %384 = vst [vmem:[%s3804_s27 + $0x198] sm:$0xf] %v383_v38  ;;  %386 = vst [vmem:[%s3804_s27 + $0x19c] sm:$0xf] %v385_v39  ;;  %v387_v40 = vld [vmem:[%s3797_s26 + $0x340] sm:$0xf] }
  0x55   : > { %v389_v41 = vld [vmem:[%s3797_s26 + $0x348] sm:$0xf]  ;;  %v391_v42 = vld [vmem:[%s3797_s26 + $0x350] sm:$0xf]  ;;  %388 = vst [vmem:[%s3804_s27 + $0x1a0] sm:$0xf] %v387_v40 }
  0x56   : > { %390 = vst [vmem:[%s3804_s27 + $0x1a4] sm:$0xf] %v389_v41  ;;  %392 = vst [vmem:[%s3804_s27 + $0x1a8] sm:$0xf] %v391_v42  ;;  %v393_v43 = vld [vmem:[%s3797_s26 + $0x358] sm:$0xf] }
  0x57   : > { %v395_v44 = vld [vmem:[%s3797_s26 + $0x360] sm:$0xf]  ;;  %v397_v45 = vld [vmem:[%s3797_s26 + $0x368] sm:$0xf]  ;;  %394 = vst [vmem:[%s3804_s27 + $0x1ac] sm:$0xf] %v393_v43 }
  0x58   : > { %396 = vst [vmem:[%s3804_s27 + $0x1b0] sm:$0xf] %v395_v44  ;;  %398 = vst [vmem:[%s3804_s27 + $0x1b4] sm:$0xf] %v397_v45  ;;  %v399_v46 = vld [vmem:[%s3797_s26 + $0x370] sm:$0xf] }
  0x59   : > { %v401_v47 = vld [vmem:[%s3797_s26 + $0x378] sm:$0xf]  ;;  %v403_v48 = vld [vmem:[%s3797_s26 + $0x380] sm:$0xf]  ;;  %400 = vst [vmem:[%s3804_s27 + $0x1b8] sm:$0xf] %v399_v46 }
  0x5a   : > { %402 = vst [vmem:[%s3804_s27 + $0x1bc] sm:$0xf] %v401_v47  ;;  %404 = vst [vmem:[%s3804_s27 + $0x1c0] sm:$0xf] %v403_v48  ;;  %v405_v49 = vld [vmem:[%s3797_s26 + $0x388] sm:$0xf] }
  0x5b   : > { %v407_v50 = vld [vmem:[%s3797_s26 + $0x390] sm:$0xf]  ;;  %v409_v51 = vld [vmem:[%s3797_s26 + $0x398] sm:$0xf]  ;;  %406 = vst [vmem:[%s3804_s27 + $0x1c4] sm:$0xf] %v405_v49 }
  0x5c   : > { %408 = vst [vmem:[%s3804_s27 + $0x1c8] sm:$0xf] %v407_v50  ;;  %410 = vst [vmem:[%s3804_s27 + $0x1cc] sm:$0xf] %v409_v51  ;;  %v411_v52 = vld [vmem:[%s3797_s26 + $0x3a0] sm:$0xf] }
  0x5d   : > { %v413_v53 = vld [vmem:[%s3797_s26 + $0x3a8] sm:$0xf]  ;;  %v415_v54 = vld [vmem:[%s3797_s26 + $0x3b0] sm:$0xf]  ;;  %412 = vst [vmem:[%s3804_s27 + $0x1d0] sm:$0xf] %v411_v52 }
  0x5e   : > { %414 = vst [vmem:[%s3804_s27 + $0x1d4] sm:$0xf] %v413_v53  ;;  %416 = vst [vmem:[%s3804_s27 + $0x1d8] sm:$0xf] %v415_v54  ;;  %v417_v55 = vld [vmem:[%s3797_s26 + $0x3b8] sm:$0xf] }
  0x5f   : > { %v419_v56 = vld [vmem:[%s3797_s26 + $0x3c0] sm:$0xf]  ;;  %v421_v57 = vld [vmem:[%s3797_s26 + $0x3c8] sm:$0xf]  ;;  %418 = vst [vmem:[%s3804_s27 + $0x1dc] sm:$0xf] %v417_v55 }
  0x60   : > { %420 = vst [vmem:[%s3804_s27 + $0x1e0] sm:$0xf] %v419_v56  ;;  %422 = vst [vmem:[%s3804_s27 + $0x1e4] sm:$0xf] %v421_v57  ;;  %v423_v58 = vld [vmem:[%s3797_s26 + $0x3d0] sm:$0xf] }
  0x61   : > { %v425_v59 = vld [vmem:[%s3797_s26 + $0x3d8] sm:$0xf]  ;;  %v427_v60 = vld [vmem:[%s3797_s26 + $0x3e0] sm:$0xf]  ;;  %424 = vst [vmem:[%s3804_s27 + $0x1e8] sm:$0xf] %v423_v58 }
  0x62   : > { %426 = vst [vmem:[%s3804_s27 + $0x1ec] sm:$0xf] %v425_v59  ;;  %428 = vst [vmem:[%s3804_s27 + $0x1f0] sm:$0xf] %v427_v60  ;;  %v429_v61 = vld [vmem:[%s3797_s26 + $0x3e8] sm:$0xf] }
  0x63   : > { %v431_v62 = vld [vmem:[%s3797_s26 + $0x3f0] sm:$0xf]  ;;  %v433_v63 = vld [vmem:[%s3797_s26 + $0x3f8] sm:$0xf]  ;;  %430 = vst [vmem:[%s3804_s27 + $0x1f4] sm:$0xf] %v429_v61 }
  0x64   : > { %432 = vst [vmem:[%s3804_s27 + $0x1f8] sm:$0xf] %v431_v62  ;;  %434 = vst [vmem:[%s3804_s27 + $0x1fc] sm:$0xf] %v433_v63  ;;  %v435_v0 = vld [vmem:[%s3797_s26 + $0x400] sm:$0xf] }
  0x65   : > { %v437_v1 = vld [vmem:[%s3797_s26 + $0x408] sm:$0xf]  ;;  %v439_v2 = vld [vmem:[%s3797_s26 + $0x410] sm:$0xf]  ;;  %436 = vst [vmem:[%s3804_s27 + $0x200] sm:$0xf] %v435_v0 }
  0x66   : > { %438 = vst [vmem:[%s3804_s27 + $0x204] sm:$0xf] %v437_v1  ;;  %440 = vst [vmem:[%s3804_s27 + $0x208] sm:$0xf] %v439_v2  ;;  %v441_v3 = vld [vmem:[%s3797_s26 + $0x418] sm:$0xf] }
  0x67   : > { %v443_v4 = vld [vmem:[%s3797_s26 + $0x420] sm:$0xf]  ;;  %v445_v5 = vld [vmem:[%s3797_s26 + $0x428] sm:$0xf]  ;;  %442 = vst [vmem:[%s3804_s27 + $0x20c] sm:$0xf] %v441_v3 }
  0x68   : > { %444 = vst [vmem:[%s3804_s27 + $0x210] sm:$0xf] %v443_v4  ;;  %446 = vst [vmem:[%s3804_s27 + $0x214] sm:$0xf] %v445_v5  ;;  %v447_v6 = vld [vmem:[%s3797_s26 + $0x430] sm:$0xf] }
  0x69   : > { %v449_v7 = vld [vmem:[%s3797_s26 + $0x438] sm:$0xf]  ;;  %v451_v8 = vld [vmem:[%s3797_s26 + $0x440] sm:$0xf]  ;;  %448 = vst [vmem:[%s3804_s27 + $0x218] sm:$0xf] %v447_v6 }
  0x6a   : > { %450 = vst [vmem:[%s3804_s27 + $0x21c] sm:$0xf] %v449_v7  ;;  %452 = vst [vmem:[%s3804_s27 + $0x220] sm:$0xf] %v451_v8  ;;  %v453_v9 = vld [vmem:[%s3797_s26 + $0x448] sm:$0xf] }
  0x6b   : > { %v455_v10 = vld [vmem:[%s3797_s26 + $0x450] sm:$0xf]  ;;  %v457_v11 = vld [vmem:[%s3797_s26 + $0x458] sm:$0xf]  ;;  %454 = vst [vmem:[%s3804_s27 + $0x224] sm:$0xf] %v453_v9 }
  0x6c   : > { %456 = vst [vmem:[%s3804_s27 + $0x228] sm:$0xf] %v455_v10  ;;  %458 = vst [vmem:[%s3804_s27 + $0x22c] sm:$0xf] %v457_v11  ;;  %v459_v12 = vld [vmem:[%s3797_s26 + $0x460] sm:$0xf] }
  0x6d   : > { %v461_v13 = vld [vmem:[%s3797_s26 + $0x468] sm:$0xf]  ;;  %v463_v14 = vld [vmem:[%s3797_s26 + $0x470] sm:$0xf]  ;;  %460 = vst [vmem:[%s3804_s27 + $0x230] sm:$0xf] %v459_v12 }
  0x6e   : > { %462 = vst [vmem:[%s3804_s27 + $0x234] sm:$0xf] %v461_v13  ;;  %464 = vst [vmem:[%s3804_s27 + $0x238] sm:$0xf] %v463_v14  ;;  %v465_v15 = vld [vmem:[%s3797_s26 + $0x478] sm:$0xf] }
  0x6f   : > { %v467_v16 = vld [vmem:[%s3797_s26 + $0x480] sm:$0xf]  ;;  %v469_v17 = vld [vmem:[%s3797_s26 + $0x488] sm:$0xf]  ;;  %466 = vst [vmem:[%s3804_s27 + $0x23c] sm:$0xf] %v465_v15 }
  0x70   : > { %468 = vst [vmem:[%s3804_s27 + $0x240] sm:$0xf] %v467_v16  ;;  %470 = vst [vmem:[%s3804_s27 + $0x244] sm:$0xf] %v469_v17  ;;  %v471_v18 = vld [vmem:[%s3797_s26 + $0x490] sm:$0xf] }
  0x71   : > { %v473_v19 = vld [vmem:[%s3797_s26 + $0x498] sm:$0xf]  ;;  %v475_v20 = vld [vmem:[%s3797_s26 + $0x4a0] sm:$0xf]  ;;  %472 = vst [vmem:[%s3804_s27 + $0x248] sm:$0xf] %v471_v18 }
  0x72   : > { %474 = vst [vmem:[%s3804_s27 + $0x24c] sm:$0xf] %v473_v19  ;;  %476 = vst [vmem:[%s3804_s27 + $0x250] sm:$0xf] %v475_v20  ;;  %v477_v21 = vld [vmem:[%s3797_s26 + $0x4a8] sm:$0xf] }
  0x73   : > { %v479_v22 = vld [vmem:[%s3797_s26 + $0x4b0] sm:$0xf]  ;;  %v481_v23 = vld [vmem:[%s3797_s26 + $0x4b8] sm:$0xf]  ;;  %478 = vst [vmem:[%s3804_s27 + $0x254] sm:$0xf] %v477_v21 }
  0x74   : > { %480 = vst [vmem:[%s3804_s27 + $0x258] sm:$0xf] %v479_v22  ;;  %482 = vst [vmem:[%s3804_s27 + $0x25c] sm:$0xf] %v481_v23  ;;  %v483_v24 = vld [vmem:[%s3797_s26 + $0x4c0] sm:$0xf] }
  0x75   : > { %v485_v25 = vld [vmem:[%s3797_s26 + $0x4c8] sm:$0xf]  ;;  %v487_v26 = vld [vmem:[%s3797_s26 + $0x4d0] sm:$0xf]  ;;  %484 = vst [vmem:[%s3804_s27 + $0x260] sm:$0xf] %v483_v24 }
  0x76   : > { %486 = vst [vmem:[%s3804_s27 + $0x264] sm:$0xf] %v485_v25  ;;  %488 = vst [vmem:[%s3804_s27 + $0x268] sm:$0xf] %v487_v26  ;;  %v489_v27 = vld [vmem:[%s3797_s26 + $0x4d8] sm:$0xf] }
  0x77   : > { %v491_v28 = vld [vmem:[%s3797_s26 + $0x4e0] sm:$0xf]  ;;  %v493_v29 = vld [vmem:[%s3797_s26 + $0x4e8] sm:$0xf]  ;;  %490 = vst [vmem:[%s3804_s27 + $0x26c] sm:$0xf] %v489_v27 }
  0x78   : > { %492 = vst [vmem:[%s3804_s27 + $0x270] sm:$0xf] %v491_v28  ;;  %494 = vst [vmem:[%s3804_s27 + $0x274] sm:$0xf] %v493_v29  ;;  %v495_v30 = vld [vmem:[%s3797_s26 + $0x4f0] sm:$0xf] }
  0x79   : > { %v497_v31 = vld [vmem:[%s3797_s26 + $0x4f8] sm:$0xf]  ;;  %v499_v32 = vld [vmem:[%s3797_s26 + $0x500] sm:$0xf]  ;;  %496 = vst [vmem:[%s3804_s27 + $0x278] sm:$0xf] %v495_v30 }
  0x7a   : > { %498 = vst [vmem:[%s3804_s27 + $0x27c] sm:$0xf] %v497_v31  ;;  %500 = vst [vmem:[%s3804_s27 + $0x280] sm:$0xf] %v499_v32  ;;  %v501_v33 = vld [vmem:[%s3797_s26 + $0x508] sm:$0xf] }
  0x7b   : > { %v503_v34 = vld [vmem:[%s3797_s26 + $0x510] sm:$0xf]  ;;  %v505_v35 = vld [vmem:[%s3797_s26 + $0x518] sm:$0xf]  ;;  %502 = vst [vmem:[%s3804_s27 + $0x284] sm:$0xf] %v501_v33 }
  0x7c   : > { %504 = vst [vmem:[%s3804_s27 + $0x288] sm:$0xf] %v503_v34  ;;  %506 = vst [vmem:[%s3804_s27 + $0x28c] sm:$0xf] %v505_v35  ;;  %v507_v36 = vld [vmem:[%s3797_s26 + $0x520] sm:$0xf] }
  0x7d   : > { %v509_v37 = vld [vmem:[%s3797_s26 + $0x528] sm:$0xf]  ;;  %v511_v38 = vld [vmem:[%s3797_s26 + $0x530] sm:$0xf]  ;;  %508 = vst [vmem:[%s3804_s27 + $0x290] sm:$0xf] %v507_v36 }
  0x7e   : > { %510 = vst [vmem:[%s3804_s27 + $0x294] sm:$0xf] %v509_v37  ;;  %512 = vst [vmem:[%s3804_s27 + $0x298] sm:$0xf] %v511_v38  ;;  %v513_v39 = vld [vmem:[%s3797_s26 + $0x538] sm:$0xf] }
  0x7f   : > { %v515_v40 = vld [vmem:[%s3797_s26 + $0x540] sm:$0xf]  ;;  %v517_v41 = vld [vmem:[%s3797_s26 + $0x548] sm:$0xf]  ;;  %514 = vst [vmem:[%s3804_s27 + $0x29c] sm:$0xf] %v513_v39 }
  0x80   : > { %516 = vst [vmem:[%s3804_s27 + $0x2a0] sm:$0xf] %v515_v40  ;;  %518 = vst [vmem:[%s3804_s27 + $0x2a4] sm:$0xf] %v517_v41  ;;  %v519_v42 = vld [vmem:[%s3797_s26 + $0x550] sm:$0xf] }
  0x81   : > { %v521_v43 = vld [vmem:[%s3797_s26 + $0x558] sm:$0xf]  ;;  %v523_v44 = vld [vmem:[%s3797_s26 + $0x560] sm:$0xf]  ;;  %520 = vst [vmem:[%s3804_s27 + $0x2a8] sm:$0xf] %v519_v42 }
  0x82   : > { %522 = vst [vmem:[%s3804_s27 + $0x2ac] sm:$0xf] %v521_v43  ;;  %524 = vst [vmem:[%s3804_s27 + $0x2b0] sm:$0xf] %v523_v44  ;;  %v525_v45 = vld [vmem:[%s3797_s26 + $0x568] sm:$0xf] }
  0x83   : > { %v527_v46 = vld [vmem:[%s3797_s26 + $0x570] sm:$0xf]  ;;  %v529_v47 = vld [vmem:[%s3797_s26 + $0x578] sm:$0xf]  ;;  %526 = vst [vmem:[%s3804_s27 + $0x2b4] sm:$0xf] %v525_v45 }
  0x84   : > { %528 = vst [vmem:[%s3804_s27 + $0x2b8] sm:$0xf] %v527_v46  ;;  %530 = vst [vmem:[%s3804_s27 + $0x2bc] sm:$0xf] %v529_v47  ;;  %v531_v48 = vld [vmem:[%s3797_s26 + $0x580] sm:$0xf] }
  0x85   : > { %v533_v49 = vld [vmem:[%s3797_s26 + $0x588] sm:$0xf]  ;;  %v535_v50 = vld [vmem:[%s3797_s26 + $0x590] sm:$0xf]  ;;  %532 = vst [vmem:[%s3804_s27 + $0x2c0] sm:$0xf] %v531_v48 }
  0x86   : > { %534 = vst [vmem:[%s3804_s27 + $0x2c4] sm:$0xf] %v533_v49  ;;  %536 = vst [vmem:[%s3804_s27 + $0x2c8] sm:$0xf] %v535_v50  ;;  %v537_v51 = vld [vmem:[%s3797_s26 + $0x598] sm:$0xf] }
  0x87   : > { %v539_v52 = vld [vmem:[%s3797_s26 + $0x5a0] sm:$0xf]  ;;  %v541_v53 = vld [vmem:[%s3797_s26 + $0x5a8] sm:$0xf]  ;;  %538 = vst [vmem:[%s3804_s27 + $0x2cc] sm:$0xf] %v537_v51 }
  0x88   : > { %540 = vst [vmem:[%s3804_s27 + $0x2d0] sm:$0xf] %v539_v52  ;;  %542 = vst [vmem:[%s3804_s27 + $0x2d4] sm:$0xf] %v541_v53  ;;  %v543_v54 = vld [vmem:[%s3797_s26 + $0x5b0] sm:$0xf] }
  0x89   : > { %v545_v55 = vld [vmem:[%s3797_s26 + $0x5b8] sm:$0xf]  ;;  %v547_v56 = vld [vmem:[%s3797_s26 + $0x5c0] sm:$0xf]  ;;  %544 = vst [vmem:[%s3804_s27 + $0x2d8] sm:$0xf] %v543_v54 }
  0x8a   : > { %546 = vst [vmem:[%s3804_s27 + $0x2dc] sm:$0xf] %v545_v55  ;;  %548 = vst [vmem:[%s3804_s27 + $0x2e0] sm:$0xf] %v547_v56  ;;  %v549_v57 = vld [vmem:[%s3797_s26 + $0x5c8] sm:$0xf] }
  0x8b   : > { %v551_v58 = vld [vmem:[%s3797_s26 + $0x5d0] sm:$0xf]  ;;  %v553_v59 = vld [vmem:[%s3797_s26 + $0x5d8] sm:$0xf]  ;;  %550 = vst [vmem:[%s3804_s27 + $0x2e4] sm:$0xf] %v549_v57 }
  0x8c   : > { %552 = vst [vmem:[%s3804_s27 + $0x2e8] sm:$0xf] %v551_v58  ;;  %554 = vst [vmem:[%s3804_s27 + $0x2ec] sm:$0xf] %v553_v59  ;;  %v555_v60 = vld [vmem:[%s3797_s26 + $0x5e0] sm:$0xf] }
  0x8d   : > { %v557_v61 = vld [vmem:[%s3797_s26 + $0x5e8] sm:$0xf]  ;;  %v559_v62 = vld [vmem:[%s3797_s26 + $0x5f0] sm:$0xf]  ;;  %556 = vst [vmem:[%s3804_s27 + $0x2f0] sm:$0xf] %v555_v60 }
  0x8e   : > { %558 = vst [vmem:[%s3804_s27 + $0x2f4] sm:$0xf] %v557_v61  ;;  %560 = vst [vmem:[%s3804_s27 + $0x2f8] sm:$0xf] %v559_v62  ;;  %v561_v63 = vld [vmem:[%s3797_s26 + $0x5f8] sm:$0xf] }
  0x8f   : > { %v563_v0 = vld [vmem:[%s3797_s26 + $0x600] sm:$0xf]  ;;  %v565_v1 = vld [vmem:[%s3797_s26 + $0x608] sm:$0xf]  ;;  %562 = vst [vmem:[%s3804_s27 + $0x2fc] sm:$0xf] %v561_v63 }
  0x90   : > { %564 = vst [vmem:[%s3804_s27 + $0x300] sm:$0xf] %v563_v0  ;;  %566 = vst [vmem:[%s3804_s27 + $0x304] sm:$0xf] %v565_v1  ;;  %v567_v2 = vld [vmem:[%s3797_s26 + $0x610] sm:$0xf] }
  0x91   : > { %v569_v3 = vld [vmem:[%s3797_s26 + $0x618] sm:$0xf]  ;;  %v571_v4 = vld [vmem:[%s3797_s26 + $0x620] sm:$0xf]  ;;  %568 = vst [vmem:[%s3804_s27 + $0x308] sm:$0xf] %v567_v2 }
  0x92   : > { %570 = vst [vmem:[%s3804_s27 + $0x30c] sm:$0xf] %v569_v3  ;;  %572 = vst [vmem:[%s3804_s27 + $0x310] sm:$0xf] %v571_v4  ;;  %v573_v5 = vld [vmem:[%s3797_s26 + $0x628] sm:$0xf] }
  0x93   : > { %v575_v6 = vld [vmem:[%s3797_s26 + $0x630] sm:$0xf]  ;;  %v577_v7 = vld [vmem:[%s3797_s26 + $0x638] sm:$0xf]  ;;  %574 = vst [vmem:[%s3804_s27 + $0x314] sm:$0xf] %v573_v5 }
  0x94   : > { %576 = vst [vmem:[%s3804_s27 + $0x318] sm:$0xf] %v575_v6  ;;  %578 = vst [vmem:[%s3804_s27 + $0x31c] sm:$0xf] %v577_v7  ;;  %v579_v8 = vld [vmem:[%s3797_s26 + $0x640] sm:$0xf] }
  0x95   : > { %v581_v9 = vld [vmem:[%s3797_s26 + $0x648] sm:$0xf]  ;;  %v583_v10 = vld [vmem:[%s3797_s26 + $0x650] sm:$0xf]  ;;  %580 = vst [vmem:[%s3804_s27 + $0x320] sm:$0xf] %v579_v8 }
  0x96   : > { %582 = vst [vmem:[%s3804_s27 + $0x324] sm:$0xf] %v581_v9  ;;  %584 = vst [vmem:[%s3804_s27 + $0x328] sm:$0xf] %v583_v10  ;;  %v585_v11 = vld [vmem:[%s3797_s26 + $0x658] sm:$0xf] }
  0x97   : > { %v587_v12 = vld [vmem:[%s3797_s26 + $0x660] sm:$0xf]  ;;  %v589_v13 = vld [vmem:[%s3797_s26 + $0x668] sm:$0xf]  ;;  %586 = vst [vmem:[%s3804_s27 + $0x32c] sm:$0xf] %v585_v11 }
  0x98   : > { %588 = vst [vmem:[%s3804_s27 + $0x330] sm:$0xf] %v587_v12  ;;  %590 = vst [vmem:[%s3804_s27 + $0x334] sm:$0xf] %v589_v13  ;;  %v591_v14 = vld [vmem:[%s3797_s26 + $0x670] sm:$0xf] }
  0x99   : > { %v593_v15 = vld [vmem:[%s3797_s26 + $0x678] sm:$0xf]  ;;  %v595_v16 = vld [vmem:[%s3797_s26 + $0x680] sm:$0xf]  ;;  %592 = vst [vmem:[%s3804_s27 + $0x338] sm:$0xf] %v591_v14 }
  0x9a   : > { %594 = vst [vmem:[%s3804_s27 + $0x33c] sm:$0xf] %v593_v15  ;;  %596 = vst [vmem:[%s3804_s27 + $0x340] sm:$0xf] %v595_v16  ;;  %v597_v17 = vld [vmem:[%s3797_s26 + $0x688] sm:$0xf] }
  0x9b   : > { %v599_v18 = vld [vmem:[%s3797_s26 + $0x690] sm:$0xf]  ;;  %v601_v19 = vld [vmem:[%s3797_s26 + $0x698] sm:$0xf]  ;;  %598 = vst [vmem:[%s3804_s27 + $0x344] sm:$0xf] %v597_v17 }
  0x9c   : > { %600 = vst [vmem:[%s3804_s27 + $0x348] sm:$0xf] %v599_v18  ;;  %602 = vst [vmem:[%s3804_s27 + $0x34c] sm:$0xf] %v601_v19  ;;  %v603_v20 = vld [vmem:[%s3797_s26 + $0x6a0] sm:$0xf] }
  0x9d   : > { %v605_v21 = vld [vmem:[%s3797_s26 + $0x6a8] sm:$0xf]  ;;  %v607_v22 = vld [vmem:[%s3797_s26 + $0x6b0] sm:$0xf]  ;;  %604 = vst [vmem:[%s3804_s27 + $0x350] sm:$0xf] %v603_v20 }
  0x9e   : > { %606 = vst [vmem:[%s3804_s27 + $0x354] sm:$0xf] %v605_v21  ;;  %608 = vst [vmem:[%s3804_s27 + $0x358] sm:$0xf] %v607_v22  ;;  %v609_v23 = vld [vmem:[%s3797_s26 + $0x6b8] sm:$0xf] }
  0x9f   : > { %v611_v24 = vld [vmem:[%s3797_s26 + $0x6c0] sm:$0xf]  ;;  %v613_v25 = vld [vmem:[%s3797_s26 + $0x6c8] sm:$0xf]  ;;  %610 = vst [vmem:[%s3804_s27 + $0x35c] sm:$0xf] %v609_v23 }
  0xa0   : > { %612 = vst [vmem:[%s3804_s27 + $0x360] sm:$0xf] %v611_v24  ;;  %614 = vst [vmem:[%s3804_s27 + $0x364] sm:$0xf] %v613_v25  ;;  %v615_v26 = vld [vmem:[%s3797_s26 + $0x6d0] sm:$0xf] }
  0xa1   : > { %v617_v27 = vld [vmem:[%s3797_s26 + $0x6d8] sm:$0xf]  ;;  %v619_v28 = vld [vmem:[%s3797_s26 + $0x6e0] sm:$0xf]  ;;  %616 = vst [vmem:[%s3804_s27 + $0x368] sm:$0xf] %v615_v26 }
  0xa2   : > { %618 = vst [vmem:[%s3804_s27 + $0x36c] sm:$0xf] %v617_v27  ;;  %620 = vst [vmem:[%s3804_s27 + $0x370] sm:$0xf] %v619_v28  ;;  %v621_v29 = vld [vmem:[%s3797_s26 + $0x6e8] sm:$0xf] }
  0xa3   : > { %v623_v30 = vld [vmem:[%s3797_s26 + $0x6f0] sm:$0xf]  ;;  %v625_v31 = vld [vmem:[%s3797_s26 + $0x6f8] sm:$0xf]  ;;  %622 = vst [vmem:[%s3804_s27 + $0x374] sm:$0xf] %v621_v29 }
  0xa4   : > { %624 = vst [vmem:[%s3804_s27 + $0x378] sm:$0xf] %v623_v30  ;;  %626 = vst [vmem:[%s3804_s27 + $0x37c] sm:$0xf] %v625_v31  ;;  %v627_v32 = vld [vmem:[%s3797_s26 + $0x700] sm:$0xf] }
  0xa5   : > { %v629_v33 = vld [vmem:[%s3797_s26 + $0x708] sm:$0xf]  ;;  %v631_v34 = vld [vmem:[%s3797_s26 + $0x710] sm:$0xf]  ;;  %628 = vst [vmem:[%s3804_s27 + $0x380] sm:$0xf] %v627_v32 }
  0xa6   : > { %630 = vst [vmem:[%s3804_s27 + $0x384] sm:$0xf] %v629_v33  ;;  %632 = vst [vmem:[%s3804_s27 + $0x388] sm:$0xf] %v631_v34  ;;  %v633_v35 = vld [vmem:[%s3797_s26 + $0x718] sm:$0xf] }
  0xa7   : > { %v635_v36 = vld [vmem:[%s3797_s26 + $0x720] sm:$0xf]  ;;  %v637_v37 = vld [vmem:[%s3797_s26 + $0x728] sm:$0xf]  ;;  %634 = vst [vmem:[%s3804_s27 + $0x38c] sm:$0xf] %v633_v35 }
  0xa8   : > { %636 = vst [vmem:[%s3804_s27 + $0x390] sm:$0xf] %v635_v36  ;;  %638 = vst [vmem:[%s3804_s27 + $0x394] sm:$0xf] %v637_v37  ;;  %v639_v38 = vld [vmem:[%s3797_s26 + $0x730] sm:$0xf] }
  0xa9   : > { %v641_v39 = vld [vmem:[%s3797_s26 + $0x738] sm:$0xf]  ;;  %v643_v40 = vld [vmem:[%s3797_s26 + $0x740] sm:$0xf]  ;;  %640 = vst [vmem:[%s3804_s27 + $0x398] sm:$0xf] %v639_v38 }
  0xaa   : > { %642 = vst [vmem:[%s3804_s27 + $0x39c] sm:$0xf] %v641_v39  ;;  %644 = vst [vmem:[%s3804_s27 + $0x3a0] sm:$0xf] %v643_v40  ;;  %v645_v41 = vld [vmem:[%s3797_s26 + $0x748] sm:$0xf] }
  0xab   : > { %v647_v42 = vld [vmem:[%s3797_s26 + $0x750] sm:$0xf]  ;;  %v649_v43 = vld [vmem:[%s3797_s26 + $0x758] sm:$0xf]  ;;  %646 = vst [vmem:[%s3804_s27 + $0x3a4] sm:$0xf] %v645_v41 }
  0xac   : > { %648 = vst [vmem:[%s3804_s27 + $0x3a8] sm:$0xf] %v647_v42  ;;  %650 = vst [vmem:[%s3804_s27 + $0x3ac] sm:$0xf] %v649_v43  ;;  %v651_v44 = vld [vmem:[%s3797_s26 + $0x760] sm:$0xf] }
  0xad   : > { %v653_v45 = vld [vmem:[%s3797_s26 + $0x768] sm:$0xf]  ;;  %v655_v46 = vld [vmem:[%s3797_s26 + $0x770] sm:$0xf]  ;;  %652 = vst [vmem:[%s3804_s27 + $0x3b0] sm:$0xf] %v651_v44 }
  0xae   : > { %654 = vst [vmem:[%s3804_s27 + $0x3b4] sm:$0xf] %v653_v45  ;;  %656 = vst [vmem:[%s3804_s27 + $0x3b8] sm:$0xf] %v655_v46  ;;  %v657_v47 = vld [vmem:[%s3797_s26 + $0x778] sm:$0xf] }
  0xaf   : > { %v659_v48 = vld [vmem:[%s3797_s26 + $0x780] sm:$0xf]  ;;  %v661_v49 = vld [vmem:[%s3797_s26 + $0x788] sm:$0xf]  ;;  %658 = vst [vmem:[%s3804_s27 + $0x3bc] sm:$0xf] %v657_v47 }
  0xb0   : > { %660 = vst [vmem:[%s3804_s27 + $0x3c0] sm:$0xf] %v659_v48  ;;  %662 = vst [vmem:[%s3804_s27 + $0x3c4] sm:$0xf] %v661_v49  ;;  %v663_v50 = vld [vmem:[%s3797_s26 + $0x790] sm:$0xf] }
  0xb1   : > { %v665_v51 = vld [vmem:[%s3797_s26 + $0x798] sm:$0xf]  ;;  %v667_v52 = vld [vmem:[%s3797_s26 + $0x7a0] sm:$0xf]  ;;  %664 = vst [vmem:[%s3804_s27 + $0x3c8] sm:$0xf] %v663_v50 }
  0xb2   : > { %666 = vst [vmem:[%s3804_s27 + $0x3cc] sm:$0xf] %v665_v51  ;;  %668 = vst [vmem:[%s3804_s27 + $0x3d0] sm:$0xf] %v667_v52  ;;  %v669_v53 = vld [vmem:[%s3797_s26 + $0x7a8] sm:$0xf] }
  0xb3   : > { %v671_v54 = vld [vmem:[%s3797_s26 + $0x7b0] sm:$0xf]  ;;  %v673_v55 = vld [vmem:[%s3797_s26 + $0x7b8] sm:$0xf]  ;;  %670 = vst [vmem:[%s3804_s27 + $0x3d4] sm:$0xf] %v669_v53 }
  0xb4   : > { %672 = vst [vmem:[%s3804_s27 + $0x3d8] sm:$0xf] %v671_v54  ;;  %674 = vst [vmem:[%s3804_s27 + $0x3dc] sm:$0xf] %v673_v55  ;;  %v675_v56 = vld [vmem:[%s3797_s26 + $0x7c0] sm:$0xf] }
  0xb5   : > { %v677_v57 = vld [vmem:[%s3797_s26 + $0x7c8] sm:$0xf]  ;;  %v679_v58 = vld [vmem:[%s3797_s26 + $0x7d0] sm:$0xf]  ;;  %676 = vst [vmem:[%s3804_s27 + $0x3e0] sm:$0xf] %v675_v56 }
  0xb6   : > { %678 = vst [vmem:[%s3804_s27 + $0x3e4] sm:$0xf] %v677_v57  ;;  %680 = vst [vmem:[%s3804_s27 + $0x3e8] sm:$0xf] %v679_v58  ;;  %v681_v59 = vld [vmem:[%s3797_s26 + $0x7d8] sm:$0xf] }
  0xb7   : > { %v683_v60 = vld [vmem:[%s3797_s26 + $0x7e0] sm:$0xf]  ;;  %v685_v61 = vld [vmem:[%s3797_s26 + $0x7e8] sm:$0xf]  ;;  %682 = vst [vmem:[%s3804_s27 + $0x3ec] sm:$0xf] %v681_v59 }
  0xb8   : > { %684 = vst [vmem:[%s3804_s27 + $0x3f0] sm:$0xf] %v683_v60  ;;  %686 = vst [vmem:[%s3804_s27 + $0x3f4] sm:$0xf] %v685_v61  ;;  %v687_v62 = vld [vmem:[%s3797_s26 + $0x7f0] sm:$0xf] }
  0xb9   : > { %v689_v63 = vld [vmem:[%s3797_s26 + $0x7f8] sm:$0xf]  ;;  %v691_v0 = vld [vmem:[%s3797_s26 + $0x800] sm:$0xf]  ;;  %688 = vst [vmem:[%s3804_s27 + $0x3f8] sm:$0xf] %v687_v62 }
  0xba   : > { %690 = vst [vmem:[%s3804_s27 + $0x3fc] sm:$0xf] %v689_v63  ;;  %692 = vst [vmem:[%s3804_s27 + $0x400] sm:$0xf] %v691_v0  ;;  %v693_v1 = vld [vmem:[%s3797_s26 + $0x808] sm:$0xf] }
  0xbb   : > { %v695_v2 = vld [vmem:[%s3797_s26 + $0x810] sm:$0xf]  ;;  %v697_v3 = vld [vmem:[%s3797_s26 + $0x818] sm:$0xf]  ;;  %694 = vst [vmem:[%s3804_s27 + $0x404] sm:$0xf] %v693_v1 }
  0xbc   : > { %696 = vst [vmem:[%s3804_s27 + $0x408] sm:$0xf] %v695_v2  ;;  %698 = vst [vmem:[%s3804_s27 + $0x40c] sm:$0xf] %v697_v3  ;;  %v699_v4 = vld [vmem:[%s3797_s26 + $0x820] sm:$0xf] }
  0xbd   : > { %v701_v5 = vld [vmem:[%s3797_s26 + $0x828] sm:$0xf]  ;;  %v703_v6 = vld [vmem:[%s3797_s26 + $0x830] sm:$0xf]  ;;  %700 = vst [vmem:[%s3804_s27 + $0x410] sm:$0xf] %v699_v4 }
  0xbe   : > { %702 = vst [vmem:[%s3804_s27 + $0x414] sm:$0xf] %v701_v5  ;;  %704 = vst [vmem:[%s3804_s27 + $0x418] sm:$0xf] %v703_v6  ;;  %v705_v7 = vld [vmem:[%s3797_s26 + $0x838] sm:$0xf] }
  0xbf   : > { %v707_v8 = vld [vmem:[%s3797_s26 + $0x840] sm:$0xf]  ;;  %v709_v9 = vld [vmem:[%s3797_s26 + $0x848] sm:$0xf]  ;;  %706 = vst [vmem:[%s3804_s27 + $0x41c] sm:$0xf] %v705_v7 }
  0xc0   : > { %708 = vst [vmem:[%s3804_s27 + $0x420] sm:$0xf] %v707_v8  ;;  %710 = vst [vmem:[%s3804_s27 + $0x424] sm:$0xf] %v709_v9  ;;  %v711_v10 = vld [vmem:[%s3797_s26 + $0x850] sm:$0xf] }
  0xc1   : > { %v713_v11 = vld [vmem:[%s3797_s26 + $0x858] sm:$0xf]  ;;  %v715_v12 = vld [vmem:[%s3797_s26 + $0x860] sm:$0xf]  ;;  %712 = vst [vmem:[%s3804_s27 + $0x428] sm:$0xf] %v711_v10 }
  0xc2   : > { %714 = vst [vmem:[%s3804_s27 + $0x42c] sm:$0xf] %v713_v11  ;;  %716 = vst [vmem:[%s3804_s27 + $0x430] sm:$0xf] %v715_v12  ;;  %v717_v13 = vld [vmem:[%s3797_s26 + $0x868] sm:$0xf] }
  0xc3   : > { %v719_v14 = vld [vmem:[%s3797_s26 + $0x870] sm:$0xf]  ;;  %v721_v15 = vld [vmem:[%s3797_s26 + $0x878] sm:$0xf]  ;;  %718 = vst [vmem:[%s3804_s27 + $0x434] sm:$0xf] %v717_v13 }
  0xc4   : > { %720 = vst [vmem:[%s3804_s27 + $0x438] sm:$0xf] %v719_v14  ;;  %722 = vst [vmem:[%s3804_s27 + $0x43c] sm:$0xf] %v721_v15  ;;  %v723_v16 = vld [vmem:[%s3797_s26 + $0x880] sm:$0xf] }
  0xc5   : > { %v725_v17 = vld [vmem:[%s3797_s26 + $0x888] sm:$0xf]  ;;  %v727_v18 = vld [vmem:[%s3797_s26 + $0x890] sm:$0xf]  ;;  %724 = vst [vmem:[%s3804_s27 + $0x440] sm:$0xf] %v723_v16 }
  0xc6   : > { %726 = vst [vmem:[%s3804_s27 + $0x444] sm:$0xf] %v725_v17  ;;  %728 = vst [vmem:[%s3804_s27 + $0x448] sm:$0xf] %v727_v18  ;;  %v729_v19 = vld [vmem:[%s3797_s26 + $0x898] sm:$0xf] }
  0xc7   : > { %v731_v20 = vld [vmem:[%s3797_s26 + $0x8a0] sm:$0xf]  ;;  %v733_v21 = vld [vmem:[%s3797_s26 + $0x8a8] sm:$0xf]  ;;  %730 = vst [vmem:[%s3804_s27 + $0x44c] sm:$0xf] %v729_v19 }
  0xc8   : > { %732 = vst [vmem:[%s3804_s27 + $0x450] sm:$0xf] %v731_v20  ;;  %734 = vst [vmem:[%s3804_s27 + $0x454] sm:$0xf] %v733_v21  ;;  %v735_v22 = vld [vmem:[%s3797_s26 + $0x8b0] sm:$0xf] }
  0xc9   : > { %v737_v23 = vld [vmem:[%s3797_s26 + $0x8b8] sm:$0xf]  ;;  %v739_v24 = vld [vmem:[%s3797_s26 + $0x8c0] sm:$0xf]  ;;  %736 = vst [vmem:[%s3804_s27 + $0x458] sm:$0xf] %v735_v22 }
  0xca   : > { %738 = vst [vmem:[%s3804_s27 + $0x45c] sm:$0xf] %v737_v23  ;;  %740 = vst [vmem:[%s3804_s27 + $0x460] sm:$0xf] %v739_v24  ;;  %v741_v25 = vld [vmem:[%s3797_s26 + $0x8c8] sm:$0xf] }
  0xcb   : > { %v743_v26 = vld [vmem:[%s3797_s26 + $0x8d0] sm:$0xf]  ;;  %v745_v27 = vld [vmem:[%s3797_s26 + $0x8d8] sm:$0xf]  ;;  %742 = vst [vmem:[%s3804_s27 + $0x464] sm:$0xf] %v741_v25 }
  0xcc   : > { %744 = vst [vmem:[%s3804_s27 + $0x468] sm:$0xf] %v743_v26  ;;  %746 = vst [vmem:[%s3804_s27 + $0x46c] sm:$0xf] %v745_v27  ;;  %v747_v28 = vld [vmem:[%s3797_s26 + $0x8e0] sm:$0xf] }
  0xcd   : > { %v749_v29 = vld [vmem:[%s3797_s26 + $0x8e8] sm:$0xf]  ;;  %v751_v30 = vld [vmem:[%s3797_s26 + $0x8f0] sm:$0xf]  ;;  %748 = vst [vmem:[%s3804_s27 + $0x470] sm:$0xf] %v747_v28 }
  0xce   : > { %750 = vst [vmem:[%s3804_s27 + $0x474] sm:$0xf] %v749_v29  ;;  %752 = vst [vmem:[%s3804_s27 + $0x478] sm:$0xf] %v751_v30  ;;  %v753_v31 = vld [vmem:[%s3797_s26 + $0x8f8] sm:$0xf] }
  0xcf   : > { %754 = vst [vmem:[%s3804_s27 + $0x47c] sm:$0xf] %v753_v31 }
  0xd0 PF: > { %p3125_p6 = scmp.ge.s32.totalorder %s3732_s16, 1  ;;  %p1359_p7 = scmp.lt.s32.totalorder %s3732_s16, 3 }
  0xd2   : > { %p1360_p8 = pnand %p3125_p6, %p1359_p7 }
  0xd3   : > { %s1366_s28 = sand.u32 (!%p1360_p8), 1, %s3716_s12   ;;  %p1405_p9 = scmp.lt.s32.totalorder (!%p1360_p8), %s3724_s14, 1 }
  0xd4   : > { %1363 = sbr.rel (%p1360_p8) target bundleno = 582 (0x246), region = 69 }
  0xd5   : > { %s3491_s6 = smul.u32 (!%p1360_p8), 1152, %s1366_s28 }
  0xd7   : > { %s4394_s7 = scalar_lea.vmem (!%p1360_p8), [#allocation2], %s3491_s6 }
  0xd9   : > { %v4383_v32 = vld [vmem:[%s4622_s0] sm:$0xff]  ;;  %v4388_v33 = vld [vmem:[%s4622_s0 + $0x8] sm:$0xff]  ;;  %v3532_v36 = vld [vmem:[%s4394_s7 + $0x78] sm:$0xff]   ;;  %s4633_s14 = smov (!%p1405_p9, %s3724_s14), 1 }
  0xda   : > { %v3129_v34 = vcombine.high %v4383_v32, %v4383_v32  ;;  %v3131_v35 = vcombine.high %v4388_v33, %v4388_v33  ;;  %v3533_v37 = vld [vmem:[%s4394_s7 + $0x38] sm:$0xff]   ;;  %3292 = vmatprep.subr.bf16.mxu0 %v3532_v36  ;;  %v3536_v40 = vld [vmem:[%s4394_s7 + $0x70] sm:$0xff]   ;;  %v3540_v44 = vld [vmem:[%s4394_s7 + $0x68] sm:$0xff]   ;;  %v3128_v5 = vcombine.low %v4383_v32, %v4383_v32  ;;  %v3130_v9 = vcombine.low %v4388_v33, %v4388_v33  ;;  %s1407_s30 = scalar_lea.vmem %s4624_s2, %s4633_s14  ;;  %s3126_s4 = sshll.u32 %s4633_s14, 2 }
  0xdb   : > { %v3534_v38 = vld [vmem:[%s4394_s7 + $0xf8] sm:$0xff]   ;;  %3293 = vmatpush3.bf16.msra.mxu0 %v3533_v37  ;;  %v3537_v41 = vld [vmem:[%s4394_s7 + $0x30] sm:$0xff]   ;;  %v3541_v45 = vld [vmem:[%s4394_s7 + $0x28] sm:$0xff]  }
  0xdc   : > { %2680 = vmatprep.mubr.bf16.mxu0 %v3129_v34  ;;  %2720 = vmatprep.mubr.bf16.mxu1 %v3131_v35  ;;  %v3535_v39 = vld [vmem:[%s4394_s7 + $0xb8] sm:$0xff]   ;;  %v3538_v42 = vld [vmem:[%s4394_s7 + $0xf0] sm:$0xff]   ;;  %v3542_v46 = vld [vmem:[%s4394_s7 + $0xe8] sm:$0xff]  }
  0xdd   : > { %3314 = vmatprep.subr.bf16.mxu1 %v3534_v38  ;;  %3294 = vmatprep.subr.bf16.mxu0 %v3536_v40  ;;  %v3539_v43 = vld [vmem:[%s4394_s7 + $0xb0] sm:$0xff]   ;;  %v3543_v47 = vld [vmem:[%s4394_s7 + $0xa8] sm:$0xff]   ;;  %v3544_v48 = vld [vmem:[%s4394_s7 + $0x60] sm:$0xff]  }
  0xde   : > { %3315 = vmatpush3.bf16.msra.mxu1 %v3535_v39  ;;  %v3545_v49 = vld [vmem:[%s4394_s7 + $0x20] sm:$0xff]   ;;  %v3548_v52 = vld [vmem:[%s4394_s7 + $0x58] sm:$0xff]   ;;  %v3552_v56 = vld [vmem:[%s4394_s7 + $0x50] sm:$0xff]  }
  0xdf   : > { %3295 = vmatpush3.bf16.msra.mxu0 %v3537_v41  ;;  %3316 = vmatprep.subr.bf16.mxu1 %v3538_v42  ;;  %v3546_v50 = vld [vmem:[%s4394_s7 + $0xe0] sm:$0xff]   ;;  %v3549_v53 = vld [vmem:[%s4394_s7 + $0x18] sm:$0xff]   ;;  %v3553_v57 = vld [vmem:[%s4394_s7 + $0x10] sm:$0xff]  }
  0xe0   : > { %3296 = vmatprep.subr.bf16.mxu0 %v3540_v44  ;;  %v3547_v51 = vld [vmem:[%s4394_s7 + $0xa0] sm:$0xff]   ;;  %v3550_v54 = vld [vmem:[%s4394_s7 + $0xd8] sm:$0xff]   ;;  %v3554_v58 = vld [vmem:[%s4394_s7 + $0xd0] sm:$0xff]  }
  0xe1   : > { %v3551_v55 = vld [vmem:[%s4394_s7 + $0x98] sm:$0xff]   ;;  %v3555_v59 = vld [vmem:[%s4394_s7 + $0x90] sm:$0xff]   ;;  %v3556_v60 = vld [vmem:[%s4394_s7 + $0x48] sm:$0xff]  }
  0xe2   : > { %3317 = vmatpush3.bf16.msra.mxu1 %v3539_v43  ;;  %v3557_v61 = vld [vmem:[%s4394_s7 + $0x8] sm:$0xff]   ;;  %v4426_v63 = vld [vmem:[%s4622_s0 + $0x10] sm:$0xff]  ;;  %v3560_v1 = vld [vmem:[%s4394_s7 + $0x40] sm:$0xff]  }
  0xe3   : > { %3297 = vmatpush3.bf16.msra.mxu0 %v3541_v45  ;;  %3318 = vmatprep.subr.bf16.mxu1 %v3542_v46  ;;  %v3558_v62 = vld [vmem:[%s4394_s7 + $0xc8] sm:$0xff]   ;;  %v4433_v2 = vld [vmem:[%s4622_s0 + $0x18] sm:$0xff]  ;;  %v3561_v3 = vld [vmem:[%s4394_s7] sm:$0xff]   ;;  %v3133_v7 = vcombine.high %v4426_v63, %v4426_v63  ;;  %v3132_v43 = vcombine.low %v4426_v63, %v4426_v63 }
  0xe4   : > { %3298 = vmatprep.subr.bf16.mxu0 %v3544_v48  ;;  %v3559_v0 = vld [vmem:[%s4394_s7 + $0x88] sm:$0xff]   ;;  %v3562_v4 = vld [vmem:[%s4394_s7 + $0xc0] sm:$0xff]   ;;  %v3566_v8 = vld [vmem:[%s4394_s7 + $0x178] sm:$0xff]   ;;  %v3135_v11 = vcombine.high %v4433_v2, %v4433_v2 }
  0xe5   : > { %v3565_v6 = vld [vmem:[%s4394_s7 + $0x80] sm:$0xff]   ;;  %v3569_v10 = vld [vmem:[%s4394_s7 + $0x138] sm:$0xff]   ;;  %v3572_v14 = vld [vmem:[%s4394_s7 + $0x170] sm:$0xff]  }
  0xe6   : > { %3319 = vmatpush3.bf16.msra.mxu1 %v3543_v47  ;;  %v3570_v12 = vld [vmem:[%s4394_s7 + $0x1f8] sm:$0xff]   ;;  %v3573_v15 = vld [vmem:[%s4394_s7 + $0x130] sm:$0xff]   ;;  %v3576_v18 = vld [vmem:[%s4394_s7 + $0x168] sm:$0xff]   ;;  %v3134_v47 = vcombine.low %v4433_v2, %v4433_v2 }
  0xe7   : > { %3299 = vmatpush3.bf16.msra.mxu0 %v3545_v49  ;;  %3320 = vmatprep.subr.bf16.mxu1 %v3546_v50  ;;  %v3571_v13 = vld [vmem:[%s4394_s7 + $0x1b8] sm:$0xff]   ;;  %v3574_v16 = vld [vmem:[%s4394_s7 + $0x1f0] sm:$0xff]   ;;  %v3577_v19 = vld [vmem:[%s4394_s7 + $0x128] sm:$0xff]  }
  0xe8   : > { %3300 = vmatprep.subr.bf16.mxu0 %v3548_v52  ;;  %v3575_v17 = vld [vmem:[%s4394_s7 + $0x1b0] sm:$0xff]   ;;  %v3578_v20 = vld [vmem:[%s4394_s7 + $0x1e8] sm:$0xff]   ;;  %v3580_v22 = vld [vmem:[%s4394_s7 + $0x160] sm:$0xff]  }
  0xe9   : > { %v3579_v21 = vld [vmem:[%s4394_s7 + $0x1a8] sm:$0xff]   ;;  %v3581_v23 = vld [vmem:[%s4394_s7 + $0x120] sm:$0xff]   ;;  %v3584_v26 = vld [vmem:[%s4394_s7 + $0x158] sm:$0xff]  }
  0xea   : > { %3321 = vmatpush3.bf16.msra.mxu1 %v3547_v51  ;;  %v3582_v24 = vld [vmem:[%s4394_s7 + $0x1e0] sm:$0xff]   ;;  %v3585_v27 = vld [vmem:[%s4394_s7 + $0x118] sm:$0xff]   ;;  %v3588_v30 = vld [vmem:[%s4394_s7 + $0x150] sm:$0xff]  }
  0xeb   : > { %3301 = vmatpush3.bf16.msra.mxu0 %v3549_v53  ;;  %3322 = vmatprep.subr.bf16.mxu1 %v3550_v54  ;;  %v3583_v25 = vld [vmem:[%s4394_s7 + $0x1a0] sm:$0xff]   ;;  %v3586_v28 = vld [vmem:[%s4394_s7 + $0x1d8] sm:$0xff]   ;;  %v3589_v31 = vld [vmem:[%s4394_s7 + $0x110] sm:$0xff]  }
  0xec   : > { %3302 = vmatprep.subr.bf16.mxu0 %v3552_v56  ;;  %v3587_v29 = vld [vmem:[%s4394_s7 + $0x198] sm:$0xff]   ;;  %v3590_v32 = vld [vmem:[%s4394_s7 + $0x1d0] sm:$0xff]   ;;  %v3592_v34 = vld [vmem:[%s4394_s7 + $0x148] sm:$0xff]  }
  0xed   : > { %v3591_v33 = vld [vmem:[%s4394_s7 + $0x190] sm:$0xff]   ;;  %v3593_v35 = vld [vmem:[%s4394_s7 + $0x108] sm:$0xff]   ;;  %v4476_v37 = vld [vmem:[%s4622_s0 + $0x20] sm:$0xff] }
  0xee   : > { %3323 = vmatpush3.bf16.msra.mxu1 %v3551_v55  ;;  %v3594_v36 = vld [vmem:[%s4394_s7 + $0x1c8] sm:$0xff]   ;;  %v3596_v39 = vld [vmem:[%s4394_s7 + $0x140] sm:$0xff]   ;;  %v3137_v45 = vcombine.high %v4476_v37, %v4476_v37  ;;  %v3602_v46 = vld [vmem:[%s4394_s7 + $0x278] sm:$0xff]  }
  0xef   : > { %3303 = vmatpush3.bf16.msra.mxu0 %v3553_v57  ;;  %3324 = vmatprep.subr.bf16.mxu1 %v3554_v58  ;;  %v3595_v38 = vld [vmem:[%s4394_s7 + $0x188] sm:$0xff]   ;;  %v3597_v41 = vld [vmem:[%s4394_s7 + $0x100] sm:$0xff]   ;;  %v3605_v48 = vld [vmem:[%s4394_s7 + $0x238] sm:$0xff]  }
  0xf0   : > { %3304 = vmatprep.subr.bf16.mxu0 %v3556_v60  ;;  %v4483_v40 = vld [vmem:[%s4622_s0 + $0x28] sm:$0xff]  ;;  %v3598_v42 = vld [vmem:[%s4394_s7 + $0x1c0] sm:$0xff]   ;;  %v3606_v50 = vld [vmem:[%s4394_s7 + $0x2f8] sm:$0xff]  }
  0xf1   : > { %v3601_v44 = vld [vmem:[%s4394_s7 + $0x180] sm:$0xff]   ;;  %v3139_v49 = vcombine.high %v4483_v40, %v4483_v40  ;;  %v3607_v51 = vld [vmem:[%s4394_s7 + $0x2b8] sm:$0xff]   ;;  %v3608_v52 = vld [vmem:[%s4394_s7 + $0x270] sm:$0xff]  }
  0xf2   : > { %3325 = vmatpush3.bf16.msra.mxu1 %v3555_v59  ;;  %v3609_v53 = vld [vmem:[%s4394_s7 + $0x230] sm:$0xff]   ;;  %v3612_v56 = vld [vmem:[%s4394_s7 + $0x268] sm:$0xff]   ;;  %v3616_v60 = vld [vmem:[%s4394_s7 + $0x260] sm:$0xff]  }
  0xf3   : > { %3305 = vmatpush3.bf16.msra.mxu0 %v3557_v61  ;;  %3326 = vmatprep.subr.bf16.mxu1 %v3558_v62  ;;  %v3610_v54 = vld [vmem:[%s4394_s7 + $0x2f0] sm:$0xff]   ;;  %v3613_v57 = vld [vmem:[%s4394_s7 + $0x228] sm:$0xff]   ;;  %v3617_v61 = vld [vmem:[%s4394_s7 + $0x220] sm:$0xff]  }
  0xf4   : > { %3306 = vmatprep.subr.bf16.mxu0 %v3560_v1  ;;  %v3611_v55 = vld [vmem:[%s4394_s7 + $0x2b0] sm:$0xff]   ;;  %v3614_v58 = vld [vmem:[%s4394_s7 + $0x2e8] sm:$0xff]   ;;  %v3618_v62 = vld [vmem:[%s4394_s7 + $0x2e0] sm:$0xff]  }
  0xf5   : > { %v3615_v59 = vld [vmem:[%s4394_s7 + $0x2a8] sm:$0xff]   ;;  %v3619_v63 = vld [vmem:[%s4394_s7 + $0x2a0] sm:$0xff]   ;;  %v3621_v1 = vld [vmem:[%s4394_s7 + $0x218] sm:$0xff]  }
  0xf6   : > { %3327 = vmatpush3.bf16.msra.mxu1 %v3559_v0  ;;  %v3620_v0 = vld [vmem:[%s4394_s7 + $0x258] sm:$0xff]  }
  0xf7   : > { %3307 = vmatpush3.bf16.msra.mxu0 %v3561_v3  ;;  %3328 = vmatprep.subr.bf16.mxu1 %v3562_v4  ;;  %v3622_v2 = vld [vmem:[%s4394_s7 + $0x2d8] sm:$0xff]   ;;  %v3624_v4 = vld [vmem:[%s4394_s7 + $0x250] sm:$0xff]  }
  0xf8   : > { %3336 = vmatprep.subr.bf16.mxu0 %v3566_v8  ;;  %v3623_v3 = vld [vmem:[%s4394_s7 + $0x298] sm:$0xff]   ;;  %v3628_v8 = vld [vmem:[%s4394_s7 + $0x248] sm:$0xff]  }
  0xfa   : > { %3329 = vmatpush3.bf16.msra.mxu1 %v3565_v6  ;;  %2681 = vmatmul.mubr.bf16.vlgmr.msra.gmra.mxu0 %v3128_v5  ;;  %v3625_v5 = vld [vmem:[%s4394_s7 + $0x210] sm:$0xff]  }
  0xfb   : > { %3337 = vmatpush3.bf16.msra.mxu0 %v3569_v10  ;;  %2760 = vmatprep.mubr.bf16.mxu0 %v3133_v7  ;;  %v3626_v6 = vld [vmem:[%s4394_s7 + $0x2d0] sm:$0xff]   ;;  %v3630_v10 = vld [vmem:[%s4394_s7 + $0x2c8] sm:$0xff]  }
  0xfc   : > { %3358 = vmatprep.subr.bf16.mxu1 %v3570_v12  ;;  %3338 = vmatprep.subr.bf16.mxu0 %v3572_v14  ;;  %v3627_v7 = vld [vmem:[%s4394_s7 + $0x290] sm:$0xff]   ;;  %v3631_v12 = vld [vmem:[%s4394_s7 + $0x288] sm:$0xff]   ;;  %v3633_v14 = vld [vmem:[%s4394_s7 + $0x200] sm:$0xff]  }
  0xfd   : > { %2721 = vmatmul.mubr.bf16.vlgmr.msra.gmra.mxu1 %v3130_v9  ;;  %v3629_v9 = vld [vmem:[%s4394_s7 + $0x208] sm:$0xff]  }
  0xfe   : > { %3359 = vmatpush3.bf16.msra.mxu1 %v3571_v13  ;;  %2800 = vmatprep.mubr.bf16.mxu1 %v3135_v11  ;;  %v4526_v11 = vld [vmem:[%s4622_s0 + $0x30] sm:$0xff]  ;;  %v3632_v13 = vld [vmem:[%s4394_s7 + $0x240] sm:$0xff]  }
  0xff   : > { %3339 = vmatpush3.bf16.msra.mxu0 %v3573_v15  ;;  %3360 = vmatprep.subr.bf16.mxu1 %v3574_v16  ;;  %v3634_v15 = vld [vmem:[%s4394_s7 + $0x2c0] sm:$0xff]   ;;  %v3136_v16 = vcombine.low %v4476_v37, %v4476_v37  ;;  %v3657_v37 = vld [vmem:[%s4394_s7 + $0x318] sm:$0xff]  }
 0x100   : > { %3340 = vmatprep.subr.bf16.mxu0 %v3576_v18  ;;  %v3141_v18 = vcombine.high %v4526_v11, %v4526_v11 }
 0x102   : > { %3361 = vmatpush3.bf16.msra.mxu1 %v3575_v17  ;;  %v3637_v17 = vld [vmem:[%s4394_s7 + $0x280] sm:$0xff]  }
 0x103   : > { %3341 = vmatpush3.bf16.msra.mxu0 %v3577_v19  ;;  %3362 = vmatprep.subr.bf16.mxu1 %v3578_v20  ;;  %v3638_v19 = vld [vmem:[%s4394_s7 + $0x378] sm:$0xff]   ;;  %v3138_v20 = vcombine.low %v4483_v40, %v4483_v40  ;;  %v3660_v40 = vld [vmem:[%s4394_s7 + $0x350] sm:$0xff]  }
 0x104   : > { %3342 = vmatprep.subr.bf16.mxu0 %v3580_v22  ;;  %v3642_v22 = vld [vmem:[%s4394_s7 + $0x3f8] sm:$0xff]  }
 0x106   : > { %3363 = vmatpush3.bf16.msra.mxu1 %v3579_v21  ;;  %v3641_v21 = vld [vmem:[%s4394_s7 + $0x338] sm:$0xff]  }
 0x107   : > { %3343 = vmatpush3.bf16.msra.mxu0 %v3581_v23  ;;  %3364 = vmatprep.subr.bf16.mxu1 %v3582_v24  ;;  %v3643_v23 = vld [vmem:[%s4394_s7 + $0x3b8] sm:$0xff]   ;;  %v3644_v24 = vld [vmem:[%s4394_s7 + $0x370] sm:$0xff]  }
 0x108   : > { %3344 = vmatprep.subr.bf16.mxu0 %v3584_v26  ;;  %v3646_v26 = vld [vmem:[%s4394_s7 + $0x3f0] sm:$0xff]  }
 0x10a   : > { %3365 = vmatpush3.bf16.msra.mxu1 %v3583_v25  ;;  %v3645_v25 = vld [vmem:[%s4394_s7 + $0x330] sm:$0xff]  }
 0x10b   : > { %3345 = vmatpush3.bf16.msra.mxu0 %v3585_v27  ;;  %3366 = vmatprep.subr.bf16.mxu1 %v3586_v28  ;;  %v3647_v27 = vld [vmem:[%s4394_s7 + $0x3b0] sm:$0xff]   ;;  %v3648_v28 = vld [vmem:[%s4394_s7 + $0x368] sm:$0xff]  }
 0x10c   : > { %3346 = vmatprep.subr.bf16.mxu0 %v3588_v30  ;;  %v3650_v30 = vld [vmem:[%s4394_s7 + $0x3e8] sm:$0xff]  }
 0x10e   : > { %3367 = vmatpush3.bf16.msra.mxu1 %v3587_v29  ;;  %v3649_v29 = vld [vmem:[%s4394_s7 + $0x328] sm:$0xff]  }
 0x10f   : > { %3347 = vmatpush3.bf16.msra.mxu0 %v3589_v31  ;;  %3368 = vmatprep.subr.bf16.mxu1 %v3590_v32  ;;  %v3651_v31 = vld [vmem:[%s4394_s7 + $0x3a8] sm:$0xff]   ;;  %v3652_v32 = vld [vmem:[%s4394_s7 + $0x360] sm:$0xff]  }
 0x110   : > { %3348 = vmatprep.subr.bf16.mxu0 %v3592_v34  ;;  %v3654_v34 = vld [vmem:[%s4394_s7 + $0x3e0] sm:$0xff]  }
 0x112   : > { %3369 = vmatpush3.bf16.msra.mxu1 %v3591_v33  ;;  %v3653_v33 = vld [vmem:[%s4394_s7 + $0x320] sm:$0xff]  }
 0x113   : > { %3349 = vmatpush3.bf16.msra.mxu0 %v3593_v35  ;;  %3370 = vmatprep.subr.bf16.mxu1 %v3594_v36  ;;  %v3655_v35 = vld [vmem:[%s4394_s7 + $0x3a0] sm:$0xff]   ;;  %v3656_v36 = vld [vmem:[%s4394_s7 + $0x358] sm:$0xff]  }
 0x114   : > { %3350 = vmatprep.subr.bf16.mxu0 %v3596_v39  ;;  %v3659_v39 = vld [vmem:[%s4394_s7 + $0x398] sm:$0xff]  }
 0x116   : > { %3371 = vmatpush3.bf16.msra.mxu1 %v3595_v38  ;;  %v3658_v38 = vld [vmem:[%s4394_s7 + $0x3d8] sm:$0xff]  }
 0x117   : > { %3351 = vmatpush3.bf16.msra.mxu0 %v3597_v41  ;;  %3372 = vmatprep.subr.bf16.mxu1 %v3598_v42  ;;  %v3661_v41 = vld [vmem:[%s4394_s7 + $0x310] sm:$0xff]  }
 0x118   : > { %3380 = vmatprep.subr.bf16.mxu0 %v3602_v46  ;;  %v3662_v42 = vld [vmem:[%s4394_s7 + $0x3d0] sm:$0xff]   ;;  %v3666_v46 = vld [vmem:[%s4394_s7 + $0x3c8] sm:$0xff]  }
 0x11a   : > { %3373 = vmatpush3.bf16.msra.mxu1 %v3601_v44  ;;  %2761 = vmatmul.mubr.bf16.vlgmr.msra.gmra.mxu0 %v3132_v43  ;;  %v3663_v43 = vld [vmem:[%s4394_s7 + $0x390] sm:$0xff]   ;;  %v3664_v44 = vld [vmem:[%s4394_s7 + $0x348] sm:$0xff]  }
 0x11b   : > { %3381 = vmatpush3.bf16.msra.mxu0 %v3605_v48  ;;  %2840 = vmatprep.mubr.bf16.mxu0 %v3137_v45  ;;  %v3665_v45 = vld [vmem:[%s4394_s7 + $0x308] sm:$0xff]   ;;  %v3668_v48 = vld [vmem:[%s4394_s7 + $0x340] sm:$0xff]  }
 0x11c   : > { %3402 = vmatprep.subr.bf16.mxu1 %v3606_v50  ;;  %3382 = vmatprep.subr.bf16.mxu0 %v3608_v52  ;;  %v3670_v50 = vld [vmem:[%s4394_s7 + $0x3c0] sm:$0xff]  }
 0x11d   : > { %2801 = vmatmul.mubr.bf16.vlgmr.msra.gmra.mxu1 %v3134_v47  ;;  %v3667_v47 = vld [vmem:[%s4394_s7 + $0x388] sm:$0xff]   ;;  %v3673_v52 = vld [vmem:[%s4394_s7 + $0x380] sm:$0xff]  }
 0x11e   : > { %3403 = vmatpush3.bf16.msra.mxu1 %v3607_v51  ;;  %2880 = vmatprep.mubr.bf16.mxu1 %v3139_v49  ;;  %v3669_v49 = vld [vmem:[%s4394_s7 + $0x300] sm:$0xff]   ;;  %v3140_v51 = vcombine.low %v4526_v11, %v4526_v11 }
 0x11f   : > { %3383 = vmatpush3.bf16.msra.mxu0 %v3609_v53  ;;  %3404 = vmatprep.subr.bf16.mxu1 %v3610_v54  ;;  %v3674_v53 = vld [vmem:[%s4394_s7 + $0x478] sm:$0xff]  }
 0x120   : > { %3384 = vmatprep.subr.bf16.mxu0 %v3612_v56  ;;  %v1424_v54 = vld [vmem:[%s4622_s0 + $0x38] sm:$0xff] }
 0x121   : > { %v3143_v56 = vcombine.high %v1424_v54, %v1424_v54 }
 0x122   : > { %3405 = vmatpush3.bf16.msra.mxu1 %v3611_v55  ;;  %v3142_v55 = vcombine.low %v1424_v54, %v1424_v54 }
 0x123   : > { %3385 = vmatpush3.bf16.msra.mxu0 %v3613_v57  ;;  %3406 = vmatprep.subr.bf16.mxu1 %v3614_v58  ;;  %v3677_v57 = vld [vmem:[%s4394_s7 + $0x438] sm:$0xff]   ;;  %v3678_v58 = vld [vmem:[%s4394_s7 + $0x470] sm:$0xff]  }
 0x124   : > { %3386 = vmatprep.subr.bf16.mxu0 %v3616_v60  ;;  %v3680_v60 = vld [vmem:[%s4394_s7 + $0x468] sm:$0xff]  }
 0x126   : > { %3407 = vmatpush3.bf16.msra.mxu1 %v3615_v59  ;;  %v3679_v59 = vld [vmem:[%s4394_s7 + $0x430] sm:$0xff]  }
 0x127   : > { %3387 = vmatpush3.bf16.msra.mxu0 %v3617_v61  ;;  %3408 = vmatprep.subr.bf16.mxu1 %v3618_v62  ;;  %v3681_v61 = vld [vmem:[%s4394_s7 + $0x428] sm:$0xff]   ;;  %v3682_v62 = vld [vmem:[%s4394_s7 + $0x460] sm:$0xff]  }
 0x128   : > { %3388 = vmatprep.subr.bf16.mxu0 %v3620_v0  ;;  %v3684_v0 = vld [vmem:[%s4394_s7 + $0x458] sm:$0xff]  }
 0x12a   : > { %3409 = vmatpush3.bf16.msra.mxu1 %v3619_v63  ;;  %v3683_v63 = vld [vmem:[%s4394_s7 + $0x420] sm:$0xff]  }
 0x12b   : > { %3389 = vmatpush3.bf16.msra.mxu0 %v3621_v1  ;;  %3410 = vmatprep.subr.bf16.mxu1 %v3622_v2  ;;  %v3685_v1 = vld [vmem:[%s4394_s7 + $0x418] sm:$0xff]   ;;  %v1425_v2 = vld [vmem:[%s4622_s0 + $0x40] sm:$0xff] }
 0x12c   : > { %3390 = vmatprep.subr.bf16.mxu0 %v3624_v4  ;;  %v3145_v4 = vcombine.high %v1425_v2, %v1425_v2 }
 0x12e   : > { %3411 = vmatpush3.bf16.msra.mxu1 %v3623_v3  ;;  %v3686_v3 = vld [vmem:[%s4394_s7 + $0x450] sm:$0xff]  }
 0x12f   : > { %3391 = vmatpush3.bf16.msra.mxu0 %v3625_v5  ;;  %3412 = vmatprep.subr.bf16.mxu1 %v3626_v6  ;;  %v3687_v5 = vld [vmem:[%s4394_s7 + $0x410] sm:$0xff]   ;;  %v3688_v6 = vld [vmem:[%s4394_s7 + $0x448] sm:$0xff]  }
 0x130   : > { %3392 = vmatprep.subr.bf16.mxu0 %v3628_v8  ;;  %v3690_v8 = vld [vmem:[%s4394_s7 + $0x440] sm:$0xff]  }
 0x132   : > { %3413 = vmatpush3.bf16.msra.mxu1 %v3627_v7  ;;  %v3689_v7 = vld [vmem:[%s4394_s7 + $0x408] sm:$0xff]  }
 0x133   : > { %3393 = vmatpush3.bf16.msra.mxu0 %v3629_v9  ;;  %3414 = vmatprep.subr.bf16.mxu1 %v3630_v10  ;;  %v3691_v9 = vld [vmem:[%s4394_s7 + $0x400] sm:$0xff]   ;;  %v3144_v10 = vcombine.low %v1425_v2, %v1425_v2  ;;  %s1415_s7 = scalar_lea.vmem %s4625_s3, %s3126_s4 }
 0x134   : > { %3394 = vmatprep.subr.bf16.mxu0 %v3632_v13 }
 0x136   : > { %3415 = vmatpush3.bf16.msra.mxu1 %v3631_v12  ;;  %v3127_v12 = vld [vmem:[%s1407_s30] ss:$0 sm:$0xff] }
 0x137   : > { %3395 = vmatpush3.bf16.msra.mxu0 %v3633_v14  ;;  %3416 = vmatprep.subr.bf16.mxu1 %v3634_v15 }
 0x138   : > { %3424 = vmatprep.subr.bf16.mxu0 %v3638_v19 }
 0x13a   : > { %3417 = vmatpush3.bf16.msra.mxu1 %v3637_v17  ;;  %2841 = vmatmul.mubr.bf16.vlgmr.msra.gmra.mxu0 %v3136_v16 }
 0x13b   : > { %3425 = vmatpush3.bf16.msra.mxu0 %v3641_v21  ;;  %2920 = vmatprep.mubr.bf16.mxu0 %v3141_v18 }
 0x13c   : > { %3446 = vmatprep.subr.bf16.mxu1 %v3642_v22  ;;  %3426 = vmatprep.subr.bf16.mxu0 %v3644_v24 }
 0x13d   : > { %2881 = vmatmul.mubr.bf16.vlgmr.msra.gmra.mxu1 %v3138_v20 }
 0x13e   : > { %3447 = vmatpush3.bf16.msra.mxu1 %v3643_v23  ;;  %2960 = vmatprep.mubr.bf16.mxu1 %v3143_v56 }
 0x13f   : > { %3427 = vmatpush3.bf16.msra.mxu0 %v3645_v25  ;;  %3448 = vmatprep.subr.bf16.mxu1 %v3646_v26 }
 0x140   : > { %3428 = vmatprep.subr.bf16.mxu0 %v3648_v28 }
 0x142   : > { %3449 = vmatpush3.bf16.msra.mxu1 %v3647_v27 }
 0x143   : > { %3429 = vmatpush3.bf16.msra.mxu0 %v3649_v29  ;;  %3450 = vmatprep.subr.bf16.mxu1 %v3650_v30 }
 0x144   : > { %3430 = vmatprep.subr.bf16.mxu0 %v3652_v32 }
 0x146   : > { %3451 = vmatpush3.bf16.msra.mxu1 %v3651_v31 }
 0x147   : > { %3431 = vmatpush3.bf16.msra.mxu0 %v3653_v33  ;;  %3452 = vmatprep.subr.bf16.mxu1 %v3654_v34 }
 0x148   : > { %3432 = vmatprep.subr.bf16.mxu0 %v3656_v36 }
 0x14a   : > { %3453 = vmatpush3.bf16.msra.mxu1 %v3655_v35 }
 0x14b   : > { %3433 = vmatpush3.bf16.msra.mxu0 %v3657_v37  ;;  %3454 = vmatprep.subr.bf16.mxu1 %v3658_v38 }
 0x14c   : > { %3434 = vmatprep.subr.bf16.mxu0 %v3660_v40 }
 0x14e   : > { %3455 = vmatpush3.bf16.msra.mxu1 %v3659_v39 }
 0x14f   : > { %3435 = vmatpush3.bf16.msra.mxu0 %v3661_v41  ;;  %3456 = vmatprep.subr.bf16.mxu1 %v3662_v42 }
 0x150   : > { %3436 = vmatprep.subr.bf16.mxu0 %v3664_v44 }
 0x152   : > { %3457 = vmatpush3.bf16.msra.mxu1 %v3663_v43 }
 0x153   : > { %3437 = vmatpush3.bf16.msra.mxu0 %v3665_v45  ;;  %3458 = vmatprep.subr.bf16.mxu1 %v3666_v46 }
 0x154   : > { %3438 = vmatprep.subr.bf16.mxu0 %v3668_v48 }
 0x156   : > { %3459 = vmatpush3.bf16.msra.mxu1 %v3667_v47 }
 0x157   : > { %3439 = vmatpush3.bf16.msra.mxu0 %v3669_v49  ;;  %3460 = vmatprep.subr.bf16.mxu1 %v3670_v50 }
 0x158   : > { %3468 = vmatprep.subr.bf16.mxu0 %v3674_v53 }
 0x15a   : > { %3461 = vmatpush3.bf16.msra.mxu1 %v3673_v52  ;;  %2921 = vmatmul.mubr.bf16.vlgmr.msra.gmra.mxu0 %v3140_v51 }
 0x15b   : > { %3469 = vmatpush3.bf16.msra.mxu0 %v3677_v57  ;;  %3000 = vmatprep.mubr.bf16.mxu0 %v3145_v4 }
 0x15c   : > { %3470 = vmatprep.subr.bf16.mxu0 %v3678_v58 }
 0x15d   : > { %2961 = vmatmul.mubr.bf16.vlgmr.msra.gmra.mxu1 %v3142_v55 }
 0x15f   : > { %3471 = vmatpush3.bf16.msra.mxu0 %v3679_v59 }
 0x160   : > { %3472 = vmatprep.subr.bf16.mxu0 %v3680_v60 }
 0x163   : > { %3473 = vmatpush3.bf16.msra.mxu0 %v3681_v61 }
 0x164   : > { %3474 = vmatprep.subr.bf16.mxu0 %v3682_v62 }
 0x167   : > { %3475 = vmatpush3.bf16.msra.mxu0 %v3683_v63 }
 0x168   : > { %3476 = vmatprep.subr.bf16.mxu0 %v3684_v0 }
 0x16b   : > { %3477 = vmatpush3.bf16.msra.mxu0 %v3685_v1 }
 0x16c   : > { %3478 = vmatprep.subr.bf16.mxu0 %v3686_v3 }
 0x16f   : > { %3479 = vmatpush3.bf16.msra.mxu0 %v3687_v5 }
 0x170   : > { %3480 = vmatprep.subr.bf16.mxu0 %v3688_v6 }
 0x173   : > { %3481 = vmatpush3.bf16.msra.mxu0 %v3689_v7 }
 0x174   : > { %3482 = vmatprep.subr.bf16.mxu0 %v3690_v8 }
 0x177   : > { %3483 = vmatpush3.bf16.msra.mxu0 %v3691_v9 }
 0x17a   : > { %3001 = vmatmul.mubr.bf16.vlgmr.msra.gmra.mxu0 %v3144_v10 }
 0x1ba   : > { %v3308_v11 = vpop.f32.mrf.mxu0 }
 0x1bc   : > { %v3309_v13 = vpop.f32.mrf.mxu0 }
 0x1bd   : > { %v3330_v14 = vpop.f32.mrf.mxu1  ;;  %v3310_v15 = vadd.f32 %v3309_v13, %v3308_v11 }
 0x1be   : > { %v3311_v16 = vpop.f32.mrf.mxu0 }
 0x1bf   : > { %v3331_v17 = vpop.f32.mrf.mxu1  ;;  %v2683_v18 = vadd.f32 %v3310_v15, %v3127_v12 }
 0x1c0   : > { %v3332_v19 = vadd.f32 %v3331_v17, %v3330_v14  ;;  %v3312_v20 = vpop.f32.mrf.mxu0 }
 0x1c1   : > { %v3333_v21 = vpop.f32.mrf.mxu1 }
 0x1c2   : > { %v2723_v22 = vadd.f32 %v3332_v19, %v2683_v18 }
 0x1c3   : > { %v3334_v23 = vpop.f32.mrf.mxu1 }
 0x1da   : > { %v3352_v24 = vpop.f32.mrf.mxu0 }
 0x1dc   : > { %v3353_v25 = vpop.f32.mrf.mxu0 }
 0x1dd   : > { %v3374_v26 = vpop.f32.mrf.mxu1  ;;  %v3354_v27 = vadd.f32 %v3353_v25, %v3352_v24 }
 0x1de   : > { %v3355_v28 = vpop.f32.mrf.mxu0 }
 0x1df   : > { %v3375_v29 = vpop.f32.mrf.mxu1  ;;  %v2763_v30 = vadd.f32 %v3354_v27, %v2723_v22 }
 0x1e0   : > { %v3376_v31 = vadd.f32 %v3375_v29, %v3374_v26  ;;  %v3356_v32 = vpop.f32.mrf.mxu0 }
 0x1e1   : > { %v3377_v33 = vpop.f32.mrf.mxu1 }
 0x1e2   : > { %v2803_v34 = vadd.f32 %v3376_v31, %v2763_v30 }
 0x1e3   : > { %v3378_v35 = vpop.f32.mrf.mxu1 }
 0x1fa   : > { %v3396_v36 = vpop.f32.mrf.mxu0 }
 0x1fc   : > { %v3397_v37 = vpop.f32.mrf.mxu0 }
 0x1fd   : > { %v3418_v38 = vpop.f32.mrf.mxu1  ;;  %v3398_v52 = vadd.f32 %v3397_v37, %v3396_v36 }
 0x1fe   : > { %v3399_v39 = vpop.f32.mrf.mxu0 }
 0x1ff   : > { %v3419_v40 = vpop.f32.mrf.mxu1  ;;  %v2843_v53 = vadd.f32 %v3398_v52, %v2803_v34 }
 0x200   : > { %v3400_v41 = vpop.f32.mrf.mxu0  ;;  %v3420_v54 = vadd.f32 %v3419_v40, %v3418_v38 }
 0x201   : > { %v3421_v42 = vpop.f32.mrf.mxu1 }
 0x202   : > { %v2883_v56 = vadd.f32 %v3420_v54, %v2843_v53 }
 0x203   : > { %v3422_v43 = vpop.f32.mrf.mxu1 }
 0x21a   : > { %v3440_v44 = vpop.f32.mrf.mxu0 }
 0x21c   : > { %v3441_v45 = vpop.f32.mrf.mxu0 }
 0x21d   : > { %v3462_v46 = vpop.f32.mrf.mxu1  ;;  %v3442_v55 = vadd.f32 %v3441_v45, %v3440_v44 }
 0x21e   : > { %v3443_v47 = vpop.f32.mrf.mxu0 }
 0x21f   : > { %v3463_v48 = vpop.f32.mrf.mxu1  ;;  %v2923_v57 = vadd.f32 %v3442_v55, %v2883_v56 }
 0x220   : > { %v3444_v49 = vpop.f32.mrf.mxu0  ;;  %v3464_v58 = vadd.f32 %v3463_v48, %v3462_v46 }
 0x221   : > { %v3465_v50 = vpop.f32.mrf.mxu1 }
 0x222   : > { %v2963_v61 = vadd.f32 %v3464_v58, %v2923_v57 }
 0x223   : > { %v3466_v51 = vpop.f32.mrf.mxu1 }
 0x23a   : > { %v3484_v59 = vpop.f32.mrf.mxu0 }
 0x23c   : > { %v3485_v60 = vpop.f32.mrf.mxu0 }
 0x23d   : > { %v3486_v62 = vadd.f32 %v3485_v60, %v3484_v59 }
 0x23e   : > { %v3487_v63 = vpop.f32.mrf.mxu0 }
 0x23f   : > { %v3003_v0 = vadd.f32 %v3486_v62, %v2963_v61 }
 0x240   : > { %v3488_v1 = vpop.f32.mrf.mxu0 }
 0x241   : > { %v3008_v2 = vmax.f32 %v3003_v0, 0.0 }
 0x243   : > { %v3009_v3 = vpack.c.bf16 %v3008_v2, %v3008_v2 }
 0x245   : > { %3010 = vst [vmem:[%s1415_s7] sm:$0xf] %v3009_v3 }
 0x246 PF: > { %s13_s16 = sadd.s32 1, %s3732_s16   ;;  %s4626_s12 = smov %s3720_s13 }
 0x247   : > { %p10_p10 = scmp.ge.s32.totalorder %s13_s16, 4   ;;  %s4627_s13 = smov %s3789_s20 }
 0x248   : > { %s4628_s14 = smov %s3728_s15  ;;  %s4629_s15 = smov %s4631_s17 }
 0x249   :  { %12 = sbr.rel (!%p10_p10) target bundleno = 3 (0x3), region = 114 }

</bundles_post_ra>
